<compile_context>
chip_gen: v7x
topology: tpu7x:2x2x1
jax: 0.10.0
libtpu: 0.0.40
codegen_flags: <defaults>
</compile_context>

<pallas_src>
import jax
import jax.numpy as jnp
from jax.experimental import pallas as pl
from jax.experimental.pallas import tpu as pltpu

HID = 512       # hidden width of every Linear
PLANES = 512    # self.planes
LAYERS = 2      # self.layers
N_PRELU = 4 + LAYERS


def _prelu(v, alpha):
    return jnp.where(v >= 0, v, alpha * v)


def mapping_kernel(x_ref,
                   w0, b0, a0, w1, b1, a1, w2, b2, a2, w3, b3, a3,  # mlp_in
                   wba, bba, aba,                                   # fused branch layer 1
                   wb0, bb0, wb1, bb1,                              # branch second Linears
                   out_ref):                                        # (TB, 4*PLANES) f32
    # mlp_in: 4 x (Linear -> PReLU), bf16 MXU operands, f32 accumulate.
    h = x_ref[...].astype(jnp.float32)
    for w, b, a in ((w0, b0, a0), (w1, b1, a1), (w2, b2, a2), (w3, b3, a3)):
        z = jnp.dot(h.astype(jnp.bfloat16), w[...],
                    preferred_element_type=jnp.float32) + b[...]
        h = _prelu(z, a[...])

    # Fused first layer of both mlp_out branches: (TB,512) @ (512,1024).
    t = jnp.dot(h.astype(jnp.bfloat16), wba[...],
                preferred_element_type=jnp.float32) + bba[...]
    t = _prelu(t, aba[...])          # per-column alpha row (1, 1024)
    t16 = t.astype(jnp.bfloat16)

    # Second Linear of each branch (different LHS slices -> two matmuls),
    # sigmoid, and one contiguous 2048-lane output slab.
    u0 = jnp.dot(t16[:, :HID], wb0[...], preferred_element_type=jnp.float32) + bb0[...]
    u1 = jnp.dot(t16[:, HID:], wb1[...], preferred_element_type=jnp.float32) + bb1[...]
    out_ref[:, :2 * PLANES] = jax.nn.sigmoid(u0)
    out_ref[:, 2 * PLANES:] = jax.nn.sigmoid(u1)


def init_params(key, in_dim):
    """Deterministic f32 params mirroring the PyTorch __init__.

    Linear weights: kaiming_normal_ (fan_in, a=0) -> std = sqrt(2 / fan_in)
    Linear biases : 0
    PReLU alphas  : default 0.25
    Weights are stored (in, out) so everything computes x @ W + b.
    """
    keys = jax.random.split(key, 8)

    def kaiming(k, fan_in, fan_out):
        std = (2.0 / fan_in) ** 0.5
        return std * jax.random.normal(k, (fan_in, fan_out), dtype=jnp.float32)

    params = {}
    dims = [(in_dim, HID), (HID, HID), (HID, HID), (HID, HID)]
    params["in_w"] = [kaiming(keys[i], *dims[i]) for i in range(4)]
    params["in_b"] = [jnp.zeros((1, HID), jnp.float32) for _ in range(4)]
    params["out_w"] = []
    params["out_b"] = []
    for li in range(LAYERS):
        w1 = kaiming(keys[4 + 2 * li], HID, HID)
        w2 = kaiming(keys[5 + 2 * li], HID, PLANES * 2)
        params["out_w"].append((w1, w2))
        params["out_b"].append((jnp.zeros((1, HID), jnp.float32),
                                jnp.zeros((1, PLANES * 2), jnp.float32)))
    params["alphas"] = jnp.full((N_PRELU,), 0.25, jnp.float32)
    return params


def pack_params(params):
    """Kernel operands: bf16 weights, f32 bias/alpha rows, fused branch layer 1."""
    p = {}
    p["in_w"] = [w.astype(jnp.bfloat16) for w in params["in_w"]]
    p["in_b"] = [b.astype(jnp.float32) for b in params["in_b"]]
    p["in_a"] = [jnp.full((1, HID), params["alphas"][i], jnp.float32) for i in range(4)]

    # Fuse the two branches' first Linear along the output axis.
    p["br_wa"] = jnp.concatenate(
        [params["out_w"][0][0], params["out_w"][1][0]], axis=1).astype(jnp.bfloat16)
    p["br_ba"] = jnp.concatenate(
        [params["out_b"][0][0], params["out_b"][1][0]], axis=1).astype(jnp.float32)
    p["br_aa"] = jnp.concatenate(
        [jnp.full((1, HID), params["alphas"][4], jnp.float32),
         jnp.full((1, HID), params["alphas"][5], jnp.float32)], axis=1)

    p["br_wb"] = [params["out_w"][li][1].astype(jnp.bfloat16) for li in range(LAYERS)]
    p["br_bb"] = [params["out_b"][li][1].astype(jnp.float32) for li in range(LAYERS)]
    return p


def mapping_forward(packed, x):
    B, in_dim = x.shape

    # Batch tiling: weights stay VMEM-resident; activation/output tiles are
    # pipelined and the batch axis is "parallel" (megacore sharding on v7x).
    if B <= 256:
        TB, Bp = B, B
    else:
        TB = 256
        Bp = ((B + TB - 1) // TB) * TB
        if Bp != B:
            x = jnp.pad(x, ((0, Bp - B), (0, 0)))
    grid = (Bp // TB,)

    def resident(arr):
        return pl.BlockSpec(arr.shape, lambda i: (0, 0))

    operands = [x]
    in_specs = [pl.BlockSpec((TB, in_dim), lambda i: (i, 0))]
    flat = []
    for li in range(4):
        flat += [packed["in_w"][li], packed["in_b"][li], packed["in_a"][li]]
    flat += [packed["br_wa"], packed["br_ba"], packed["br_aa"]]
    flat += [packed["br_wb"][0], packed["br_bb"][0],
             packed["br_wb"][1], packed["br_bb"][1]]
    for a in flat:
        operands.append(a)
        in_specs.append(resident(a))

    out = pl.pallas_call(
        mapping_kernel,
        out_shape=jax.ShapeDtypeStruct((Bp, 4 * PLANES), jnp.float32),
        grid=grid,
        in_specs=in_specs,
        out_specs=pl.BlockSpec((TB, 4 * PLANES), lambda i: (i, 0)),
        compiler_params=pltpu.CompilerParams(
            dimension_semantics=("parallel",),
            vmem_limit_bytes=32 << 20),
    )(*operands)

    out = out[:B]

    # Match torch: .view(B, -1, 1, 1) then chunk(2, dim=1) -> list of lists.
    def to4d(a):
        return a.reshape(B, PLANES, 1, 1)

    s_list = []
    for li in range(LAYERS):
        br = out[:, li * 2 * PLANES:(li + 1) * 2 * PLANES]
        s_list.append([to4d(br[:, :PLANES]), to4d(br[:, PLANES:])])
    return s_list


def mapping_ref(params, x):
    """Pure-JAX reference with the same bf16-weight / f32-accumulate recipe."""
    def dot16(a, w):
        return jnp.dot(a.astype(jnp.bfloat16), w.astype(jnp.bfloat16),
                       preferred_element_type=jnp.float32)

    h = x.astype(jnp.float32)
    for i, (w, b) in enumerate(zip(params["in_w"], params["in_b"])):
        h = _prelu(dot16(h, w) + b, params["alphas"][i])
    s_list = []
    for li in range(LAYERS):
        w1, w2 = params["out_w"][li]
        b1, b2 = params["out_b"][li]
        t = _prelu(dot16(h, w1) + b1, params["alphas"][4 + li])
        s = jax.nn.sigmoid(dot16(t, w2) + b2)
        s = s.reshape(x.shape[0], -1, 1, 1)
        s_list.append([s[:, :PLANES], s[:, PLANES:]])
    return s_list


if __name__ == "__main__":
    B, IN_DIM = 2, 32
    key = jax.random.PRNGKey(0)
    kp, kx = jax.random.split(key)
    params = init_params(kp, IN_DIM)
    packed = pack_params(params)
    x = jax.random.normal(kx, (B, IN_DIM), dtype=jnp.float32)

    out = mapping_forward(packed, x)
    jax.block_until_ready(out)

    ref = mapping_ref(params, x)
    for li in range(LAYERS):
        for ci in range(2):
            assert out[li][ci].shape == (B, PLANES, 1, 1)
            err = float(jnp.max(jnp.abs(out[li][ci] - ref[li][ci])))
            assert jnp.allclose(out[li][ci], ref[li][ci], atol=2e-3, rtol=2e-3), err

    print("KERNEL_OK")
</pallas_src>

<mosaic_0001>
module attributes {stable_mosaic.version = 11 : i64} {
  func.func @mapping_kernel(%arg0: i32, %arg1: memref<2x32xf32, #tpu.memory_space<vmem>>, %arg2: memref<32x512xbf16, #tpu.memory_space<vmem>>, %arg3: memref<1x512xf32, #tpu.memory_space<vmem>>, %arg4: memref<1x512xf32, #tpu.memory_space<vmem>>, %arg5: memref<512x512xbf16, #tpu.memory_space<vmem>>, %arg6: memref<1x512xf32, #tpu.memory_space<vmem>>, %arg7: memref<1x512xf32, #tpu.memory_space<vmem>>, %arg8: memref<512x512xbf16, #tpu.memory_space<vmem>>, %arg9: memref<1x512xf32, #tpu.memory_space<vmem>>, %arg10: memref<1x512xf32, #tpu.memory_space<vmem>>, %arg11: memref<512x512xbf16, #tpu.memory_space<vmem>>, %arg12: memref<1x512xf32, #tpu.memory_space<vmem>>, %arg13: memref<1x512xf32, #tpu.memory_space<vmem>>, %arg14: memref<512x1024xbf16, #tpu.memory_space<vmem>>, %arg15: memref<1x1024xf32, #tpu.memory_space<vmem>>, %arg16: memref<1x1024xf32, #tpu.memory_space<vmem>>, %arg17: memref<512x1024xbf16, #tpu.memory_space<vmem>>, %arg18: memref<1x1024xf32, #tpu.memory_space<vmem>>, %arg19: memref<512x1024xbf16, #tpu.memory_space<vmem>>, %arg20: memref<1x1024xf32, #tpu.memory_space<vmem>>, %arg21: memref<2x2048xf32, #tpu.memory_space<vmem>>) attributes {dimension_semantics = [#tpu.dimension_semantics<parallel>], iteration_bounds = array<i64: 1>, scalar_prefetch = 0 : i64, scratch_operands = 0 : i64, tpu.core_type = #tpu.core_type<tc>, window_params = [{transform_indices = @transform_0, window_bounds = array<i64: 2, 32>}, {pipeline_mode = #tpu.pipeline_mode<synchronous>, transform_indices = @transform_1, window_bounds = array<i64: 32, 512>}, {pipeline_mode = #tpu.pipeline_mode<synchronous>, transform_indices = @transform_2, window_bounds = array<i64: 1, 512>}, {pipeline_mode = #tpu.pipeline_mode<synchronous>, transform_indices = @transform_3, window_bounds = array<i64: 1, 512>}, {pipeline_mode = #tpu.pipeline_mode<synchronous>, transform_indices = @transform_4, window_bounds = array<i64: 512, 512>}, {pipeline_mode = #tpu.pipeline_mode<synchronous>, transform_indices = @transform_5, window_bounds = array<i64: 1, 512>}, {pipeline_mode = #tpu.pipeline_mode<synchronous>, transform_indices = @transform_6, window_bounds = array<i64: 1, 512>}, {pipeline_mode = #tpu.pipeline_mode<synchronous>, transform_indices = @transform_7, window_bounds = array<i64: 512, 512>}, {pipeline_mode = #tpu.pipeline_mode<synchronous>, transform_indices = @transform_8, window_bounds = array<i64: 1, 512>}, {pipeline_mode = #tpu.pipeline_mode<synchronous>, transform_indices = @transform_9, window_bounds = array<i64: 1, 512>}, {pipeline_mode = #tpu.pipeline_mode<synchronous>, transform_indices = @transform_10, window_bounds = array<i64: 512, 512>}, {pipeline_mode = #tpu.pipeline_mode<synchronous>, transform_indices = @transform_11, window_bounds = array<i64: 1, 512>}, {pipeline_mode = #tpu.pipeline_mode<synchronous>, transform_indices = @transform_12, window_bounds = array<i64: 1, 512>}, {pipeline_mode = #tpu.pipeline_mode<synchronous>, transform_indices = @transform_13, window_bounds = array<i64: 512, 1024>}, {pipeline_mode = #tpu.pipeline_mode<synchronous>, transform_indices = @transform_14, window_bounds = array<i64: 1, 1024>}, {pipeline_mode = #tpu.pipeline_mode<synchronous>, transform_indices = @transform_15, window_bounds = array<i64: 1, 1024>}, {pipeline_mode = #tpu.pipeline_mode<synchronous>, transform_indices = @transform_16, window_bounds = array<i64: 512, 1024>}, {pipeline_mode = #tpu.pipeline_mode<synchronous>, transform_indices = @transform_17, window_bounds = array<i64: 1, 1024>}, {pipeline_mode = #tpu.pipeline_mode<synchronous>, transform_indices = @transform_18, window_bounds = array<i64: 512, 1024>}, {pipeline_mode = #tpu.pipeline_mode<synchronous>, transform_indices = @transform_19, window_bounds = array<i64: 1, 1024>}, {transform_indices = @transform_20, window_bounds = array<i64: 2, 2048>}]} {
    %c0 = arith.constant 0 : index
    %c0_0 = arith.constant 0 : index
    %0 = vector.load %arg1[%c0, %c0_0] : memref<2x32xf32, #tpu.memory_space<vmem>>, vector<2x32xf32>
    %1 = arith.truncf %0 : vector<2x32xf32> to vector<2x32xbf16>
    %c0_1 = arith.constant 0 : index
    %c0_2 = arith.constant 0 : index
    %2 = vector.load %arg2[%c0_1, %c0_2] : memref<32x512xbf16, #tpu.memory_space<vmem>>, vector<32x512xbf16>
    %cst = arith.constant dense<0.000000e+00> : vector<2x512xf32>
    %3 = tpu.matmul %1, %2, %cst {dimension_numbers = #tpu.dot_dimension_numbers<[1], [0], [0], [1], [0, 0, 1, 1], [], []>} : vector<2x32xbf16>, vector<32x512xbf16>, vector<2x512xf32> -> vector<2x512xf32>
    %c0_3 = arith.constant 0 : index
    %c0_4 = arith.constant 0 : index
    %4 = vector.load %arg3[%c0_3, %c0_4] : memref<1x512xf32, #tpu.memory_space<vmem>>, vector<1x512xf32>
    %5 = vector.broadcast %4 : vector<1x512xf32> to vector<2x512xf32>
    %6 = arith.addf %3, %5 : vector<2x512xf32>
    %c0_5 = arith.constant 0 : index
    %c0_6 = arith.constant 0 : index
    %7 = vector.load %arg4[%c0_5, %c0_6] : memref<1x512xf32, #tpu.memory_space<vmem>>, vector<1x512xf32>
    %cst_7 = arith.constant 0.000000e+00 : f32
    %8 = vector.broadcast %cst_7 : f32 to vector<2x512xf32>
    %9 = arith.cmpf oge, %6, %8 : vector<2x512xf32>
    %10 = vector.broadcast %7 : vector<1x512xf32> to vector<2x512xf32>
    %11 = arith.mulf %10, %6 : vector<2x512xf32>
    %12 = arith.select %9, %6, %11 : vector<2x512xi1>, vector<2x512xf32>
    %13 = arith.truncf %12 : vector<2x512xf32> to vector<2x512xbf16>
    %c0_8 = arith.constant 0 : index
    %c0_9 = arith.constant 0 : index
    %14 = vector.load %arg5[%c0_8, %c0_9] : memref<512x512xbf16, #tpu.memory_space<vmem>>, vector<512x512xbf16>
    %cst_10 = arith.constant dense<0.000000e+00> : vector<2x512xf32>
    %15 = tpu.matmul %13, %14, %cst_10 {dimension_numbers = #tpu.dot_dimension_numbers<[1], [0], [0], [1], [0, 0, 1, 1], [], []>} : vector<2x512xbf16>, vector<512x512xbf16>, vector<2x512xf32> -> vector<2x512xf32>
    %c0_11 = arith.constant 0 : index
    %c0_12 = arith.constant 0 : index
    %16 = vector.load %arg6[%c0_11, %c0_12] : memref<1x512xf32, #tpu.memory_space<vmem>>, vector<1x512xf32>
    %17 = vector.broadcast %16 : vector<1x512xf32> to vector<2x512xf32>
    %18 = arith.addf %15, %17 : vector<2x512xf32>
    %c0_13 = arith.constant 0 : index
    %c0_14 = arith.constant 0 : index
    %19 = vector.load %arg7[%c0_13, %c0_14] : memref<1x512xf32, #tpu.memory_space<vmem>>, vector<1x512xf32>
    %cst_15 = arith.constant 0.000000e+00 : f32
    %20 = vector.broadcast %cst_15 : f32 to vector<2x512xf32>
    %21 = arith.cmpf oge, %18, %20 : vector<2x512xf32>
    %22 = vector.broadcast %19 : vector<1x512xf32> to vector<2x512xf32>
    %23 = arith.mulf %22, %18 : vector<2x512xf32>
    %24 = arith.select %21, %18, %23 : vector<2x512xi1>, vector<2x512xf32>
    %25 = arith.truncf %24 : vector<2x512xf32> to vector<2x512xbf16>
    %c0_16 = arith.constant 0 : index
    %c0_17 = arith.constant 0 : index
    %26 = vector.load %arg8[%c0_16, %c0_17] : memref<512x512xbf16, #tpu.memory_space<vmem>>, vector<512x512xbf16>
    %cst_18 = arith.constant dense<0.000000e+00> : vector<2x512xf32>
    %27 = tpu.matmul %25, %26, %cst_18 {dimension_numbers = #tpu.dot_dimension_numbers<[1], [0], [0], [1], [0, 0, 1, 1], [], []>} : vector<2x512xbf16>, vector<512x512xbf16>, vector<2x512xf32> -> vector<2x512xf32>
    %c0_19 = arith.constant 0 : index
    %c0_20 = arith.constant 0 : index
    %28 = vector.load %arg9[%c0_19, %c0_20] : memref<1x512xf32, #tpu.memory_space<vmem>>, vector<1x512xf32>
    %29 = vector.broadcast %28 : vector<1x512xf32> to vector<2x512xf32>
    %30 = arith.addf %27, %29 : vector<2x512xf32>
    %c0_21 = arith.constant 0 : index
    %c0_22 = arith.constant 0 : index
    %31 = vector.load %arg10[%c0_21, %c0_22] : memref<1x512xf32, #tpu.memory_space<vmem>>, vector<1x512xf32>
    %cst_23 = arith.constant 0.000000e+00 : f32
    %32 = vector.broadcast %cst_23 : f32 to vector<2x512xf32>
    %33 = arith.cmpf oge, %30, %32 : vector<2x512xf32>
    %34 = vector.broadcast %31 : vector<1x512xf32> to vector<2x512xf32>
    %35 = arith.mulf %34, %30 : vector<2x512xf32>
    %36 = arith.select %33, %30, %35 : vector<2x512xi1>, vector<2x512xf32>
    %37 = arith.truncf %36 : vector<2x512xf32> to vector<2x512xbf16>
    %c0_24 = arith.constant 0 : index
    %c0_25 = arith.constant 0 : index
    %38 = vector.load %arg11[%c0_24, %c0_25] : memref<512x512xbf16, #tpu.memory_space<vmem>>, vector<512x512xbf16>
    %cst_26 = arith.constant dense<0.000000e+00> : vector<2x512xf32>
    %39 = tpu.matmul %37, %38, %cst_26 {dimension_numbers = #tpu.dot_dimension_numbers<[1], [0], [0], [1], [0, 0, 1, 1], [], []>} : vector<2x512xbf16>, vector<512x512xbf16>, vector<2x512xf32> -> vector<2x512xf32>
    %c0_27 = arith.constant 0 : index
    %c0_28 = arith.constant 0 : index
    %40 = vector.load %arg12[%c0_27, %c0_28] : memref<1x512xf32, #tpu.memory_space<vmem>>, vector<1x512xf32>
    %41 = vector.broadcast %40 : vector<1x512xf32> to vector<2x512xf32>
    %42 = arith.addf %39, %41 : vector<2x512xf32>
    %c0_29 = arith.constant 0 : index
    %c0_30 = arith.constant 0 : index
    %43 = vector.load %arg13[%c0_29, %c0_30] : memref<1x512xf32, #tpu.memory_space<vmem>>, vector<1x512xf32>
    %cst_31 = arith.constant 0.000000e+00 : f32
    %44 = vector.broadcast %cst_31 : f32 to vector<2x512xf32>
    %45 = arith.cmpf oge, %42, %44 : vector<2x512xf32>
    %46 = vector.broadcast %43 : vector<1x512xf32> to vector<2x512xf32>
    %47 = arith.mulf %46, %42 : vector<2x512xf32>
    %48 = arith.select %45, %42, %47 : vector<2x512xi1>, vector<2x512xf32>
    %49 = arith.truncf %48 : vector<2x512xf32> to vector<2x512xbf16>
    %c0_32 = arith.constant 0 : index
    %c0_33 = arith.constant 0 : index
    %50 = vector.load %arg14[%c0_32, %c0_33] : memref<512x1024xbf16, #tpu.memory_space<vmem>>, vector<512x1024xbf16>
    %cst_34 = arith.constant dense<0.000000e+00> : vector<2x1024xf32>
    %51 = tpu.matmul %49, %50, %cst_34 {dimension_numbers = #tpu.dot_dimension_numbers<[1], [0], [0], [1], [0, 0, 1, 1], [], []>} : vector<2x512xbf16>, vector<512x1024xbf16>, vector<2x1024xf32> -> vector<2x1024xf32>
    %c0_35 = arith.constant 0 : index
    %c0_36 = arith.constant 0 : index
    %52 = vector.load %arg15[%c0_35, %c0_36] : memref<1x1024xf32, #tpu.memory_space<vmem>>, vector<1x1024xf32>
    %53 = vector.broadcast %52 : vector<1x1024xf32> to vector<2x1024xf32>
    %54 = arith.addf %51, %53 : vector<2x1024xf32>
    %c0_37 = arith.constant 0 : index
    %c0_38 = arith.constant 0 : index
    %55 = vector.load %arg16[%c0_37, %c0_38] : memref<1x1024xf32, #tpu.memory_space<vmem>>, vector<1x1024xf32>
    %cst_39 = arith.constant 0.000000e+00 : f32
    %56 = vector.broadcast %cst_39 : f32 to vector<2x1024xf32>
    %57 = arith.cmpf oge, %54, %56 : vector<2x1024xf32>
    %58 = vector.broadcast %55 : vector<1x1024xf32> to vector<2x1024xf32>
    %59 = arith.mulf %58, %54 : vector<2x1024xf32>
    %60 = arith.select %57, %54, %59 : vector<2x1024xi1>, vector<2x1024xf32>
    %61 = arith.truncf %60 : vector<2x1024xf32> to vector<2x1024xbf16>
    %62 = vector.extract_strided_slice %61 {offsets = [0, 0], sizes = [2, 512], strides = [1, 1]} : vector<2x1024xbf16> to vector<2x512xbf16>
    %c0_40 = arith.constant 0 : index
    %c0_41 = arith.constant 0 : index
    %63 = vector.load %arg17[%c0_40, %c0_41] : memref<512x1024xbf16, #tpu.memory_space<vmem>>, vector<512x1024xbf16>
    %cst_42 = arith.constant dense<0.000000e+00> : vector<2x1024xf32>
    %64 = tpu.matmul %62, %63, %cst_42 {dimension_numbers = #tpu.dot_dimension_numbers<[1], [0], [0], [1], [0, 0, 1, 1], [], []>} : vector<2x512xbf16>, vector<512x1024xbf16>, vector<2x1024xf32> -> vector<2x1024xf32>
    %c0_43 = arith.constant 0 : index
    %c0_44 = arith.constant 0 : index
    %65 = vector.load %arg18[%c0_43, %c0_44] : memref<1x1024xf32, #tpu.memory_space<vmem>>, vector<1x1024xf32>
    %66 = vector.broadcast %65 : vector<1x1024xf32> to vector<2x1024xf32>
    %67 = arith.addf %64, %66 : vector<2x1024xf32>
    %68 = vector.extract_strided_slice %61 {offsets = [0, 512], sizes = [2, 512], strides = [1, 1]} : vector<2x1024xbf16> to vector<2x512xbf16>
    %c0_45 = arith.constant 0 : index
    %c0_46 = arith.constant 0 : index
    %69 = vector.load %arg19[%c0_45, %c0_46] : memref<512x1024xbf16, #tpu.memory_space<vmem>>, vector<512x1024xbf16>
    %cst_47 = arith.constant dense<0.000000e+00> : vector<2x1024xf32>
    %70 = tpu.matmul %68, %69, %cst_47 {dimension_numbers = #tpu.dot_dimension_numbers<[1], [0], [0], [1], [0, 0, 1, 1], [], []>} : vector<2x512xbf16>, vector<512x1024xbf16>, vector<2x1024xf32> -> vector<2x1024xf32>
    %c0_48 = arith.constant 0 : index
    %c0_49 = arith.constant 0 : index
    %71 = vector.load %arg20[%c0_48, %c0_49] : memref<1x1024xf32, #tpu.memory_space<vmem>>, vector<1x1024xf32>
    %72 = vector.broadcast %71 : vector<1x1024xf32> to vector<2x1024xf32>
    %73 = arith.addf %70, %72 : vector<2x1024xf32>
    %74 = arith.negf %67 : vector<2x1024xf32>
    %75 = math.exp %74 : vector<2x1024xf32>
    %cst_50 = arith.constant 1.000000e+00 : f32
    %76 = vector.broadcast %cst_50 : f32 to vector<2x1024xf32>
    %77 = arith.addf %76, %75 : vector<2x1024xf32>
    %78 = arith.divf %76, %77 : vector<2x1024xf32>
    %c0_51 = arith.constant 0 : index
    %c0_52 = arith.constant 0 : index
    %79 = vector.load %arg21[%c0_51, %c0_52] : memref<2x2048xf32, #tpu.memory_space<vmem>>, vector<2x1024xf32>
    tpu.vector_store %arg21[%c0_51, %c0_52], %78 {strides = array<i32>} : memref<2x2048xf32, #tpu.memory_space<vmem>>, vector<2x1024xf32>,
    %80 = arith.negf %73 : vector<2x1024xf32>
    %81 = math.exp %80 : vector<2x1024xf32>
    %cst_53 = arith.constant 1.000000e+00 : f32
    %82 = vector.broadcast %cst_53 : f32 to vector<2x1024xf32>
    %83 = arith.addf %82, %81 : vector<2x1024xf32>
    %84 = arith.divf %82, %83 : vector<2x1024xf32>
    %c0_54 = arith.constant 0 : index
    %c1024 = arith.constant 1024 : index
    %85 = vector.load %arg21[%c0_54, %c1024] : memref<2x2048xf32, #tpu.memory_space<vmem>>, vector<2x1024xf32>
    tpu.vector_store %arg21[%c0_54, %c1024], %84 {strides = array<i32>} : memref<2x2048xf32, #tpu.memory_space<vmem>>, vector<2x1024xf32>,
    return
  }
  func.func @transform_0(%arg0: i32) -> (i32, i32) {
    %c0_i32 = arith.constant 0 : i32
    %c0_i32_0 = arith.constant 0 : i32
    return %arg0, %c0_i32 : i32, i32
  }
  func.func @transform_1(%arg0: i32) -> (i32, i32) {
    %c0_i32 = arith.constant 0 : i32
    %c0_i32_0 = arith.constant 0 : i32
    %c0_i32_1 = arith.constant 0 : i32
    return %c0_i32, %c0_i32_0 : i32, i32
  }
  func.func @transform_2(%arg0: i32) -> (i32, i32) {
    %c0_i32 = arith.constant 0 : i32
    %c0_i32_0 = arith.constant 0 : i32
    %c0_i32_1 = arith.constant 0 : i32
    return %c0_i32, %c0_i32_0 : i32, i32
  }
  func.func @transform_3(%arg0: i32) -> (i32, i32) {
    %c0_i32 = arith.constant 0 : i32
    %c0_i32_0 = arith.constant 0 : i32
    %c0_i32_1 = arith.constant 0 : i32
    return %c0_i32, %c0_i32_0 : i32, i32
  }
  func.func @transform_4(%arg0: i32) -> (i32, i32) {
    %c0_i32 = arith.constant 0 : i32
    %c0_i32_0 = arith.constant 0 : i32
    %c0_i32_1 = arith.constant 0 : i32
    return %c0_i32, %c0_i32_0 : i32, i32
  }
  func.func @transform_5(%arg0: i32) -> (i32, i32) {
    %c0_i32 = arith.constant 0 : i32
    %c0_i32_0 = arith.constant 0 : i32
    %c0_i32_1 = arith.constant 0 : i32
    return %c0_i32, %c0_i32_0 : i32, i32
  }
  func.func @transform_6(%arg0: i32) -> (i32, i32) {
    %c0_i32 = arith.constant 0 : i32
    %c0_i32_0 = arith.constant 0 : i32
    %c0_i32_1 = arith.constant 0 : i32
    return %c0_i32, %c0_i32_0 : i32, i32
  }
  func.func @transform_7(%arg0: i32) -> (i32, i32) {
    %c0_i32 = arith.constant 0 : i32
    %c0_i32_0 = arith.constant 0 : i32
    %c0_i32_1 = arith.constant 0 : i32
    return %c0_i32, %c0_i32_0 : i32, i32
  }
  func.func @transform_8(%arg0: i32) -> (i32, i32) {
    %c0_i32 = arith.constant 0 : i32
    %c0_i32_0 = arith.constant 0 : i32
    %c0_i32_1 = arith.constant 0 : i32
    return %c0_i32, %c0_i32_0 : i32, i32
  }
  func.func @transform_9(%arg0: i32) -> (i32, i32) {
    %c0_i32 = arith.constant 0 : i32
    %c0_i32_0 = arith.constant 0 : i32
    %c0_i32_1 = arith.constant 0 : i32
    return %c0_i32, %c0_i32_0 : i32, i32
  }
  func.func @transform_10(%arg0: i32) -> (i32, i32) {
    %c0_i32 = arith.constant 0 : i32
    %c0_i32_0 = arith.constant 0 : i32
    %c0_i32_1 = arith.constant 0 : i32
    return %c0_i32, %c0_i32_0 : i32, i32
  }
  func.func @transform_11(%arg0: i32) -> (i32, i32) {
    %c0_i32 = arith.constant 0 : i32
    %c0_i32_0 = arith.constant 0 : i32
    %c0_i32_1 = arith.constant 0 : i32
    return %c0_i32, %c0_i32_0 : i32, i32
  }
  func.func @transform_12(%arg0: i32) -> (i32, i32) {
    %c0_i32 = arith.constant 0 : i32
    %c0_i32_0 = arith.constant 0 : i32
    %c0_i32_1 = arith.constant 0 : i32
    return %c0_i32, %c0_i32_0 : i32, i32
  }
  func.func @transform_13(%arg0: i32) -> (i32, i32) {
    %c0_i32 = arith.constant 0 : i32
    %c0_i32_0 = arith.constant 0 : i32
    %c0_i32_1 = arith.constant 0 : i32
    return %c0_i32, %c0_i32_0 : i32, i32
  }
  func.func @transform_14(%arg0: i32) -> (i32, i32) {
    %c0_i32 = arith.constant 0 : i32
    %c0_i32_0 = arith.constant 0 : i32
    %c0_i32_1 = arith.constant 0 : i32
    return %c0_i32, %c0_i32_0 : i32, i32
  }
  func.func @transform_15(%arg0: i32) -> (i32, i32) {
    %c0_i32 = arith.constant 0 : i32
    %c0_i32_0 = arith.constant 0 : i32
    %c0_i32_1 = arith.constant 0 : i32
    return %c0_i32, %c0_i32_0 : i32, i32
  }
  func.func @transform_16(%arg0: i32) -> (i32, i32) {
    %c0_i32 = arith.constant 0 : i32
    %c0_i32_0 = arith.constant 0 : i32
    %c0_i32_1 = arith.constant 0 : i32
    return %c0_i32, %c0_i32_0 : i32, i32
  }
  func.func @transform_17(%arg0: i32) -> (i32, i32) {
    %c0_i32 = arith.constant 0 : i32
    %c0_i32_0 = arith.constant 0 : i32
    %c0_i32_1 = arith.constant 0 : i32
    return %c0_i32, %c0_i32_0 : i32, i32
  }
  func.func @transform_18(%arg0: i32) -> (i32, i32) {
    %c0_i32 = arith.constant 0 : i32
    %c0_i32_0 = arith.constant 0 : i32
    %c0_i32_1 = arith.constant 0 : i32
    return %c0_i32, %c0_i32_0 : i32, i32
  }
  func.func @transform_19(%arg0: i32) -> (i32, i32) {
    %c0_i32 = arith.constant 0 : i32
    %c0_i32_0 = arith.constant 0 : i32
    %c0_i32_1 = arith.constant 0 : i32
    return %c0_i32, %c0_i32_0 : i32, i32
  }
  func.func @transform_20(%arg0: i32) -> (i32, i32) {
    %c0_i32 = arith.constant 0 : i32
    %c0_i32_0 = arith.constant 0 : i32
    return %arg0, %c0_i32 : i32, i32
  }
}

</mosaic_0001>

<bundles_post_ra>
// kernel: tpu_custom_call.1
= control target key start
LH: loop header
LB: loop body
LE: loop exit
PB: predicated region body
PF: predicated region fallthrough
CT: control target
= control target key end

     0   :  { %s12333_s0 = inlined_call_operand.hbm [shape: f32[2,32], index: 0, kind: input, shape index: {}]   ;;  %s12334_s1 = inlined_call_operand.hbm [shape: bf16[32,512], index: 1, kind: input, shape index: {}]   ;;  %s12335_s2 = inlined_call_operand.hbm [shape: f32[1,512], index: 2, kind: input, shape index: {}]   ;;  %s12336_s3 = inlined_call_operand.hbm [shape: f32[1,512], index: 3, kind: input, shape index: {}]   ;;  %s12337_s4 = inlined_call_operand.hbm [shape: bf16[512,512], index: 4, kind: input, shape index: {}]   ;;  %s12338_s5 = inlined_call_operand.hbm [shape: f32[1,512], index: 5, kind: input, shape index: {}]   ;;  %s12339_s6 = inlined_call_operand.hbm [shape: f32[1,512], index: 6, kind: input, shape index: {}]   ;;  %s12340_s7 = inlined_call_operand.hbm [shape: bf16[512,512], index: 7, kind: input, shape index: {}]   ;;  %s12341_s8 = inlined_call_operand.hbm [shape: f32[1,512], index: 8, kind: input, shape index: {}]   ;;  %s12342_s9 = inlined_call_operand.hbm [shape: f32[1,512], index: 9, kind: input, shape index: {}]   ;;  %s12343_s10 = inlined_call_operand.hbm [shape: bf16[512,512], index: 10, kind: input, shape index: {}]   ;;  %s12344_s11 = inlined_call_operand.vmem [shape: f32[1,512], index: 11, kind: input, shape index: {}]   ;;  %s12345_s12 = inlined_call_operand.vmem [shape: f32[1,512], index: 12, kind: input, shape index: {}]   ;;  %s12346_s13 = inlined_call_operand.hbm [shape: bf16[512,1024], index: 13, kind: input, shape index: {}]   ;;  %s12347_s14 = inlined_call_operand.vmem [shape: f32[1,1024], index: 14, kind: input, shape index: {}]   ;;  %s12348_s15 = inlined_call_operand.vmem [shape: f32[1,1024], index: 15, kind: input, shape index: {}]   ;;  %s12349_s16 = inlined_call_operand.hbm [shape: bf16[512,1024], index: 16, kind: input, shape index: {}]   ;;  %s12350_s17 = inlined_call_operand.vmem [shape: f32[1,1024], index: 17, kind: input, shape index: {}]   ;;  %s12351_s18 = inlined_call_operand.hbm [shape: bf16[512,1024], index: 18, kind: input, shape index: {}]   ;;  %s12352_s19 = inlined_call_operand.vmem [shape: f32[1,1024], index: 19, kind: input, shape index: {}]   ;;  %s12353_s20 = inlined_call_operand.hbm [shape: f32[2,2048], index: 20, kind: output, shape index: {}]  }
   0x1   :  { %12360 = sst [smem:[#allocation35_spill]] %s12333_s0 }
   0x2   :  { %12361 = sst [smem:[#allocation36_spill]] %s12334_s1 }
   0x3   :  { %12362 = sst [smem:[#allocation37_spill]] %s12335_s2 }
   0x4   :  { %12363 = sst [smem:[#allocation38_spill]] %s12336_s3 }
   0x5   :  { %12364 = sst [smem:[#allocation39_spill]] %s12337_s4 }
   0x6   :  { %12365 = sst [smem:[#allocation40_spill]] %s12350_s17 }
   0x7   :  { %12366 = sst [smem:[#allocation41_spill]] %s12352_s19 }
   0x8   :  { %12367 = sst [smem:[#allocation42_spill]] %s12353_s20 }
   0x9   :  { %25 = vsyncpa [#allocation3], 0 }
   0xa   :  { %26 = vsyncpa [#allocation6], 0 }
   0xb   :  { %27 = vsyncpa [#allocation9], 0 }
   0xc   :  { %28 = vsyncpa [#allocation12], 0 }
   0xd   :  { %29 = vsyncpa [#allocation15], 0 }
   0xe   :  { %30 = vsyncpa [#allocation18], 0 }
   0xf   :  { %31 = vsyncpa [#allocation21], 0 }
  0x10   :  { %32 = vsyncpa [#allocation24], 0 }
  0x11   :  { %33 = vsyncpa [#allocation4], 0  ;;  %s11726_s1 = smov [#allocation5]   ;;  %s12368_s2 = sld [smem:[#allocation36_spill]] }
  0x12   :  { %s49_s22 = sshll.u32 %s11726_s1, 4  ;;  %s50_s22 = int_to_ptr.vmem [resolvable:$true] %s49_s22 }
  0x17   :  { %s11378_s25 = scalar_lea.hbm %s12368_s2, 1024 }
  0x18   :  { %p11379_p0 = scmp.ne.s32.totalorder %s12368_s2, %s11378_s25  ;;  %p11382_p1 = scmp.lt.u32.totalorder %s11378_s25, %s12368_s2 }
  0x1a   :  { %p11384_p2 = pnand %p11382_p1, %p11379_p0 }
  0x1c   :  { %11387 = shalt.err (!%p11384_p2)
}
  0x1d   :  { %s11388_s4 = scalar_lea.vmem %s50_s22, 1024  ;;  %p11393_p4 = scmp.lt.s32.totalorder %s50_s22, %s50_s22 }
  0x1e   :  { %p11389_p3 = scmp.ne.s32.totalorder %s50_s22, %s11388_s4  ;;  %p11394_p5 = scmp.lt.s32.totalorder %s11388_s4, %s11388_s4 }
  0x20   :  { %p11395_p6 = por %p11394_p5, %p11393_p4 }
  0x22   :  { %p11396_p7 = pnand %p11395_p6, %p11389_p3 }
  0x24   :  { %11399 = shalt.err (!%p11396_p7)
}
  0x25   :  { %s11727_s29 = smov 256   ;;  %s11728_s30 = smov 16  }
  0x26   :  { %55 = dma.hbm_to_vmem [thread:$0]  %s12368_s2, 1024, %s50_s22, [#allocation6], %s11727_s29, %s11727_s29, %s11728_s30  }
  0x27   :  { %s11729_s1 = smov [#allocation8]   ;;  %s11730_s24 = smov [#allocation11]  }
  0x28   :  { %s72_s23 = sshll.u32 %s11729_s1, 4  ;;  %s94_s25 = sshll.u32 %s11730_s24, 4  ;;  %s73_s23 = int_to_ptr.vmem [resolvable:$true] %s72_s23  ;;  %s95_s25 = int_to_ptr.vmem [resolvable:$true] %s94_s25 }
  0x29   :  { %s12369_s27 = sld [smem:[#allocation38_spill]] }
  0x2f   :  { %s11400_s28 = scalar_lea.hbm %s12369_s27, 64 }
  0x30   :  { %p11401_p8 = scmp.ne.s32.totalorder %s12369_s27, %s11400_s28  ;;  %p11404_p9 = scmp.lt.u32.totalorder %s11400_s28, %s12369_s27 }
  0x32   :  { %p11406_p10 = pnand %p11404_p9, %p11401_p8 }
  0x34   :  { %11409 = shalt.err (!%p11406_p10)
}
  0x35   :  { %s11410_s22 = scalar_lea.vmem %s73_s23, 64  ;;  %p11415_p12 = scmp.lt.s32.totalorder %s73_s23, %s73_s23 }
  0x36   :  { %p11411_p11 = scmp.ne.s32.totalorder %s73_s23, %s11410_s22  ;;  %p11416_p13 = scmp.lt.s32.totalorder %s11410_s22, %s11410_s22 }
  0x38   :  { %p11417_p0 = por %p11416_p13, %p11415_p12 }
  0x3a   :  { %p11418_p1 = pnand %p11417_p0, %p11411_p11 }
  0x3c   :  { %11421 = shalt.err (!%p11418_p1)
}
  0x3d   :  { %75 = dma.hbm_to_vmem [thread:$0]  %s12369_s27, 64, %s73_s23, [#allocation9]  }
  0x3e   :  { %s11422_s1 = scalar_lea.hbm %s12338_s5, 64 }
  0x3f   :  { %p11423_p2 = scmp.ne.s32.totalorder %s12338_s5, %s11422_s1  ;;  %p11426_p3 = scmp.lt.u32.totalorder %s11422_s1, %s12338_s5 }
  0x41   :  { %p11428_p4 = pnand %p11426_p3, %p11423_p2 }
  0x43   :  { %11431 = shalt.err (!%p11428_p4)
}
  0x44   :  { %s11432_s26 = scalar_lea.vmem %s95_s25, 64  ;;  %p11437_p6 = scmp.lt.s32.totalorder %s95_s25, %s95_s25 }
  0x45   :  { %p11433_p5 = scmp.ne.s32.totalorder %s95_s25, %s11432_s26  ;;  %p11438_p7 = scmp.lt.s32.totalorder %s11432_s26, %s11432_s26 }
  0x47   :  { %p11439_p8 = por %p11438_p7, %p11437_p6 }
  0x49   :  { %p11440_p9 = pnand %p11439_p8, %p11433_p5 }
  0x4b   :  { %11443 = shalt.err (!%p11440_p9)
}
  0x4c   :  { %97 = dma.hbm_to_vmem [thread:$0]  %s12338_s5, 64, %s95_s25, [#allocation12]  }
  0x4d   :  { %s11731_s28 = smov [#allocation14]   ;;  %s11732_s22 = smov [#allocation17]  }
  0x4e   :  { %s113_s4 = sshll.u32 %s11731_s28, 4  ;;  %s136_s2 = sshll.u32 %s11732_s22, 4  ;;  %s114_s4 = int_to_ptr.vmem [resolvable:$true] %s113_s4  ;;  %s137_s2 = int_to_ptr.vmem [resolvable:$true] %s136_s2 }
  0x4f   :  { %s11444_s21 = scalar_lea.hbm %s12340_s7, 16384 }
  0x50   :  { %p11445_p10 = scmp.ne.s32.totalorder %s12340_s7, %s11444_s21  ;;  %p11448_p11 = scmp.lt.u32.totalorder %s11444_s21, %s12340_s7 }
  0x52   :  { %p11450_p12 = pnand %p11448_p11, %p11445_p10 }
  0x54   :  { %11453 = shalt.err (!%p11450_p12)
}
  0x55   :  { %s11454_s5 = scalar_lea.vmem %s114_s4, 16384  ;;  %p11459_p0 = scmp.lt.s32.totalorder %s114_s4, %s114_s4 }
  0x56   :  { %p11455_p13 = scmp.ne.s32.totalorder %s114_s4, %s11454_s5  ;;  %p11460_p1 = scmp.lt.s32.totalorder %s11454_s5, %s11454_s5 }
  0x58   :  { %p11461_p2 = por %p11460_p1, %p11459_p0 }
  0x5a   :  { %p11462_p3 = pnand %p11461_p2, %p11455_p13 }
  0x5c   :  { %11465 = shalt.err (!%p11462_p3)
}
  0x5d   :  { %119 = dma.hbm_to_vmem [thread:$0]  %s12340_s7, 16384, %s114_s4, [#allocation15], %s11727_s29, %s11727_s29, %s11728_s30  }
  0x5e   :  { %s11466_s27 = scalar_lea.hbm %s12342_s9, 64 }
  0x5f   :  { %p11467_p4 = scmp.ne.s32.totalorder %s12342_s9, %s11466_s27  ;;  %p11470_p5 = scmp.lt.u32.totalorder %s11466_s27, %s12342_s9 }
  0x61   :  { %p11472_p6 = pnand %p11470_p5, %p11467_p4 }
  0x63   :  { %11475 = shalt.err (!%p11472_p6)
}
  0x64   :  { %s11476_s21 = scalar_lea.vmem %s137_s2, 64  ;;  %p11481_p8 = scmp.lt.s32.totalorder %s137_s2, %s137_s2 }
  0x65   :  { %p11477_p7 = scmp.ne.s32.totalorder %s137_s2, %s11476_s21  ;;  %p11482_p9 = scmp.lt.s32.totalorder %s11476_s21, %s11476_s21 }
  0x67   :  { %p11483_p10 = por %p11482_p9, %p11481_p8 }
  0x69   :  { %p11484_p11 = pnand %p11483_p10, %p11477_p7 }
  0x6b   :  { %11487 = shalt.err (!%p11484_p11)
}
  0x6c   :  { %139 = dma.hbm_to_vmem [thread:$0]  %s12342_s9, 64, %s137_s2, [#allocation18]  }
  0x6d   :  { %s11733_s1 = smov [#allocation20]   ;;  %s11488_s5 = scalar_lea.hbm %s12346_s13, 32768 }
  0x6e   :  { %s161_s17 = sshll.u32 %s11733_s1, 4  ;;  %p11489_p12 = scmp.ne.s32.totalorder %s12346_s13, %s11488_s5  ;;  %s162_s17 = int_to_ptr.vmem [resolvable:$true] %s161_s17 }
  0x6f   :  { %p11492_p13 = scmp.lt.u32.totalorder %s11488_s5, %s12346_s13 }
  0x71   :  { %p11494_p0 = pnand %p11492_p13, %p11489_p12 }
  0x73   :  { %11497 = shalt.err (!%p11494_p0)
}
  0x74   :  { %s11498_s27 = scalar_lea.vmem %s162_s17, 32768  ;;  %p11503_p2 = scmp.lt.s32.totalorder %s162_s17, %s162_s17 }
  0x75   :  { %p11499_p1 = scmp.ne.s32.totalorder %s162_s17, %s11498_s27  ;;  %p11504_p3 = scmp.lt.s32.totalorder %s11498_s27, %s11498_s27 }
  0x77   :  { %p11505_p4 = por %p11504_p3, %p11503_p2 }
  0x79   :  { %p11506_p5 = pnand %p11505_p4, %p11499_p1 }
  0x7b   :  { %11509 = shalt.err (!%p11506_p5)
}
  0x7c   :  { %s11734_s9 = smov 512   ;;  %s11735_s2 = smov 32  }
  0x7d   :  { %167 = dma.hbm_to_vmem [thread:$0]  %s12346_s13, 32768, %s162_s17, [#allocation21], %s11734_s9, %s11734_s9, %s11735_s2  }
  0x7e   :  { %s11736_s0 = smov [#allocation2]   ;;  %s11737_s21 = smov [#allocation7]  }
  0x7f   :  { %s40_s20 = sshll.u32 %s11736_s0, 4  ;;  %s62_s7 = sshll.u32 %s11737_s21, 4  ;;  %s41_s20 = int_to_ptr.vmem [resolvable:$true] %s40_s20  ;;  %s63_s7 = int_to_ptr.vmem [resolvable:$true] %s62_s7 }
  0x80   :  { %s12370_s19 = sld [smem:[#allocation35_spill]] }
  0x86   :  { %s11510_s24 = scalar_lea.hbm %s12370_s19, 32 }
  0x87   :  { %p11511_p6 = scmp.ne.s32.totalorder %s12370_s19, %s11510_s24  ;;  %p11514_p7 = scmp.lt.u32.totalorder %s11510_s24, %s12370_s19 }
  0x89   :  { %p11516_p8 = pnand %p11514_p7, %p11511_p6 }
  0x8b   :  { %11519 = shalt.err (!%p11516_p8)
}
  0x8c   :  { %s11520_s13 = scalar_lea.vmem %s41_s20, 32  ;;  %p11525_p10 = scmp.lt.s32.totalorder %s41_s20, %s41_s20 }
  0x8d   :  { %p11521_p9 = scmp.ne.s32.totalorder %s41_s20, %s11520_s13  ;;  %p11526_p11 = scmp.lt.s32.totalorder %s11520_s13, %s11520_s13 }
  0x8f   :  { %p11527_p12 = por %p11526_p11, %p11525_p10 }
  0x91   :  { %p11528_p13 = pnand %p11527_p12, %p11521_p9 }
  0x93   :  { %11531 = shalt.err (!%p11528_p13)
}
  0x94   :  { %43 = dma.hbm_to_vmem [thread:$0]  %s12370_s19, 32, %s41_s20, [#allocation3]  }
  0x95   :  { %s12371_s22 = sld [smem:[#allocation37_spill]] }
  0x9b   :  { %s11532_s0 = scalar_lea.hbm %s12371_s22, 64 }
  0x9c   :  { %p11533_p0 = scmp.ne.s32.totalorder %s12371_s22, %s11532_s0  ;;  %p11536_p1 = scmp.lt.u32.totalorder %s11532_s0, %s12371_s22 }
  0x9e   :  { %p11538_p2 = pnand %p11536_p1, %p11533_p0 }
  0xa0   :  { %11541 = shalt.err (!%p11538_p2)
}
  0xa1   :  { %s11542_s5 = scalar_lea.vmem %s63_s7, 64  ;;  %p11547_p4 = scmp.lt.s32.totalorder %s63_s7, %s63_s7 }
  0xa2   :  { %p11543_p3 = scmp.ne.s32.totalorder %s63_s7, %s11542_s5  ;;  %p11548_p5 = scmp.lt.s32.totalorder %s11542_s5, %s11542_s5 }
  0xa4   :  { %p11549_p6 = por %p11548_p5, %p11547_p4 }
  0xa6   :  { %p11550_p7 = pnand %p11549_p6, %p11543_p3 }
  0xa8   :  { %11553 = shalt.err (!%p11550_p7)
}
  0xa9   :  { %65 = dma.hbm_to_vmem [thread:$0]  %s12371_s22, 64, %s63_s7, [#allocation6]  }
  0xaa   :  { %s11738_s25 = smov [#allocation10]   ;;  %s11739_s26 = smov [#allocation13]  }
  0xab   :  { %s81_s3 = sshll.u32 %s11738_s25, 4  ;;  %s104_s13 = sshll.u32 %s11739_s26, 4  ;;  %s82_s3 = int_to_ptr.vmem [resolvable:$true] %s81_s3  ;;  %s105_s13 = int_to_ptr.vmem [resolvable:$true] %s104_s13 }
  0xac   :  { %s12372_s27 = sld [smem:[#allocation39_spill]] }
  0xb2   :  { %s11554_s28 = scalar_lea.hbm %s12372_s27, 16384 }
  0xb3   :  { %p11555_p8 = scmp.ne.s32.totalorder %s12372_s27, %s11554_s28  ;;  %p11558_p9 = scmp.lt.u32.totalorder %s11554_s28, %s12372_s27 }
  0xb5   :  { %p11560_p10 = pnand %p11558_p9, %p11555_p8 }
  0xb7   :  { %11563 = shalt.err (!%p11560_p10)
}
  0xb8   :  { %s11564_s7 = scalar_lea.vmem %s82_s3, 16384  ;;  %p11569_p12 = scmp.lt.s32.totalorder %s82_s3, %s82_s3 }
  0xb9   :  { %p11565_p11 = scmp.ne.s32.totalorder %s82_s3, %s11564_s7  ;;  %p11570_p13 = scmp.lt.s32.totalorder %s11564_s7, %s11564_s7 }
  0xbb   :  { %p11571_p0 = por %p11570_p13, %p11569_p12 }
  0xbd   :  { %p11572_p1 = pnand %p11571_p0, %p11565_p11 }
  0xbf   :  { %11575 = shalt.err (!%p11572_p1)
}
  0xc0   :  { %87 = dma.hbm_to_vmem [thread:$0]  %s12372_s27, 16384, %s82_s3, [#allocation9], %s11727_s29, %s11727_s29, %s11728_s30  }
  0xc1   :  { %s11576_s19 = scalar_lea.hbm %s12339_s6, 64 }
  0xc2   :  { %p11577_p2 = scmp.ne.s32.totalorder %s12339_s6, %s11576_s19  ;;  %p11580_p3 = scmp.lt.u32.totalorder %s11576_s19, %s12339_s6 }
  0xc4   :  { %p11582_p4 = pnand %p11580_p3, %p11577_p2 }
  0xc6   :  { %11585 = shalt.err (!%p11582_p4)
}
  0xc7   :  { %s11586_s28 = scalar_lea.vmem %s105_s13, 64  ;;  %p11591_p6 = scmp.lt.s32.totalorder %s105_s13, %s105_s13 }
  0xc8   :  { %p11587_p5 = scmp.ne.s32.totalorder %s105_s13, %s11586_s28  ;;  %p11592_p7 = scmp.lt.s32.totalorder %s11586_s28, %s11586_s28 }
  0xca   :  { %p11593_p8 = por %p11592_p7, %p11591_p6 }
  0xcc   :  { %p11594_p9 = pnand %p11593_p8, %p11587_p5 }
  0xce   :  { %11597 = shalt.err (!%p11594_p9)
}
  0xcf   :  { %107 = dma.hbm_to_vmem [thread:$0]  %s12339_s6, 64, %s105_s13, [#allocation12]  }
  0xd0   :  { %s11740_s0 = smov [#allocation16]   ;;  %s11741_s4 = smov [#allocation19]  }
  0xd1   :  { %s126_s21 = sshll.u32 %s11740_s0, 4  ;;  %s145_s1 = sshll.u32 %s11741_s4, 4  ;;  %s127_s21 = int_to_ptr.vmem [resolvable:$true] %s126_s21  ;;  %s11984_s1 = int_to_ptr.vmem [resolvable:$true] %s145_s1 }
  0xd2   :  { %s11598_s24 = scalar_lea.hbm %s12341_s8, 64 }
  0xd3   :  { %p11599_p10 = scmp.ne.s32.totalorder %s12341_s8, %s11598_s24  ;;  %p11602_p11 = scmp.lt.u32.totalorder %s11598_s24, %s12341_s8 }
  0xd5   :  { %p11604_p12 = pnand %p11602_p11, %p11599_p10 }
  0xd7   :  { %11607 = shalt.err (!%p11604_p12)
}
  0xd8   :  { %s11608_s6 = scalar_lea.vmem %s127_s21, 64  ;;  %p11613_p0 = scmp.lt.s32.totalorder %s127_s21, %s127_s21 }
  0xd9   :  { %p11609_p13 = scmp.ne.s32.totalorder %s127_s21, %s11608_s6  ;;  %p11614_p1 = scmp.lt.s32.totalorder %s11608_s6, %s11608_s6 }
  0xdb   :  { %p11615_p2 = por %p11614_p1, %p11613_p0 }
  0xdd   :  { %p11616_p3 = pnand %p11615_p2, %p11609_p13 }
  0xdf   :  { %11619 = shalt.err (!%p11616_p3)
}
  0xe0   :  { %129 = dma.hbm_to_vmem [thread:$0]  %s12341_s8, 64, %s127_s21, [#allocation15]  }
  0xe1   :  { %s11620_s28 = scalar_lea.hbm %s12343_s10, 16384 }
  0xe2   :  { %p11621_p4 = scmp.ne.s32.totalorder %s12343_s10, %s11620_s28  ;;  %p11624_p5 = scmp.lt.u32.totalorder %s11620_s28, %s12343_s10 }
  0xe4   :  { %p11626_p6 = pnand %p11624_p5, %p11621_p4 }
  0xe6   :  { %11629 = shalt.err (!%p11626_p6)
}
  0xe7   :  { %s11630_s7 = scalar_lea.vmem %s11984_s1, 16384  ;;  %p11635_p8 = scmp.lt.s32.totalorder %s11984_s1, %s11984_s1 }
  0xe8   :  { %p11631_p7 = scmp.ne.s32.totalorder %s11984_s1, %s11630_s7  ;;  %p11636_p9 = scmp.lt.s32.totalorder %s11630_s7, %s11630_s7 }
  0xea   :  { %p11637_p10 = por %p11636_p9, %p11635_p8 }
  0xec   :  { %p11638_p11 = pnand %p11637_p10, %p11631_p7 }
  0xee   :  { %11641 = shalt.err (!%p11638_p11)
}
  0xef   :  { %151 = dma.hbm_to_vmem [thread:$0]  %s12343_s10, 16384, %s11984_s1, [#allocation18], %s11727_s29, %s11727_s29, %s11728_s30  }
  0xf0   :  { %s11742_s22 = smov [#allocation22]   ;;  %s11743_s5 = smov [#allocation23]  }
  0xf1   :  { %s177_s24 = sshll.u32 %s11742_s22, 4  ;;  %s191_s20 = sshll.u32 %s11743_s5, 4  ;;  %s178_s24 = int_to_ptr.vmem [resolvable:$true] %s177_s24  ;;  %s12018_s20 = int_to_ptr.vmem [resolvable:$true] %s191_s20 }
  0xf2   :  { %s11642_s6 = scalar_lea.hbm %s12349_s16, 32768 }
  0xf3   :  { %p11643_p12 = scmp.ne.s32.totalorder %s12349_s16, %s11642_s6  ;;  %p11646_p13 = scmp.lt.u32.totalorder %s11642_s6, %s12349_s16 }
  0xf5   :  { %p11648_p0 = pnand %p11646_p13, %p11643_p12 }
  0xf7   :  { %11651 = shalt.err (!%p11648_p0)
}
  0xf8   :  { %s11652_s10 = scalar_lea.vmem %s178_s24, 32768  ;;  %p11657_p2 = scmp.lt.s32.totalorder %s178_s24, %s178_s24 }
  0xf9   :  { %p11653_p1 = scmp.ne.s32.totalorder %s178_s24, %s11652_s10  ;;  %p11658_p3 = scmp.lt.s32.totalorder %s11652_s10, %s11652_s10 }
  0xfb   :  { %p11659_p4 = por %p11658_p3, %p11657_p2 }
  0xfd   :  { %p11660_p5 = pnand %p11659_p4, %p11653_p1 }
  0xff   :  { %11663 = shalt.err (!%p11660_p5)
}
 0x100   :  { %183 = dma.hbm_to_vmem [thread:$0]  %s12349_s16, 32768, %s178_s24, [#allocation21], %s11734_s9, %s11734_s9, %s11735_s2  }
 0x101   :  { %s11664_s3 = scalar_lea.hbm %s12351_s18, 32768 }
 0x102   :  { %p11665_p6 = scmp.ne.s32.totalorder %s12351_s18, %s11664_s3  ;;  %p11668_p7 = scmp.lt.u32.totalorder %s11664_s3, %s12351_s18 }
 0x104   :  { %p11670_p8 = pnand %p11668_p7, %p11665_p6 }
 0x106   :  { %11673 = shalt.err (!%p11670_p8)
}
 0x107   :  { %s11674_s8 = scalar_lea.vmem %s12018_s20, 32768  ;;  %p11679_p10 = scmp.lt.s32.totalorder %s12018_s20, %s12018_s20 }
 0x108   :  { %p11675_p9 = scmp.ne.s32.totalorder %s12018_s20, %s11674_s8  ;;  %p11680_p11 = scmp.lt.s32.totalorder %s11674_s8, %s11674_s8 }
 0x10a   :  { %p11681_p12 = por %p11680_p11, %p11679_p10 }
 0x10c   :  { %p11682_p13 = pnand %p11681_p12, %p11675_p9 }
 0x10e   :  { %11685 = shalt.err (!%p11682_p13)
}
 0x10f   :  { %197 = dma.hbm_to_vmem [thread:$0]  %s12351_s18, 32768, %s12018_s20, [#allocation24], %s11734_s9, %s11734_s9, %s11735_s2  }
 0x110   :  { %11708 = dma.done.wait [#allocation3], 32  }
 0x111   :  { %11709 = vsyncadd [#allocation3], 4294967264 }
 0x112   :  { %11710 = dma.done.wait [#allocation6], 1088  }
 0x113   :  { %11711 = vsyncadd [#allocation6], 4294966208 }
 0x114   :  { %11712 = dma.done.wait [#allocation9], 16448  }
 0x115   :  { %11713 = vsyncadd [#allocation9], 4294950848 }
 0x116   :  { %11714 = dma.done.wait [#allocation12], 128  }
 0x117   :  { %11715 = vsyncadd [#allocation12], 4294967168 }
 0x118   :  { %11716 = dma.done.wait [#allocation15], 16448  }
 0x119   :  { %11717 = vsyncadd [#allocation15], 4294950848 }
 0x11a   :  { %11718 = dma.done.wait [#allocation18], 16448  }
 0x11b   :  { %11719 = vsyncadd [#allocation18], 4294950848 }
 0x11c   :  { %11720 = dma.done.wait [#allocation21], 65536  }
 0x11d   :  { %11721 = vsyncadd [#allocation21], 4294901760 }
 0x11e   :  { %11722 = dma.done.wait [#allocation24], 32768  }
 0x11f   :  { %11723 = vsyncadd [#allocation24], 4294934528  ;;  %v11744_v0 = vmov 0   ;;  %v10724_v1 = vld [vmem:[#allocation5 + $0x4] ss:$16 sps:$4 sm:$0xff]   ;;  %vm315_vm0 = vcmask 261120  }
 0x120   :  { %351 = vmatprep.mubr.bf16.mxu0 %v11744_v0  ;;  %392 = vmatprep.mubr.bf16.mxu1 %v11744_v0  ;;  %v10726_v2 = vld [vmem:[#allocation5] ss:$16 sps:$4 sm:$0xff]   ;;  %v10727_v3 = vld [vmem:[#allocation5 + $0x24] ss:$16 sps:$4 sm:$0xff]   ;;  %v243_v5 = vld [vmem:[#allocation2] sm:$0x3] }
 0x121   :  { %319 = vmatprep.subr.bf16.mxu0 %v10724_v1  ;;  %v10729_v4 = vld [vmem:[#allocation5 + $0x20] ss:$16 sps:$4 sm:$0xff]   ;;  %v10730_v6 = vld [vmem:[#allocation5 + $0xc] ss:$16 sps:$4 sm:$0xff]   ;;  %v10732_v7 = vld [vmem:[#allocation5 + $0x8] ss:$16 sps:$4 sm:$0xff]   ;;  %v244_v9 = vpack.c.bf16 %v243_v5, %v243_v5 }
 0x122   :  { %320 = vmatpush1.bf16.msra.mxu0 %v10726_v2  ;;  %360 = vmatprep.subr.bf16.mxu1 %v10730_v6  ;;  %v10733_v8 = vld [vmem:[#allocation5 + $0x2c] ss:$16 sps:$4 sm:$0xff]   ;;  %v10735_v10 = vld [vmem:[#allocation5 + $0x28] ss:$16 sps:$4 sm:$0xff]   ;;  %v10741_v13 = vld [vmem:[#allocation10 + $0xc] ss:$16 sps:$4 sm:$0xff]  }
 0x123   :  { %321 = vmatprep.subr.bf16.mxu0 %v10727_v3  ;;  %361 = vmatpush1.bf16.msra.mxu1 %v10732_v7  ;;  %v10738_v11 = vld [vmem:[#allocation10 + $0x4] ss:$16 sps:$4 sm:$0xff]   ;;  %v10736_v12 = vld [vmem:[#allocation10] ss:$16 sps:$4 sm:$0xff]   ;;  %v10739_v15 = vld [vmem:[#allocation10 + $0x8] ss:$16 sps:$4 sm:$0xff]  }
 0x124   :  { %362 = vmatprep.subr.bf16.mxu1 %v10733_v8  ;;  %v10744_v14 = vld [vmem:[#allocation10 + $0x24] ss:$16 sps:$4 sm:$0xff]   ;;  %v10742_v16 = vld [vmem:[#allocation10 + $0x20] ss:$16 sps:$4 sm:$0xff]   ;;  %v10747_v17 = vld [vmem:[#allocation10 + $0x2c] ss:$16 sps:$4 sm:$0xff]  }
 0x125   :  { %v10750_v18 = vld [vmem:[#allocation10 + $0x44] ss:$16 sps:$4 sm:$0xff]   ;;  %v10745_v19 = vld [vmem:[#allocation10 + $0x28] ss:$16 sps:$4 sm:$0xff]   ;;  %v10748_v20 = vld [vmem:[#allocation10 + $0x40] ss:$16 sps:$4 sm:$0xff]  }
 0x126   :  { %322 = vmatpush1.bf16.msra.mxu0 %v10729_v4  ;;  %v10753_v21 = vld [vmem:[#allocation10 + $0x4c] ss:$16 sps:$4 sm:$0xff]   ;;  %v10756_v22 = vld [vmem:[#allocation10 + $0x64] ss:$16 sps:$4 sm:$0xff]   ;;  %v10751_v23 = vld [vmem:[#allocation10 + $0x48] ss:$16 sps:$4 sm:$0xff]  }
 0x127   :  { %1229 = vmatprep.subr.bf16.mxu0 %v10738_v11  ;;  %363 = vmatpush1.bf16.msra.mxu1 %v10735_v10  ;;  %v10754_v24 = vld [vmem:[#allocation10 + $0x60] ss:$16 sps:$4 sm:$0xff]   ;;  %v10759_v25 = vld [vmem:[#allocation10 + $0x6c] ss:$16 sps:$4 sm:$0xff]   ;;  %v10762_v26 = vld [vmem:[#allocation10 + $0x84] ss:$16 sps:$4 sm:$0xff]  }
 0x128   :  { %1311 = vmatprep.subr.bf16.mxu1 %v10741_v13  ;;  %v10757_v27 = vld [vmem:[#allocation10 + $0x68] ss:$16 sps:$4 sm:$0xff]   ;;  %v10760_v28 = vld [vmem:[#allocation10 + $0x80] ss:$16 sps:$4 sm:$0xff]   ;;  %v10765_v29 = vld [vmem:[#allocation10 + $0x8c] ss:$16 sps:$4 sm:$0xff]   ;;  %v255_v13 = vlaneseq }
 0x129   :  { %9425 = vmatmul.mubr.msk.bf16.vlgmr.msra.gmra.mrb[0].mxu0 %vm315_vm0, %v244_v9  ;;  %v10768_v30 = vld [vmem:[#allocation10 + $0xa4] ss:$16 sps:$4 sm:$0xff]   ;;  %v10763_v31 = vld [vmem:[#allocation10 + $0x88] ss:$16 sps:$4 sm:$0xff]   ;;  %v10766_v32 = vld [vmem:[#allocation10 + $0xa0] ss:$16 sps:$4 sm:$0xff]  }
 0x12a   :  { %1230 = vmatpush1.bf16.msra.mxu0 %v10736_v12  ;;  %9426 = vmatmul.mubr.msk.bf16.vlgmr.msra.gmra.mrb[0].mxu1 %vm315_vm0, %v244_v9  ;;  %v10771_v33 = vld [vmem:[#allocation10 + $0xac] ss:$16 sps:$4 sm:$0xff]   ;;  %v10774_v34 = vld [vmem:[#allocation10 + $0xc4] ss:$16 sps:$4 sm:$0xff]   ;;  %v10769_v35 = vld [vmem:[#allocation10 + $0xa8] ss:$16 sps:$4 sm:$0xff]  }
 0x12b   :  { %1231 = vmatprep.subr.bf16.mxu0 %v10744_v14  ;;  %1312 = vmatpush1.bf16.msra.mxu1 %v10739_v15  ;;  %v10772_v36 = vld [vmem:[#allocation10 + $0xc0] ss:$16 sps:$4 sm:$0xff]   ;;  %v10777_v37 = vld [vmem:[#allocation10 + $0xcc] ss:$16 sps:$4 sm:$0xff]   ;;  %v10780_v38 = vld [vmem:[#allocation10 + $0xe4] ss:$16 sps:$4 sm:$0xff]  }
 0x12c   :  { %1313 = vmatprep.subr.bf16.mxu1 %v10747_v17  ;;  %v10775_v39 = vld [vmem:[#allocation10 + $0xc8] ss:$16 sps:$4 sm:$0xff]   ;;  %v10778_v40 = vld [vmem:[#allocation10 + $0xe0] ss:$16 sps:$4 sm:$0xff]   ;;  %v10783_v41 = vld [vmem:[#allocation10 + $0xec] ss:$16 sps:$4 sm:$0xff]  }
 0x12d   :  { %v10786_v42 = vld [vmem:[#allocation10 + $0x104] ss:$16 sps:$4 sm:$0xff]   ;;  %v10781_v43 = vld [vmem:[#allocation10 + $0xe8] ss:$16 sps:$4 sm:$0xff]   ;;  %v10784_v44 = vld [vmem:[#allocation10 + $0x100] ss:$16 sps:$4 sm:$0xff]  }
 0x12e   :  { %1232 = vmatpush1.bf16.msra.mxu0 %v10742_v16  ;;  %v10789_v45 = vld [vmem:[#allocation10 + $0x10c] ss:$16 sps:$4 sm:$0xff]   ;;  %v10792_v46 = vld [vmem:[#allocation10 + $0x124] ss:$16 sps:$4 sm:$0xff]   ;;  %v10787_v47 = vld [vmem:[#allocation10 + $0x108] ss:$16 sps:$4 sm:$0xff]  }
 0x12f   :  { %1233 = vmatprep.subr.bf16.mxu0 %v10750_v18  ;;  %1314 = vmatpush1.bf16.msra.mxu1 %v10745_v19  ;;  %v10790_v48 = vld [vmem:[#allocation10 + $0x120] ss:$16 sps:$4 sm:$0xff]   ;;  %v10795_v49 = vld [vmem:[#allocation10 + $0x12c] ss:$16 sps:$4 sm:$0xff]   ;;  %v10798_v50 = vld [vmem:[#allocation10 + $0x144] ss:$16 sps:$4 sm:$0xff]  }
 0x130   :  { %1315 = vmatprep.subr.bf16.mxu1 %v10753_v21  ;;  %v10793_v51 = vld [vmem:[#allocation10 + $0x128] ss:$16 sps:$4 sm:$0xff]   ;;  %v10796_v52 = vld [vmem:[#allocation10 + $0x140] ss:$16 sps:$4 sm:$0xff]   ;;  %v10801_v53 = vld [vmem:[#allocation10 + $0x14c] ss:$16 sps:$4 sm:$0xff]  }
 0x131   :  { %v10804_v54 = vld [vmem:[#allocation10 + $0x164] ss:$16 sps:$4 sm:$0xff]   ;;  %v10799_v55 = vld [vmem:[#allocation10 + $0x148] ss:$16 sps:$4 sm:$0xff]   ;;  %v10802_v56 = vld [vmem:[#allocation10 + $0x160] ss:$16 sps:$4 sm:$0xff]  }
 0x132   :  { %1234 = vmatpush1.bf16.msra.mxu0 %v10748_v20  ;;  %v10807_v57 = vld [vmem:[#allocation10 + $0x16c] ss:$16 sps:$4 sm:$0xff]   ;;  %v10810_v58 = vld [vmem:[#allocation10 + $0x184] ss:$16 sps:$4 sm:$0xff]   ;;  %v10805_v59 = vld [vmem:[#allocation10 + $0x168] ss:$16 sps:$4 sm:$0xff]  }
 0x133   :  { %1235 = vmatprep.subr.bf16.mxu0 %v10756_v22  ;;  %1316 = vmatpush1.bf16.msra.mxu1 %v10751_v23  ;;  %v10808_v60 = vld [vmem:[#allocation10 + $0x180] ss:$16 sps:$4 sm:$0xff]   ;;  %v10813_v61 = vld [vmem:[#allocation10 + $0x18c] ss:$16 sps:$4 sm:$0xff]   ;;  %v10816_v62 = vld [vmem:[#allocation10 + $0x1a4] ss:$16 sps:$4 sm:$0xff]  }
 0x134   :  { %1317 = vmatprep.subr.bf16.mxu1 %v10759_v25  ;;  %v10811_v63 = vld [vmem:[#allocation10 + $0x188] ss:$16 sps:$4 sm:$0xff]   ;;  %v10814_v0 = vld [vmem:[#allocation10 + $0x1a0] ss:$16 sps:$4 sm:$0xff]   ;;  %v10819_v1 = vld [vmem:[#allocation10 + $0x1ac] ss:$16 sps:$4 sm:$0xff]  }
 0x135   :  { %v10817_v2 = vld [vmem:[#allocation10 + $0x1a8] ss:$16 sps:$4 sm:$0xff]   ;;  %v10822_v3 = vld [vmem:[#allocation10 + $0x1c4] ss:$16 sps:$4 sm:$0xff]   ;;  %v10825_v4 = vld [vmem:[#allocation10 + $0x1cc] ss:$16 sps:$4 sm:$0xff]  }
 0x136   :  { %1236 = vmatpush1.bf16.msra.mxu0 %v10754_v24  ;;  %v10820_v5 = vld [vmem:[#allocation10 + $0x1c0] ss:$16 sps:$4 sm:$0xff]   ;;  %v10823_v6 = vld [vmem:[#allocation10 + $0x1c8] ss:$16 sps:$4 sm:$0xff]   ;;  %v10828_v7 = vld [vmem:[#allocation10 + $0x1e4] ss:$16 sps:$4 sm:$0xff]  }
 0x137   :  { %1237 = vmatprep.subr.bf16.mxu0 %v10762_v26  ;;  %1318 = vmatpush1.bf16.msra.mxu1 %v10757_v27  ;;  %v10831_v8 = vld [vmem:[#allocation10 + $0x1ec] ss:$16 sps:$4 sm:$0xff]   ;;  %v10826_v9 = vld [vmem:[#allocation10 + $0x1e0] ss:$16 sps:$4 sm:$0xff]   ;;  %v10829_v10 = vld [vmem:[#allocation10 + $0x1e8] ss:$16 sps:$4 sm:$0xff]  }
 0x138   :  { %1319 = vmatprep.subr.bf16.mxu1 %v10765_v29  ;;  %v10834_v11 = vld [vmem:[#allocation10 + $0x204] ss:$16 sps:$4 sm:$0xff]   ;;  %v10837_v12 = vld [vmem:[#allocation10 + $0x20c] ss:$16 sps:$4 sm:$0xff]   ;;  %v12055_v14 = vshrl.u32 %v255_v13, 7  ;;  %s12373_s13 = sld [smem:[#allocation40_spill]] }
 0x139   :  { %v253_v16 = vld [vmem:[#allocation7] sm:$0xf]  ;;  %v401_v18 = vld [vmem:[#allocation8] sm:$0xf]  ;;  %s12374_s23 = sld [smem:[#allocation41_spill]]  ;;  %s11746_s10 = smov [#allocation25]  }
 0x13a   :  { %1238 = vmatpush1.bf16.msra.mxu0 %v10760_v28  ;;  %v12058_v15 = vsub.s32 0, %v12055_v14  ;;  %v12061_v17 = vsub.s32 1, %v12055_v14  ;;  %v12064_v19 = vsub.s32 2, %v12055_v14  ;;  %v12068_v21 = vsub.s32 3, %v12055_v14  ;;  %v10871_v13 = vld [vmem:[#allocation10 + $0x2c8] ss:$16 sps:$4 sm:$0xff]  }
 0x13b   :  { %1239 = vmatprep.subr.bf16.mxu0 %v10768_v30  ;;  %1320 = vmatpush1.bf16.msra.mxu1 %v10763_v31  ;;  %s9401_s29 = sshll.u32 %s11746_s10, 4  ;;  %s9402_s29 = int_to_ptr.vmem [resolvable:$true] %s9401_s29 }
 0x13c   :  { %1321 = vmatprep.subr.bf16.mxu1 %v10771_v33  ;;  %v258_v20 = vrot.slane %v253_v16, %v12058_v15  ;;  %v262_v22 = vrot.slane %v253_v16, %v12061_v17  ;;  %v410_v23 = vrot.slane %v401_v18, %v12058_v15  ;;  %v414_v25 = vrot.slane %v401_v18, %v12061_v17  ;;  %s11686_s30 = scalar_lea.vmem %s9402_s29, 512  ;;  %p11691_p1 = scmp.lt.s32.totalorder %s9402_s29, %s9402_s29 }
 0x13d   :  { %v266_v26 = vrot.slane %v253_v16, %v12064_v19  ;;  %v270_v29 = vrot.slane %v253_v16, %v12068_v21  ;;  %v10876_v16 = vld [vmem:[#allocation10 + $0x2e4] ss:$16 sps:$4 sm:$0xff]   ;;  %p11687_p0 = scmp.ne.s32.totalorder %s9402_s29, %s11686_s30  ;;  %p11692_p2 = scmp.lt.s32.totalorder %s11686_s30, %s11686_s30 }
 0x13e   :  { %1240 = vmatpush1.bf16.msra.mxu0 %v10766_v32  ;;  %v418_v32 = vrot.slane %v401_v18, %v12064_v19 }
 0x13f   :  { %1241 = vmatprep.subr.bf16.mxu0 %v10774_v34  ;;  %1322 = vmatpush1.bf16.msra.mxu1 %v10769_v35  ;;  %p11693_p3 = por %p11692_p2, %p11691_p1 }
 0x140   :  { %1323 = vmatprep.subr.bf16.mxu1 %v10777_v37 }
 0x141   :  { %p11694_p4 = pnand %p11693_p3, %p11687_p0 }
 0x142   :  { %1242 = vmatpush1.bf16.msra.mxu0 %v10772_v36  ;;  %v422_v36 = vrot.slane %v401_v18, %v12068_v21  ;;  %v10879_v18 = vld [vmem:[#allocation10 + $0x2ec] ss:$16 sps:$4 sm:$0xff]  }
 0x143   :  { %1243 = vmatprep.subr.bf16.mxu0 %v10780_v38  ;;  %1324 = vmatpush1.bf16.msra.mxu1 %v10775_v39 }
 0x144   :  { %1325 = vmatprep.subr.bf16.mxu1 %v10783_v41 }
 0x146   :  { %1244 = vmatpush1.bf16.msra.mxu0 %v10778_v40 }
 0x147   :  { %1245 = vmatprep.subr.bf16.mxu0 %v10786_v42  ;;  %1326 = vmatpush1.bf16.msra.mxu1 %v10781_v43 }
 0x148   :  { %1327 = vmatprep.subr.bf16.mxu1 %v10789_v45 }
 0x14a   :  { %1246 = vmatpush1.bf16.msra.mxu0 %v10784_v44 }
 0x14b   :  { %1247 = vmatprep.subr.bf16.mxu0 %v10792_v46  ;;  %1328 = vmatpush1.bf16.msra.mxu1 %v10787_v47  ;;  %v10832_v47 = vld [vmem:[#allocation10 + $0x200] ss:$16 sps:$4 sm:$0xff]  }
 0x14c   :  { %1329 = vmatprep.subr.bf16.mxu1 %v10795_v49 }
 0x14e   :  { %1248 = vmatpush1.bf16.msra.mxu0 %v10790_v48  ;;  %v10835_v48 = vld [vmem:[#allocation10 + $0x208] ss:$16 sps:$4 sm:$0xff]  }
 0x14f   :  { %1249 = vmatprep.subr.bf16.mxu0 %v10798_v50  ;;  %1330 = vmatpush1.bf16.msra.mxu1 %v10793_v51  ;;  %v10840_v51 = vld [vmem:[#allocation10 + $0x224] ss:$16 sps:$4 sm:$0xff]  }
 0x150   :  { %1331 = vmatprep.subr.bf16.mxu1 %v10801_v53 }
 0x152   :  { %1250 = vmatpush1.bf16.msra.mxu0 %v10796_v52  ;;  %v10843_v52 = vld [vmem:[#allocation10 + $0x22c] ss:$16 sps:$4 sm:$0xff]  }
 0x153   :  { %1251 = vmatprep.subr.bf16.mxu0 %v10804_v54  ;;  %1332 = vmatpush1.bf16.msra.mxu1 %v10799_v55 }
 0x154   :  { %1333 = vmatprep.subr.bf16.mxu1 %v10807_v57  ;;  %v10841_v57 = vld [vmem:[#allocation10 + $0x228] ss:$16 sps:$4 sm:$0xff]  }
 0x156   :  { %1252 = vmatpush1.bf16.msra.mxu0 %v10802_v56  ;;  %v10838_v56 = vld [vmem:[#allocation10 + $0x220] ss:$16 sps:$4 sm:$0xff]  }
 0x157   :  { %1253 = vmatprep.subr.bf16.mxu0 %v10810_v58  ;;  %1334 = vmatpush1.bf16.msra.mxu1 %v10805_v59  ;;  %v10846_v58 = vld [vmem:[#allocation10 + $0x244] ss:$16 sps:$4 sm:$0xff]   ;;  %v10849_v59 = vld [vmem:[#allocation10 + $0x24c] ss:$16 sps:$4 sm:$0xff]  }
 0x158   :  { %1335 = vmatprep.subr.bf16.mxu1 %v10813_v61  ;;  %v10847_v61 = vld [vmem:[#allocation10 + $0x248] ss:$16 sps:$4 sm:$0xff]  }
 0x15a   :  { %1254 = vmatpush1.bf16.msra.mxu0 %v10808_v60  ;;  %v10844_v60 = vld [vmem:[#allocation10 + $0x240] ss:$16 sps:$4 sm:$0xff]  }
 0x15b   :  { %1255 = vmatprep.subr.bf16.mxu0 %v10816_v62  ;;  %1336 = vmatpush1.bf16.msra.mxu1 %v10811_v63  ;;  %v10852_v62 = vld [vmem:[#allocation10 + $0x264] ss:$16 sps:$4 sm:$0xff]   ;;  %v10855_v63 = vld [vmem:[#allocation10 + $0x26c] ss:$16 sps:$4 sm:$0xff]  }
 0x15c   :  { %1337 = vmatprep.subr.bf16.mxu1 %v10819_v1  ;;  %v10853_v1 = vld [vmem:[#allocation10 + $0x268] ss:$16 sps:$4 sm:$0xff]  }
 0x15e   :  { %1256 = vmatpush1.bf16.msra.mxu0 %v10814_v0  ;;  %v10850_v0 = vld [vmem:[#allocation10 + $0x260] ss:$16 sps:$4 sm:$0xff]  }
 0x15f   :  { %1338 = vmatpush1.bf16.msra.mxu1 %v10817_v2  ;;  %1257 = vmatprep.subr.bf16.mxu0 %v10822_v3  ;;  %v10858_v2 = vld [vmem:[#allocation10 + $0x284] ss:$16 sps:$4 sm:$0xff]   ;;  %v10861_v3 = vld [vmem:[#allocation10 + $0x28c] ss:$16 sps:$4 sm:$0xff]  }
 0x160   :  { %1339 = vmatprep.subr.bf16.mxu1 %v10825_v4  ;;  %v10856_v4 = vld [vmem:[#allocation10 + $0x280] ss:$16 sps:$4 sm:$0xff]  }
 0x162   :  { %1258 = vmatpush1.bf16.msra.mxu0 %v10820_v5  ;;  %v10859_v5 = vld [vmem:[#allocation10 + $0x288] ss:$16 sps:$4 sm:$0xff]  }
 0x163   :  { %1340 = vmatpush1.bf16.msra.mxu1 %v10823_v6  ;;  %1259 = vmatprep.subr.bf16.mxu0 %v10828_v7  ;;  %v10864_v6 = vld [vmem:[#allocation10 + $0x2a4] ss:$16 sps:$4 sm:$0xff]   ;;  %v10867_v7 = vld [vmem:[#allocation10 + $0x2ac] ss:$16 sps:$4 sm:$0xff]  }
 0x164   :  { %1341 = vmatprep.subr.bf16.mxu1 %v10831_v8  ;;  %v10862_v8 = vld [vmem:[#allocation10 + $0x2a0] ss:$16 sps:$4 sm:$0xff]  }
 0x166   :  { %1260 = vmatpush1.bf16.msra.mxu0 %v10826_v9  ;;  %v10865_v9 = vld [vmem:[#allocation10 + $0x2a8] ss:$16 sps:$4 sm:$0xff]  }
 0x167   :  { %1342 = vmatpush1.bf16.msra.mxu1 %v10829_v10  ;;  %1270 = vmatprep.subr.bf16.mxu0 %v10834_v11  ;;  %v10870_v10 = vld [vmem:[#allocation10 + $0x2c4] ss:$16 sps:$4 sm:$0xff]   ;;  %v10873_v11 = vld [vmem:[#allocation10 + $0x2cc] ss:$16 sps:$4 sm:$0xff]  }
 0x168   :  { %1352 = vmatprep.subr.bf16.mxu1 %v10837_v12  ;;  %v10868_v12 = vld [vmem:[#allocation10 + $0x2c0] ss:$16 sps:$4 sm:$0xff]  }
 0x1fc   :  { %v353_v24 = vpop.f32.mrb[0].mxu0 }
 0x1fd   :  { %v354_v27 = vadd.f32 %v353_v24, %v258_v20  ;;  %v355_v28 = vpop.f32.mrb[1].mxu0  ;;  %v394_v35 = vpop.f32.mrb[0].mxu1  ;;  %v10874_v20 = vld [vmem:[#allocation10 + $0x2e0] ss:$16 sps:$4 sm:$0xff]   ;;  %v10885_v24 = vld [vmem:[#allocation10 + $0x30c] ss:$16 sps:$4 sm:$0xff]  }
 0x1fe   :  { %v356_v30 = vadd.f32 %v355_v28, %v262_v22  ;;  %v357_v31 = vpop.f32.mrb[2].mxu0  ;;  %v395_v38 = vadd.f32 %v394_v35, %v266_v26  ;;  %v396_v39 = vpop.f32.mrb[1].mxu1  ;;  %v10877_v22 = vld [vmem:[#allocation10 + $0x2e8] ss:$16 sps:$4 sm:$0xff]   ;;  %v10891_v28 = vld [vmem:[#allocation10 + $0x32c] ss:$16 sps:$4 sm:$0xff]  }
 0x1ff   :  { %vm402_vm1 = vcmp.ge.f32.partialorder %v354_v27, 0.0  ;;  %v427_v33 = vmul.f32 %v410_v23, %v354_v27  ;;  %v358_v34 = vpop.f32.mrb[3].mxu0  ;;  %v397_v41 = vadd.f32 %v396_v39, %v270_v29  ;;  %v398_v42 = vpop.f32.mrb[2].mxu1  ;;  %v10882_v23 = vld [vmem:[#allocation10 + $0x304] ss:$16 sps:$4 sm:$0xff]  }
 0x200   :  { %vm403_vm2 = vcmp.ge.f32.partialorder %v356_v30, 0.0  ;;  %v428_v37 = vmul.f32 %v414_v25, %v356_v30  ;;  %vm404_vm3 = vcmp.ge.f32.partialorder %v395_v38, 0.0  ;;  %v429_v44 = vmul.f32 %v418_v32, %v395_v38  ;;  %v399_v45 = vpop.f32.mrb[3].mxu1  ;;  %v10880_v25 = vld [vmem:[#allocation10 + $0x300] ss:$16 sps:$4 sm:$0xff]  }
 0x201   :  { %v431_v40 = vsel %vm402_vm1, %v354_v27, %v427_v33  ;;  %vm405_vm4 = vcmp.ge.f32.partialorder %v397_v41, 0.0  ;;  %v430_v49 = vmul.f32 %v422_v36, %v397_v41  ;;  %v10883_v26 = vld [vmem:[#allocation10 + $0x308] ss:$16 sps:$4 sm:$0xff]   ;;  %v10888_v27 = vld [vmem:[#allocation10 + $0x324] ss:$16 sps:$4 sm:$0xff]  }
 0x202   :  { %v432_v43 = vsel %vm403_vm2, %v356_v30, %v428_v37  ;;  %v435_v50 = vpack.c.bf16 %v431_v40, %v431_v40  ;;  %v12077_v53 = vsel %vm404_vm3, %v395_v38, %v429_v44  ;;  %v10886_v29 = vld [vmem:[#allocation10 + $0x320] ss:$16 sps:$4 sm:$0xff]   ;;  %v10889_v30 = vld [vmem:[#allocation10 + $0x328] ss:$16 sps:$4 sm:$0xff]   ;;  %v10894_v31 = vld [vmem:[#allocation10 + $0x344] ss:$16 sps:$4 sm:$0xff]  }
 0x203   :  { %v436_v46 = vpack.c.bf16 %v432_v43, %v432_v43  ;;  %v434_v54 = vsel %vm405_vm4, %v397_v41, %v430_v49  ;;  %v10897_v32 = vld [vmem:[#allocation10 + $0x34c] ss:$16 sps:$4 sm:$0xff]   ;;  %v10892_v33 = vld [vmem:[#allocation10 + $0x340] ss:$16 sps:$4 sm:$0xff]   ;;  %v10895_v34 = vld [vmem:[#allocation10 + $0x348] ss:$16 sps:$4 sm:$0xff]  }
 0x204   :  { %v438_v55 = vpack.c.bf16 %v434_v54, %v434_v54  ;;  %v10900_v35 = vld [vmem:[#allocation10 + $0x364] ss:$16 sps:$4 sm:$0xff]   ;;  %v10903_v36 = vld [vmem:[#allocation10 + $0x36c] ss:$16 sps:$4 sm:$0xff]   ;;  %v10898_v37 = vld [vmem:[#allocation10 + $0x360] ss:$16 sps:$4 sm:$0xff]  }
 0x205   :  { %1261 = vmatprep.mubr.bf16.mxu0 %v436_v46  ;;  %1343 = vmatprep.mubr.bf16.mxu1 %v436_v46  ;;  %v10901_v38 = vld [vmem:[#allocation10 + $0x368] ss:$16 sps:$4 sm:$0xff]   ;;  %v10906_v39 = vld [vmem:[#allocation10 + $0x384] ss:$16 sps:$4 sm:$0xff]   ;;  %v10909_v40 = vld [vmem:[#allocation10 + $0x38c] ss:$16 sps:$4 sm:$0xff]  }
 0x206   :  { %1262 = vmatmul.mubr.bf16.vlgmr.msra.gmra.mrb[4].mxu0 %v435_v50  ;;  %1344 = vmatmul.mubr.bf16.vlgmr.msra.gmra.mrb[4].mxu1 %v435_v50  ;;  %v10904_v41 = vld [vmem:[#allocation10 + $0x380] ss:$16 sps:$4 sm:$0xff]   ;;  %v10907_v42 = vld [vmem:[#allocation10 + $0x388] ss:$16 sps:$4 sm:$0xff]   ;;  %v10912_v43 = vld [vmem:[#allocation10 + $0x3a4] ss:$16 sps:$4 sm:$0xff]  }
 0x207   :  { %1271 = vmatpush1.bf16.msra.mxu0 %v10832_v47  ;;  %1353 = vmatpush1.bf16.msra.mxu1 %v10835_v48  ;;  %v10915_v44 = vld [vmem:[#allocation10 + $0x3ac] ss:$16 sps:$4 sm:$0xff]   ;;  %v10910_v45 = vld [vmem:[#allocation10 + $0x3a0] ss:$16 sps:$4 sm:$0xff]   ;;  %v10913_v46 = vld [vmem:[#allocation10 + $0x3a8] ss:$16 sps:$4 sm:$0xff]  }
 0x208   :  { %1272 = vmatprep.subr.bf16.mxu0 %v10840_v51  ;;  %1354 = vmatprep.subr.bf16.mxu1 %v10843_v52  ;;  %v10918_v47 = vld [vmem:[#allocation10 + $0x3c4] ss:$16 sps:$4 sm:$0xff]   ;;  %v10921_v48 = vld [vmem:[#allocation10 + $0x3cc] ss:$16 sps:$4 sm:$0xff]   ;;  %v10916_v49 = vld [vmem:[#allocation10 + $0x3c0] ss:$16 sps:$4 sm:$0xff]  }
 0x209   :  { %1302 = vmatprep.mubr.bf16.mxu0 %v438_v55  ;;  %1384 = vmatprep.mubr.bf16.mxu1 %v438_v55  ;;  %v10919_v50 = vld [vmem:[#allocation10 + $0x3c8] ss:$16 sps:$4 sm:$0xff]   ;;  %v10924_v51 = vld [vmem:[#allocation10 + $0x3e4] ss:$16 sps:$4 sm:$0xff]   ;;  %v10927_v52 = vld [vmem:[#allocation10 + $0x3ec] ss:$16 sps:$4 sm:$0xff]  }
 0x20a   :  { %v10922_v54 = vld [vmem:[#allocation10 + $0x3e0] ss:$16 sps:$4 sm:$0xff]   ;;  %v10925_v55 = vld [vmem:[#allocation10 + $0x3e8] ss:$16 sps:$4 sm:$0xff]  }
 0x20b   :  { %1273 = vmatpush1.bf16.msra.mxu0 %v10838_v56  ;;  %1355 = vmatpush1.bf16.msra.mxu1 %v10841_v57  ;;  %v10930_v56 = vld [vmem:[#allocation14 + $0x4] ss:$16 sps:$4 sm:$0xff]   ;;  %v10933_v57 = vld [vmem:[#allocation14 + $0xc] ss:$16 sps:$4 sm:$0xff]  }
 0x20c   :  { %1274 = vmatprep.subr.bf16.mxu0 %v10846_v58  ;;  %1356 = vmatprep.subr.bf16.mxu1 %v10849_v59  ;;  %v10928_v58 = vld [vmem:[#allocation14] ss:$16 sps:$4 sm:$0xff]   ;;  %v10931_v59 = vld [vmem:[#allocation14 + $0x8] ss:$16 sps:$4 sm:$0xff]  }
 0x20f   :  { %1275 = vmatpush1.bf16.msra.mxu0 %v10844_v60  ;;  %1357 = vmatpush1.bf16.msra.mxu1 %v10847_v61  ;;  %v437_v60 = vpack.c.bf16 %v12077_v53, %v12077_v53  ;;  %v10936_v61 = vld [vmem:[#allocation14 + $0x24] ss:$16 sps:$4 sm:$0xff]  }
 0x210   :  { %1276 = vmatprep.subr.bf16.mxu0 %v10852_v62  ;;  %1358 = vmatprep.subr.bf16.mxu1 %v10855_v63  ;;  %v10939_v62 = vld [vmem:[#allocation14 + $0x2c] ss:$16 sps:$4 sm:$0xff]   ;;  %v10934_v63 = vld [vmem:[#allocation14 + $0x20] ss:$16 sps:$4 sm:$0xff]   ;;  %v10948_v53 = vld [vmem:[#allocation14 + $0x64] ss:$16 sps:$4 sm:$0xff]  }
 0x213   :  { %1277 = vmatpush1.bf16.msra.mxu0 %v10850_v0  ;;  %1359 = vmatpush1.bf16.msra.mxu1 %v10853_v1  ;;  %v10937_v0 = vld [vmem:[#allocation14 + $0x28] ss:$16 sps:$4 sm:$0xff]   ;;  %v10942_v1 = vld [vmem:[#allocation14 + $0x44] ss:$16 sps:$4 sm:$0xff]  }
 0x214   :  { %1278 = vmatprep.subr.bf16.mxu0 %v10858_v2  ;;  %1360 = vmatprep.subr.bf16.mxu1 %v10861_v3  ;;  %v10945_v2 = vld [vmem:[#allocation14 + $0x4c] ss:$16 sps:$4 sm:$0xff]   ;;  %v10940_v3 = vld [vmem:[#allocation14 + $0x40] ss:$16 sps:$4 sm:$0xff]  }
 0x217   :  { %1279 = vmatpush1.bf16.msra.mxu0 %v10856_v4  ;;  %1361 = vmatpush1.bf16.msra.mxu1 %v10859_v5  ;;  %v10943_v4 = vld [vmem:[#allocation14 + $0x48] ss:$16 sps:$4 sm:$0xff]   ;;  %v10951_v5 = vld [vmem:[#allocation14 + $0x6c] ss:$16 sps:$4 sm:$0xff]  }
 0x218   :  { %1280 = vmatprep.subr.bf16.mxu0 %v10864_v6  ;;  %1362 = vmatprep.subr.bf16.mxu1 %v10867_v7  ;;  %v10946_v6 = vld [vmem:[#allocation14 + $0x60] ss:$16 sps:$4 sm:$0xff]   ;;  %v10949_v7 = vld [vmem:[#allocation14 + $0x68] ss:$16 sps:$4 sm:$0xff]  }
 0x21b   :  { %1281 = vmatpush1.bf16.msra.mxu0 %v10862_v8  ;;  %1363 = vmatpush1.bf16.msra.mxu1 %v10865_v9  ;;  %v10954_v8 = vld [vmem:[#allocation14 + $0x84] ss:$16 sps:$4 sm:$0xff]   ;;  %v10957_v9 = vld [vmem:[#allocation14 + $0x8c] ss:$16 sps:$4 sm:$0xff]  }
 0x21c   :  { %1282 = vmatprep.subr.bf16.mxu0 %v10870_v10  ;;  %1364 = vmatprep.subr.bf16.mxu1 %v10873_v11  ;;  %v10952_v10 = vld [vmem:[#allocation14 + $0x80] ss:$16 sps:$4 sm:$0xff]   ;;  %v10955_v11 = vld [vmem:[#allocation14 + $0x88] ss:$16 sps:$4 sm:$0xff]  }
 0x21f   :  { %1283 = vmatpush1.bf16.msra.mxu0 %v10868_v12  ;;  %1365 = vmatpush1.bf16.msra.mxu1 %v10871_v13  ;;  %v10960_v12 = vld [vmem:[#allocation14 + $0xa4] ss:$16 sps:$4 sm:$0xff]   ;;  %v10963_v13 = vld [vmem:[#allocation14 + $0xac] ss:$16 sps:$4 sm:$0xff]  }
 0x220   :  { %1284 = vmatprep.subr.bf16.mxu0 %v10876_v16  ;;  %1366 = vmatprep.subr.bf16.mxu1 %v10879_v18  ;;  %v10958_v16 = vld [vmem:[#allocation14 + $0xa0] ss:$16 sps:$4 sm:$0xff]   ;;  %v10961_v18 = vld [vmem:[#allocation14 + $0xa8] ss:$16 sps:$4 sm:$0xff]  }
 0x223   :  { %1285 = vmatpush1.bf16.msra.mxu0 %v10874_v20  ;;  %1367 = vmatpush1.bf16.msra.mxu1 %v10877_v22  ;;  %v10966_v20 = vld [vmem:[#allocation14 + $0xc4] ss:$16 sps:$4 sm:$0xff]   ;;  %v10969_v22 = vld [vmem:[#allocation14 + $0xcc] ss:$16 sps:$4 sm:$0xff]  }
 0x224   :  { %1286 = vmatprep.subr.bf16.mxu0 %v10882_v23  ;;  %1368 = vmatprep.subr.bf16.mxu1 %v10885_v24  ;;  %v10964_v23 = vld [vmem:[#allocation14 + $0xc0] ss:$16 sps:$4 sm:$0xff]   ;;  %v10967_v24 = vld [vmem:[#allocation14 + $0xc8] ss:$16 sps:$4 sm:$0xff]  }
 0x227   :  { %1287 = vmatpush1.bf16.msra.mxu0 %v10880_v25  ;;  %1369 = vmatpush1.bf16.msra.mxu1 %v10883_v26  ;;  %v10972_v25 = vld [vmem:[#allocation14 + $0xe4] ss:$16 sps:$4 sm:$0xff]   ;;  %v10975_v26 = vld [vmem:[#allocation14 + $0xec] ss:$16 sps:$4 sm:$0xff]  }
 0x228   :  { %1288 = vmatprep.subr.bf16.mxu0 %v10888_v27  ;;  %1370 = vmatprep.subr.bf16.mxu1 %v10891_v28  ;;  %v10970_v27 = vld [vmem:[#allocation14 + $0xe0] ss:$16 sps:$4 sm:$0xff]   ;;  %v10973_v28 = vld [vmem:[#allocation14 + $0xe8] ss:$16 sps:$4 sm:$0xff]  }
 0x22b   :  { %1289 = vmatpush1.bf16.msra.mxu0 %v10886_v29  ;;  %1371 = vmatpush1.bf16.msra.mxu1 %v10889_v30  ;;  %v10978_v29 = vld [vmem:[#allocation14 + $0x104] ss:$16 sps:$4 sm:$0xff]   ;;  %v10981_v30 = vld [vmem:[#allocation14 + $0x10c] ss:$16 sps:$4 sm:$0xff]  }
 0x22c   :  { %1290 = vmatprep.subr.bf16.mxu0 %v10894_v31  ;;  %1372 = vmatprep.subr.bf16.mxu1 %v10897_v32  ;;  %v10976_v31 = vld [vmem:[#allocation14 + $0x100] ss:$16 sps:$4 sm:$0xff]   ;;  %v10979_v32 = vld [vmem:[#allocation14 + $0x108] ss:$16 sps:$4 sm:$0xff]  }
 0x22f   :  { %1291 = vmatpush1.bf16.msra.mxu0 %v10892_v33  ;;  %1373 = vmatpush1.bf16.msra.mxu1 %v10895_v34  ;;  %v10984_v33 = vld [vmem:[#allocation14 + $0x124] ss:$16 sps:$4 sm:$0xff]   ;;  %v10987_v34 = vld [vmem:[#allocation14 + $0x12c] ss:$16 sps:$4 sm:$0xff]  }
 0x230   :  { %1292 = vmatprep.subr.bf16.mxu0 %v10900_v35  ;;  %1374 = vmatprep.subr.bf16.mxu1 %v10903_v36  ;;  %v10982_v35 = vld [vmem:[#allocation14 + $0x120] ss:$16 sps:$4 sm:$0xff]   ;;  %v10985_v36 = vld [vmem:[#allocation14 + $0x128] ss:$16 sps:$4 sm:$0xff]  }
 0x233   :  { %1293 = vmatpush1.bf16.msra.mxu0 %v10898_v37  ;;  %1375 = vmatpush1.bf16.msra.mxu1 %v10901_v38  ;;  %v10990_v37 = vld [vmem:[#allocation14 + $0x144] ss:$16 sps:$4 sm:$0xff]   ;;  %v10993_v38 = vld [vmem:[#allocation14 + $0x14c] ss:$16 sps:$4 sm:$0xff]  }
 0x234   :  { %1294 = vmatprep.subr.bf16.mxu0 %v10906_v39  ;;  %1376 = vmatprep.subr.bf16.mxu1 %v10909_v40  ;;  %v10988_v39 = vld [vmem:[#allocation14 + $0x140] ss:$16 sps:$4 sm:$0xff]   ;;  %v10991_v40 = vld [vmem:[#allocation14 + $0x148] ss:$16 sps:$4 sm:$0xff]  }
 0x237   :  { %1295 = vmatpush1.bf16.msra.mxu0 %v10904_v41  ;;  %1377 = vmatpush1.bf16.msra.mxu1 %v10907_v42  ;;  %v10996_v41 = vld [vmem:[#allocation14 + $0x164] ss:$16 sps:$4 sm:$0xff]   ;;  %v10999_v42 = vld [vmem:[#allocation14 + $0x16c] ss:$16 sps:$4 sm:$0xff]  }
 0x238   :  { %1296 = vmatprep.subr.bf16.mxu0 %v10912_v43  ;;  %1378 = vmatprep.subr.bf16.mxu1 %v10915_v44  ;;  %v10994_v43 = vld [vmem:[#allocation14 + $0x160] ss:$16 sps:$4 sm:$0xff]   ;;  %v10997_v44 = vld [vmem:[#allocation14 + $0x168] ss:$16 sps:$4 sm:$0xff]  }
 0x23b   :  { %1297 = vmatpush1.bf16.msra.mxu0 %v10910_v45  ;;  %1379 = vmatpush1.bf16.msra.mxu1 %v10913_v46  ;;  %v11002_v45 = vld [vmem:[#allocation14 + $0x184] ss:$16 sps:$4 sm:$0xff]   ;;  %v11005_v46 = vld [vmem:[#allocation14 + $0x18c] ss:$16 sps:$4 sm:$0xff]  }
 0x23c   :  { %1298 = vmatprep.subr.bf16.mxu0 %v10918_v47  ;;  %1380 = vmatprep.subr.bf16.mxu1 %v10921_v48  ;;  %v11000_v47 = vld [vmem:[#allocation14 + $0x180] ss:$16 sps:$4 sm:$0xff]   ;;  %v11003_v48 = vld [vmem:[#allocation14 + $0x188] ss:$16 sps:$4 sm:$0xff]  }
 0x23f   :  { %1299 = vmatpush1.bf16.msra.mxu0 %v10916_v49  ;;  %1381 = vmatpush1.bf16.msra.mxu1 %v10919_v50  ;;  %v11008_v49 = vld [vmem:[#allocation14 + $0x1a4] ss:$16 sps:$4 sm:$0xff]   ;;  %v11011_v50 = vld [vmem:[#allocation14 + $0x1ac] ss:$16 sps:$4 sm:$0xff]  }
 0x240   :  { %1300 = vmatprep.subr.bf16.mxu0 %v10924_v51  ;;  %1382 = vmatprep.subr.bf16.mxu1 %v10927_v52  ;;  %v11006_v51 = vld [vmem:[#allocation14 + $0x1a0] ss:$16 sps:$4 sm:$0xff]   ;;  %v11009_v52 = vld [vmem:[#allocation14 + $0x1a8] ss:$16 sps:$4 sm:$0xff]  }
 0x243   :  { %1301 = vmatpush1.bf16.msra.mxu0 %v10922_v54  ;;  %1383 = vmatpush1.bf16.msra.mxu1 %v10925_v55  ;;  %v11014_v54 = vld [vmem:[#allocation14 + $0x1c4] ss:$16 sps:$4 sm:$0xff]   ;;  %v11017_v55 = vld [vmem:[#allocation14 + $0x1cc] ss:$16 sps:$4 sm:$0xff]  }
 0x244   :  { %2221 = vmatprep.subr.bf16.mxu0 %v10930_v56  ;;  %2303 = vmatprep.subr.bf16.mxu1 %v10933_v57  ;;  %v11012_v56 = vld [vmem:[#allocation14 + $0x1c0] ss:$16 sps:$4 sm:$0xff]   ;;  %v11015_v57 = vld [vmem:[#allocation14 + $0x1c8] ss:$16 sps:$4 sm:$0xff]  }
 0x246   :  { %1303 = vmatmul.mubr.bf16.vlgmr.msra.gmra.mrb[4].mxu0 %v437_v60  ;;  %1385 = vmatmul.mubr.bf16.vlgmr.msra.gmra.mrb[4].mxu1 %v437_v60  ;;  %v11018_v60 = vld [vmem:[#allocation14 + $0x1e0] ss:$16 sps:$4 sm:$0xff]  }
 0x247   :  { %2222 = vmatpush1.bf16.msra.mxu0 %v10928_v58  ;;  %2304 = vmatpush1.bf16.msra.mxu1 %v10931_v59  ;;  %v11020_v58 = vld [vmem:[#allocation14 + $0x1e4] ss:$16 sps:$4 sm:$0xff]   ;;  %v11023_v59 = vld [vmem:[#allocation14 + $0x1ec] ss:$16 sps:$4 sm:$0xff]  }
 0x248   :  { %2223 = vmatprep.subr.bf16.mxu0 %v10936_v61  ;;  %2305 = vmatprep.subr.bf16.mxu1 %v10939_v62  ;;  %v11021_v61 = vld [vmem:[#allocation14 + $0x1e8] ss:$16 sps:$4 sm:$0xff]   ;;  %v11026_v62 = vld [vmem:[#allocation14 + $0x204] ss:$16 sps:$4 sm:$0xff]  }
 0x24b   :  { %2224 = vmatpush1.bf16.msra.mxu0 %v10934_v63  ;;  %2306 = vmatpush1.bf16.msra.mxu1 %v10937_v0  ;;  %v11029_v63 = vld [vmem:[#allocation14 + $0x20c] ss:$16 sps:$4 sm:$0xff]   ;;  %v567_v0 = vld [vmem:[#allocation11] sm:$0xf] }
 0x24c   :  { %2225 = vmatprep.subr.bf16.mxu0 %v10942_v1  ;;  %2307 = vmatprep.subr.bf16.mxu1 %v10945_v2  ;;  %v1393_v1 = vld [vmem:[#allocation13] sm:$0xf]  ;;  %v572_v2 = vrot.slane %v567_v0, %v12058_v15 }
 0x24f   :  { %2226 = vmatpush1.bf16.msra.mxu0 %v10940_v3  ;;  %2308 = vmatpush1.bf16.msra.mxu1 %v10943_v4  ;;  %v580_v3 = vrot.slane %v567_v0, %v12064_v19  ;;  %v576_v4 = vrot.slane %v567_v0, %v12061_v17 }
 0x250   :  { %2227 = vmatprep.subr.bf16.mxu0 %v10948_v53  ;;  %2309 = vmatprep.subr.bf16.mxu1 %v10951_v5  ;;  %v584_v53 = vrot.slane %v567_v0, %v12068_v21  ;;  %v1402_v5 = vrot.slane %v1393_v1, %v12058_v15  ;;  %v11068_v0 = vld [vmem:[#allocation14 + $0x2e4] ss:$16 sps:$4 sm:$0xff]  }
 0x253   :  { %2228 = vmatpush1.bf16.msra.mxu0 %v10946_v6  ;;  %2310 = vmatpush1.bf16.msra.mxu1 %v10949_v7  ;;  %v1410_v6 = vrot.slane %v1393_v1, %v12064_v19 }
 0x254   :  { %2229 = vmatprep.subr.bf16.mxu0 %v10954_v8  ;;  %2311 = vmatprep.subr.bf16.mxu1 %v10957_v9  ;;  %v1406_v9 = vrot.slane %v1393_v1, %v12061_v17 }
 0x257   :  { %2230 = vmatpush1.bf16.msra.mxu0 %v10952_v10  ;;  %2312 = vmatpush1.bf16.msra.mxu1 %v10955_v11  ;;  %v1414_v10 = vrot.slane %v1393_v1, %v12068_v21  ;;  %v11071_v1 = vld [vmem:[#allocation14 + $0x2ec] ss:$16 sps:$4 sm:$0xff]  }
 0x258   :  { %2231 = vmatprep.subr.bf16.mxu0 %v10960_v12  ;;  %2313 = vmatprep.subr.bf16.mxu1 %v10963_v13 }
 0x25b   :  { %2232 = vmatpush1.bf16.msra.mxu0 %v10958_v16  ;;  %2314 = vmatpush1.bf16.msra.mxu1 %v10961_v18 }
 0x25c   :  { %2233 = vmatprep.subr.bf16.mxu0 %v10966_v20  ;;  %2315 = vmatprep.subr.bf16.mxu1 %v10969_v22 }
 0x25f   :  { %2234 = vmatpush1.bf16.msra.mxu0 %v10964_v23  ;;  %2316 = vmatpush1.bf16.msra.mxu1 %v10967_v24 }
 0x260   :  { %2235 = vmatprep.subr.bf16.mxu0 %v10972_v25  ;;  %2317 = vmatprep.subr.bf16.mxu1 %v10975_v26 }
 0x263   :  { %2236 = vmatpush1.bf16.msra.mxu0 %v10970_v27  ;;  %2318 = vmatpush1.bf16.msra.mxu1 %v10973_v28 }
 0x264   :  { %2237 = vmatprep.subr.bf16.mxu0 %v10978_v29  ;;  %2319 = vmatprep.subr.bf16.mxu1 %v10981_v30 }
 0x267   :  { %2238 = vmatpush1.bf16.msra.mxu0 %v10976_v31  ;;  %2320 = vmatpush1.bf16.msra.mxu1 %v10979_v32 }
 0x268   :  { %2239 = vmatprep.subr.bf16.mxu0 %v10984_v33  ;;  %2321 = vmatprep.subr.bf16.mxu1 %v10987_v34  ;;  %v11024_v34 = vld [vmem:[#allocation14 + $0x200] ss:$16 sps:$4 sm:$0xff]  }
 0x26b   :  { %2240 = vmatpush1.bf16.msra.mxu0 %v10982_v35  ;;  %2322 = vmatpush1.bf16.msra.mxu1 %v10985_v36  ;;  %v11027_v35 = vld [vmem:[#allocation14 + $0x208] ss:$16 sps:$4 sm:$0xff]  }
 0x26c   :  { %2241 = vmatprep.subr.bf16.mxu0 %v10990_v37  ;;  %2323 = vmatprep.subr.bf16.mxu1 %v10993_v38  ;;  %v11032_v38 = vld [vmem:[#allocation14 + $0x224] ss:$16 sps:$4 sm:$0xff]  }
 0x26f   :  { %2242 = vmatpush1.bf16.msra.mxu0 %v10988_v39  ;;  %2324 = vmatpush1.bf16.msra.mxu1 %v10991_v40  ;;  %v11035_v39 = vld [vmem:[#allocation14 + $0x22c] ss:$16 sps:$4 sm:$0xff]  }
 0x270   :  { %2243 = vmatprep.subr.bf16.mxu0 %v10996_v41  ;;  %2325 = vmatprep.subr.bf16.mxu1 %v10999_v42  ;;  %v11030_v41 = vld [vmem:[#allocation14 + $0x220] ss:$16 sps:$4 sm:$0xff]   ;;  %v11033_v42 = vld [vmem:[#allocation14 + $0x228] ss:$16 sps:$4 sm:$0xff]  }
 0x273   :  { %2244 = vmatpush1.bf16.msra.mxu0 %v10994_v43  ;;  %2326 = vmatpush1.bf16.msra.mxu1 %v10997_v44  ;;  %v11038_v43 = vld [vmem:[#allocation14 + $0x244] ss:$16 sps:$4 sm:$0xff]   ;;  %v11041_v44 = vld [vmem:[#allocation14 + $0x24c] ss:$16 sps:$4 sm:$0xff]  }
 0x274   :  { %2245 = vmatprep.subr.bf16.mxu0 %v11002_v45  ;;  %2327 = vmatprep.subr.bf16.mxu1 %v11005_v46  ;;  %v11036_v45 = vld [vmem:[#allocation14 + $0x240] ss:$16 sps:$4 sm:$0xff]   ;;  %v11039_v46 = vld [vmem:[#allocation14 + $0x248] ss:$16 sps:$4 sm:$0xff]  }
 0x277   :  { %2246 = vmatpush1.bf16.msra.mxu0 %v11000_v47  ;;  %2328 = vmatpush1.bf16.msra.mxu1 %v11003_v48  ;;  %v11044_v47 = vld [vmem:[#allocation14 + $0x264] ss:$16 sps:$4 sm:$0xff]   ;;  %v11047_v48 = vld [vmem:[#allocation14 + $0x26c] ss:$16 sps:$4 sm:$0xff]  }
 0x278   :  { %2247 = vmatprep.subr.bf16.mxu0 %v11008_v49  ;;  %2329 = vmatprep.subr.bf16.mxu1 %v11011_v50  ;;  %v11042_v49 = vld [vmem:[#allocation14 + $0x260] ss:$16 sps:$4 sm:$0xff]   ;;  %v11045_v50 = vld [vmem:[#allocation14 + $0x268] ss:$16 sps:$4 sm:$0xff]  }
 0x27b   :  { %2248 = vmatpush1.bf16.msra.mxu0 %v11006_v51  ;;  %2330 = vmatpush1.bf16.msra.mxu1 %v11009_v52  ;;  %v11050_v51 = vld [vmem:[#allocation14 + $0x284] ss:$16 sps:$4 sm:$0xff]   ;;  %v11053_v52 = vld [vmem:[#allocation14 + $0x28c] ss:$16 sps:$4 sm:$0xff]  }
 0x27c   :  { %2249 = vmatprep.subr.bf16.mxu0 %v11014_v54  ;;  %2331 = vmatprep.subr.bf16.mxu1 %v11017_v55  ;;  %v11048_v54 = vld [vmem:[#allocation14 + $0x280] ss:$16 sps:$4 sm:$0xff]   ;;  %v11051_v55 = vld [vmem:[#allocation14 + $0x288] ss:$16 sps:$4 sm:$0xff]  }
 0x27f   :  { %2250 = vmatpush1.bf16.msra.mxu0 %v11012_v56  ;;  %2332 = vmatpush1.bf16.msra.mxu1 %v11015_v57  ;;  %v11056_v56 = vld [vmem:[#allocation14 + $0x2a4] ss:$16 sps:$4 sm:$0xff]   ;;  %v11059_v57 = vld [vmem:[#allocation14 + $0x2ac] ss:$16 sps:$4 sm:$0xff]  }
 0x280   :  { %2251 = vmatprep.subr.bf16.mxu0 %v11020_v58  ;;  %2333 = vmatprep.subr.bf16.mxu1 %v11023_v59  ;;  %v11054_v58 = vld [vmem:[#allocation14 + $0x2a0] ss:$16 sps:$4 sm:$0xff]   ;;  %v11057_v59 = vld [vmem:[#allocation14 + $0x2a8] ss:$16 sps:$4 sm:$0xff]  }
 0x283   :  { %2252 = vmatpush1.bf16.msra.mxu0 %v11018_v60  ;;  %2334 = vmatpush1.bf16.msra.mxu1 %v11021_v61  ;;  %v11062_v60 = vld [vmem:[#allocation14 + $0x2c4] ss:$16 sps:$4 sm:$0xff]   ;;  %v11065_v61 = vld [vmem:[#allocation14 + $0x2cc] ss:$16 sps:$4 sm:$0xff]  }
 0x284   :  { %2262 = vmatprep.subr.bf16.mxu0 %v11026_v62  ;;  %2344 = vmatprep.subr.bf16.mxu1 %v11029_v63  ;;  %v11060_v62 = vld [vmem:[#allocation14 + $0x2c0] ss:$16 sps:$4 sm:$0xff]   ;;  %v11063_v63 = vld [vmem:[#allocation14 + $0x2c8] ss:$16 sps:$4 sm:$0xff]  }
 0x319   :  { %v1304_v7 = vpop.f32.mrb[4].mxu0  ;;  %v1386_v8 = vpop.f32.mrb[4].mxu1 }
 0x31a   :  { %v10595_v11 = vadd.f32 %v1304_v7, %v572_v2  ;;  %v10597_v12 = vadd.f32 %v1386_v8, %v580_v3  ;;  %v1306_v13 = vpop.f32.mrb[5].mxu0  ;;  %v1388_v16 = vpop.f32.mrb[5].mxu1  ;;  %v11066_v2 = vld [vmem:[#allocation14 + $0x2e0] ss:$16 sps:$4 sm:$0xff]   ;;  %v11069_v3 = vld [vmem:[#allocation14 + $0x2e8] ss:$16 sps:$4 sm:$0xff]  }
 0x31b   :  { %v10596_v18 = vadd.f32 %v1306_v13, %v576_v4  ;;  %v10598_v20 = vadd.f32 %v1388_v16, %v584_v53  ;;  %v1308_v22 = vpop.f32.mrb[6].mxu0  ;;  %v1390_v23 = vpop.f32.mrb[6].mxu1  ;;  %v11074_v4 = vld [vmem:[#allocation14 + $0x304] ss:$16 sps:$4 sm:$0xff]   ;;  %v11077_v53 = vld [vmem:[#allocation14 + $0x30c] ss:$16 sps:$4 sm:$0xff]  }
 0x31c   :  { %vm1394_vm5 = vcmp.ge.f32.partialorder %v10595_v11, 0.0  ;;  %v1419_v24 = vmul.f32 %v10595_v11, %v1402_v5  ;;  %vm1396_vm6 = vcmp.ge.f32.partialorder %v10597_v12, 0.0  ;;  %v1421_v25 = vmul.f32 %v10597_v12, %v1410_v6  ;;  %v1309_v26 = vpop.f32.mrb[7].mxu0  ;;  %v1391_v27 = vpop.f32.mrb[7].mxu1  ;;  %v11072_v5 = vld [vmem:[#allocation14 + $0x300] ss:$16 sps:$4 sm:$0xff]  }
 0x31d   :  { %vm1395_vm7 = vcmp.ge.f32.partialorder %v10596_v18, 0.0  ;;  %v1420_v28 = vmul.f32 %v10596_v18, %v1406_v9  ;;  %vm1397_vm8 = vcmp.ge.f32.partialorder %v10598_v20, 0.0  ;;  %v1422_v29 = vmul.f32 %v10598_v20, %v1414_v10  ;;  %v11075_v6 = vld [vmem:[#allocation14 + $0x308] ss:$16 sps:$4 sm:$0xff]   ;;  %v11080_v7 = vld [vmem:[#allocation14 + $0x324] ss:$16 sps:$4 sm:$0xff]  }
 0x31e   :  { %v1423_v30 = vsel %vm1394_vm5, %v10595_v11, %v1419_v24  ;;  %v12089_v31 = vsel %vm1396_vm6, %v10597_v12, %v1421_v25  ;;  %v11083_v8 = vld [vmem:[#allocation14 + $0x32c] ss:$16 sps:$4 sm:$0xff]   ;;  %v11078_v9 = vld [vmem:[#allocation14 + $0x320] ss:$16 sps:$4 sm:$0xff]   ;;  %v11081_v10 = vld [vmem:[#allocation14 + $0x328] ss:$16 sps:$4 sm:$0xff]  }
 0x31f   :  { %v1424_v32 = vsel %vm1395_vm7, %v10596_v18, %v1420_v28  ;;  %v1426_v36 = vsel %vm1397_vm8, %v10598_v20, %v1422_v29  ;;  %v1427_v37 = vpack.c.bf16 %v1423_v30, %v1423_v30  ;;  %v11086_v11 = vld [vmem:[#allocation14 + $0x344] ss:$16 sps:$4 sm:$0xff]   ;;  %v11089_v12 = vld [vmem:[#allocation14 + $0x34c] ss:$16 sps:$4 sm:$0xff]   ;;  %v11084_v13 = vld [vmem:[#allocation14 + $0x340] ss:$16 sps:$4 sm:$0xff]  }
 0x320   :  { %v1428_v33 = vpack.c.bf16 %v1424_v32, %v1424_v32  ;;  %v1430_v40 = vpack.c.bf16 %v1426_v36, %v1426_v36  ;;  %v11087_v16 = vld [vmem:[#allocation14 + $0x348] ss:$16 sps:$4 sm:$0xff]   ;;  %v11092_v18 = vld [vmem:[#allocation14 + $0x364] ss:$16 sps:$4 sm:$0xff]   ;;  %v11095_v20 = vld [vmem:[#allocation14 + $0x36c] ss:$16 sps:$4 sm:$0xff]  }
 0x321   :  { %v11090_v22 = vld [vmem:[#allocation14 + $0x360] ss:$16 sps:$4 sm:$0xff]   ;;  %v11093_v23 = vld [vmem:[#allocation14 + $0x368] ss:$16 sps:$4 sm:$0xff]   ;;  %v11098_v24 = vld [vmem:[#allocation14 + $0x384] ss:$16 sps:$4 sm:$0xff]  }
 0x322   :  { %2253 = vmatprep.mubr.bf16.mxu0 %v1428_v33  ;;  %2335 = vmatprep.mubr.bf16.mxu1 %v1428_v33  ;;  %v11101_v25 = vld [vmem:[#allocation14 + $0x38c] ss:$16 sps:$4 sm:$0xff]   ;;  %v11096_v26 = vld [vmem:[#allocation14 + $0x380] ss:$16 sps:$4 sm:$0xff]   ;;  %v11099_v27 = vld [vmem:[#allocation14 + $0x388] ss:$16 sps:$4 sm:$0xff]  }
 0x323   :  { %2254 = vmatmul.mubr.bf16.vlgmr.msra.gmra.mrb[8].mxu0 %v1427_v37  ;;  %2336 = vmatmul.mubr.bf16.vlgmr.msra.gmra.mrb[8].mxu1 %v1427_v37  ;;  %v11104_v28 = vld [vmem:[#allocation14 + $0x3a4] ss:$16 sps:$4 sm:$0xff]   ;;  %v11107_v29 = vld [vmem:[#allocation14 + $0x3ac] ss:$16 sps:$4 sm:$0xff]   ;;  %v11102_v30 = vld [vmem:[#allocation14 + $0x3a0] ss:$16 sps:$4 sm:$0xff]  }
 0x324   :  { %2263 = vmatpush1.bf16.msra.mxu0 %v11024_v34  ;;  %2345 = vmatpush1.bf16.msra.mxu1 %v11027_v35  ;;  %v11105_v32 = vld [vmem:[#allocation14 + $0x3a8] ss:$16 sps:$4 sm:$0xff]   ;;  %v11110_v33 = vld [vmem:[#allocation14 + $0x3c4] ss:$16 sps:$4 sm:$0xff]   ;;  %v11113_v34 = vld [vmem:[#allocation14 + $0x3cc] ss:$16 sps:$4 sm:$0xff]  }
 0x325   :  { %2294 = vmatprep.mubr.bf16.mxu0 %v1430_v40  ;;  %2376 = vmatprep.mubr.bf16.mxu1 %v1430_v40  ;;  %v11108_v35 = vld [vmem:[#allocation14 + $0x3c0] ss:$16 sps:$4 sm:$0xff]   ;;  %v11111_v36 = vld [vmem:[#allocation14 + $0x3c8] ss:$16 sps:$4 sm:$0xff]   ;;  %v11116_v37 = vld [vmem:[#allocation14 + $0x3e4] ss:$16 sps:$4 sm:$0xff]  }
 0x326   :  { %2264 = vmatprep.subr.bf16.mxu0 %v11032_v38  ;;  %2346 = vmatprep.subr.bf16.mxu1 %v11035_v39  ;;  %v11119_v38 = vld [vmem:[#allocation14 + $0x3ec] ss:$16 sps:$4 sm:$0xff]   ;;  %v11114_v39 = vld [vmem:[#allocation14 + $0x3e0] ss:$16 sps:$4 sm:$0xff]   ;;  %v11117_v40 = vld [vmem:[#allocation14 + $0x3e8] ss:$16 sps:$4 sm:$0xff]  }
 0x328   :  { %2265 = vmatpush1.bf16.msra.mxu0 %v11030_v41  ;;  %2347 = vmatpush1.bf16.msra.mxu1 %v11033_v42  ;;  %v11122_v41 = vld [vmem:[#allocation19 + $0x4] ss:$16 sps:$4 sm:$0xff]   ;;  %v11125_v42 = vld [vmem:[#allocation19 + $0xc] ss:$16 sps:$4 sm:$0xff]  }
 0x329   :  { %2266 = vmatprep.subr.bf16.mxu0 %v11038_v43  ;;  %2348 = vmatprep.subr.bf16.mxu1 %v11041_v44  ;;  %v11120_v43 = vld [vmem:[#allocation19] ss:$16 sps:$4 sm:$0xff]   ;;  %v11123_v44 = vld [vmem:[#allocation19 + $0x8] ss:$16 sps:$4 sm:$0xff]  }
 0x32c   :  { %2267 = vmatpush1.bf16.msra.mxu0 %v11036_v45  ;;  %2349 = vmatpush1.bf16.msra.mxu1 %v11039_v46  ;;  %v1429_v45 = vpack.c.bf16 %v12089_v31, %v12089_v31  ;;  %v11128_v46 = vld [vmem:[#allocation19 + $0x24] ss:$16 sps:$4 sm:$0xff]  }
 0x32d   :  { %2268 = vmatprep.subr.bf16.mxu0 %v11044_v47  ;;  %2350 = vmatprep.subr.bf16.mxu1 %v11047_v48  ;;  %v11131_v47 = vld [vmem:[#allocation19 + $0x2c] ss:$16 sps:$4 sm:$0xff]   ;;  %v11126_v48 = vld [vmem:[#allocation19 + $0x20] ss:$16 sps:$4 sm:$0xff]   ;;  %v11140_v31 = vld [vmem:[#allocation19 + $0x64] ss:$16 sps:$4 sm:$0xff]  }
 0x330   :  { %2269 = vmatpush1.bf16.msra.mxu0 %v11042_v49  ;;  %2351 = vmatpush1.bf16.msra.mxu1 %v11045_v50  ;;  %v11129_v49 = vld [vmem:[#allocation19 + $0x28] ss:$16 sps:$4 sm:$0xff]   ;;  %v11134_v50 = vld [vmem:[#allocation19 + $0x44] ss:$16 sps:$4 sm:$0xff]  }
 0x331   :  { %2270 = vmatprep.subr.bf16.mxu0 %v11050_v51  ;;  %2352 = vmatprep.subr.bf16.mxu1 %v11053_v52  ;;  %v11137_v51 = vld [vmem:[#allocation19 + $0x4c] ss:$16 sps:$4 sm:$0xff]   ;;  %v11132_v52 = vld [vmem:[#allocation19 + $0x40] ss:$16 sps:$4 sm:$0xff]  }
 0x334   :  { %2271 = vmatpush1.bf16.msra.mxu0 %v11048_v54  ;;  %2353 = vmatpush1.bf16.msra.mxu1 %v11051_v55  ;;  %v11135_v54 = vld [vmem:[#allocation19 + $0x48] ss:$16 sps:$4 sm:$0xff]   ;;  %v11143_v55 = vld [vmem:[#allocation19 + $0x6c] ss:$16 sps:$4 sm:$0xff]  }
 0x335   :  { %2272 = vmatprep.subr.bf16.mxu0 %v11056_v56  ;;  %2354 = vmatprep.subr.bf16.mxu1 %v11059_v57  ;;  %v11138_v56 = vld [vmem:[#allocation19 + $0x60] ss:$16 sps:$4 sm:$0xff]   ;;  %v11141_v57 = vld [vmem:[#allocation19 + $0x68] ss:$16 sps:$4 sm:$0xff]  }
 0x338   :  { %2273 = vmatpush1.bf16.msra.mxu0 %v11054_v58  ;;  %2355 = vmatpush1.bf16.msra.mxu1 %v11057_v59  ;;  %v11146_v58 = vld [vmem:[#allocation19 + $0x84] ss:$16 sps:$4 sm:$0xff]   ;;  %v11149_v59 = vld [vmem:[#allocation19 + $0x8c] ss:$16 sps:$4 sm:$0xff]  }
 0x339   :  { %2274 = vmatprep.subr.bf16.mxu0 %v11062_v60  ;;  %2356 = vmatprep.subr.bf16.mxu1 %v11065_v61  ;;  %v11144_v60 = vld [vmem:[#allocation19 + $0x80] ss:$16 sps:$4 sm:$0xff]   ;;  %v11147_v61 = vld [vmem:[#allocation19 + $0x88] ss:$16 sps:$4 sm:$0xff]  }
 0x33c   :  { %2275 = vmatpush1.bf16.msra.mxu0 %v11060_v62  ;;  %2357 = vmatpush1.bf16.msra.mxu1 %v11063_v63  ;;  %v11152_v62 = vld [vmem:[#allocation19 + $0xa4] ss:$16 sps:$4 sm:$0xff]   ;;  %v11155_v63 = vld [vmem:[#allocation19 + $0xac] ss:$16 sps:$4 sm:$0xff]  }
 0x33d   :  { %2276 = vmatprep.subr.bf16.mxu0 %v11068_v0  ;;  %2358 = vmatprep.subr.bf16.mxu1 %v11071_v1  ;;  %v11150_v0 = vld [vmem:[#allocation19 + $0xa0] ss:$16 sps:$4 sm:$0xff]   ;;  %v11153_v1 = vld [vmem:[#allocation19 + $0xa8] ss:$16 sps:$4 sm:$0xff]  }
 0x340   :  { %2277 = vmatpush1.bf16.msra.mxu0 %v11066_v2  ;;  %2359 = vmatpush1.bf16.msra.mxu1 %v11069_v3  ;;  %v11158_v2 = vld [vmem:[#allocation19 + $0xc4] ss:$16 sps:$4 sm:$0xff]   ;;  %v11161_v3 = vld [vmem:[#allocation19 + $0xcc] ss:$16 sps:$4 sm:$0xff]  }
 0x341   :  { %2278 = vmatprep.subr.bf16.mxu0 %v11074_v4  ;;  %2360 = vmatprep.subr.bf16.mxu1 %v11077_v53  ;;  %v11156_v4 = vld [vmem:[#allocation19 + $0xc0] ss:$16 sps:$4 sm:$0xff]   ;;  %v11159_v53 = vld [vmem:[#allocation19 + $0xc8] ss:$16 sps:$4 sm:$0xff]  }
 0x344   :  { %2279 = vmatpush1.bf16.msra.mxu0 %v11072_v5  ;;  %2361 = vmatpush1.bf16.msra.mxu1 %v11075_v6  ;;  %v11164_v5 = vld [vmem:[#allocation19 + $0xe4] ss:$16 sps:$4 sm:$0xff]   ;;  %v11167_v6 = vld [vmem:[#allocation19 + $0xec] ss:$16 sps:$4 sm:$0xff]  }
 0x345   :  { %2280 = vmatprep.subr.bf16.mxu0 %v11080_v7  ;;  %2362 = vmatprep.subr.bf16.mxu1 %v11083_v8  ;;  %v11162_v7 = vld [vmem:[#allocation19 + $0xe0] ss:$16 sps:$4 sm:$0xff]   ;;  %v11165_v8 = vld [vmem:[#allocation19 + $0xe8] ss:$16 sps:$4 sm:$0xff]  }
 0x348   :  { %2281 = vmatpush1.bf16.msra.mxu0 %v11078_v9  ;;  %2363 = vmatpush1.bf16.msra.mxu1 %v11081_v10  ;;  %v11170_v9 = vld [vmem:[#allocation19 + $0x104] ss:$16 sps:$4 sm:$0xff]   ;;  %v11173_v10 = vld [vmem:[#allocation19 + $0x10c] ss:$16 sps:$4 sm:$0xff]  }
 0x349   :  { %2282 = vmatprep.subr.bf16.mxu0 %v11086_v11  ;;  %2364 = vmatprep.subr.bf16.mxu1 %v11089_v12  ;;  %v11168_v11 = vld [vmem:[#allocation19 + $0x100] ss:$16 sps:$4 sm:$0xff]   ;;  %v11171_v12 = vld [vmem:[#allocation19 + $0x108] ss:$16 sps:$4 sm:$0xff]  }
 0x34c   :  { %2283 = vmatpush1.bf16.msra.mxu0 %v11084_v13  ;;  %2365 = vmatpush1.bf16.msra.mxu1 %v11087_v16  ;;  %v11176_v13 = vld [vmem:[#allocation19 + $0x124] ss:$16 sps:$4 sm:$0xff]   ;;  %v11179_v16 = vld [vmem:[#allocation19 + $0x12c] ss:$16 sps:$4 sm:$0xff]  }
 0x34d   :  { %2284 = vmatprep.subr.bf16.mxu0 %v11092_v18  ;;  %2366 = vmatprep.subr.bf16.mxu1 %v11095_v20  ;;  %v11174_v18 = vld [vmem:[#allocation19 + $0x120] ss:$16 sps:$4 sm:$0xff]   ;;  %v11177_v20 = vld [vmem:[#allocation19 + $0x128] ss:$16 sps:$4 sm:$0xff]  }
 0x350   :  { %2285 = vmatpush1.bf16.msra.mxu0 %v11090_v22  ;;  %2367 = vmatpush1.bf16.msra.mxu1 %v11093_v23  ;;  %v11182_v22 = vld [vmem:[#allocation19 + $0x144] ss:$16 sps:$4 sm:$0xff]   ;;  %v11185_v23 = vld [vmem:[#allocation19 + $0x14c] ss:$16 sps:$4 sm:$0xff]  }
 0x351   :  { %2286 = vmatprep.subr.bf16.mxu0 %v11098_v24  ;;  %2368 = vmatprep.subr.bf16.mxu1 %v11101_v25  ;;  %v11180_v24 = vld [vmem:[#allocation19 + $0x140] ss:$16 sps:$4 sm:$0xff]   ;;  %v11183_v25 = vld [vmem:[#allocation19 + $0x148] ss:$16 sps:$4 sm:$0xff]  }
 0x354   :  { %2287 = vmatpush1.bf16.msra.mxu0 %v11096_v26  ;;  %2369 = vmatpush1.bf16.msra.mxu1 %v11099_v27  ;;  %v11188_v26 = vld [vmem:[#allocation19 + $0x164] ss:$16 sps:$4 sm:$0xff]   ;;  %v11191_v27 = vld [vmem:[#allocation19 + $0x16c] ss:$16 sps:$4 sm:$0xff]  }
 0x355   :  { %2288 = vmatprep.subr.bf16.mxu0 %v11104_v28  ;;  %2370 = vmatprep.subr.bf16.mxu1 %v11107_v29  ;;  %v11186_v28 = vld [vmem:[#allocation19 + $0x160] ss:$16 sps:$4 sm:$0xff]   ;;  %v11189_v29 = vld [vmem:[#allocation19 + $0x168] ss:$16 sps:$4 sm:$0xff]  }
 0x358   :  { %2289 = vmatpush1.bf16.msra.mxu0 %v11102_v30  ;;  %2371 = vmatpush1.bf16.msra.mxu1 %v11105_v32  ;;  %v11194_v30 = vld [vmem:[#allocation19 + $0x184] ss:$16 sps:$4 sm:$0xff]   ;;  %v11197_v32 = vld [vmem:[#allocation19 + $0x18c] ss:$16 sps:$4 sm:$0xff]  }
 0x359   :  { %2290 = vmatprep.subr.bf16.mxu0 %v11110_v33  ;;  %2372 = vmatprep.subr.bf16.mxu1 %v11113_v34  ;;  %v11192_v33 = vld [vmem:[#allocation19 + $0x180] ss:$16 sps:$4 sm:$0xff]   ;;  %v11195_v34 = vld [vmem:[#allocation19 + $0x188] ss:$16 sps:$4 sm:$0xff]  }
 0x35c   :  { %2291 = vmatpush1.bf16.msra.mxu0 %v11108_v35  ;;  %2373 = vmatpush1.bf16.msra.mxu1 %v11111_v36  ;;  %v11200_v35 = vld [vmem:[#allocation19 + $0x1a4] ss:$16 sps:$4 sm:$0xff]   ;;  %v11203_v36 = vld [vmem:[#allocation19 + $0x1ac] ss:$16 sps:$4 sm:$0xff]  }
 0x35d   :  { %2292 = vmatprep.subr.bf16.mxu0 %v11116_v37  ;;  %2374 = vmatprep.subr.bf16.mxu1 %v11119_v38  ;;  %v11198_v37 = vld [vmem:[#allocation19 + $0x1a0] ss:$16 sps:$4 sm:$0xff]   ;;  %v11201_v38 = vld [vmem:[#allocation19 + $0x1a8] ss:$16 sps:$4 sm:$0xff]  }
 0x360   :  { %2293 = vmatpush1.bf16.msra.mxu0 %v11114_v39  ;;  %2375 = vmatpush1.bf16.msra.mxu1 %v11117_v40  ;;  %v11206_v39 = vld [vmem:[#allocation19 + $0x1c4] ss:$16 sps:$4 sm:$0xff]   ;;  %v11209_v40 = vld [vmem:[#allocation19 + $0x1cc] ss:$16 sps:$4 sm:$0xff]  }
 0x361   :  { %3213 = vmatprep.subr.bf16.mxu0 %v11122_v41  ;;  %3295 = vmatprep.subr.bf16.mxu1 %v11125_v42  ;;  %v11204_v41 = vld [vmem:[#allocation19 + $0x1c0] ss:$16 sps:$4 sm:$0xff]   ;;  %v11207_v42 = vld [vmem:[#allocation19 + $0x1c8] ss:$16 sps:$4 sm:$0xff]  }
 0x363   :  { %2295 = vmatmul.mubr.bf16.vlgmr.msra.gmra.mrb[8].mxu0 %v1429_v45  ;;  %2377 = vmatmul.mubr.bf16.vlgmr.msra.gmra.mrb[8].mxu1 %v1429_v45  ;;  %v11210_v45 = vld [vmem:[#allocation19 + $0x1e0] ss:$16 sps:$4 sm:$0xff]  }
 0x364   :  { %3214 = vmatpush1.bf16.msra.mxu0 %v11120_v43  ;;  %3296 = vmatpush1.bf16.msra.mxu1 %v11123_v44  ;;  %v11212_v43 = vld [vmem:[#allocation19 + $0x1e4] ss:$16 sps:$4 sm:$0xff]   ;;  %v11215_v44 = vld [vmem:[#allocation19 + $0x1ec] ss:$16 sps:$4 sm:$0xff]  }
 0x365   :  { %3215 = vmatprep.subr.bf16.mxu0 %v11128_v46  ;;  %3297 = vmatprep.subr.bf16.mxu1 %v11131_v47  ;;  %v11213_v46 = vld [vmem:[#allocation19 + $0x1e8] ss:$16 sps:$4 sm:$0xff]   ;;  %v11218_v47 = vld [vmem:[#allocation19 + $0x204] ss:$16 sps:$4 sm:$0xff]  }
 0x368   :  { %3216 = vmatpush1.bf16.msra.mxu0 %v11126_v48  ;;  %3298 = vmatpush1.bf16.msra.mxu1 %v11129_v49  ;;  %v11221_v48 = vld [vmem:[#allocation19 + $0x20c] ss:$16 sps:$4 sm:$0xff]   ;;  %v1559_v49 = vld [vmem:[#allocation16] sm:$0xf] }
 0x369   :  { %3217 = vmatprep.subr.bf16.mxu0 %v11134_v50  ;;  %3299 = vmatprep.subr.bf16.mxu1 %v11137_v51  ;;  %v2385_v50 = vld [vmem:[#allocation17] sm:$0xf]  ;;  %v1564_v51 = vrot.slane %v1559_v49, %v12058_v15 }
 0x36c   :  { %3218 = vmatpush1.bf16.msra.mxu0 %v11132_v52  ;;  %3300 = vmatpush1.bf16.msra.mxu1 %v11135_v54  ;;  %v1572_v52 = vrot.slane %v1559_v49, %v12064_v19  ;;  %v1568_v54 = vrot.slane %v1559_v49, %v12061_v17 }
 0x36d   :  { %3219 = vmatprep.subr.bf16.mxu0 %v11140_v31  ;;  %3301 = vmatprep.subr.bf16.mxu1 %v11143_v55  ;;  %v1576_v31 = vrot.slane %v1559_v49, %v12068_v21  ;;  %v2394_v55 = vrot.slane %v2385_v50, %v12058_v15  ;;  %v11260_v49 = vld [vmem:[#allocation19 + $0x2e4] ss:$16 sps:$4 sm:$0xff]  }
 0x370   :  { %3220 = vmatpush1.bf16.msra.mxu0 %v11138_v56  ;;  %3302 = vmatpush1.bf16.msra.mxu1 %v11141_v57  ;;  %v2402_v56 = vrot.slane %v2385_v50, %v12064_v19 }
 0x371   :  { %3221 = vmatprep.subr.bf16.mxu0 %v11146_v58  ;;  %3303 = vmatprep.subr.bf16.mxu1 %v11149_v59  ;;  %v2398_v59 = vrot.slane %v2385_v50, %v12061_v17 }
 0x374   :  { %3222 = vmatpush1.bf16.msra.mxu0 %v11144_v60  ;;  %3304 = vmatpush1.bf16.msra.mxu1 %v11147_v61  ;;  %v2406_v60 = vrot.slane %v2385_v50, %v12068_v21  ;;  %v11263_v50 = vld [vmem:[#allocation19 + $0x2ec] ss:$16 sps:$4 sm:$0xff]  }
 0x375   :  { %3223 = vmatprep.subr.bf16.mxu0 %v11152_v62  ;;  %3305 = vmatprep.subr.bf16.mxu1 %v11155_v63 }
 0x378   :  { %3224 = vmatpush1.bf16.msra.mxu0 %v11150_v0  ;;  %3306 = vmatpush1.bf16.msra.mxu1 %v11153_v1 }
 0x379   :  { %3225 = vmatprep.subr.bf16.mxu0 %v11158_v2  ;;  %3307 = vmatprep.subr.bf16.mxu1 %v11161_v3 }
 0x37c   :  { %3226 = vmatpush1.bf16.msra.mxu0 %v11156_v4  ;;  %3308 = vmatpush1.bf16.msra.mxu1 %v11159_v53 }
 0x37d   :  { %3227 = vmatprep.subr.bf16.mxu0 %v11164_v5  ;;  %3309 = vmatprep.subr.bf16.mxu1 %v11167_v6 }
 0x380   :  { %3228 = vmatpush1.bf16.msra.mxu0 %v11162_v7  ;;  %3310 = vmatpush1.bf16.msra.mxu1 %v11165_v8 }
 0x381   :  { %3229 = vmatprep.subr.bf16.mxu0 %v11170_v9  ;;  %3311 = vmatprep.subr.bf16.mxu1 %v11173_v10 }
 0x384   :  { %3230 = vmatpush1.bf16.msra.mxu0 %v11168_v11  ;;  %3312 = vmatpush1.bf16.msra.mxu1 %v11171_v12 }
 0x385   :  { %3231 = vmatprep.subr.bf16.mxu0 %v11176_v13  ;;  %3313 = vmatprep.subr.bf16.mxu1 %v11179_v16  ;;  %v11216_v16 = vld [vmem:[#allocation19 + $0x200] ss:$16 sps:$4 sm:$0xff]  }
 0x388   :  { %3232 = vmatpush1.bf16.msra.mxu0 %v11174_v18  ;;  %3314 = vmatpush1.bf16.msra.mxu1 %v11177_v20  ;;  %v11219_v18 = vld [vmem:[#allocation19 + $0x208] ss:$16 sps:$4 sm:$0xff]  }
 0x389   :  { %3233 = vmatprep.subr.bf16.mxu0 %v11182_v22  ;;  %3315 = vmatprep.subr.bf16.mxu1 %v11185_v23  ;;  %v11224_v23 = vld [vmem:[#allocation19 + $0x224] ss:$16 sps:$4 sm:$0xff]  }
 0x38c   :  { %3234 = vmatpush1.bf16.msra.mxu0 %v11180_v24  ;;  %3316 = vmatpush1.bf16.msra.mxu1 %v11183_v25  ;;  %v11227_v24 = vld [vmem:[#allocation19 + $0x22c] ss:$16 sps:$4 sm:$0xff]  }
 0x38d   :  { %3235 = vmatprep.subr.bf16.mxu0 %v11188_v26  ;;  %3317 = vmatprep.subr.bf16.mxu1 %v11191_v27  ;;  %v11222_v26 = vld [vmem:[#allocation19 + $0x220] ss:$16 sps:$4 sm:$0xff]   ;;  %v11225_v27 = vld [vmem:[#allocation19 + $0x228] ss:$16 sps:$4 sm:$0xff]  }
 0x390   :  { %3236 = vmatpush1.bf16.msra.mxu0 %v11186_v28  ;;  %3318 = vmatpush1.bf16.msra.mxu1 %v11189_v29  ;;  %v11230_v28 = vld [vmem:[#allocation19 + $0x244] ss:$16 sps:$4 sm:$0xff]   ;;  %v11233_v29 = vld [vmem:[#allocation19 + $0x24c] ss:$16 sps:$4 sm:$0xff]  }
 0x391   :  { %3237 = vmatprep.subr.bf16.mxu0 %v11194_v30  ;;  %3319 = vmatprep.subr.bf16.mxu1 %v11197_v32  ;;  %v11228_v30 = vld [vmem:[#allocation19 + $0x240] ss:$16 sps:$4 sm:$0xff]   ;;  %v11231_v32 = vld [vmem:[#allocation19 + $0x248] ss:$16 sps:$4 sm:$0xff]  }
 0x394   :  { %3238 = vmatpush1.bf16.msra.mxu0 %v11192_v33  ;;  %3320 = vmatpush1.bf16.msra.mxu1 %v11195_v34  ;;  %v11236_v33 = vld [vmem:[#allocation19 + $0x264] ss:$16 sps:$4 sm:$0xff]   ;;  %v11239_v34 = vld [vmem:[#allocation19 + $0x26c] ss:$16 sps:$4 sm:$0xff]  }
 0x395   :  { %3239 = vmatprep.subr.bf16.mxu0 %v11200_v35  ;;  %3321 = vmatprep.subr.bf16.mxu1 %v11203_v36  ;;  %v11234_v35 = vld [vmem:[#allocation19 + $0x260] ss:$16 sps:$4 sm:$0xff]   ;;  %v11237_v36 = vld [vmem:[#allocation19 + $0x268] ss:$16 sps:$4 sm:$0xff]  }
 0x398   :  { %3240 = vmatpush1.bf16.msra.mxu0 %v11198_v37  ;;  %3322 = vmatpush1.bf16.msra.mxu1 %v11201_v38  ;;  %v11242_v37 = vld [vmem:[#allocation19 + $0x284] ss:$16 sps:$4 sm:$0xff]   ;;  %v11245_v38 = vld [vmem:[#allocation19 + $0x28c] ss:$16 sps:$4 sm:$0xff]  }
 0x399   :  { %3241 = vmatprep.subr.bf16.mxu0 %v11206_v39  ;;  %3323 = vmatprep.subr.bf16.mxu1 %v11209_v40  ;;  %v11240_v39 = vld [vmem:[#allocation19 + $0x280] ss:$16 sps:$4 sm:$0xff]   ;;  %v11243_v40 = vld [vmem:[#allocation19 + $0x288] ss:$16 sps:$4 sm:$0xff]  }
 0x39c   :  { %3242 = vmatpush1.bf16.msra.mxu0 %v11204_v41  ;;  %3324 = vmatpush1.bf16.msra.mxu1 %v11207_v42  ;;  %v11248_v41 = vld [vmem:[#allocation19 + $0x2a4] ss:$16 sps:$4 sm:$0xff]   ;;  %v11251_v42 = vld [vmem:[#allocation19 + $0x2ac] ss:$16 sps:$4 sm:$0xff]  }
 0x39d   :  { %3243 = vmatprep.subr.bf16.mxu0 %v11212_v43  ;;  %3325 = vmatprep.subr.bf16.mxu1 %v11215_v44  ;;  %v11246_v43 = vld [vmem:[#allocation19 + $0x2a0] ss:$16 sps:$4 sm:$0xff]   ;;  %v11249_v44 = vld [vmem:[#allocation19 + $0x2a8] ss:$16 sps:$4 sm:$0xff]  }
 0x3a0   :  { %3244 = vmatpush1.bf16.msra.mxu0 %v11210_v45  ;;  %3326 = vmatpush1.bf16.msra.mxu1 %v11213_v46  ;;  %v11254_v45 = vld [vmem:[#allocation19 + $0x2c4] ss:$16 sps:$4 sm:$0xff]   ;;  %v11257_v46 = vld [vmem:[#allocation19 + $0x2cc] ss:$16 sps:$4 sm:$0xff]  }
 0x3a1   :  { %3254 = vmatprep.subr.bf16.mxu0 %v11218_v47  ;;  %3336 = vmatprep.subr.bf16.mxu1 %v11221_v48  ;;  %v11252_v47 = vld [vmem:[#allocation19 + $0x2c0] ss:$16 sps:$4 sm:$0xff]   ;;  %v11255_v48 = vld [vmem:[#allocation19 + $0x2c8] ss:$16 sps:$4 sm:$0xff]  }
 0x436   :  { %v2296_v57 = vpop.f32.mrb[8].mxu0  ;;  %v2378_v58 = vpop.f32.mrb[8].mxu1 }
 0x437   :  { %v10599_v61 = vadd.f32 %v2296_v57, %v1564_v51  ;;  %v10601_v62 = vadd.f32 %v2378_v58, %v1572_v52  ;;  %v2298_v63 = vpop.f32.mrb[9].mxu0  ;;  %v2380_v0 = vpop.f32.mrb[9].mxu1  ;;  %v11258_v51 = vld [vmem:[#allocation19 + $0x2e0] ss:$16 sps:$4 sm:$0xff]   ;;  %v11261_v52 = vld [vmem:[#allocation19 + $0x2e8] ss:$16 sps:$4 sm:$0xff]  }
 0x438   :  { %v10600_v1 = vadd.f32 %v2298_v63, %v1568_v54  ;;  %v10602_v2 = vadd.f32 %v2380_v0, %v1576_v31  ;;  %v2300_v3 = vpop.f32.mrb[10].mxu0  ;;  %v2382_v4 = vpop.f32.mrb[10].mxu1  ;;  %v11266_v54 = vld [vmem:[#allocation19 + $0x304] ss:$16 sps:$4 sm:$0xff]   ;;  %v11269_v31 = vld [vmem:[#allocation19 + $0x30c] ss:$16 sps:$4 sm:$0xff]  }
 0x439   :  { %vm2386_vm9 = vcmp.ge.f32.partialorder %v10599_v61, 0.0  ;;  %v2411_v53 = vmul.f32 %v10599_v61, %v2394_v55  ;;  %vm2388_vm10 = vcmp.ge.f32.partialorder %v10601_v62, 0.0  ;;  %v2413_v5 = vmul.f32 %v10601_v62, %v2402_v56  ;;  %v2301_v6 = vpop.f32.mrb[11].mxu0  ;;  %v2383_v7 = vpop.f32.mrb[11].mxu1  ;;  %v11264_v55 = vld [vmem:[#allocation19 + $0x300] ss:$16 sps:$4 sm:$0xff]  }
 0x43a   :  { %vm2387_vm11 = vcmp.ge.f32.partialorder %v10600_v1, 0.0  ;;  %v2412_v8 = vmul.f32 %v10600_v1, %v2398_v59  ;;  %vm2389_vm12 = vcmp.ge.f32.partialorder %v10602_v2, 0.0  ;;  %v2414_v9 = vmul.f32 %v10602_v2, %v2406_v60  ;;  %v11267_v56 = vld [vmem:[#allocation19 + $0x308] ss:$16 sps:$4 sm:$0xff]   ;;  %v11272_v57 = vld [vmem:[#allocation19 + $0x324] ss:$16 sps:$4 sm:$0xff]  }
 0x43b   :  { %v2415_v10 = vsel %vm2386_vm9, %v10599_v61, %v2411_v53  ;;  %v12101_v11 = vsel %vm2388_vm10, %v10601_v62, %v2413_v5  ;;  %v11275_v58 = vld [vmem:[#allocation19 + $0x32c] ss:$16 sps:$4 sm:$0xff]   ;;  %v11270_v59 = vld [vmem:[#allocation19 + $0x320] ss:$16 sps:$4 sm:$0xff]   ;;  %v11273_v60 = vld [vmem:[#allocation19 + $0x328] ss:$16 sps:$4 sm:$0xff]  }
 0x43c   :  { %v2416_v12 = vsel %vm2387_vm11, %v10600_v1, %v2412_v8  ;;  %v2418_v20 = vsel %vm2389_vm12, %v10602_v2, %v2414_v9  ;;  %v2419_v22 = vpack.c.bf16 %v2415_v10, %v2415_v10  ;;  %v11278_v61 = vld [vmem:[#allocation19 + $0x344] ss:$16 sps:$4 sm:$0xff]   ;;  %v11281_v62 = vld [vmem:[#allocation19 + $0x34c] ss:$16 sps:$4 sm:$0xff]   ;;  %v11276_v63 = vld [vmem:[#allocation19 + $0x340] ss:$16 sps:$4 sm:$0xff]  }
 0x43d   :  { %v2420_v13 = vpack.c.bf16 %v2416_v12, %v2416_v12  ;;  %v2422_v25 = vpack.c.bf16 %v2418_v20, %v2418_v20  ;;  %v11279_v0 = vld [vmem:[#allocation19 + $0x348] ss:$16 sps:$4 sm:$0xff]   ;;  %v11284_v1 = vld [vmem:[#allocation19 + $0x364] ss:$16 sps:$4 sm:$0xff]   ;;  %v11287_v2 = vld [vmem:[#allocation19 + $0x36c] ss:$16 sps:$4 sm:$0xff]  }
 0x43e   :  { %v11282_v3 = vld [vmem:[#allocation19 + $0x360] ss:$16 sps:$4 sm:$0xff]   ;;  %v11285_v4 = vld [vmem:[#allocation19 + $0x368] ss:$16 sps:$4 sm:$0xff]   ;;  %v11290_v53 = vld [vmem:[#allocation19 + $0x384] ss:$16 sps:$4 sm:$0xff]  }
 0x43f   :  { %3245 = vmatprep.mubr.bf16.mxu0 %v2420_v13  ;;  %3327 = vmatprep.mubr.bf16.mxu1 %v2420_v13  ;;  %v11293_v5 = vld [vmem:[#allocation19 + $0x38c] ss:$16 sps:$4 sm:$0xff]   ;;  %v11288_v6 = vld [vmem:[#allocation19 + $0x380] ss:$16 sps:$4 sm:$0xff]   ;;  %v11291_v7 = vld [vmem:[#allocation19 + $0x388] ss:$16 sps:$4 sm:$0xff]  }
 0x440   :  { %3246 = vmatmul.mubr.bf16.vlgmr.msra.gmra.mrb[12].mxu0 %v2419_v22  ;;  %3328 = vmatmul.mubr.bf16.vlgmr.msra.gmra.mrb[12].mxu1 %v2419_v22  ;;  %v11296_v8 = vld [vmem:[#allocation19 + $0x3a4] ss:$16 sps:$4 sm:$0xff]   ;;  %v11299_v9 = vld [vmem:[#allocation19 + $0x3ac] ss:$16 sps:$4 sm:$0xff]   ;;  %v11294_v10 = vld [vmem:[#allocation19 + $0x3a0] ss:$16 sps:$4 sm:$0xff]  }
 0x441   :  { %3255 = vmatpush1.bf16.msra.mxu0 %v11216_v16  ;;  %3337 = vmatpush1.bf16.msra.mxu1 %v11219_v18  ;;  %v11297_v12 = vld [vmem:[#allocation19 + $0x3a8] ss:$16 sps:$4 sm:$0xff]   ;;  %v11302_v13 = vld [vmem:[#allocation19 + $0x3c4] ss:$16 sps:$4 sm:$0xff]   ;;  %v11305_v16 = vld [vmem:[#allocation19 + $0x3cc] ss:$16 sps:$4 sm:$0xff]  }
 0x442   :  { %3286 = vmatprep.mubr.bf16.mxu0 %v2422_v25  ;;  %3368 = vmatprep.mubr.bf16.mxu1 %v2422_v25  ;;  %v11300_v18 = vld [vmem:[#allocation19 + $0x3c0] ss:$16 sps:$4 sm:$0xff]   ;;  %v11303_v20 = vld [vmem:[#allocation19 + $0x3c8] ss:$16 sps:$4 sm:$0xff]   ;;  %v11308_v22 = vld [vmem:[#allocation19 + $0x3e4] ss:$16 sps:$4 sm:$0xff]  }
 0x443   :  { %3256 = vmatprep.subr.bf16.mxu0 %v11224_v23  ;;  %3338 = vmatprep.subr.bf16.mxu1 %v11227_v24  ;;  %v11311_v23 = vld [vmem:[#allocation19 + $0x3ec] ss:$16 sps:$4 sm:$0xff]   ;;  %v3415_v24 = vld [vmem:[#allocation20] sm:$0xff] }
 0x444   :  { %v3419_v25 = vld [vmem:[#allocation20 + $0x20] sm:$0xff] }
 0x445   :  { %3257 = vmatpush1.bf16.msra.mxu0 %v11222_v26  ;;  %3339 = vmatpush1.bf16.msra.mxu1 %v11225_v27  ;;  %v3416_v26 = vld [vmem:[#allocation20 + $0x8] sm:$0xff] }
 0x446   :  { %3258 = vmatprep.subr.bf16.mxu0 %v11230_v28  ;;  %3340 = vmatprep.subr.bf16.mxu1 %v11233_v29  ;;  %v3420_v27 = vld [vmem:[#allocation20 + $0x28] sm:$0xff]  ;;  %v11306_v28 = vld [vmem:[#allocation19 + $0x3e0] ss:$16 sps:$4 sm:$0xff]  }
 0x447   :  { %v11309_v29 = vld [vmem:[#allocation19 + $0x3e8] ss:$16 sps:$4 sm:$0xff]  }
 0x449   :  { %3259 = vmatpush1.bf16.msra.mxu0 %v11228_v30  ;;  %3341 = vmatpush1.bf16.msra.mxu1 %v11231_v32  ;;  %v9812_v30 = vcombine.high %v3415_v24, %v3419_v25  ;;  %v9814_v32 = vcombine.high %v3416_v26, %v3420_v27 }
 0x44a   :  { %3260 = vmatprep.subr.bf16.mxu0 %v11236_v33  ;;  %3342 = vmatprep.subr.bf16.mxu1 %v11239_v34  ;;  %v3423_v33 = vld [vmem:[#allocation20 + $0x40] sm:$0xff] }
 0x44b   :  { %v3427_v34 = vld [vmem:[#allocation20 + $0x60] sm:$0xff] }
 0x44d   :  { %3261 = vmatpush1.bf16.msra.mxu0 %v11234_v35  ;;  %3343 = vmatpush1.bf16.msra.mxu1 %v11237_v36  ;;  %v3424_v35 = vld [vmem:[#allocation20 + $0x48] sm:$0xff] }
 0x44e   :  { %3262 = vmatprep.subr.bf16.mxu0 %v11242_v37  ;;  %3344 = vmatprep.subr.bf16.mxu1 %v11245_v38  ;;  %v3428_v36 = vld [vmem:[#allocation20 + $0x68] sm:$0xff]  ;;  %v9811_v37 = vcombine.low %v3415_v24, %v3419_v25  ;;  %v9813_v38 = vcombine.low %v3416_v26, %v3420_v27 }
 0x44f   :  { %v3472_v24 = vld [vmem:[#allocation20 + $0x1c8] sm:$0xff] }
 0x450   :  { %v3476_v25 = vld [vmem:[#allocation20 + $0x1e8] sm:$0xff] }
 0x451   :  { %3263 = vmatpush1.bf16.msra.mxu0 %v11240_v39  ;;  %3345 = vmatpush1.bf16.msra.mxu1 %v11243_v40  ;;  %v2421_v39 = vpack.c.bf16 %v12101_v11, %v12101_v11  ;;  %v9820_v40 = vcombine.high %v3423_v33, %v3427_v34  ;;  %v3443_v11 = vld [vmem:[#allocation20 + $0xe0] sm:$0xff] }
 0x452   :  { %3264 = vmatprep.subr.bf16.mxu0 %v11248_v41  ;;  %3346 = vmatprep.subr.bf16.mxu1 %v11251_v42  ;;  %v9822_v41 = vcombine.high %v3424_v35, %v3428_v36  ;;  %v3431_v42 = vld [vmem:[#allocation20 + $0x80] sm:$0xff] }
 0x455   :  { %3265 = vmatpush1.bf16.msra.mxu0 %v11246_v43  ;;  %3347 = vmatpush1.bf16.msra.mxu1 %v11249_v44  ;;  %v3435_v43 = vld [vmem:[#allocation20 + $0xa0] sm:$0xff]  ;;  %v3432_v44 = vld [vmem:[#allocation20 + $0x88] sm:$0xff] }
 0x456   :  { %3266 = vmatprep.subr.bf16.mxu0 %v11254_v45  ;;  %3348 = vmatprep.subr.bf16.mxu1 %v11257_v46  ;;  %v3436_v45 = vld [vmem:[#allocation20 + $0xa8] sm:$0xff]  ;;  %v9819_v46 = vcombine.low %v3423_v33, %v3427_v34 }
 0x457   :  { %v3480_v33 = vld [vmem:[#allocation20 + $0x208] sm:$0xff] }
 0x458   :  { %v3484_v34 = vld [vmem:[#allocation20 + $0x228] sm:$0xff] }
 0x459   :  { %3267 = vmatpush1.bf16.msra.mxu0 %v11252_v47  ;;  %3349 = vmatpush1.bf16.msra.mxu1 %v11255_v48  ;;  %v9821_v47 = vcombine.low %v3424_v35, %v3428_v36  ;;  %v9828_v48 = vcombine.high %v3431_v42, %v3435_v43  ;;  %v9869_v36 = vcombine.low %v3472_v24, %v3476_v25 }
 0x45a   :  { %3268 = vmatprep.subr.bf16.mxu0 %v11260_v49  ;;  %3350 = vmatprep.subr.bf16.mxu1 %v11263_v50  ;;  %v9830_v49 = vcombine.high %v3432_v44, %v3436_v45  ;;  %v3439_v50 = vld [vmem:[#allocation20 + $0xc0] sm:$0xff] }
 0x45d   :  { %3269 = vmatpush1.bf16.msra.mxu0 %v11258_v51  ;;  %3351 = vmatpush1.bf16.msra.mxu1 %v11261_v52  ;;  %v3440_v51 = vld [vmem:[#allocation20 + $0xc8] sm:$0xff] }
 0x45e   :  { %3270 = vmatprep.subr.bf16.mxu0 %v11266_v54  ;;  %3352 = vmatprep.subr.bf16.mxu1 %v11269_v31  ;;  %v3444_v52 = vld [vmem:[#allocation20 + $0xe8] sm:$0xff]  ;;  %v9827_v54 = vcombine.low %v3431_v42, %v3435_v43  ;;  %v9829_v31 = vcombine.low %v3432_v44, %v3436_v45  ;;  %v9877_v44 = vcombine.low %v3480_v33, %v3484_v34 }
 0x45f   :  { %v3492_v42 = vld [vmem:[#allocation20 + $0x268] sm:$0xff] }
 0x461   :  { %3271 = vmatpush1.bf16.msra.mxu0 %v11264_v55  ;;  %3353 = vmatpush1.bf16.msra.mxu1 %v11267_v56  ;;  %v9836_v55 = vcombine.high %v3439_v50, %v3443_v11  ;;  %v9838_v56 = vcombine.high %v3440_v51, %v3444_v52 }
 0x462   :  { %3272 = vmatprep.subr.bf16.mxu0 %v11272_v57  ;;  %3354 = vmatprep.subr.bf16.mxu1 %v11275_v58  ;;  %v3447_v57 = vld [vmem:[#allocation20 + $0x100] sm:$0xff] }
 0x463   :  { %v3451_v58 = vld [vmem:[#allocation20 + $0x120] sm:$0xff] }
 0x465   :  { %3273 = vmatpush1.bf16.msra.mxu0 %v11270_v59  ;;  %3355 = vmatpush1.bf16.msra.mxu1 %v11273_v60  ;;  %v3448_v59 = vld [vmem:[#allocation20 + $0x108] sm:$0xff] }
 0x466   :  { %3274 = vmatprep.subr.bf16.mxu0 %v11278_v61  ;;  %3356 = vmatprep.subr.bf16.mxu1 %v11281_v62  ;;  %v3452_v60 = vld [vmem:[#allocation20 + $0x128] sm:$0xff]  ;;  %v9835_v61 = vcombine.low %v3439_v50, %v3443_v11  ;;  %v9837_v62 = vcombine.low %v3440_v51, %v3444_v52 }
 0x467   :  { %v3500_v50 = vld [vmem:[#allocation20 + $0x2a8] sm:$0xff] }
 0x469   :  { %3275 = vmatpush1.bf16.msra.mxu0 %v11276_v63  ;;  %3357 = vmatpush1.bf16.msra.mxu1 %v11279_v0  ;;  %v9844_v63 = vcombine.high %v3447_v57, %v3451_v58  ;;  %v9846_v0 = vcombine.high %v3448_v59, %v3452_v60 }
 0x46a   :  { %3276 = vmatprep.subr.bf16.mxu0 %v11284_v1  ;;  %3358 = vmatprep.subr.bf16.mxu1 %v11287_v2  ;;  %v3455_v1 = vld [vmem:[#allocation20 + $0x140] sm:$0xff] }
 0x46b   :  { %v3459_v2 = vld [vmem:[#allocation20 + $0x160] sm:$0xff] }
 0x46d   :  { %3277 = vmatpush1.bf16.msra.mxu0 %v11282_v3  ;;  %3359 = vmatpush1.bf16.msra.mxu1 %v11285_v4  ;;  %v3456_v3 = vld [vmem:[#allocation20 + $0x148] sm:$0xff] }
 0x46e   :  { %3278 = vmatprep.subr.bf16.mxu0 %v11290_v53  ;;  %3360 = vmatprep.subr.bf16.mxu1 %v11293_v5  ;;  %v3460_v4 = vld [vmem:[#allocation20 + $0x168] sm:$0xff]  ;;  %v9843_v53 = vcombine.low %v3447_v57, %v3451_v58  ;;  %v9845_v5 = vcombine.low %v3448_v59, %v3452_v60 }
 0x46f   :  { %v3508_v57 = vld [vmem:[#allocation20 + $0x2e8] sm:$0xff] }
 0x471   :  { %3279 = vmatpush1.bf16.msra.mxu0 %v11288_v6  ;;  %3361 = vmatpush1.bf16.msra.mxu1 %v11291_v7  ;;  %v9852_v6 = vcombine.high %v3455_v1, %v3459_v2  ;;  %v9854_v7 = vcombine.high %v3456_v3, %v3460_v4 }
 0x472   :  { %3280 = vmatprep.subr.bf16.mxu0 %v11296_v8  ;;  %3362 = vmatprep.subr.bf16.mxu1 %v11299_v9  ;;  %v3463_v8 = vld [vmem:[#allocation20 + $0x180] sm:$0xff] }
 0x473   :  { %v3467_v9 = vld [vmem:[#allocation20 + $0x1a0] sm:$0xff] }
 0x474   :  { %v9859_v26 = vcombine.low %v3463_v8, %v3467_v9 }
 0x475   :  { %3281 = vmatpush1.bf16.msra.mxu0 %v11294_v10  ;;  %3363 = vmatpush1.bf16.msra.mxu1 %v11297_v12  ;;  %v3464_v10 = vld [vmem:[#allocation20 + $0x188] sm:$0xff] }
 0x476   :  { %3282 = vmatprep.subr.bf16.mxu0 %v11302_v13  ;;  %3364 = vmatprep.subr.bf16.mxu1 %v11305_v16  ;;  %v3468_v12 = vld [vmem:[#allocation20 + $0x1a8] sm:$0xff]  ;;  %v9851_v13 = vcombine.low %v3455_v1, %v3459_v2  ;;  %v9853_v16 = vcombine.low %v3456_v3, %v3460_v4 }
 0x477   :  { %v9861_v27 = vcombine.low %v3464_v10, %v3468_v12  ;;  %v3516_v1 = vld [vmem:[#allocation20 + $0x328] sm:$0xff] }
 0x479   :  { %3283 = vmatpush1.bf16.msra.mxu0 %v11300_v18  ;;  %3365 = vmatpush1.bf16.msra.mxu1 %v11303_v20  ;;  %v9860_v18 = vcombine.high %v3463_v8, %v3467_v9  ;;  %v9862_v20 = vcombine.high %v3464_v10, %v3468_v12  ;;  %v3524_v8 = vld [vmem:[#allocation20 + $0x368] sm:$0xff] }
 0x47a   :  { %3284 = vmatprep.subr.bf16.mxu0 %v11308_v22  ;;  %3366 = vmatprep.subr.bf16.mxu1 %v11311_v23  ;;  %v3471_v22 = vld [vmem:[#allocation20 + $0x1c0] sm:$0xff] }
 0x47b   :  { %v3475_v23 = vld [vmem:[#allocation20 + $0x1e0] sm:$0xff] }
 0x47c   :  { %v9867_v35 = vcombine.low %v3471_v22, %v3475_v23 }
 0x47d   :  { %3285 = vmatpush1.bf16.msra.mxu0 %v11306_v28  ;;  %3367 = vmatpush1.bf16.msra.mxu1 %v11309_v29  ;;  %v9868_v28 = vcombine.high %v3471_v22, %v3475_v23  ;;  %v9870_v29 = vcombine.high %v3472_v24, %v3476_v25  ;;  %v3531_v22 = vld [vmem:[#allocation20 + $0x3a0] sm:$0xff]  ;;  %v3528_v23 = vld [vmem:[#allocation20 + $0x388] sm:$0xff] }
 0x47e   :  { %4993 = vmatprep.subr.bf16.mxu0 %v9812_v30  ;;  %5075 = vmatprep.subr.bf16.mxu1 %v9814_v32  ;;  %v3479_v30 = vld [vmem:[#allocation20 + $0x200] sm:$0xff]  ;;  %v3532_v25 = vld [vmem:[#allocation20 + $0x3a8] sm:$0xff] }
 0x47f   :  { %v3483_v32 = vld [vmem:[#allocation20 + $0x220] sm:$0xff] }
 0x480   :  { %3287 = vmatmul.mubr.bf16.vlgmr.msra.gmra.mrb[12].mxu0 %v2421_v39  ;;  %3369 = vmatmul.mubr.bf16.vlgmr.msra.gmra.mrb[12].mxu1 %v2421_v39  ;;  %v3487_v39 = vld [vmem:[#allocation20 + $0x240] sm:$0xff]  ;;  %v9875_v43 = vcombine.low %v3479_v30, %v3483_v32 }
 0x481   :  { %4994 = vmatpush1.bf16.msra.mxu0 %v9811_v37  ;;  %5076 = vmatpush1.bf16.msra.mxu1 %v9813_v38  ;;  %v9876_v37 = vcombine.high %v3479_v30, %v3483_v32  ;;  %v9878_v38 = vcombine.high %v3480_v33, %v3484_v34  ;;  %v3539_v30 = vld [vmem:[#allocation20 + $0x3e0] sm:$0xff]  ;;  %v3536_v32 = vld [vmem:[#allocation20 + $0x3c8] sm:$0xff] }
 0x482   :  { %4995 = vmatprep.subr.bf16.mxu0 %v9820_v40  ;;  %5077 = vmatprep.subr.bf16.mxu1 %v9822_v41  ;;  %v3491_v40 = vld [vmem:[#allocation20 + $0x260] sm:$0xff]  ;;  %v3488_v41 = vld [vmem:[#allocation20 + $0x248] sm:$0xff] }
 0x483   :  { %v9884_v45 = vcombine.high %v3487_v39, %v3491_v40  ;;  %v9883_v11 = vcombine.low %v3487_v39, %v3491_v40  ;;  %v9885_v51 = vcombine.low %v3488_v41, %v3492_v42  ;;  %v3540_v34 = vld [vmem:[#allocation20 + $0x3e8] sm:$0xff]  ;;  %v3547_v39 = vld [vmem:[#allocation20 + $0x420] sm:$0xff] }
 0x484   :  { %v3544_v40 = vld [vmem:[#allocation20 + $0x408] sm:$0xff] }
 0x485   :  { %4996 = vmatpush1.bf16.msra.mxu0 %v9819_v46  ;;  %5078 = vmatpush1.bf16.msra.mxu1 %v9821_v47  ;;  %v9886_v46 = vcombine.high %v3488_v41, %v3492_v42  ;;  %v3495_v47 = vld [vmem:[#allocation20 + $0x280] sm:$0xff]  ;;  %v3548_v42 = vld [vmem:[#allocation20 + $0x428] sm:$0xff] }
 0x486   :  { %4997 = vmatprep.subr.bf16.mxu0 %v9828_v48  ;;  %5079 = vmatprep.subr.bf16.mxu1 %v9830_v49  ;;  %v3499_v48 = vld [vmem:[#allocation20 + $0x2a0] sm:$0xff]  ;;  %v3496_v49 = vld [vmem:[#allocation20 + $0x288] sm:$0xff] }
 0x487   :  { %v9892_v52 = vcombine.high %v3495_v47, %v3499_v48  ;;  %v9891_v58 = vcombine.low %v3495_v47, %v3499_v48  ;;  %v9893_v59 = vcombine.low %v3496_v49, %v3500_v50  ;;  %v3377_v47 = vld [vmem:[%s12345_s12] sm:$0xf] }
 0x489   :  { %4998 = vmatpush1.bf16.msra.mxu0 %v9827_v54  ;;  %5080 = vmatpush1.bf16.msra.mxu1 %v9829_v31  ;;  %v9894_v54 = vcombine.high %v3496_v49, %v3500_v50  ;;  %v3503_v31 = vld [vmem:[#allocation20 + $0x2c0] sm:$0xff] }
 0x48a   :  { %4999 = vmatprep.subr.bf16.mxu0 %v9836_v55  ;;  %5081 = vmatprep.subr.bf16.mxu1 %v9838_v56  ;;  %v3507_v55 = vld [vmem:[#allocation20 + $0x2e0] sm:$0xff]  ;;  %v3504_v56 = vld [vmem:[#allocation20 + $0x2c8] sm:$0xff] }
 0x48b   :  { %v9900_v60 = vcombine.high %v3503_v31, %v3507_v55  ;;  %v9899_v2 = vcombine.low %v3503_v31, %v3507_v55  ;;  %v9901_v3 = vcombine.low %v3504_v56, %v3508_v57  ;;  %v3390_v55 = vrot.slane %v3377_v47, %v12061_v17 }
 0x48d   :  { %5000 = vmatpush1.bf16.msra.mxu0 %v9835_v61  ;;  %5082 = vmatpush1.bf16.msra.mxu1 %v9837_v62  ;;  %v9902_v61 = vcombine.high %v3504_v56, %v3508_v57  ;;  %v3511_v62 = vld [vmem:[#allocation20 + $0x300] sm:$0xff]  ;;  %v3398_v56 = vrot.slane %v3377_v47, %v12068_v21 }
 0x48e   :  { %5001 = vmatprep.subr.bf16.mxu0 %v9844_v63  ;;  %5083 = vmatprep.subr.bf16.mxu1 %v9846_v0  ;;  %v3515_v63 = vld [vmem:[#allocation20 + $0x320] sm:$0xff]  ;;  %v3512_v0 = vld [vmem:[#allocation20 + $0x308] sm:$0xff] }
 0x48f   :  { %v9908_v4 = vcombine.high %v3511_v62, %v3515_v63  ;;  %v9907_v9 = vcombine.low %v3511_v62, %v3515_v63  ;;  %v9909_v10 = vcombine.low %v3512_v0, %v3516_v1 }
 0x491   :  { %5002 = vmatpush1.bf16.msra.mxu0 %v9843_v53  ;;  %5084 = vmatpush1.bf16.msra.mxu1 %v9845_v5  ;;  %v9910_v53 = vcombine.high %v3512_v0, %v3516_v1  ;;  %v3519_v5 = vld [vmem:[#allocation20 + $0x340] sm:$0xff] }
 0x492   :  { %5003 = vmatprep.subr.bf16.mxu0 %v9852_v6  ;;  %5085 = vmatprep.subr.bf16.mxu1 %v9854_v7  ;;  %v3523_v6 = vld [vmem:[#allocation20 + $0x360] sm:$0xff]  ;;  %v3520_v7 = vld [vmem:[#allocation20 + $0x348] sm:$0xff] }
 0x493   :  { %v9916_v12 = vcombine.high %v3519_v5, %v3523_v6 }
 0x495   :  { %5004 = vmatpush1.bf16.msra.mxu0 %v9851_v13  ;;  %5086 = vmatpush1.bf16.msra.mxu1 %v9853_v16  ;;  %v9918_v13 = vcombine.high %v3520_v7, %v3524_v8  ;;  %v9915_v16 = vcombine.low %v3519_v5, %v3523_v6 }
 0x496   :  { %5005 = vmatprep.subr.bf16.mxu0 %v9860_v18  ;;  %5087 = vmatprep.subr.bf16.mxu1 %v9862_v20  ;;  %v9917_v18 = vcombine.low %v3520_v7, %v3524_v8  ;;  %v3527_v20 = vld [vmem:[#allocation20 + $0x380] sm:$0xff] }
 0x497   :  { %v9924_v24 = vcombine.high %v3527_v20, %v3531_v22  ;;  %v3551_v8 = vld [vmem:[#allocation20 + $0x440] sm:$0xff] }
 0x499   :  { %5006 = vmatpush1.bf16.msra.mxu0 %v9859_v26  ;;  %5088 = vmatpush1.bf16.msra.mxu1 %v9861_v27  ;;  %v9923_v26 = vcombine.low %v3527_v20, %v3531_v22  ;;  %v9925_v27 = vcombine.low %v3528_v23, %v3532_v25  ;;  %v3559_v22 = vld [vmem:[#allocation20 + $0x480] sm:$0xff] }
 0x49a   :  { %5007 = vmatprep.subr.bf16.mxu0 %v9868_v28  ;;  %5089 = vmatprep.subr.bf16.mxu1 %v9870_v29  ;;  %v9926_v28 = vcombine.high %v3528_v23, %v3532_v25  ;;  %v3535_v29 = vld [vmem:[#allocation20 + $0x3c0] sm:$0xff] }
 0x49b   :  { %v9932_v33 = vcombine.high %v3535_v29, %v3539_v30  ;;  %v3563_v25 = vld [vmem:[#allocation20 + $0x4a0] sm:$0xff] }
 0x49d   :  { %5008 = vmatpush1.bf16.msra.mxu0 %v9867_v35  ;;  %5090 = vmatpush1.bf16.msra.mxu1 %v9869_v36  ;;  %v9931_v35 = vcombine.low %v3535_v29, %v3539_v30  ;;  %v9933_v36 = vcombine.low %v3536_v32, %v3540_v34 }
 0x49e   :  { %5009 = vmatprep.subr.bf16.mxu0 %v9876_v37  ;;  %5091 = vmatprep.subr.bf16.mxu1 %v9878_v38  ;;  %v9934_v37 = vcombine.high %v3536_v32, %v3540_v34  ;;  %v3543_v38 = vld [vmem:[#allocation20 + $0x400] sm:$0xff]  ;;  %v9956_v32 = vcombine.high %v3559_v22, %v3563_v25 }
 0x49f   :  { %v9940_v41 = vcombine.high %v3543_v38, %v3547_v39  ;;  %v3567_v34 = vld [vmem:[#allocation20 + $0x4c0] sm:$0xff] }
 0x4a1   :  { %5010 = vmatpush1.bf16.msra.mxu0 %v9875_v43  ;;  %5092 = vmatpush1.bf16.msra.mxu1 %v9877_v44  ;;  %v9939_v43 = vcombine.low %v3543_v38, %v3547_v39  ;;  %v9941_v44 = vcombine.low %v3544_v40, %v3548_v42  ;;  %v9955_v38 = vcombine.low %v3559_v22, %v3563_v25  ;;  %v3615_v25 = vld [vmem:[#allocation20 + $0x640] sm:$0xff] }
 0x4a2   :  { %5011 = vmatprep.subr.bf16.mxu0 %v9884_v45  ;;  %5093 = vmatprep.subr.bf16.mxu1 %v9886_v46  ;;  %v9942_v45 = vcombine.high %v3544_v40, %v3548_v42  ;;  %v2551_v46 = vld [vmem:[%s12344_s11] sm:$0xf]  ;;  %v3575_v42 = vld [vmem:[#allocation20 + $0x500] sm:$0xff] }
 0x4a3   :  { %v2556_v48 = vrot.slane %v2551_v46, %v12058_v15  ;;  %v2564_v49 = vrot.slane %v2551_v46, %v12064_v19  ;;  %v2560_v50 = vrot.slane %v2551_v46, %v12061_v17 }
 0x4a5   :  { %5012 = vmatpush1.bf16.msra.mxu0 %v9883_v11  ;;  %5094 = vmatpush1.bf16.msra.mxu1 %v9885_v51  ;;  %v2568_v11 = vrot.slane %v2551_v46, %v12068_v21  ;;  %v3386_v51 = vrot.slane %v3377_v47, %v12058_v15 }
 0x4a6   :  { %5013 = vmatprep.subr.bf16.mxu0 %v9892_v52  ;;  %5095 = vmatprep.subr.bf16.mxu1 %v9894_v54  ;;  %v3394_v52 = vrot.slane %v3377_v47, %v12064_v19 }
 0x4a9   :  { %5014 = vmatpush1.bf16.msra.mxu0 %v9891_v58  ;;  %5096 = vmatpush1.bf16.msra.mxu1 %v9893_v59 }
 0x4aa   :  { %5015 = vmatprep.subr.bf16.mxu0 %v9900_v60  ;;  %5097 = vmatprep.subr.bf16.mxu1 %v9902_v61 }
 0x4ad   :  { %5016 = vmatpush1.bf16.msra.mxu0 %v9899_v2  ;;  %5098 = vmatpush1.bf16.msra.mxu1 %v9901_v3 }
 0x4ae   :  { %5017 = vmatprep.subr.bf16.mxu0 %v9908_v4  ;;  %5099 = vmatprep.subr.bf16.mxu1 %v9910_v53 }
 0x4b1   :  { %5018 = vmatpush1.bf16.msra.mxu0 %v9907_v9  ;;  %5100 = vmatpush1.bf16.msra.mxu1 %v9909_v10  ;;  %v3555_v10 = vld [vmem:[#allocation20 + $0x460] sm:$0xff] }
 0x4b2   :  { %5019 = vmatprep.subr.bf16.mxu0 %v9916_v12  ;;  %5101 = vmatprep.subr.bf16.mxu1 %v9918_v13  ;;  %v3552_v12 = vld [vmem:[#allocation20 + $0x448] sm:$0xff]  ;;  %v9948_v23 = vcombine.high %v3551_v8, %v3555_v10  ;;  %v9947_v29 = vcombine.low %v3551_v8, %v3555_v10  ;;  %v3611_v10 = vld [vmem:[#allocation20 + $0x620] sm:$0xff] }
 0x4b3   :  { %v3556_v13 = vld [vmem:[#allocation20 + $0x468] sm:$0xff] }
 0x4b4   :  { %v9949_v30 = vcombine.low %v3552_v12, %v3556_v13 }
 0x4b5   :  { %5020 = vmatpush1.bf16.msra.mxu0 %v9915_v16  ;;  %5102 = vmatpush1.bf16.msra.mxu1 %v9917_v18 }
 0x4b6   :  { %5021 = vmatprep.subr.bf16.mxu0 %v9924_v24  ;;  %5103 = vmatprep.subr.bf16.mxu1 %v9926_v28  ;;  %v9950_v24 = vcombine.high %v3552_v12, %v3556_v13  ;;  %v3608_v12 = vld [vmem:[#allocation20 + $0x608] sm:$0xff] }
 0x4b7   :  { %v3612_v13 = vld [vmem:[#allocation20 + $0x628] sm:$0xff] }
 0x4b9   :  { %5022 = vmatpush1.bf16.msra.mxu0 %v9923_v26  ;;  %5104 = vmatpush1.bf16.msra.mxu1 %v9925_v27  ;;  %v3560_v26 = vld [vmem:[#allocation20 + $0x488] sm:$0xff] }
 0x4ba   :  { %5023 = vmatprep.subr.bf16.mxu0 %v9932_v33  ;;  %5105 = vmatprep.subr.bf16.mxu1 %v9934_v37  ;;  %v3564_v27 = vld [vmem:[#allocation20 + $0x4a8] sm:$0xff] }
 0x4bb   :  { %v9958_v33 = vcombine.high %v3560_v26, %v3564_v27  ;;  %v3572_v37 = vld [vmem:[#allocation20 + $0x4e8] sm:$0xff]  ;;  %v9957_v39 = vcombine.low %v3560_v26, %v3564_v27  ;;  %v3619_v26 = vld [vmem:[#allocation20 + $0x660] sm:$0xff] }
 0x4bc   :  { %v3616_v27 = vld [vmem:[#allocation20 + $0x648] sm:$0xff] }
 0x4bd   :  { %5024 = vmatpush1.bf16.msra.mxu0 %v9931_v35  ;;  %5106 = vmatpush1.bf16.msra.mxu1 %v9933_v36  ;;  %v3571_v35 = vld [vmem:[#allocation20 + $0x4e0] sm:$0xff]  ;;  %v3568_v36 = vld [vmem:[#allocation20 + $0x4c8] sm:$0xff] }
 0x4be   :  { %5034 = vmatprep.subr.bf16.mxu0 %v9940_v41  ;;  %5116 = vmatprep.subr.bf16.mxu1 %v9942_v45  ;;  %v9964_v40 = vcombine.high %v3567_v34, %v3571_v35  ;;  %v9966_v41 = vcombine.high %v3568_v36, %v3572_v37  ;;  %v3580_v45 = vld [vmem:[#allocation20 + $0x528] sm:$0xff]  ;;  %v9963_v46 = vcombine.low %v3567_v34, %v3571_v35  ;;  %v3623_v35 = vld [vmem:[#allocation20 + $0x680] sm:$0xff] }
 0x4bf   :  { %v9965_v47 = vcombine.low %v3568_v36, %v3572_v37  ;;  %v3627_v36 = vld [vmem:[#allocation20 + $0x6a0] sm:$0xff]  ;;  %v3624_v37 = vld [vmem:[#allocation20 + $0x688] sm:$0xff] }
 0x553   :  { %v3288_v54 = vpop.f32.mrb[12].mxu0  ;;  %v3370_v31 = vpop.f32.mrb[12].mxu1 }
 0x554   :  { %v10603_v57 = vadd.f32 %v3288_v54, %v2556_v48  ;;  %v10605_v58 = vadd.f32 %v3370_v31, %v2564_v49  ;;  %v3290_v59 = vpop.f32.mrb[13].mxu0  ;;  %v3372_v60 = vpop.f32.mrb[13].mxu1 }
 0x555   :  { %v10604_v61 = vadd.f32 %v3290_v59, %v2560_v50  ;;  %v10606_v62 = vadd.f32 %v3372_v60, %v2568_v11  ;;  %v3292_v63 = vpop.f32.mrb[14].mxu0  ;;  %v3374_v0 = vpop.f32.mrb[14].mxu1  ;;  %v3583_v50 = vld [vmem:[#allocation20 + $0x540] sm:$0xff]  ;;  %v3592_v59 = vld [vmem:[#allocation20 + $0x588] sm:$0xff] }
 0x556   :  { %vm3378_vm13 = vcmp.ge.f32.partialorder %v10603_v57, 0.0  ;;  %v3403_v1 = vmul.f32 %v10603_v57, %v3386_v51  ;;  %vm3380_vm14 = vcmp.ge.f32.partialorder %v10605_v58, 0.0  ;;  %v3405_v2 = vmul.f32 %v10605_v58, %v3394_v52  ;;  %v3293_v3 = vpop.f32.mrb[15].mxu0  ;;  %v3375_v4 = vpop.f32.mrb[15].mxu1  ;;  %v3587_v11 = vld [vmem:[#allocation20 + $0x560] sm:$0xff]  ;;  %v3584_v51 = vld [vmem:[#allocation20 + $0x548] sm:$0xff] }
 0x557   :  { %vm3379_vm15 = vcmp.ge.f32.partialorder %v10604_v61, 0.0  ;;  %v3404_v53 = vmul.f32 %v10604_v61, %v3390_v55  ;;  %vm3381_vm0 = vcmp.ge.f32.partialorder %v10606_v62, 0.0  ;;  %v3406_v5 = vmul.f32 %v10606_v62, %v3398_v56  ;;  %v3588_v52 = vld [vmem:[#allocation20 + $0x568] sm:$0xff] }
 0x558   :  { %v3407_v6 = vsel %vm3378_vm13, %v10603_v57, %v3403_v1  ;;  %v12119_v7 = vsel %vm3380_vm14, %v10605_v58, %v3405_v2  ;;  %v9980_v55 = vcombine.high %v3583_v50, %v3587_v11  ;;  %v9982_v56 = vcombine.high %v3584_v51, %v3588_v52  ;;  %v3591_v57 = vld [vmem:[#allocation20 + $0x580] sm:$0xff]  ;;  %v3596_v60 = vld [vmem:[#allocation20 + $0x5a8] sm:$0xff] }
 0x559   :  { %v3408_v9 = vsel %vm3379_vm15, %v10604_v61, %v3404_v53  ;;  %v3410_v18 = vsel %vm3381_vm0, %v10606_v62, %v3406_v5  ;;  %v12123_v20 = vpack.c.bf16 %v3407_v6, %v3407_v6  ;;  %v3595_v58 = vld [vmem:[#allocation20 + $0x5a0] sm:$0xff]  ;;  %v9979_v61 = vcombine.low %v3583_v50, %v3587_v11  ;;  %v3600_v3 = vld [vmem:[#allocation20 + $0x5c8] sm:$0xff] }
 0x55a   :  { %v12121_v16 = vpack.c.bf16 %v3408_v9, %v3408_v9  ;;  %v12127_v28 = vpack.c.bf16 %v3410_v18, %v3410_v18  ;;  %v9981_v62 = vcombine.low %v3584_v51, %v3588_v52  ;;  %v9988_v63 = vcombine.high %v3591_v57, %v3595_v58  ;;  %v3599_v1 = vld [vmem:[#allocation20 + $0x5c0] sm:$0xff]  ;;  %v3604_v4 = vld [vmem:[#allocation20 + $0x5e8] sm:$0xff] }
 0x55b   :  { %v9990_v0 = vcombine.high %v3592_v59, %v3596_v60  ;;  %v3603_v2 = vld [vmem:[#allocation20 + $0x5e0] sm:$0xff]  ;;  %v9987_v53 = vcombine.low %v3591_v57, %v3595_v58  ;;  %v9989_v5 = vcombine.low %v3592_v59, %v3596_v60  ;;  %v9998_v8 = vcombine.high %v3600_v3, %v3604_v4  ;;  %v3640_v52 = vld [vmem:[#allocation20 + $0x708] sm:$0xff] }
 0x55c   :  { %5025 = vmatprep.mubr.bf16.mxu0 %v12121_v16  ;;  %5107 = vmatprep.mubr.bf16.mxu1 %v12121_v16  ;;  %v9996_v6 = vcombine.high %v3599_v1, %v3603_v2  ;;  %v3607_v9 = vld [vmem:[#allocation20 + $0x600] sm:$0xff]  ;;  %v9995_v18 = vcombine.low %v3599_v1, %v3603_v2  ;;  %v9997_v22 = vcombine.low %v3600_v3, %v3604_v4  ;;  %v3648_v60 = vld [vmem:[#allocation20 + $0x748] sm:$0xff] }
 0x55d   :  { %5026 = vmatmul.mubr.bf16.vlgmr.msra.gmra.mrb[16].mxu0 %v12123_v20  ;;  %5108 = vmatmul.mubr.bf16.vlgmr.msra.gmra.mrb[16].mxu1 %v12123_v20  ;;  %v3639_v11 = vld [vmem:[#allocation20 + $0x700] sm:$0xff]  ;;  %v3656_v4 = vld [vmem:[#allocation20 + $0x788] sm:$0xff] }
 0x55e   :  { %5035 = vmatpush1.bf16.msra.mxu0 %v9939_v43  ;;  %5117 = vmatpush1.bf16.msra.mxu1 %v9941_v44  ;;  %v3579_v43 = vld [vmem:[#allocation20 + $0x520] sm:$0xff]  ;;  %v3576_v44 = vld [vmem:[#allocation20 + $0x508] sm:$0xff] }
 0x55f   :  { %5066 = vmatprep.mubr.bf16.mxu0 %v12127_v28  ;;  %5148 = vmatprep.mubr.bf16.mxu1 %v12127_v28  ;;  %v9972_v48 = vcombine.high %v3575_v42, %v3579_v43  ;;  %v9974_v49 = vcombine.high %v3576_v44, %v3580_v45  ;;  %v9971_v54 = vcombine.low %v3575_v42, %v3579_v43  ;;  %v3631_v43 = vld [vmem:[#allocation20 + $0x6c0] sm:$0xff] }
 0x560   :  { %5036 = vmatprep.subr.bf16.mxu0 %v9948_v23  ;;  %5118 = vmatprep.subr.bf16.mxu1 %v9950_v24  ;;  %v9973_v31 = vcombine.low %v3576_v44, %v3580_v45  ;;  %v10004_v23 = vcombine.high %v3607_v9, %v3611_v10  ;;  %v10006_v24 = vcombine.high %v3608_v12, %v3612_v13  ;;  %v3635_v44 = vld [vmem:[#allocation20 + $0x6e0] sm:$0xff]  ;;  %v3632_v45 = vld [vmem:[#allocation20 + $0x6c8] sm:$0xff] }
 0x561   :  { %v3643_v51 = vld [vmem:[#allocation20 + $0x720] sm:$0xff] }
 0x562   :  { %5037 = vmatpush1.bf16.msra.mxu0 %v9947_v29  ;;  %5119 = vmatpush1.bf16.msra.mxu1 %v9949_v30  ;;  %v3620_v29 = vld [vmem:[#allocation20 + $0x668] sm:$0xff]  ;;  %v10003_v30 = vcombine.low %v3607_v9, %v3611_v10  ;;  %v3647_v58 = vld [vmem:[#allocation20 + $0x740] sm:$0xff] }
 0x563   :  { %5038 = vmatprep.subr.bf16.mxu0 %v9956_v32  ;;  %5120 = vmatprep.subr.bf16.mxu1 %v9958_v33  ;;  %v10005_v32 = vcombine.low %v3608_v12, %v3612_v13  ;;  %v10012_v33 = vcombine.high %v3615_v25, %v3619_v26  ;;  %v10014_v34 = vcombine.high %v3616_v27, %v3620_v29  ;;  %v3651_v59 = vld [vmem:[#allocation20 + $0x760] sm:$0xff]  ;;  %v3664_v13 = vld [vmem:[#allocation20 + $0x7c8] sm:$0xff] }
 0x564   :  { %v3655_v2 = vld [vmem:[#allocation20 + $0x780] sm:$0xff] }
 0x565   :  { %v3659_v3 = vld [vmem:[#allocation20 + $0x7a0] sm:$0xff] }
 0x566   :  { %5039 = vmatpush1.bf16.msra.mxu0 %v9955_v38  ;;  %5121 = vmatpush1.bf16.msra.mxu1 %v9957_v39  ;;  %v3628_v38 = vld [vmem:[#allocation20 + $0x6a8] sm:$0xff]  ;;  %v10011_v39 = vcombine.low %v3615_v25, %v3619_v26  ;;  %v3663_v10 = vld [vmem:[#allocation20 + $0x7c0] sm:$0xff]  ;;  %v3417_v26 = vld [vmem:[#allocation20 + $0x10] sm:$0xff] }
 0x567   :  { %5040 = vmatprep.subr.bf16.mxu0 %v9964_v40  ;;  %5122 = vmatprep.subr.bf16.mxu1 %v9966_v41  ;;  %v10013_v40 = vcombine.low %v3616_v27, %v3620_v29  ;;  %v10020_v41 = vcombine.high %v3623_v35, %v3627_v36  ;;  %v10022_v42 = vcombine.high %v3624_v37, %v3628_v38  ;;  %v3667_v12 = vld [vmem:[#allocation20 + $0x7e0] sm:$0xff]  ;;  %v3421_v27 = vld [vmem:[#allocation20 + $0x30] sm:$0xff]  ;;  %v3418_v29 = vld [vmem:[#allocation20 + $0x18] sm:$0xff] }
 0x56a   :  { %5041 = vmatpush1.bf16.msra.mxu0 %v9963_v46  ;;  %5123 = vmatpush1.bf16.msra.mxu1 %v9965_v47  ;;  %v3636_v46 = vld [vmem:[#allocation20 + $0x6e8] sm:$0xff]  ;;  %v10019_v47 = vcombine.low %v3623_v35, %v3627_v36  ;;  %v3425_v36 = vld [vmem:[#allocation20 + $0x50] sm:$0xff] }
 0x56b   :  { %5042 = vmatprep.subr.bf16.mxu0 %v9972_v48  ;;  %5124 = vmatprep.subr.bf16.mxu1 %v9974_v49  ;;  %v10021_v48 = vcombine.low %v3624_v37, %v3628_v38  ;;  %v10028_v49 = vcombine.high %v3631_v43, %v3635_v44  ;;  %v10030_v50 = vcombine.high %v3632_v45, %v3636_v46  ;;  %v3429_v37 = vld [vmem:[#allocation20 + $0x70] sm:$0xff]  ;;  %v3426_v38 = vld [vmem:[#allocation20 + $0x58] sm:$0xff] }
 0x56e   :  { %5043 = vmatpush1.bf16.msra.mxu0 %v9971_v54  ;;  %5125 = vmatpush1.bf16.msra.mxu1 %v9973_v31  ;;  %v3644_v54 = vld [vmem:[#allocation20 + $0x728] sm:$0xff]  ;;  %v10027_v31 = vcombine.low %v3631_v43, %v3635_v44  ;;  %v9824_v43 = vcombine.high %v3425_v36, %v3429_v37 }
 0x56f   :  { %5044 = vmatprep.subr.bf16.mxu0 %v9980_v55  ;;  %5126 = vmatprep.subr.bf16.mxu1 %v9982_v56  ;;  %v10029_v55 = vcombine.low %v3632_v45, %v3636_v46  ;;  %v10036_v56 = vcombine.high %v3639_v11, %v3643_v51  ;;  %v10038_v57 = vcombine.high %v3640_v52, %v3644_v54  ;;  %v3433_v45 = vld [vmem:[#allocation20 + $0x90] sm:$0xff] }
 0x570   :  { %v3437_v46 = vld [vmem:[#allocation20 + $0xb0] sm:$0xff] }
 0x572   :  { %5045 = vmatpush1.bf16.msra.mxu0 %v9979_v61  ;;  %5127 = vmatpush1.bf16.msra.mxu1 %v9981_v62  ;;  %v3652_v61 = vld [vmem:[#allocation20 + $0x768] sm:$0xff]  ;;  %v10035_v62 = vcombine.low %v3639_v11, %v3643_v51  ;;  %v3441_v51 = vld [vmem:[#allocation20 + $0xd0] sm:$0xff] }
 0x573   :  { %5046 = vmatprep.subr.bf16.mxu0 %v9988_v63  ;;  %5128 = vmatprep.subr.bf16.mxu1 %v9990_v0  ;;  %v10037_v63 = vcombine.low %v3640_v52, %v3644_v54  ;;  %v10044_v0 = vcombine.high %v3647_v58, %v3651_v59  ;;  %v10046_v1 = vcombine.high %v3648_v60, %v3652_v61  ;;  %v3445_v52 = vld [vmem:[#allocation20 + $0xf0] sm:$0xff]  ;;  %v3442_v54 = vld [vmem:[#allocation20 + $0xd8] sm:$0xff] }
 0x576   :  { %5047 = vmatpush1.bf16.msra.mxu0 %v9987_v53  ;;  %5129 = vmatpush1.bf16.msra.mxu1 %v9989_v5  ;;  %v3660_v53 = vld [vmem:[#allocation20 + $0x7a8] sm:$0xff]  ;;  %v10043_v5 = vcombine.low %v3647_v58, %v3651_v59  ;;  %v3449_v59 = vld [vmem:[#allocation20 + $0x110] sm:$0xff] }
 0x577   :  { %5048 = vmatprep.subr.bf16.mxu0 %v9996_v6  ;;  %5130 = vmatprep.subr.bf16.mxu1 %v9998_v8  ;;  %v10045_v6 = vcombine.low %v3648_v60, %v3652_v61  ;;  %v10052_v8 = vcombine.high %v3655_v2, %v3659_v3  ;;  %v10054_v9 = vcombine.high %v3656_v4, %v3660_v53  ;;  %v3453_v60 = vld [vmem:[#allocation20 + $0x130] sm:$0xff]  ;;  %v3454_v61 = vld [vmem:[#allocation20 + $0x138] sm:$0xff] }
 0x57a   :  { %5049 = vmatpush1.bf16.msra.mxu0 %v9995_v18  ;;  %5131 = vmatpush1.bf16.msra.mxu1 %v9997_v22  ;;  %v3668_v18 = vld [vmem:[#allocation20 + $0x7e8] sm:$0xff]  ;;  %v10051_v22 = vcombine.low %v3655_v2, %v3659_v3  ;;  %v3457_v2 = vld [vmem:[#allocation20 + $0x150] sm:$0xff] }
 0x57b   :  { %5050 = vmatprep.subr.bf16.mxu0 %v10004_v23  ;;  %5132 = vmatprep.subr.bf16.mxu1 %v10006_v24  ;;  %v10053_v23 = vcombine.low %v3656_v4, %v3660_v53  ;;  %v10060_v24 = vcombine.high %v3663_v10, %v3667_v12  ;;  %v10062_v25 = vcombine.high %v3664_v13, %v3668_v18  ;;  %v3461_v3 = vld [vmem:[#allocation20 + $0x170] sm:$0xff]  ;;  %v3458_v4 = vld [vmem:[#allocation20 + $0x158] sm:$0xff] }
 0x57c   :  { %v3462_v53 = vld [vmem:[#allocation20 + $0x178] sm:$0xff] }
 0x57e   :  { %5051 = vmatpush1.bf16.msra.mxu0 %v10003_v30  ;;  %5133 = vmatpush1.bf16.msra.mxu1 %v10005_v32  ;;  %v3422_v30 = vld [vmem:[#allocation20 + $0x38] sm:$0xff]  ;;  %v10059_v32 = vcombine.low %v3663_v10, %v3667_v12  ;;  %v3465_v10 = vld [vmem:[#allocation20 + $0x190] sm:$0xff] }
 0x57f   :  { %5052 = vmatprep.subr.bf16.mxu0 %v10012_v33  ;;  %5134 = vmatprep.subr.bf16.mxu1 %v10014_v34  ;;  %v10061_v33 = vcombine.low %v3664_v13, %v3668_v18  ;;  %v9816_v34 = vcombine.high %v3417_v26, %v3421_v27  ;;  %v9818_v35 = vcombine.high %v3418_v29, %v3422_v30  ;;  %v3469_v12 = vld [vmem:[#allocation20 + $0x1b0] sm:$0xff]  ;;  %v3466_v13 = vld [vmem:[#allocation20 + $0x198] sm:$0xff] }
 0x580   :  { %v3470_v18 = vld [vmem:[#allocation20 + $0x1b8] sm:$0xff] }
 0x582   :  { %5053 = vmatpush1.bf16.msra.mxu0 %v10011_v39  ;;  %5135 = vmatpush1.bf16.msra.mxu1 %v10013_v40  ;;  %v3430_v39 = vld [vmem:[#allocation20 + $0x78] sm:$0xff]  ;;  %v9815_v40 = vcombine.low %v3417_v26, %v3421_v27  ;;  %v3473_v26 = vld [vmem:[#allocation20 + $0x1d0] sm:$0xff] }
 0x583   :  { %5054 = vmatprep.subr.bf16.mxu0 %v10020_v41  ;;  %5136 = vmatprep.subr.bf16.mxu1 %v10022_v42  ;;  %v12135_v41 = vpack.c.bf16 %v12119_v7, %v12119_v7  ;;  %v9817_v42 = vcombine.low %v3418_v29, %v3422_v30  ;;  %v9826_v44 = vcombine.high %v3426_v38, %v3430_v39  ;;  %v3477_v27 = vld [vmem:[#allocation20 + $0x1f0] sm:$0xff]  ;;  %v3474_v29 = vld [vmem:[#allocation20 + $0x1d8] sm:$0xff] }
 0x584   :  { %v9825_v7 = vcombine.low %v3426_v38, %v3430_v39  ;;  %v3478_v30 = vld [vmem:[#allocation20 + $0x1f8] sm:$0xff] }
 0x585   :  { %v3482_v38 = vld [vmem:[#allocation20 + $0x218] sm:$0xff] }
 0x586   :  { %5055 = vmatpush1.bf16.msra.mxu0 %v10019_v47  ;;  %5137 = vmatpush1.bf16.msra.mxu1 %v10021_v48  ;;  %v3434_v47 = vld [vmem:[#allocation20 + $0x98] sm:$0xff] }
 0x587   :  { %5056 = vmatprep.subr.bf16.mxu0 %v10028_v49  ;;  %5138 = vmatprep.subr.bf16.mxu1 %v10030_v50  ;;  %v3438_v48 = vld [vmem:[#allocation20 + $0xb8] sm:$0xff]  ;;  %v9823_v49 = vcombine.low %v3425_v36, %v3429_v37  ;;  %v9832_v50 = vcombine.high %v3433_v45, %v3437_v46  ;;  %v3481_v36 = vld [vmem:[#allocation20 + $0x210] sm:$0xff] }
 0x588   :  { %v9834_v11 = vcombine.high %v3434_v47, %v3438_v48  ;;  %v3485_v37 = vld [vmem:[#allocation20 + $0x230] sm:$0xff]  ;;  %v3486_v39 = vld [vmem:[#allocation20 + $0x238] sm:$0xff] }
 0x58a   :  { %5057 = vmatpush1.bf16.msra.mxu0 %v10027_v31  ;;  %5139 = vmatpush1.bf16.msra.mxu1 %v10029_v55  ;;  %v3446_v31 = vld [vmem:[#allocation20 + $0xf8] sm:$0xff]  ;;  %v9831_v55 = vcombine.low %v3433_v45, %v3437_v46  ;;  %v3489_v45 = vld [vmem:[#allocation20 + $0x250] sm:$0xff] }
 0x58b   :  { %5058 = vmatprep.subr.bf16.mxu0 %v10036_v56  ;;  %5140 = vmatprep.subr.bf16.mxu1 %v10038_v57  ;;  %v9833_v56 = vcombine.low %v3434_v47, %v3438_v48  ;;  %v9840_v57 = vcombine.high %v3441_v51, %v3445_v52  ;;  %v9842_v58 = vcombine.high %v3442_v54, %v3446_v31  ;;  %v3493_v46 = vld [vmem:[#allocation20 + $0x270] sm:$0xff]  ;;  %v3490_v47 = vld [vmem:[#allocation20 + $0x258] sm:$0xff] }
 0x58c   :  { %v3494_v48 = vld [vmem:[#allocation20 + $0x278] sm:$0xff] }
 0x58e   :  { %5059 = vmatpush1.bf16.msra.mxu0 %v10035_v62  ;;  %5141 = vmatpush1.bf16.msra.mxu1 %v10037_v63  ;;  %v9839_v62 = vcombine.low %v3441_v51, %v3445_v52  ;;  %v9841_v63 = vcombine.low %v3442_v54, %v3446_v31  ;;  %v3497_v51 = vld [vmem:[#allocation20 + $0x290] sm:$0xff]  ;;  %v3498_v54 = vld [vmem:[#allocation20 + $0x298] sm:$0xff] }
 0x58f   :  { %5060 = vmatprep.subr.bf16.mxu0 %v10044_v0  ;;  %5142 = vmatprep.subr.bf16.mxu1 %v10046_v1  ;;  %v9848_v0 = vcombine.high %v3449_v59, %v3453_v60  ;;  %v3501_v52 = vld [vmem:[#allocation20 + $0x2b0] sm:$0xff]  ;;  %v3502_v31 = vld [vmem:[#allocation20 + $0x2b8] sm:$0xff] }
 0x592   :  { %5061 = vmatpush1.bf16.msra.mxu0 %v10043_v5  ;;  %5143 = vmatpush1.bf16.msra.mxu1 %v10045_v6  ;;  %v9847_v5 = vcombine.low %v3449_v59, %v3453_v60  ;;  %v3505_v59 = vld [vmem:[#allocation20 + $0x2d0] sm:$0xff] }
 0x593   :  { %5062 = vmatprep.subr.bf16.mxu0 %v10052_v8  ;;  %5144 = vmatprep.subr.bf16.mxu1 %v10054_v9  ;;  %v9856_v8 = vcombine.high %v3457_v2, %v3461_v3  ;;  %v9858_v9 = vcombine.high %v3458_v4, %v3462_v53  ;;  %v3509_v60 = vld [vmem:[#allocation20 + $0x2f0] sm:$0xff] }
 0x596   :  { %5063 = vmatpush1.bf16.msra.mxu0 %v10051_v22  ;;  %5145 = vmatpush1.bf16.msra.mxu1 %v10053_v23  ;;  %v9855_v22 = vcombine.low %v3457_v2, %v3461_v3  ;;  %v9857_v23 = vcombine.low %v3458_v4, %v3462_v53  ;;  %v3513_v2 = vld [vmem:[#allocation20 + $0x310] sm:$0xff]  ;;  %v3514_v4 = vld [vmem:[#allocation20 + $0x318] sm:$0xff] }
 0x597   :  { %5064 = vmatprep.subr.bf16.mxu0 %v10060_v24  ;;  %5146 = vmatprep.subr.bf16.mxu1 %v10062_v25  ;;  %v9864_v24 = vcombine.high %v3465_v10, %v3469_v12  ;;  %v9866_v25 = vcombine.high %v3466_v13, %v3470_v18  ;;  %v3517_v3 = vld [vmem:[#allocation20 + $0x330] sm:$0xff]  ;;  %v3518_v53 = vld [vmem:[#allocation20 + $0x338] sm:$0xff] }
 0x59a   :  { %5065 = vmatpush1.bf16.msra.mxu0 %v10059_v32  ;;  %5147 = vmatpush1.bf16.msra.mxu1 %v10061_v33  ;;  %v9863_v32 = vcombine.low %v3465_v10, %v3469_v12  ;;  %v9865_v33 = vcombine.low %v3466_v13, %v3470_v18  ;;  %v3521_v10 = vld [vmem:[#allocation20 + $0x350] sm:$0xff]  ;;  %v3522_v13 = vld [vmem:[#allocation20 + $0x358] sm:$0xff] }
 0x59b   :  { %5157 = vmatprep.subr.bf16.mxu0 %v9816_v34  ;;  %5239 = vmatprep.subr.bf16.mxu1 %v9818_v35  ;;  %v9872_v34 = vcombine.high %v3473_v26, %v3477_v27  ;;  %v9874_v35 = vcombine.high %v3474_v29, %v3478_v30  ;;  %v3525_v12 = vld [vmem:[#allocation20 + $0x370] sm:$0xff]  ;;  %v3526_v18 = vld [vmem:[#allocation20 + $0x378] sm:$0xff] }
 0x59d   :  { %5067 = vmatmul.mubr.bf16.vlgmr.msra.gmra.mrb[16].mxu0 %v12135_v41  ;;  %5149 = vmatmul.mubr.bf16.vlgmr.msra.gmra.mrb[16].mxu1 %v12135_v41 }
 0x59e   :  { %5158 = vmatpush1.bf16.msra.mxu0 %v9815_v40  ;;  %5189 = vmatprep.mubr.bf16.mxu0 %v12121_v16  ;;  %v9871_v40 = vcombine.low %v3473_v26, %v3477_v27  ;;  %v3529_v26 = vld [vmem:[#allocation20 + $0x390] sm:$0xff] }
 0x59f   :  { %5240 = vmatpush1.bf16.msra.mxu1 %v9817_v42  ;;  %5271 = vmatprep.mubr.bf16.mxu1 %v12121_v16  ;;  %v3450_v16 = vld [vmem:[#allocation20 + $0x118] sm:$0xff]  ;;  %v9873_v42 = vcombine.low %v3474_v29, %v3478_v30  ;;  %v3533_v27 = vld [vmem:[#allocation20 + $0x3b0] sm:$0xff] }
 0x5a0   :  { %5159 = vmatprep.subr.bf16.mxu0 %v9824_v43  ;;  %5241 = vmatprep.subr.bf16.mxu1 %v9826_v44  ;;  %v9850_v1 = vcombine.high %v3450_v16, %v3454_v61  ;;  %v9849_v6 = vcombine.low %v3450_v16, %v3454_v61  ;;  %v9880_v43 = vcombine.high %v3481_v36, %v3485_v37  ;;  %v3506_v16 = vld [vmem:[#allocation20 + $0x2d8] sm:$0xff] }
 0x5a1   :  { %v9882_v44 = vcombine.high %v3482_v38, %v3486_v39  ;;  %v3510_v61 = vld [vmem:[#allocation20 + $0x2f8] sm:$0xff] }
 0x5a2   :  { %5160 = vmatpush1.bf16.msra.mxu0 %v9823_v49  ;;  %v9879_v49 = vcombine.low %v3481_v36, %v3485_v37  ;;  %v3530_v29 = vld [vmem:[#allocation20 + $0x398] sm:$0xff]  ;;  %v3537_v36 = vld [vmem:[#allocation20 + $0x3d0] sm:$0xff] }
 0x5a3   :  { %5242 = vmatpush1.bf16.msra.mxu1 %v9825_v7  ;;  %5161 = vmatprep.subr.bf16.mxu0 %v9832_v50  ;;  %v9881_v7 = vcombine.low %v3482_v38, %v3486_v39  ;;  %v9888_v50 = vcombine.high %v3489_v45, %v3493_v46  ;;  %v3534_v30 = vld [vmem:[#allocation20 + $0x3b8] sm:$0xff]  ;;  %v3541_v37 = vld [vmem:[#allocation20 + $0x3f0] sm:$0xff] }
 0x5a4   :  { %5243 = vmatprep.subr.bf16.mxu1 %v9834_v11  ;;  %v9890_v11 = vcombine.high %v3490_v47, %v3494_v48  ;;  %v3538_v38 = vld [vmem:[#allocation20 + $0x3d8] sm:$0xff] }
 0x5a5   :  { %v3542_v39 = vld [vmem:[#allocation20 + $0x3f8] sm:$0xff] }
 0x5a6   :  { %5162 = vmatpush1.bf16.msra.mxu0 %v9831_v55  ;;  %v9887_v55 = vcombine.low %v3489_v45, %v3493_v46  ;;  %v3545_v45 = vld [vmem:[#allocation20 + $0x410] sm:$0xff] }
 0x5a7   :  { %5244 = vmatpush1.bf16.msra.mxu1 %v9833_v56  ;;  %5163 = vmatprep.subr.bf16.mxu0 %v9840_v57  ;;  %v9889_v56 = vcombine.low %v3490_v47, %v3494_v48  ;;  %v9896_v57 = vcombine.high %v3497_v51, %v3501_v52  ;;  %v3549_v46 = vld [vmem:[#allocation20 + $0x430] sm:$0xff]  ;;  %v3546_v47 = vld [vmem:[#allocation20 + $0x418] sm:$0xff] }
 0x5a8   :  { %5245 = vmatprep.subr.bf16.mxu1 %v9842_v58  ;;  %v9898_v58 = vcombine.high %v3498_v54, %v3502_v31  ;;  %v3550_v48 = vld [vmem:[#allocation20 + $0x438] sm:$0xff] }
 0x5aa   :  { %5164 = vmatpush1.bf16.msra.mxu0 %v9839_v62  ;;  %v9895_v62 = vcombine.low %v3497_v51, %v3501_v52  ;;  %v3553_v51 = vld [vmem:[#allocation20 + $0x450] sm:$0xff] }
 0x5ab   :  { %5246 = vmatpush1.bf16.msra.mxu1 %v9841_v63  ;;  %5165 = vmatprep.subr.bf16.mxu0 %v9848_v0  ;;  %v9897_v63 = vcombine.low %v3498_v54, %v3502_v31  ;;  %v9904_v0 = vcombine.high %v3505_v59, %v3509_v60  ;;  %v3557_v52 = vld [vmem:[#allocation20 + $0x470] sm:$0xff]  ;;  %v9943_v54 = vcombine.low %v3545_v45, %v3549_v46  ;;  %v3554_v31 = vld [vmem:[#allocation20 + $0x458] sm:$0xff] }
 0x5ac   :  { %5247 = vmatprep.subr.bf16.mxu1 %v9850_v1  ;;  %v9906_v1 = vcombine.high %v3506_v16, %v3510_v61 }
 0x5ae   :  { %5166 = vmatpush1.bf16.msra.mxu0 %v9847_v5  ;;  %v9903_v5 = vcombine.low %v3505_v59, %v3509_v60  ;;  %v3565_v59 = vld [vmem:[#allocation20 + $0x4b0] sm:$0xff] }
 0x5af   :  { %5248 = vmatpush1.bf16.msra.mxu1 %v9849_v6  ;;  %5167 = vmatprep.subr.bf16.mxu0 %v9856_v8  ;;  %v9905_v6 = vcombine.low %v3506_v16, %v3510_v61  ;;  %v9912_v8 = vcombine.high %v3513_v2, %v3517_v3  ;;  %v3562_v16 = vld [vmem:[#allocation20 + $0x498] sm:$0xff] }
 0x5b0   :  { %5249 = vmatprep.subr.bf16.mxu1 %v9858_v9  ;;  %v9914_v9 = vcombine.high %v3514_v4, %v3518_v53  ;;  %v3566_v61 = vld [vmem:[#allocation20 + $0x4b8] sm:$0xff] }
 0x5b2   :  { %5168 = vmatpush1.bf16.msra.mxu0 %v9855_v22  ;;  %v9911_v22 = vcombine.low %v3513_v2, %v3517_v3  ;;  %v3569_v2 = vld [vmem:[#allocation20 + $0x4d0] sm:$0xff] }
 0x5b3   :  { %5250 = vmatpush1.bf16.msra.mxu1 %v9857_v23  ;;  %5169 = vmatprep.subr.bf16.mxu0 %v9864_v24  ;;  %v9913_v23 = vcombine.low %v3514_v4, %v3518_v53  ;;  %v9920_v24 = vcombine.high %v3521_v10, %v3525_v12  ;;  %v3573_v3 = vld [vmem:[#allocation20 + $0x4f0] sm:$0xff]  ;;  %v3570_v4 = vld [vmem:[#allocation20 + $0x4d8] sm:$0xff] }
 0x5b4   :  { %5251 = vmatprep.subr.bf16.mxu1 %v9866_v25  ;;  %v9922_v25 = vcombine.high %v3522_v13, %v3526_v18  ;;  %v3574_v53 = vld [vmem:[#allocation20 + $0x4f8] sm:$0xff] }
 0x5b6   :  { %5170 = vmatpush1.bf16.msra.mxu0 %v9863_v32  ;;  %v9919_v32 = vcombine.low %v3521_v10, %v3525_v12  ;;  %v3581_v10 = vld [vmem:[#allocation20 + $0x530] sm:$0xff]  ;;  %v3578_v12 = vld [vmem:[#allocation20 + $0x518] sm:$0xff] }
 0x5b7   :  { %5252 = vmatpush1.bf16.msra.mxu1 %v9865_v33  ;;  %5171 = vmatprep.subr.bf16.mxu0 %v9872_v34  ;;  %v9921_v33 = vcombine.low %v3522_v13, %v3526_v18  ;;  %v9928_v34 = vcombine.high %v3529_v26, %v3533_v27  ;;  %v3582_v13 = vld [vmem:[#allocation20 + $0x538] sm:$0xff]  ;;  %v9969_v18 = vcombine.low %v3570_v4, %v3574_v53 }
 0x5b8   :  { %5253 = vmatprep.subr.bf16.mxu1 %v9874_v35  ;;  %v9930_v35 = vcombine.high %v3530_v29, %v3534_v30 }
 0x5ba   :  { %5172 = vmatpush1.bf16.msra.mxu0 %v9871_v40  ;;  %v9927_v40 = vcombine.low %v3529_v26, %v3533_v27  ;;  %v3586_v26 = vld [vmem:[#allocation20 + $0x558] sm:$0xff] }
 0x5bb   :  { %5254 = vmatpush1.bf16.msra.mxu1 %v9873_v42  ;;  %5173 = vmatprep.subr.bf16.mxu0 %v9880_v43  ;;  %v9929_v42 = vcombine.low %v3530_v29, %v3534_v30  ;;  %v9936_v43 = vcombine.high %v3537_v36, %v3541_v37  ;;  %v3590_v27 = vld [vmem:[#allocation20 + $0x578] sm:$0xff]  ;;  %v9977_v30 = vcombine.low %v3578_v12, %v3582_v13 }
 0x5bc   :  { %5255 = vmatprep.subr.bf16.mxu1 %v9882_v44  ;;  %v9938_v44 = vcombine.high %v3538_v38, %v3542_v39 }
 0x5be   :  { %5174 = vmatpush1.bf16.msra.mxu0 %v9879_v49  ;;  %v9935_v49 = vcombine.low %v3537_v36, %v3541_v37  ;;  %v3594_v36 = vld [vmem:[#allocation20 + $0x598] sm:$0xff] }
 0x5bf   :  { %5256 = vmatpush1.bf16.msra.mxu1 %v9881_v7  ;;  %5175 = vmatprep.subr.bf16.mxu0 %v9888_v50  ;;  %v9937_v7 = vcombine.low %v3538_v38, %v3542_v39  ;;  %v9944_v50 = vcombine.high %v3545_v45, %v3549_v46  ;;  %v3598_v37 = vld [vmem:[#allocation20 + $0x5b8] sm:$0xff]  ;;  %v9985_v39 = vcombine.low %v3586_v26, %v3590_v27 }
 0x5c0   :  { %5257 = vmatprep.subr.bf16.mxu1 %v9890_v11  ;;  %v9946_v11 = vcombine.high %v3546_v47, %v3550_v48  ;;  %v3602_v45 = vld [vmem:[#allocation20 + $0x5d8] sm:$0xff] }
 0x5c1   :  { %v3606_v46 = vld [vmem:[#allocation20 + $0x5f8] sm:$0xff] }
 0x5c2   :  { %5176 = vmatpush1.bf16.msra.mxu0 %v9887_v55  ;;  %v3558_v55 = vld [vmem:[#allocation20 + $0x478] sm:$0xff] }
 0x5c3   :  { %5258 = vmatpush1.bf16.msra.mxu1 %v9889_v56  ;;  %5177 = vmatprep.subr.bf16.mxu0 %v9896_v57  ;;  %v9945_v56 = vcombine.low %v3546_v47, %v3550_v48  ;;  %v9952_v57 = vcombine.high %v3553_v51, %v3557_v52  ;;  %v9954_v60 = vcombine.high %v3554_v31, %v3558_v55 }
 0x5c4   :  { %5259 = vmatprep.subr.bf16.mxu1 %v9898_v58  ;;  %v3561_v58 = vld [vmem:[#allocation20 + $0x490] sm:$0xff]  ;;  %v9993_v48 = vcombine.low %v3594_v36, %v3598_v37 }
 0x5c6   :  { %5178 = vmatpush1.bf16.msra.mxu0 %v9895_v62  ;;  %v9951_v62 = vcombine.low %v3553_v51, %v3557_v52  ;;  %v3610_v51 = vld [vmem:[#allocation20 + $0x618] sm:$0xff] }
 0x5c7   :  { %5260 = vmatpush1.bf16.msra.mxu1 %v9897_v63  ;;  %5179 = vmatprep.subr.bf16.mxu0 %v9904_v0  ;;  %v9953_v63 = vcombine.low %v3554_v31, %v3558_v55  ;;  %v9960_v0 = vcombine.high %v3561_v58, %v3565_v59  ;;  %v3614_v52 = vld [vmem:[#allocation20 + $0x638] sm:$0xff]  ;;  %v10001_v31 = vcombine.low %v3602_v45, %v3606_v46 }
 0x5c8   :  { %5261 = vmatprep.subr.bf16.mxu1 %v9906_v1  ;;  %v9962_v1 = vcombine.high %v3562_v16, %v3566_v61 }
 0x5ca   :  { %5180 = vmatpush1.bf16.msra.mxu0 %v9903_v5  ;;  %v9959_v5 = vcombine.low %v3561_v58, %v3565_v59  ;;  %v3621_v58 = vld [vmem:[#allocation20 + $0x670] sm:$0xff]  ;;  %v3618_v59 = vld [vmem:[#allocation20 + $0x658] sm:$0xff] }
 0x5cb   :  { %5262 = vmatpush1.bf16.msra.mxu1 %v9905_v6  ;;  %5181 = vmatprep.subr.bf16.mxu0 %v9912_v8  ;;  %v9968_v6 = vcombine.high %v3569_v2, %v3573_v3  ;;  %v9970_v8 = vcombine.high %v3570_v4, %v3574_v53 }
 0x5cc   :  { %5263 = vmatprep.subr.bf16.mxu1 %v9914_v9  ;;  %v3577_v9 = vld [vmem:[#allocation20 + $0x510] sm:$0xff] }
 0x5cd   :  { %v9975_v29 = vcombine.low %v3577_v9, %v3581_v10 }
 0x5ce   :  { %5182 = vmatpush1.bf16.msra.mxu0 %v9911_v22  ;;  %v9976_v22 = vcombine.high %v3577_v9, %v3581_v10  ;;  %v3634_v9 = vld [vmem:[#allocation20 + $0x6d8] sm:$0xff] }
 0x5cf   :  { %5264 = vmatpush1.bf16.msra.mxu1 %v9913_v23  ;;  %5183 = vmatprep.subr.bf16.mxu0 %v9920_v24  ;;  %v9978_v23 = vcombine.high %v3578_v12, %v3582_v13  ;;  %v3585_v24 = vld [vmem:[#allocation20 + $0x550] sm:$0xff]  ;;  %v3638_v10 = vld [vmem:[#allocation20 + $0x6f8] sm:$0xff] }
 0x5d0   :  { %5265 = vmatprep.subr.bf16.mxu1 %v9922_v25  ;;  %v3589_v25 = vld [vmem:[#allocation20 + $0x570] sm:$0xff] }
 0x5d1   :  { %v9983_v38 = vcombine.low %v3585_v24, %v3589_v25 }
 0x5d2   :  { %5184 = vmatpush1.bf16.msra.mxu0 %v9919_v32  ;;  %v9984_v32 = vcombine.high %v3585_v24, %v3589_v25  ;;  %v3642_v24 = vld [vmem:[#allocation20 + $0x718] sm:$0xff] }
 0x5d3   :  { %5266 = vmatpush1.bf16.msra.mxu1 %v9921_v33  ;;  %5185 = vmatprep.subr.bf16.mxu0 %v9928_v34  ;;  %v9986_v33 = vcombine.high %v3586_v26, %v3590_v27  ;;  %v3593_v34 = vld [vmem:[#allocation20 + $0x590] sm:$0xff]  ;;  %v3646_v25 = vld [vmem:[#allocation20 + $0x738] sm:$0xff]  ;;  %v10033_v27 = vcombine.low %v3634_v9, %v3638_v10 }
 0x5d4   :  { %5267 = vmatprep.subr.bf16.mxu1 %v9930_v35  ;;  %v3597_v35 = vld [vmem:[#allocation20 + $0x5b0] sm:$0xff] }
 0x5d5   :  { %v9991_v47 = vcombine.low %v3593_v34, %v3597_v35 }
 0x5d6   :  { %5186 = vmatpush1.bf16.msra.mxu0 %v9927_v40  ;;  %v9992_v40 = vcombine.high %v3593_v34, %v3597_v35  ;;  %v3650_v34 = vld [vmem:[#allocation20 + $0x758] sm:$0xff] }
 0x5d7   :  { %5268 = vmatpush1.bf16.msra.mxu1 %v9929_v42  ;;  %5187 = vmatprep.subr.bf16.mxu0 %v9936_v43  ;;  %v9994_v42 = vcombine.high %v3594_v36, %v3598_v37  ;;  %v3601_v43 = vld [vmem:[#allocation20 + $0x5d0] sm:$0xff]  ;;  %v3654_v35 = vld [vmem:[#allocation20 + $0x778] sm:$0xff]  ;;  %v10041_v37 = vcombine.low %v3642_v24, %v3646_v25 }
 0x5d8   :  { %5269 = vmatprep.subr.bf16.mxu1 %v9938_v44  ;;  %v3605_v44 = vld [vmem:[#allocation20 + $0x5f0] sm:$0xff] }
 0x5da   :  { %5188 = vmatpush1.bf16.msra.mxu0 %v9935_v49  ;;  %v10000_v49 = vcombine.high %v3601_v43, %v3605_v44 }
 0x5db   :  { %5270 = vmatpush1.bf16.msra.mxu1 %v9937_v7  ;;  %5198 = vmatprep.subr.bf16.mxu0 %v9944_v50  ;;  %v10002_v7 = vcombine.high %v3602_v45, %v3606_v46  ;;  %v3609_v50 = vld [vmem:[#allocation20 + $0x610] sm:$0xff]  ;;  %v10049_v46 = vcombine.low %v3650_v34, %v3654_v35 }
 0x5dc   :  { %5280 = vmatprep.subr.bf16.mxu1 %v9946_v11  ;;  %v3613_v11 = vld [vmem:[#allocation20 + $0x630] sm:$0xff] }
 0x5dd   :  { %5190 = vmatmul.mubr.bf16.vlgmr.msra.gmra.mrb[20].mxu0 %v12123_v20  ;;  %v10008_v55 = vcombine.high %v3609_v50, %v3613_v11 }
 0x5de   :  { %5272 = vmatmul.mubr.bf16.vlgmr.msra.gmra.mrb[20].mxu1 %v12123_v20  ;;  %5199 = vmatpush1.bf16.msra.mxu0 %v9943_v54  ;;  %v9961_v20 = vcombine.low %v3562_v16, %v3566_v61  ;;  %v9999_v54 = vcombine.low %v3601_v43, %v3605_v44  ;;  %v10007_v16 = vcombine.low %v3609_v50, %v3613_v11  ;;  %v3658_v43 = vld [vmem:[#allocation20 + $0x798] sm:$0xff] }
 0x5df   :  { %5230 = vmatprep.mubr.bf16.mxu0 %v12127_v28  ;;  %5281 = vmatpush1.bf16.msra.mxu1 %v9945_v56  ;;  %v10010_v56 = vcombine.high %v3610_v51, %v3614_v52  ;;  %v10009_v61 = vcombine.low %v3610_v51, %v3614_v52  ;;  %v3662_v44 = vld [vmem:[#allocation20 + $0x7b8] sm:$0xff] }
 0x5e0   :  { %5312 = vmatprep.mubr.bf16.mxu1 %v12127_v28  ;;  %5200 = vmatprep.subr.bf16.mxu0 %v9952_v57  ;;  %v9967_v28 = vcombine.low %v3569_v2, %v3573_v3  ;;  %v3617_v57 = vld [vmem:[#allocation20 + $0x650] sm:$0xff]  ;;  %v3626_v2 = vld [vmem:[#allocation20 + $0x698] sm:$0xff]  ;;  %v10057_v52 = vcombine.low %v3658_v43, %v3662_v44 }
 0x5e1   :  { %5282 = vmatprep.subr.bf16.mxu1 %v9954_v60  ;;  %v3622_v60 = vld [vmem:[#allocation20 + $0x678] sm:$0xff]  ;;  %v10015_v4 = vcombine.low %v3617_v57, %v3621_v58 }
 0x5e2   :  { %5201 = vmatpush1.bf16.msra.mxu0 %v9951_v62  ;;  %v10016_v62 = vcombine.high %v3617_v57, %v3621_v58  ;;  %v3630_v3 = vld [vmem:[#allocation20 + $0x6b8] sm:$0xff]  ;;  %v10017_v53 = vcombine.low %v3618_v59, %v3622_v60  ;;  %v5396_v57 = vld [vmem:[#allocation22 + $0x8] sm:$0xff] }
 0x5e3   :  { %5283 = vmatpush1.bf16.msra.mxu1 %v9953_v63  ;;  %5202 = vmatprep.subr.bf16.mxu0 %v9960_v0  ;;  %v10018_v63 = vcombine.high %v3618_v59, %v3622_v60  ;;  %v3625_v0 = vld [vmem:[#allocation20 + $0x690] sm:$0xff]  ;;  %v10025_v13 = vcombine.low %v3626_v2, %v3630_v3  ;;  %v3666_v50 = vld [vmem:[#allocation20 + $0x7d8] sm:$0xff]  ;;  %v5400_v58 = vld [vmem:[#allocation22 + $0x28] sm:$0xff] }
 0x5e4   :  { %5284 = vmatprep.subr.bf16.mxu1 %v9962_v1  ;;  %v3629_v1 = vld [vmem:[#allocation20 + $0x6b0] sm:$0xff]  ;;  %v3670_v11 = vld [vmem:[#allocation20 + $0x7f8] sm:$0xff] }
 0x5e5   :  { %v10023_v12 = vcombine.low %v3625_v0, %v3629_v1  ;;  %v10065_v60 = vcombine.low %v3666_v50, %v3670_v11 }
 0x5e6   :  { %5203 = vmatpush1.bf16.msra.mxu0 %v9959_v5  ;;  %v10024_v5 = vcombine.high %v3625_v0, %v3629_v1  ;;  %v5404_v0 = vld [vmem:[#allocation22 + $0x48] sm:$0xff] }
 0x5e7   :  { %5285 = vmatpush1.bf16.msra.mxu1 %v9961_v20  ;;  %5204 = vmatprep.subr.bf16.mxu0 %v9968_v6  ;;  %v10026_v20 = vcombine.high %v3626_v2, %v3630_v3  ;;  %v3633_v6 = vld [vmem:[#allocation20 + $0x6d0] sm:$0xff]  ;;  %v5408_v1 = vld [vmem:[#allocation22 + $0x68] sm:$0xff]  ;;  %v10069_v3 = vcombine.low %v5396_v57, %v5400_v58 }
 0x5e8   :  { %5286 = vmatprep.subr.bf16.mxu1 %v9970_v8  ;;  %v3637_v8 = vld [vmem:[#allocation20 + $0x6f0] sm:$0xff] }
 0x5e9   :  { %v10031_v26 = vcombine.low %v3633_v6, %v3637_v8 }
 0x5ea   :  { %5205 = vmatpush1.bf16.msra.mxu0 %v9967_v28  ;;  %v10032_v28 = vcombine.high %v3633_v6, %v3637_v8  ;;  %v5412_v6 = vld [vmem:[#allocation22 + $0x88] sm:$0xff] }
 0x5eb   :  { %5287 = vmatpush1.bf16.msra.mxu1 %v9969_v18  ;;  %5206 = vmatprep.subr.bf16.mxu0 %v9976_v22  ;;  %v10034_v18 = vcombine.high %v3634_v9, %v3638_v10  ;;  %v3641_v22 = vld [vmem:[#allocation20 + $0x710] sm:$0xff]  ;;  %v5416_v8 = vld [vmem:[#allocation22 + $0xa8] sm:$0xff]  ;;  %v10077_v10 = vcombine.low %v5404_v0, %v5408_v1 }
 0x5ec   :  { %5288 = vmatprep.subr.bf16.mxu1 %v9978_v23  ;;  %v3645_v23 = vld [vmem:[#allocation20 + $0x730] sm:$0xff] }
 0x5ed   :  { %v10039_v36 = vcombine.low %v3641_v22, %v3645_v23 }
 0x5ee   :  { %5207 = vmatpush1.bf16.msra.mxu0 %v9975_v29  ;;  %v10040_v29 = vcombine.high %v3641_v22, %v3645_v23  ;;  %v5420_v22 = vld [vmem:[#allocation22 + $0xc8] sm:$0xff] }
 0x5ef   :  { %5289 = vmatpush1.bf16.msra.mxu1 %v9977_v30  ;;  %5208 = vmatprep.subr.bf16.mxu0 %v9984_v32  ;;  %v10042_v30 = vcombine.high %v3642_v24, %v3646_v25  ;;  %v3649_v32 = vld [vmem:[#allocation20 + $0x750] sm:$0xff]  ;;  %v5424_v23 = vld [vmem:[#allocation22 + $0xe8] sm:$0xff]  ;;  %v10085_v25 = vcombine.low %v5412_v6, %v5416_v8 }
 0x5f0   :  { %5290 = vmatprep.subr.bf16.mxu1 %v9986_v33  ;;  %v3653_v33 = vld [vmem:[#allocation20 + $0x770] sm:$0xff] }
 0x5f1   :  { %v10047_v45 = vcombine.low %v3649_v32, %v3653_v33 }
 0x5f2   :  { %5209 = vmatpush1.bf16.msra.mxu0 %v9983_v38  ;;  %v10048_v38 = vcombine.high %v3649_v32, %v3653_v33  ;;  %v5432_v32 = vld [vmem:[#allocation22 + $0x128] sm:$0xff] }
 0x5f3   :  { %5291 = vmatpush1.bf16.msra.mxu1 %v9985_v39  ;;  %5210 = vmatprep.subr.bf16.mxu0 %v9992_v40  ;;  %v10050_v39 = vcombine.high %v3650_v34, %v3654_v35  ;;  %v3657_v40 = vld [vmem:[#allocation20 + $0x790] sm:$0xff]  ;;  %v10093_v34 = vcombine.low %v5420_v22, %v5424_v23 }
 0x5f4   :  { %5292 = vmatprep.subr.bf16.mxu1 %v9994_v42  ;;  %v3661_v42 = vld [vmem:[#allocation20 + $0x7b0] sm:$0xff] }
 0x5f5   :  { %v10055_v51 = vcombine.low %v3657_v40, %v3661_v42 }
 0x5f6   :  { %5211 = vmatpush1.bf16.msra.mxu0 %v9991_v47  ;;  %v10056_v47 = vcombine.high %v3657_v40, %v3661_v42  ;;  %v5440_v40 = vld [vmem:[#allocation22 + $0x168] sm:$0xff] }
 0x5f7   :  { %5293 = vmatpush1.bf16.msra.mxu1 %v9993_v48  ;;  %5212 = vmatprep.subr.bf16.mxu0 %v10000_v49  ;;  %v10058_v48 = vcombine.high %v3658_v43, %v3662_v44  ;;  %v3665_v49 = vld [vmem:[#allocation20 + $0x7d0] sm:$0xff] }
 0x5f8   :  { %5294 = vmatprep.subr.bf16.mxu1 %v10002_v7  ;;  %v3669_v7 = vld [vmem:[#allocation20 + $0x7f0] sm:$0xff] }
 0x5f9   :  { %v10063_v59 = vcombine.low %v3665_v49, %v3669_v7 }
 0x5fa   :  { %5213 = vmatpush1.bf16.msra.mxu0 %v9999_v54  ;;  %v10064_v54 = vcombine.high %v3665_v49, %v3669_v7  ;;  %v5448_v49 = vld [vmem:[#allocation22 + $0x1a8] sm:$0xff] }
 0x5fb   :  { %5295 = vmatpush1.bf16.msra.mxu1 %v10001_v31  ;;  %5214 = vmatprep.subr.bf16.mxu0 %v10008_v55  ;;  %v10066_v31 = vcombine.high %v3666_v50, %v3670_v11  ;;  %v5395_v55 = vld [vmem:[#allocation22] sm:$0xff] }
 0x5fc   :  { %5296 = vmatprep.subr.bf16.mxu1 %v10010_v56  ;;  %v5399_v56 = vld [vmem:[#allocation22 + $0x20] sm:$0xff] }
 0x5fd   :  { %v10067_v2 = vcombine.low %v5395_v55, %v5399_v56 }
 0x5fe   :  { %5215 = vmatpush1.bf16.msra.mxu0 %v10007_v16  ;;  %v10068_v16 = vcombine.high %v5395_v55, %v5399_v56  ;;  %v5456_v55 = vld [vmem:[#allocation22 + $0x1e8] sm:$0xff] }
 0x5ff   :  { %5297 = vmatpush1.bf16.msra.mxu1 %v10009_v61  ;;  %5216 = vmatprep.subr.bf16.mxu0 %v10016_v62  ;;  %v10070_v61 = vcombine.high %v5396_v57, %v5400_v58  ;;  %v5403_v62 = vld [vmem:[#allocation22 + $0x40] sm:$0xff] }
 0x600   :  { %5298 = vmatprep.subr.bf16.mxu1 %v10018_v63  ;;  %v5407_v63 = vld [vmem:[#allocation22 + $0x60] sm:$0xff] }
 0x601   :  { %v10075_v9 = vcombine.low %v5403_v62, %v5407_v63 }
 0x602   :  { %5217 = vmatpush1.bf16.msra.mxu0 %v10015_v4  ;;  %v10076_v4 = vcombine.high %v5403_v62, %v5407_v63  ;;  %v5464_v62 = vld [vmem:[#allocation22 + $0x228] sm:$0xff] }
 0x603   :  { %5299 = vmatpush1.bf16.msra.mxu1 %v10017_v53  ;;  %5218 = vmatprep.subr.bf16.mxu0 %v10024_v5  ;;  %v10078_v53 = vcombine.high %v5404_v0, %v5408_v1  ;;  %v5411_v5 = vld [vmem:[#allocation22 + $0x80] sm:$0xff] }
 0x604   :  { %5300 = vmatprep.subr.bf16.mxu1 %v10026_v20  ;;  %v5415_v20 = vld [vmem:[#allocation22 + $0xa0] sm:$0xff] }
 0x605   :  { %v10083_v24 = vcombine.low %v5411_v5, %v5415_v20 }
 0x606   :  { %5219 = vmatpush1.bf16.msra.mxu0 %v10023_v12  ;;  %v10084_v12 = vcombine.high %v5411_v5, %v5415_v20  ;;  %v5472_v5 = vld [vmem:[#allocation22 + $0x268] sm:$0xff] }
 0x607   :  { %5301 = vmatpush1.bf16.msra.mxu1 %v10025_v13  ;;  %5220 = vmatprep.subr.bf16.mxu0 %v10032_v28  ;;  %v10086_v13 = vcombine.high %v5412_v6, %v5416_v8  ;;  %v5419_v28 = vld [vmem:[#allocation22 + $0xc0] sm:$0xff] }
 0x608   :  { %5302 = vmatprep.subr.bf16.mxu1 %v10034_v18  ;;  %v5423_v18 = vld [vmem:[#allocation22 + $0xe0] sm:$0xff] }
 0x609   :  { %v10091_v33 = vcombine.low %v5419_v28, %v5423_v18 }
 0x60a   :  { %5221 = vmatpush1.bf16.msra.mxu0 %v10031_v26  ;;  %v10092_v26 = vcombine.high %v5419_v28, %v5423_v18  ;;  %v5480_v28 = vld [vmem:[#allocation22 + $0x2a8] sm:$0xff] }
 0x60b   :  { %5303 = vmatpush1.bf16.msra.mxu1 %v10033_v27  ;;  %5222 = vmatprep.subr.bf16.mxu0 %v10040_v29  ;;  %v5427_v27 = vld [vmem:[#allocation22 + $0x100] sm:$0xff] }
 0x60c   :  { %5304 = vmatprep.subr.bf16.mxu1 %v10042_v30  ;;  %v5431_v29 = vld [vmem:[#allocation22 + $0x120] sm:$0xff]  ;;  %v5428_v30 = vld [vmem:[#allocation22 + $0x108] sm:$0xff] }
 0x60d   :  { %v10100_v35 = vcombine.high %v5427_v27, %v5431_v29  ;;  %v10099_v42 = vcombine.low %v5427_v27, %v5431_v29  ;;  %v10101_v43 = vcombine.low %v5428_v30, %v5432_v32  ;;  %v5488_v27 = vld [vmem:[#allocation22 + $0x2e8] sm:$0xff] }
 0x60e   :  { %5223 = vmatpush1.bf16.msra.mxu0 %v10039_v36  ;;  %v10102_v36 = vcombine.high %v5428_v30, %v5432_v32 }
 0x60f   :  { %5305 = vmatpush1.bf16.msra.mxu1 %v10041_v37  ;;  %5224 = vmatprep.subr.bf16.mxu0 %v10048_v38  ;;  %v5435_v37 = vld [vmem:[#allocation22 + $0x140] sm:$0xff] }
 0x610   :  { %5306 = vmatprep.subr.bf16.mxu1 %v10050_v39  ;;  %v5439_v38 = vld [vmem:[#allocation22 + $0x160] sm:$0xff]  ;;  %v5436_v39 = vld [vmem:[#allocation22 + $0x148] sm:$0xff] }
 0x611   :  { %v10108_v44 = vcombine.high %v5435_v37, %v5439_v38  ;;  %v10107_v7 = vcombine.low %v5435_v37, %v5439_v38  ;;  %v10109_v50 = vcombine.low %v5436_v39, %v5440_v40  ;;  %v5496_v37 = vld [vmem:[#allocation22 + $0x328] sm:$0xff] }
 0x612   :  { %5225 = vmatpush1.bf16.msra.mxu0 %v10047_v45  ;;  %v10110_v45 = vcombine.high %v5436_v39, %v5440_v40 }
 0x613   :  { %5307 = vmatpush1.bf16.msra.mxu1 %v10049_v46  ;;  %5226 = vmatprep.subr.bf16.mxu0 %v10056_v47  ;;  %v5443_v46 = vld [vmem:[#allocation22 + $0x180] sm:$0xff] }
 0x614   :  { %5308 = vmatprep.subr.bf16.mxu1 %v10058_v48  ;;  %v5447_v47 = vld [vmem:[#allocation22 + $0x1a0] sm:$0xff]  ;;  %v5444_v48 = vld [vmem:[#allocation22 + $0x188] sm:$0xff] }
 0x615   :  { %v10116_v11 = vcombine.high %v5443_v46, %v5447_v47  ;;  %v10115_v56 = vcombine.low %v5443_v46, %v5447_v47  ;;  %v10117_v57 = vcombine.low %v5444_v48, %v5448_v49  ;;  %v5504_v46 = vld [vmem:[#allocation22 + $0x368] sm:$0xff] }
 0x616   :  { %5227 = vmatpush1.bf16.msra.mxu0 %v10055_v51  ;;  %v10118_v51 = vcombine.high %v5444_v48, %v5448_v49 }
 0x617   :  { %5309 = vmatpush1.bf16.msra.mxu1 %v10057_v52  ;;  %5228 = vmatprep.subr.bf16.mxu0 %v10064_v54  ;;  %v5451_v52 = vld [vmem:[#allocation22 + $0x1c0] sm:$0xff] }
 0x618   :  { %5310 = vmatprep.subr.bf16.mxu1 %v10066_v31  ;;  %v5455_v54 = vld [vmem:[#allocation22 + $0x1e0] sm:$0xff]  ;;  %v5452_v31 = vld [vmem:[#allocation22 + $0x1c8] sm:$0xff] }
 0x619   :  { %v10124_v58 = vcombine.high %v5451_v52, %v5455_v54  ;;  %v10123_v63 = vcombine.low %v5451_v52, %v5455_v54  ;;  %v10125_v0 = vcombine.low %v5452_v31, %v5456_v55  ;;  %v5512_v52 = vld [vmem:[#allocation22 + $0x3a8] sm:$0xff] }
 0x61a   :  { %5229 = vmatpush1.bf16.msra.mxu0 %v10063_v59  ;;  %v10126_v59 = vcombine.high %v5452_v31, %v5456_v55 }
 0x61b   :  { %5311 = vmatpush1.bf16.msra.mxu1 %v10065_v60  ;;  %6973 = vmatprep.subr.bf16.mxu0 %v10068_v16  ;;  %v5459_v60 = vld [vmem:[#allocation22 + $0x200] sm:$0xff] }
 0x61c   :  { %7055 = vmatprep.subr.bf16.mxu1 %v10070_v61  ;;  %v5463_v16 = vld [vmem:[#allocation22 + $0x220] sm:$0xff]  ;;  %v5460_v61 = vld [vmem:[#allocation22 + $0x208] sm:$0xff] }
 0x61d   :  { %5231 = vmatmul.mubr.bf16.vlgmr.msra.gmra.mrb[20].mxu0 %v12135_v41  ;;  %v10132_v1 = vcombine.high %v5459_v60, %v5463_v16  ;;  %v10131_v20 = vcombine.low %v5459_v60, %v5463_v16  ;;  %v10133_v6 = vcombine.low %v5460_v61, %v5464_v62  ;;  %v5520_v60 = vld [vmem:[#allocation22 + $0x3e8] sm:$0xff] }
 0x61e   :  { %5313 = vmatmul.mubr.bf16.vlgmr.msra.gmra.mrb[20].mxu1 %v12135_v41  ;;  %6974 = vmatpush1.bf16.msra.mxu0 %v10067_v2  ;;  %v10094_v41 = vcombine.high %v5420_v22, %v5424_v23  ;;  %v10134_v2 = vcombine.high %v5460_v61, %v5464_v62 }
 0x61f   :  { %7056 = vmatpush1.bf16.msra.mxu1 %v10069_v3  ;;  %6975 = vmatprep.subr.bf16.mxu0 %v10076_v4  ;;  %v5467_v3 = vld [vmem:[#allocation22 + $0x240] sm:$0xff] }
 0x620   :  { %7057 = vmatprep.subr.bf16.mxu1 %v10078_v53  ;;  %v5471_v4 = vld [vmem:[#allocation22 + $0x260] sm:$0xff]  ;;  %v5468_v53 = vld [vmem:[#allocation22 + $0x248] sm:$0xff] }
 0x621   :  { %v10140_v8 = vcombine.high %v5467_v3, %v5471_v4  ;;  %v10139_v18 = vcombine.low %v5467_v3, %v5471_v4  ;;  %v10141_v22 = vcombine.low %v5468_v53, %v5472_v5  ;;  %v5528_v3 = vld [vmem:[#allocation22 + $0x428] sm:$0xff] }
 0x622   :  { %6976 = vmatpush1.bf16.msra.mxu0 %v10075_v9  ;;  %v10142_v9 = vcombine.high %v5468_v53, %v5472_v5 }
 0x623   :  { %7058 = vmatpush1.bf16.msra.mxu1 %v10077_v10  ;;  %6977 = vmatprep.subr.bf16.mxu0 %v10084_v12  ;;  %v5475_v10 = vld [vmem:[#allocation22 + $0x280] sm:$0xff] }
 0x624   :  { %7059 = vmatprep.subr.bf16.mxu1 %v10086_v13  ;;  %v5479_v12 = vld [vmem:[#allocation22 + $0x2a0] sm:$0xff]  ;;  %v5476_v13 = vld [vmem:[#allocation22 + $0x288] sm:$0xff] }
 0x625   :  { %v10148_v23 = vcombine.high %v5475_v10, %v5479_v12  ;;  %v10147_v29 = vcombine.low %v5475_v10, %v5479_v12  ;;  %v10149_v30 = vcombine.low %v5476_v13, %v5480_v28 }
 0x626   :  { %6978 = vmatpush1.bf16.msra.mxu0 %v10083_v24  ;;  %v10150_v24 = vcombine.high %v5476_v13, %v5480_v28 }
 0x627   :  { %7060 = vmatpush1.bf16.msra.mxu1 %v10085_v25  ;;  %6979 = vmatprep.subr.bf16.mxu0 %v10092_v26  ;;  %v5483_v25 = vld [vmem:[#allocation22 + $0x2c0] sm:$0xff] }
 0x628   :  { %7061 = vmatprep.subr.bf16.mxu1 %v10094_v41  ;;  %v5487_v26 = vld [vmem:[#allocation22 + $0x2e0] sm:$0xff]  ;;  %v5484_v41 = vld [vmem:[#allocation22 + $0x2c8] sm:$0xff] }
 0x629   :  { %v10156_v32 = vcombine.high %v5483_v25, %v5487_v26  ;;  %v10155_v38 = vcombine.low %v5483_v25, %v5487_v26  ;;  %v10157_v39 = vcombine.low %v5484_v41, %v5488_v27 }
 0x62a   :  { %6980 = vmatpush1.bf16.msra.mxu0 %v10091_v33  ;;  %v10158_v33 = vcombine.high %v5484_v41, %v5488_v27 }
 0x62b   :  { %7062 = vmatpush1.bf16.msra.mxu1 %v10093_v34  ;;  %6981 = vmatprep.subr.bf16.mxu0 %v10100_v35  ;;  %v5491_v34 = vld [vmem:[#allocation22 + $0x300] sm:$0xff] }
 0x62c   :  { %7063 = vmatprep.subr.bf16.mxu1 %v10102_v36  ;;  %v5495_v35 = vld [vmem:[#allocation22 + $0x320] sm:$0xff]  ;;  %v5492_v36 = vld [vmem:[#allocation22 + $0x308] sm:$0xff] }
 0x62d   :  { %v10164_v40 = vcombine.high %v5491_v34, %v5495_v35  ;;  %v10163_v47 = vcombine.low %v5491_v34, %v5495_v35  ;;  %v10165_v48 = vcombine.low %v5492_v36, %v5496_v37 }
 0x62e   :  { %6982 = vmatpush1.bf16.msra.mxu0 %v10099_v42  ;;  %v10166_v42 = vcombine.high %v5492_v36, %v5496_v37 }
 0x62f   :  { %7064 = vmatpush1.bf16.msra.mxu1 %v10101_v43  ;;  %6983 = vmatprep.subr.bf16.mxu0 %v10108_v44  ;;  %v5499_v43 = vld [vmem:[#allocation22 + $0x340] sm:$0xff] }
 0x630   :  { %7065 = vmatprep.subr.bf16.mxu1 %v10110_v45  ;;  %v5503_v44 = vld [vmem:[#allocation22 + $0x360] sm:$0xff]  ;;  %v5500_v45 = vld [vmem:[#allocation22 + $0x348] sm:$0xff] }
 0x631   :  { %v10172_v49 = vcombine.high %v5499_v43, %v5503_v44  ;;  %v10171_v54 = vcombine.low %v5499_v43, %v5503_v44  ;;  %v10173_v31 = vcombine.low %v5500_v45, %v5504_v46  ;;  %v5536_v43 = vld [vmem:[#allocation22 + $0x468] sm:$0xff] }
 0x632   :  { %6984 = vmatpush1.bf16.msra.mxu0 %v10107_v7  ;;  %v10174_v7 = vcombine.high %v5500_v45, %v5504_v46 }
 0x633   :  { %7066 = vmatpush1.bf16.msra.mxu1 %v10109_v50  ;;  %6985 = vmatprep.subr.bf16.mxu0 %v10116_v11  ;;  %v5507_v50 = vld [vmem:[#allocation22 + $0x380] sm:$0xff] }
 0x634   :  { %7067 = vmatprep.subr.bf16.mxu1 %v10118_v51  ;;  %v5511_v11 = vld [vmem:[#allocation22 + $0x3a0] sm:$0xff]  ;;  %v5508_v51 = vld [vmem:[#allocation22 + $0x388] sm:$0xff] }
 0x635   :  { %v10180_v55 = vcombine.high %v5507_v50, %v5511_v11  ;;  %v10179_v16 = vcombine.low %v5507_v50, %v5511_v11  ;;  %v10181_v61 = vcombine.low %v5508_v51, %v5512_v52  ;;  %v5543_v11 = vld [vmem:[#allocation22 + $0x4a0] sm:$0xff] }
 0x636   :  { %6986 = vmatpush1.bf16.msra.mxu0 %v10115_v56  ;;  %v10182_v56 = vcombine.high %v5508_v51, %v5512_v52  ;;  %v5540_v51 = vld [vmem:[#allocation22 + $0x488] sm:$0xff] }
 0x637   :  { %7068 = vmatpush1.bf16.msra.mxu1 %v10117_v57  ;;  %6987 = vmatprep.subr.bf16.mxu0 %v10124_v58  ;;  %v5515_v57 = vld [vmem:[#allocation22 + $0x3c0] sm:$0xff]  ;;  %v5544_v52 = vld [vmem:[#allocation22 + $0x4a8] sm:$0xff] }
 0x638   :  { %7069 = vmatprep.subr.bf16.mxu1 %v10126_v59  ;;  %v5519_v58 = vld [vmem:[#allocation22 + $0x3e0] sm:$0xff]  ;;  %v5516_v59 = vld [vmem:[#allocation22 + $0x3c8] sm:$0xff] }
 0x639   :  { %v10188_v62 = vcombine.high %v5515_v57, %v5519_v58  ;;  %v10187_v4 = vcombine.low %v5515_v57, %v5519_v58  ;;  %v10189_v53 = vcombine.low %v5516_v59, %v5520_v60  ;;  %v10214_v57 = vcombine.high %v5540_v51, %v5544_v52  ;;  %v5547_v58 = vld [vmem:[#allocation22 + $0x4c0] sm:$0xff] }
 0x63a   :  { %6988 = vmatpush1.bf16.msra.mxu0 %v10123_v63  ;;  %v10190_v63 = vcombine.high %v5516_v59, %v5520_v60  ;;  %v5551_v59 = vld [vmem:[#allocation22 + $0x4e0] sm:$0xff]  ;;  %v5548_v60 = vld [vmem:[#allocation22 + $0x4c8] sm:$0xff] }
 0x63b   :  { %7070 = vmatpush1.bf16.msra.mxu1 %v10125_v0  ;;  %6989 = vmatprep.subr.bf16.mxu0 %v10132_v1  ;;  %v12147_v0 = vld [vmem:[#allocation22 + $0x400] sm:$0xff] }
 0x63c   :  { %7071 = vmatprep.subr.bf16.mxu1 %v10134_v2  ;;  %v5527_v1 = vld [vmem:[#allocation22 + $0x420] sm:$0xff]  ;;  %v5524_v2 = vld [vmem:[#allocation22 + $0x408] sm:$0xff] }
 0x63d   :  { %v10196_v5 = vcombine.high %v12147_v0, %v5527_v1  ;;  %v10195_v46 = vcombine.low %v12147_v0, %v5527_v1  ;;  %v5555_v1 = vld [vmem:[#allocation22 + $0x500] sm:$0xff] }
 0x63e   :  { %6990 = vmatpush1.bf16.msra.mxu0 %v10131_v20  ;;  %v10198_v20 = vcombine.high %v5524_v2, %v5528_v3 }
 0x63f   :  { %7072 = vmatpush1.bf16.msra.mxu1 %v10133_v6  ;;  %6991 = vmatprep.subr.bf16.mxu0 %v10140_v8  ;;  %v12153_v6 = vld [vmem:[%s12347_s14] sm:$0xff] }
 0x640   :  { %7073 = vmatprep.subr.bf16.mxu1 %v10142_v9  ;;  %v12158_v8 = vld [vmem:[%s12348_s15] sm:$0xff]  ;;  %v3676_v9 = vrot.slane %v12153_v6, %v12058_v15  ;;  %v3680_v10 = vrot.slane %v12153_v6, %v12061_v17  ;;  %v3688_v12 = vrot.slane %v12153_v6, %v12068_v21 }
 0x641   :  { %v5334_v13 = vrot.slane %v12158_v8, %v12058_v15 }
 0x642   :  { %6992 = vmatpush1.bf16.msra.mxu0 %v10139_v18 }
 0x643   :  { %7074 = vmatpush1.bf16.msra.mxu1 %v10141_v22  ;;  %6993 = vmatprep.subr.bf16.mxu0 %v10148_v23  ;;  %v5338_v22 = vrot.slane %v12158_v8, %v12061_v17  ;;  %v5346_v23 = vrot.slane %v12158_v8, %v12068_v21 }
 0x644   :  { %7075 = vmatprep.subr.bf16.mxu1 %v10150_v24 }
 0x646   :  { %6994 = vmatpush1.bf16.msra.mxu0 %v10147_v29 }
 0x647   :  { %7076 = vmatpush1.bf16.msra.mxu1 %v10149_v30  ;;  %6995 = vmatprep.subr.bf16.mxu0 %v10156_v32 }
 0x648   :  { %7077 = vmatprep.subr.bf16.mxu1 %v10158_v33 }
 0x64a   :  { %6996 = vmatpush1.bf16.msra.mxu0 %v10155_v38  ;;  %v5531_v38 = vld [vmem:[#allocation22 + $0x440] sm:$0xff] }
 0x64b   :  { %7078 = vmatpush1.bf16.msra.mxu1 %v10157_v39  ;;  %6997 = vmatprep.subr.bf16.mxu0 %v10164_v40  ;;  %v5535_v40 = vld [vmem:[#allocation22 + $0x460] sm:$0xff] }
 0x64c   :  { %7079 = vmatprep.subr.bf16.mxu1 %v10166_v42  ;;  %v5532_v42 = vld [vmem:[#allocation22 + $0x448] sm:$0xff] }
 0x64d   :  { %v10206_v50 = vcombine.high %v5532_v42, %v5536_v43 }
 0x64e   :  { %6998 = vmatpush1.bf16.msra.mxu0 %v10163_v47  ;;  %v10197_v47 = vcombine.low %v5524_v2, %v5528_v3  ;;  %v5559_v2 = vld [vmem:[#allocation22 + $0x520] sm:$0xff]  ;;  %v5556_v3 = vld [vmem:[#allocation22 + $0x508] sm:$0xff] }
 0x64f   :  { %7080 = vmatpush1.bf16.msra.mxu1 %v10165_v48  ;;  %6999 = vmatprep.subr.bf16.mxu0 %v10172_v49  ;;  %v5539_v49 = vld [vmem:[#allocation22 + $0x480] sm:$0xff] }
 0x650   :  { %7081 = vmatprep.subr.bf16.mxu1 %v10174_v7  ;;  %v10204_v7 = vcombine.high %v5531_v38, %v5535_v40 }
 0x652   :  { %7000 = vmatpush1.bf16.msra.mxu0 %v10171_v54 }
 0x653   :  { %7082 = vmatpush1.bf16.msra.mxu1 %v10173_v31  ;;  %7001 = vmatprep.subr.bf16.mxu0 %v10180_v55  ;;  %v10203_v31 = vcombine.low %v5531_v38, %v5535_v40  ;;  %v10205_v55 = vcombine.low %v5532_v42, %v5536_v43  ;;  %v5584_v38 = vld [vmem:[#allocation22 + $0x5e8] sm:$0xff] }
 0x654   :  { %7083 = vmatprep.subr.bf16.mxu1 %v10182_v56  ;;  %v10212_v56 = vcombine.high %v5539_v49, %v5543_v11 }
 0x656   :  { %7002 = vmatpush1.bf16.msra.mxu0 %v10179_v16  ;;  %v5552_v16 = vld [vmem:[#allocation22 + $0x4e8] sm:$0xff] }
 0x657   :  { %7084 = vmatpush1.bf16.msra.mxu1 %v10181_v61  ;;  %7003 = vmatprep.subr.bf16.mxu0 %v10188_v62  ;;  %v10211_v61 = vcombine.low %v5539_v49, %v5543_v11  ;;  %v10213_v62 = vcombine.low %v5540_v51, %v5544_v52  ;;  %v10222_v0 = vcombine.high %v5548_v60, %v5552_v16  ;;  %v5592_v49 = vld [vmem:[#allocation22 + $0x628] sm:$0xff]  ;;  %v5595_v52 = vld [vmem:[#allocation22 + $0x640] sm:$0xff] }
 0x658   :  { %7085 = vmatprep.subr.bf16.mxu1 %v10190_v63  ;;  %v10220_v63 = vcombine.high %v5547_v58, %v5551_v59 }
 0x65a   :  { %7004 = vmatpush1.bf16.msra.mxu0 %v10187_v4  ;;  %v5560_v4 = vld [vmem:[#allocation22 + $0x528] sm:$0xff] }
 0x65b   :  { %7086 = vmatpush1.bf16.msra.mxu1 %v10189_v53  ;;  %7014 = vmatprep.subr.bf16.mxu0 %v10196_v5  ;;  %v10219_v53 = vcombine.low %v5547_v58, %v5551_v59  ;;  %v10221_v5 = vcombine.low %v5548_v60, %v5552_v16  ;;  %v5603_v16 = vld [vmem:[#allocation22 + $0x680] sm:$0xff] }
 0x65c   :  { %7096 = vmatprep.subr.bf16.mxu1 %v10198_v20  ;;  %v10228_v20 = vcombine.high %v5555_v1, %v5559_v2 }
 0x670   :  { %v5068_v28 = vpop.f32.mrb[16].mxu0  ;;  %v12168_v18 = vpop.f32.mrb[16].mxu1 }
 0x671   :  { %v10607_v24 = vadd.f32 %v5068_v28, %v3676_v9  ;;  %v5070_v25 = vpop.f32.mrb[17].mxu0  ;;  %v5152_v26 = vpop.f32.mrb[17].mxu1  ;;  %v10230_v9 = vcombine.high %v5556_v3, %v5560_v4  ;;  %v5568_v28 = vld [vmem:[#allocation22 + $0x568] sm:$0xff] }
 0x672   :  { %v10608_v41 = vadd.f32 %v5070_v25, %v3680_v10  ;;  %v10610_v27 = vadd.f32 %v5152_v26, %v3688_v12  ;;  %v5072_v29 = vpop.f32.mrb[18].mxu0  ;;  %v5154_v30 = vpop.f32.mrb[18].mxu1  ;;  %v5563_v10 = vld [vmem:[#allocation22 + $0x540] sm:$0xff] }
 0x673   :  { %vm5322_vm1 = vcmp.ge.f32.partialorder %v10607_v24, 0.0  ;;  %v5371_v32 = vmul.f32 %v10607_v24, %v5334_v13  ;;  %v5073_v33 = vpop.f32.mrb[19].mxu0  ;;  %v5155_v34 = vpop.f32.mrb[19].mxu1  ;;  %v5567_v12 = vld [vmem:[#allocation22 + $0x560] sm:$0xff]  ;;  %v5564_v13 = vld [vmem:[#allocation22 + $0x548] sm:$0xff] }
 0x674   :  { %vm5323_vm2 = vcmp.ge.f32.partialorder %v10608_v41, 0.0  ;;  %v5372_v35 = vmul.f32 %v10608_v41, %v5338_v22  ;;  %vm5325_vm3 = vcmp.ge.f32.partialorder %v10610_v27, 0.0  ;;  %v5374_v36 = vmul.f32 %v10610_v27, %v5346_v23  ;;  %v5571_v26 = vld [vmem:[#allocation22 + $0x580] sm:$0xff]  ;;  %v5576_v29 = vld [vmem:[#allocation22 + $0x5a8] sm:$0xff] }
 0x675   :  { %v5379_v37 = vsel %vm5322_vm1, %v10607_v24, %v5371_v32  ;;  %v10227_v22 = vcombine.low %v5555_v1, %v5559_v2  ;;  %v10229_v23 = vcombine.low %v5556_v3, %v5560_v4  ;;  %v10236_v24 = vcombine.high %v5563_v10, %v5567_v12  ;;  %v5611_v4 = vld [vmem:[#allocation22 + $0x6c0] sm:$0xff] }
 0x676   :  { %v5380_v39 = vsel %vm5323_vm2, %v10608_v41, %v5372_v35  ;;  %v5382_v45 = vsel %vm5325_vm3, %v10610_v27, %v5374_v36  ;;  %v12177_v48 = vpack.c.bf16 %v5379_v37, %v5379_v37  ;;  %v10238_v25 = vcombine.high %v5564_v13, %v5568_v28  ;;  %v5575_v41 = vld [vmem:[#allocation22 + $0x5a0] sm:$0xff]  ;;  %v5572_v27 = vld [vmem:[#allocation22 + $0x588] sm:$0xff] }
 0x677   :  { %v12174_v44 = vpack.c.bf16 %v5380_v39, %v5380_v39  ;;  %v12181_v54 = vpack.c.bf16 %v5382_v45, %v5382_v45  ;;  %v10235_v30 = vcombine.low %v5563_v10, %v5567_v12  ;;  %v10237_v32 = vcombine.low %v5564_v13, %v5568_v28  ;;  %v5579_v35 = vld [vmem:[#allocation22 + $0x5c0] sm:$0xff]  ;;  %v5580_v37 = vld [vmem:[#allocation22 + $0x5c8] sm:$0xff] }
 0x678   :  { %v10244_v33 = vcombine.high %v5571_v26, %v5575_v41  ;;  %v10246_v34 = vcombine.high %v5572_v27, %v5576_v29  ;;  %v5583_v36 = vld [vmem:[#allocation22 + $0x5e0] sm:$0xff]  ;;  %v10243_v39 = vcombine.low %v5571_v26, %v5575_v41  ;;  %v10245_v40 = vcombine.low %v5572_v27, %v5576_v29 }
 0x679   :  { %7005 = vmatprep.mubr.bf16.mxu0 %v12174_v44  ;;  %7087 = vmatprep.mubr.bf16.mxu1 %v12174_v44  ;;  %v10252_v42 = vcombine.high %v5579_v35, %v5583_v36  ;;  %v10254_v43 = vcombine.high %v5580_v37, %v5584_v38  ;;  %v5587_v45 = vld [vmem:[#allocation22 + $0x600] sm:$0xff] }
 0x67a   :  { %7006 = vmatmul.mubr.bf16.vlgmr.msra.gmra.mrb[24].mxu0 %v12177_v48  ;;  %7088 = vmatmul.mubr.bf16.vlgmr.msra.gmra.mrb[24].mxu1 %v12177_v48  ;;  %v5619_v28 = vld [vmem:[#allocation22 + $0x700] sm:$0xff] }
 0x67b   :  { %7015 = vmatpush1.bf16.msra.mxu0 %v10195_v46  ;;  %7097 = vmatpush1.bf16.msra.mxu1 %v10197_v47  ;;  %v5591_v46 = vld [vmem:[#allocation22 + $0x620] sm:$0xff]  ;;  %v5588_v47 = vld [vmem:[#allocation22 + $0x608] sm:$0xff] }
 0x67c   :  { %7046 = vmatprep.mubr.bf16.mxu0 %v12181_v54  ;;  %7128 = vmatprep.mubr.bf16.mxu1 %v12181_v54  ;;  %v10260_v11 = vcombine.high %v5587_v45, %v5591_v46  ;;  %v10262_v51 = vcombine.high %v5588_v47, %v5592_v49  ;;  %v10261_v58 = vcombine.low %v5588_v47, %v5592_v49  ;;  %v5627_v29 = vld [vmem:[#allocation22 + $0x740] sm:$0xff] }
 0x67d   :  { %7016 = vmatprep.subr.bf16.mxu0 %v10204_v7  ;;  %7098 = vmatprep.subr.bf16.mxu1 %v10206_v50  ;;  %v10251_v7 = vcombine.low %v5579_v35, %v5583_v36  ;;  %v10253_v50 = vcombine.low %v5580_v37, %v5584_v38  ;;  %v5635_v38 = vld [vmem:[#allocation22 + $0x780] sm:$0xff] }
 0x67f   :  { %7017 = vmatpush1.bf16.msra.mxu0 %v10203_v31  ;;  %7099 = vmatpush1.bf16.msra.mxu1 %v10205_v55  ;;  %v5599_v31 = vld [vmem:[#allocation22 + $0x660] sm:$0xff]  ;;  %v5596_v55 = vld [vmem:[#allocation22 + $0x648] sm:$0xff] }
 0x680   :  { %7018 = vmatprep.subr.bf16.mxu0 %v10212_v56  ;;  %7100 = vmatprep.subr.bf16.mxu1 %v10214_v57  ;;  %v5600_v56 = vld [vmem:[#allocation22 + $0x668] sm:$0xff]  ;;  %v10259_v57 = vcombine.low %v5587_v45, %v5591_v46  ;;  %v10268_v59 = vcombine.high %v5595_v52, %v5599_v31 }
 0x681   :  { %v10270_v60 = vcombine.high %v5596_v55, %v5600_v56  ;;  %v10269_v1 = vcombine.low %v5596_v55, %v5600_v56 }
 0x683   :  { %7019 = vmatpush1.bf16.msra.mxu0 %v10211_v61  ;;  %7101 = vmatpush1.bf16.msra.mxu1 %v10213_v62  ;;  %v5607_v61 = vld [vmem:[#allocation22 + $0x6a0] sm:$0xff]  ;;  %v5604_v62 = vld [vmem:[#allocation22 + $0x688] sm:$0xff] }
 0x684   :  { %7020 = vmatprep.subr.bf16.mxu0 %v10220_v63  ;;  %7102 = vmatprep.subr.bf16.mxu1 %v10222_v0  ;;  %v5608_v63 = vld [vmem:[#allocation22 + $0x6a8] sm:$0xff]  ;;  %v10267_v0 = vcombine.low %v5595_v52, %v5599_v31  ;;  %v10276_v2 = vcombine.high %v5603_v16, %v5607_v61 }
 0x685   :  { %v10278_v3 = vcombine.high %v5604_v62, %v5608_v63  ;;  %v10277_v10 = vcombine.low %v5604_v62, %v5608_v63  ;;  %v5644_v52 = vld [vmem:[#allocation22 + $0x7c8] sm:$0xff] }
 0x687   :  { %7021 = vmatpush1.bf16.msra.mxu0 %v10219_v53  ;;  %7103 = vmatpush1.bf16.msra.mxu1 %v10221_v5  ;;  %v5615_v53 = vld [vmem:[#allocation22 + $0x6e0] sm:$0xff]  ;;  %v5612_v5 = vld [vmem:[#allocation22 + $0x6c8] sm:$0xff] }
 0x688   :  { %7022 = vmatprep.subr.bf16.mxu0 %v10228_v20  ;;  %7104 = vmatprep.subr.bf16.mxu1 %v10230_v9  ;;  %v5616_v20 = vld [vmem:[#allocation22 + $0x6e8] sm:$0xff]  ;;  %v10275_v9 = vcombine.low %v5603_v16, %v5607_v61  ;;  %v10284_v12 = vcombine.high %v5611_v4, %v5615_v53  ;;  %v5398_v16 = vld [vmem:[#allocation22 + $0x18] sm:$0xff] }
 0x689   :  { %v10286_v13 = vcombine.high %v5612_v5, %v5616_v20  ;;  %v10285_v26 = vcombine.low %v5612_v5, %v5616_v20  ;;  %v5402_v61 = vld [vmem:[#allocation22 + $0x38] sm:$0xff] }
 0x68a   :  { %v10074_v63 = vcombine.high %v5398_v16, %v5402_v61  ;;  %v10073_v20 = vcombine.low %v5398_v16, %v5402_v61  ;;  %v5457_v16 = vld [vmem:[#allocation22 + $0x1f0] sm:$0xff]  ;;  %v5454_v61 = vld [vmem:[#allocation22 + $0x1d8] sm:$0xff] }
 0x68b   :  { %7023 = vmatpush1.bf16.msra.mxu0 %v10227_v22  ;;  %7105 = vmatpush1.bf16.msra.mxu1 %v10229_v23  ;;  %v5623_v22 = vld [vmem:[#allocation22 + $0x720] sm:$0xff]  ;;  %v5620_v23 = vld [vmem:[#allocation22 + $0x708] sm:$0xff] }
 0x68c   :  { %7024 = vmatprep.subr.bf16.mxu0 %v10236_v24  ;;  %7106 = vmatprep.subr.bf16.mxu1 %v10238_v25  ;;  %v5624_v24 = vld [vmem:[#allocation22 + $0x728] sm:$0xff]  ;;  %v10283_v25 = vcombine.low %v5611_v4, %v5615_v53  ;;  %v10292_v41 = vcombine.high %v5619_v28, %v5623_v22  ;;  %v5410_v4 = vld [vmem:[#allocation22 + $0x78] sm:$0xff] }
 0x68d   :  { %v10294_v27 = vcombine.high %v5620_v23, %v5624_v24  ;;  %v10293_v35 = vcombine.low %v5620_v23, %v5624_v24 }
 0x68f   :  { %7025 = vmatpush1.bf16.msra.mxu0 %v10235_v30  ;;  %7107 = vmatpush1.bf16.msra.mxu1 %v10237_v32  ;;  %v5631_v30 = vld [vmem:[#allocation22 + $0x760] sm:$0xff]  ;;  %v5628_v32 = vld [vmem:[#allocation22 + $0x748] sm:$0xff] }
 0x690   :  { %7026 = vmatprep.subr.bf16.mxu0 %v10244_v33  ;;  %7108 = vmatprep.subr.bf16.mxu1 %v10246_v34  ;;  %v5632_v33 = vld [vmem:[#allocation22 + $0x768] sm:$0xff]  ;;  %v10291_v34 = vcombine.low %v5619_v28, %v5623_v22  ;;  %v10300_v36 = vcombine.high %v5627_v29, %v5631_v30  ;;  %v10299_v45 = vcombine.low %v5627_v29, %v5631_v30  ;;  %v5414_v28 = vld [vmem:[#allocation22 + $0x98] sm:$0xff] }
 0x691   :  { %v10302_v37 = vcombine.high %v5628_v32, %v5632_v33  ;;  %v10301_v46 = vcombine.low %v5628_v32, %v5632_v33  ;;  %v5418_v22 = vld [vmem:[#allocation22 + $0xb8] sm:$0xff] }
 0x692   :  { %v5422_v29 = vld [vmem:[#allocation22 + $0xd8] sm:$0xff]  ;;  %v10089_v33 = vcombine.low %v5414_v28, %v5418_v22 }
 0x693   :  { %7027 = vmatpush1.bf16.msra.mxu0 %v10243_v39  ;;  %7109 = vmatpush1.bf16.msra.mxu1 %v10245_v40  ;;  %v3684_v39 = vrot.slane %v12153_v6, %v12064_v19  ;;  %v5639_v40 = vld [vmem:[#allocation22 + $0x7a0] sm:$0xff]  ;;  %v5648_v6 = vld [vmem:[#allocation22 + $0x7e8] sm:$0xff]  ;;  %v5426_v30 = vld [vmem:[#allocation22 + $0xf8] sm:$0xff] }
 0x694   :  { %7028 = vmatprep.subr.bf16.mxu0 %v10252_v42  ;;  %7110 = vmatprep.subr.bf16.mxu1 %v10254_v43  ;;  %v5636_v42 = vld [vmem:[#allocation22 + $0x788] sm:$0xff]  ;;  %v10308_v47 = vcombine.high %v5635_v38, %v5639_v40  ;;  %v10307_v31 = vcombine.low %v5635_v38, %v5639_v40  ;;  %v5434_v38 = vld [vmem:[#allocation22 + $0x138] sm:$0xff]  ;;  %v10097_v40 = vcombine.low %v5422_v29, %v5426_v30 }
 0x695   :  { %v5640_v43 = vld [vmem:[#allocation22 + $0x7a8] sm:$0xff] }
 0x696   :  { %v10310_v49 = vcombine.high %v5636_v42, %v5640_v43  ;;  %v10309_v55 = vcombine.low %v5636_v42, %v5640_v43 }
 0x697   :  { %7029 = vmatpush1.bf16.msra.mxu0 %v10251_v7  ;;  %7111 = vmatpush1.bf16.msra.mxu1 %v10253_v50  ;;  %v5643_v7 = vld [vmem:[#allocation22 + $0x7c0] sm:$0xff]  ;;  %v10609_v50 = vadd.f32 %v12168_v18, %v3684_v39  ;;  %v10317_v18 = vcombine.low %v5644_v52, %v5648_v6 }
 0x698   :  { %7030 = vmatprep.subr.bf16.mxu0 %v10260_v11  ;;  %7112 = vmatprep.subr.bf16.mxu1 %v10262_v51  ;;  %v5342_v11 = vrot.slane %v12158_v8, %v12064_v19  ;;  %v5647_v51 = vld [vmem:[#allocation22 + $0x7e0] sm:$0xff] }
 0x699   :  { %v10316_v56 = vcombine.high %v5643_v7, %v5647_v51  ;;  %vm5324_vm4 = vcmp.ge.f32.partialorder %v10609_v50, 0.0  ;;  %v10315_v8 = vcombine.low %v5643_v7, %v5647_v51 }
 0x69b   :  { %7031 = vmatpush1.bf16.msra.mxu0 %v10259_v57  ;;  %7113 = vmatpush1.bf16.msra.mxu1 %v10261_v58  ;;  %v10318_v57 = vcombine.high %v5644_v52, %v5648_v6  ;;  %v5397_v58 = vld [vmem:[#allocation22 + $0x10] sm:$0xff] }
 0x69c   :  { %7032 = vmatprep.subr.bf16.mxu0 %v10268_v59  ;;  %7114 = vmatprep.subr.bf16.mxu1 %v10270_v60  ;;  %v5373_v59 = vmul.f32 %v10609_v50, %v5342_v11  ;;  %v5401_v60 = vld [vmem:[#allocation22 + $0x30] sm:$0xff] }
 0x69d   :  { %v10072_v62 = vcombine.high %v5397_v58, %v5401_v60  ;;  %v10071_v53 = vcombine.low %v5397_v58, %v5401_v60  ;;  %v5445_v52 = vld [vmem:[#allocation22 + $0x190] sm:$0xff] }
 0x69e   :  { %v5449_v6 = vld [vmem:[#allocation22 + $0x1b0] sm:$0xff] }
 0x69f   :  { %7033 = vmatpush1.bf16.msra.mxu0 %v10267_v0  ;;  %7115 = vmatpush1.bf16.msra.mxu1 %v10269_v1  ;;  %v5381_v0 = vsel %vm5324_vm4, %v10609_v50, %v5373_v59  ;;  %v5405_v1 = vld [vmem:[#allocation22 + $0x50] sm:$0xff]  ;;  %v10120_v58 = vcombine.high %v5445_v52, %v5449_v6 }
 0x6a0   :  { %7034 = vmatprep.subr.bf16.mxu0 %v10276_v2  ;;  %7116 = vmatprep.subr.bf16.mxu1 %v10278_v3  ;;  %v5409_v2 = vld [vmem:[#allocation22 + $0x70] sm:$0xff]  ;;  %v5406_v3 = vld [vmem:[#allocation22 + $0x58] sm:$0xff]  ;;  %v12192_v5 = vpack.c.bf16 %v5381_v0, %v5381_v0 }
 0x6a1   :  { %v10079_v23 = vcombine.low %v5405_v1, %v5409_v2  ;;  %v10081_v24 = vcombine.low %v5406_v3, %v5410_v4  ;;  %v5453_v60 = vld [vmem:[#allocation22 + $0x1d0] sm:$0xff] }
 0x6a3   :  { %7035 = vmatpush1.bf16.msra.mxu0 %v10275_v9  ;;  %7117 = vmatpush1.bf16.msra.mxu1 %v10277_v10  ;;  %v10080_v9 = vcombine.high %v5405_v1, %v5409_v2  ;;  %v10082_v10 = vcombine.high %v5406_v3, %v5410_v4  ;;  %v5461_v1 = vld [vmem:[#allocation22 + $0x210] sm:$0xff]  ;;  %v5462_v3 = vld [vmem:[#allocation22 + $0x218] sm:$0xff] }
 0x6a4   :  { %7036 = vmatprep.subr.bf16.mxu0 %v10284_v12  ;;  %7118 = vmatprep.subr.bf16.mxu1 %v10286_v13  ;;  %v5413_v12 = vld [vmem:[#allocation22 + $0x90] sm:$0xff]  ;;  %v5466_v4 = vld [vmem:[#allocation22 + $0x238] sm:$0xff] }
 0x6a5   :  { %v5417_v13 = vld [vmem:[#allocation22 + $0xb0] sm:$0xff] }
 0x6a6   :  { %v10087_v32 = vcombine.low %v5413_v12, %v5417_v13  ;;  %v5465_v2 = vld [vmem:[#allocation22 + $0x230] sm:$0xff] }
 0x6a7   :  { %7037 = vmatpush1.bf16.msra.mxu0 %v10283_v25  ;;  %7119 = vmatpush1.bf16.msra.mxu1 %v10285_v26  ;;  %v10088_v25 = vcombine.high %v5413_v12, %v5417_v13  ;;  %v10090_v26 = vcombine.high %v5414_v28, %v5418_v22  ;;  %v5469_v12 = vld [vmem:[#allocation22 + $0x250] sm:$0xff]  ;;  %v5470_v28 = vld [vmem:[#allocation22 + $0x258] sm:$0xff] }
 0x6a8   :  { %7038 = vmatprep.subr.bf16.mxu0 %v10292_v41  ;;  %7120 = vmatprep.subr.bf16.mxu1 %v10294_v27  ;;  %v5421_v41 = vld [vmem:[#allocation22 + $0xd0] sm:$0xff]  ;;  %v5474_v22 = vld [vmem:[#allocation22 + $0x278] sm:$0xff] }
 0x6a9   :  { %v5425_v27 = vld [vmem:[#allocation22 + $0xf0] sm:$0xff] }
 0x6aa   :  { %v10095_v39 = vcombine.low %v5421_v41, %v5425_v27  ;;  %v5473_v13 = vld [vmem:[#allocation22 + $0x270] sm:$0xff] }
 0x6ab   :  { %7039 = vmatpush1.bf16.msra.mxu0 %v10291_v34  ;;  %7121 = vmatpush1.bf16.msra.mxu1 %v10293_v35  ;;  %v10096_v34 = vcombine.high %v5421_v41, %v5425_v27  ;;  %v10098_v35 = vcombine.high %v5422_v29, %v5426_v30  ;;  %v5477_v41 = vld [vmem:[#allocation22 + $0x290] sm:$0xff]  ;;  %v5478_v29 = vld [vmem:[#allocation22 + $0x298] sm:$0xff] }
 0x6ac   :  { %7040 = vmatprep.subr.bf16.mxu0 %v10300_v36  ;;  %7122 = vmatprep.subr.bf16.mxu1 %v10302_v37  ;;  %v5429_v36 = vld [vmem:[#allocation22 + $0x110] sm:$0xff]  ;;  %v5482_v30 = vld [vmem:[#allocation22 + $0x2b8] sm:$0xff] }
 0x6ad   :  { %v5433_v37 = vld [vmem:[#allocation22 + $0x130] sm:$0xff] }
 0x6ae   :  { %v10104_v42 = vcombine.high %v5429_v36, %v5433_v37  ;;  %v10103_v7 = vcombine.low %v5429_v36, %v5433_v37  ;;  %v5481_v27 = vld [vmem:[#allocation22 + $0x2b0] sm:$0xff] }
 0x6af   :  { %7041 = vmatpush1.bf16.msra.mxu0 %v10299_v45  ;;  %7123 = vmatpush1.bf16.msra.mxu1 %v10301_v46  ;;  %v5437_v45 = vld [vmem:[#allocation22 + $0x150] sm:$0xff] }
 0x6b0   :  { %7042 = vmatprep.subr.bf16.mxu0 %v10308_v47  ;;  %7124 = vmatprep.subr.bf16.mxu1 %v10310_v49  ;;  %v5441_v46 = vld [vmem:[#allocation22 + $0x170] sm:$0xff]  ;;  %v5438_v47 = vld [vmem:[#allocation22 + $0x158] sm:$0xff] }
 0x6b1   :  { %v5442_v49 = vld [vmem:[#allocation22 + $0x178] sm:$0xff]  ;;  %v10112_v11 = vcombine.high %v5437_v45, %v5441_v46  ;;  %v5485_v36 = vld [vmem:[#allocation22 + $0x2d0] sm:$0xff] }
 0x6b2   :  { %v10114_v51 = vcombine.high %v5438_v47, %v5442_v49  ;;  %v5489_v37 = vld [vmem:[#allocation22 + $0x2f0] sm:$0xff] }
 0x6b3   :  { %7043 = vmatpush1.bf16.msra.mxu0 %v10307_v31  ;;  %7125 = vmatpush1.bf16.msra.mxu1 %v10309_v55  ;;  %v5446_v31 = vld [vmem:[#allocation22 + $0x198] sm:$0xff] }
 0x6b4   :  { %7044 = vmatprep.subr.bf16.mxu0 %v10316_v56  ;;  %7126 = vmatprep.subr.bf16.mxu1 %v10318_v57  ;;  %v5450_v55 = vld [vmem:[#allocation22 + $0x1b8] sm:$0xff]  ;;  %v10111_v56 = vcombine.low %v5437_v45, %v5441_v46  ;;  %v10113_v57 = vcombine.low %v5438_v47, %v5442_v49  ;;  %v5493_v45 = vld [vmem:[#allocation22 + $0x310] sm:$0xff] }
 0x6b5   :  { %v10122_v59 = vcombine.high %v5446_v31, %v5450_v55  ;;  %v5497_v46 = vld [vmem:[#allocation22 + $0x330] sm:$0xff]  ;;  %v5494_v47 = vld [vmem:[#allocation22 + $0x318] sm:$0xff] }
 0x6b6   :  { %v5498_v49 = vld [vmem:[#allocation22 + $0x338] sm:$0xff] }
 0x6b7   :  { %7045 = vmatpush1.bf16.msra.mxu0 %v10315_v8  ;;  %7127 = vmatpush1.bf16.msra.mxu1 %v10317_v18  ;;  %v5458_v8 = vld [vmem:[#allocation22 + $0x1f8] sm:$0xff]  ;;  %v10119_v18 = vcombine.low %v5445_v52, %v5449_v6  ;;  %v5501_v52 = vld [vmem:[#allocation22 + $0x350] sm:$0xff] }
 0x6b8   :  { %7137 = vmatprep.subr.bf16.mxu0 %v10072_v62  ;;  %7219 = vmatprep.subr.bf16.mxu1 %v10074_v63  ;;  %v10121_v62 = vcombine.low %v5446_v31, %v5450_v55  ;;  %v10128_v63 = vcombine.high %v5453_v60, %v5457_v16  ;;  %v10130_v0 = vcombine.high %v5454_v61, %v5458_v8  ;;  %v5505_v6 = vld [vmem:[#allocation22 + $0x370] sm:$0xff]  ;;  %v5502_v31 = vld [vmem:[#allocation22 + $0x358] sm:$0xff] }
 0x6b9   :  { %v5506_v55 = vld [vmem:[#allocation22 + $0x378] sm:$0xff] }
 0x6ba   :  { %7047 = vmatmul.mubr.bf16.vlgmr.msra.gmra.mrb[24].mxu0 %v12192_v5  ;;  %7129 = vmatmul.mubr.bf16.vlgmr.msra.gmra.mrb[24].mxu1 %v12192_v5 }
 0x6bb   :  { %7138 = vmatpush1.bf16.msra.mxu0 %v10071_v53  ;;  %7169 = vmatprep.mubr.bf16.mxu0 %v12174_v44  ;;  %v10127_v53 = vcombine.low %v5453_v60, %v5457_v16  ;;  %v5509_v60 = vld [vmem:[#allocation22 + $0x390] sm:$0xff] }
 0x6bc   :  { %7220 = vmatpush1.bf16.msra.mxu1 %v10073_v20  ;;  %7251 = vmatprep.mubr.bf16.mxu1 %v12174_v44  ;;  %v5430_v44 = vld [vmem:[#allocation22 + $0x118] sm:$0xff]  ;;  %v10129_v20 = vcombine.low %v5454_v61, %v5458_v8  ;;  %v5513_v16 = vld [vmem:[#allocation22 + $0x3b0] sm:$0xff] }
 0x6bd   :  { %7139 = vmatprep.subr.bf16.mxu0 %v10080_v9  ;;  %7221 = vmatprep.subr.bf16.mxu1 %v10082_v10  ;;  %v10106_v43 = vcombine.high %v5430_v44, %v5434_v38  ;;  %v10105_v50 = vcombine.low %v5430_v44, %v5434_v38  ;;  %v10136_v9 = vcombine.high %v5461_v1, %v5465_v2  ;;  %v5486_v44 = vld [vmem:[#allocation22 + $0x2d8] sm:$0xff] }
 0x6be   :  { %v10138_v10 = vcombine.high %v5462_v3, %v5466_v4  ;;  %v5490_v38 = vld [vmem:[#allocation22 + $0x2f8] sm:$0xff] }
 0x6bf   :  { %7140 = vmatpush1.bf16.msra.mxu0 %v10079_v23  ;;  %v10135_v23 = vcombine.low %v5461_v1, %v5465_v2  ;;  %v5510_v61 = vld [vmem:[#allocation22 + $0x398] sm:$0xff]  ;;  %v5517_v1 = vld [vmem:[#allocation22 + $0x3d0] sm:$0xff] }
 0x6c0   :  { %7222 = vmatpush1.bf16.msra.mxu1 %v10081_v24  ;;  %7141 = vmatprep.subr.bf16.mxu0 %v10088_v25  ;;  %v10137_v24 = vcombine.low %v5462_v3, %v5466_v4  ;;  %v10144_v25 = vcombine.high %v5469_v12, %v5473_v13  ;;  %v5514_v8 = vld [vmem:[#allocation22 + $0x3b8] sm:$0xff]  ;;  %v5521_v2 = vld [vmem:[#allocation22 + $0x3f0] sm:$0xff] }
 0x6c1   :  { %7223 = vmatprep.subr.bf16.mxu1 %v10090_v26  ;;  %v10146_v26 = vcombine.high %v5470_v28, %v5474_v22  ;;  %v5518_v3 = vld [vmem:[#allocation22 + $0x3d8] sm:$0xff] }
 0x6c2   :  { %v5522_v4 = vld [vmem:[#allocation22 + $0x3f8] sm:$0xff] }
 0x6c3   :  { %7142 = vmatpush1.bf16.msra.mxu0 %v10087_v32  ;;  %v10143_v32 = vcombine.low %v5469_v12, %v5473_v13 }
 0x6c4   :  { %7224 = vmatpush1.bf16.msra.mxu1 %v10089_v33  ;;  %7143 = vmatprep.subr.bf16.mxu0 %v10096_v34  ;;  %v10145_v33 = vcombine.low %v5470_v28, %v5474_v22  ;;  %v10152_v34 = vcombine.high %v5477_v41, %v5481_v27  ;;  %v10194_v28 = vcombine.high %v5518_v3, %v5522_v4  ;;  %v5525_v22 = vld [vmem:[#allocation22 + $0x410] sm:$0xff] }
 0x6c5   :  { %7225 = vmatprep.subr.bf16.mxu1 %v10098_v35  ;;  %v10154_v35 = vcombine.high %v5478_v29, %v5482_v30 }
 0x6c7   :  { %7144 = vmatpush1.bf16.msra.mxu0 %v10095_v39  ;;  %v10151_v39 = vcombine.low %v5477_v41, %v5481_v27  ;;  %v5530_v41 = vld [vmem:[#allocation22 + $0x438] sm:$0xff] }
 0x6c8   :  { %7226 = vmatpush1.bf16.msra.mxu1 %v10097_v40  ;;  %7145 = vmatprep.subr.bf16.mxu0 %v10104_v42  ;;  %v10153_v40 = vcombine.low %v5478_v29, %v5482_v30  ;;  %v10160_v42 = vcombine.high %v5485_v36, %v5489_v37  ;;  %v10191_v30 = vcombine.low %v5517_v1, %v5521_v2 }
 0x6c9   :  { %7227 = vmatprep.subr.bf16.mxu1 %v10106_v43  ;;  %v10162_v43 = vcombine.high %v5486_v44, %v5490_v38 }
 0x6cb   :  { %7146 = vmatpush1.bf16.msra.mxu0 %v10103_v7  ;;  %v10159_v7 = vcombine.low %v5485_v36, %v5489_v37  ;;  %v5533_v36 = vld [vmem:[#allocation22 + $0x450] sm:$0xff] }
 0x6cc   :  { %7228 = vmatpush1.bf16.msra.mxu1 %v10105_v50  ;;  %7147 = vmatprep.subr.bf16.mxu0 %v10112_v11  ;;  %v10161_v50 = vcombine.low %v5486_v44, %v5490_v38  ;;  %v10168_v11 = vcombine.high %v5493_v45, %v5497_v46  ;;  %v5537_v37 = vld [vmem:[#allocation22 + $0x470] sm:$0xff]  ;;  %v5534_v38 = vld [vmem:[#allocation22 + $0x458] sm:$0xff] }
 0x6cd   :  { %7229 = vmatprep.subr.bf16.mxu1 %v10114_v51  ;;  %v10170_v51 = vcombine.high %v5494_v47, %v5498_v49 }
 0x6cf   :  { %7148 = vmatpush1.bf16.msra.mxu0 %v10111_v56  ;;  %v10167_v56 = vcombine.low %v5493_v45, %v5497_v46  ;;  %v5545_v45 = vld [vmem:[#allocation22 + $0x4b0] sm:$0xff] }
 0x6d0   :  { %7230 = vmatpush1.bf16.msra.mxu1 %v10113_v57  ;;  %7149 = vmatprep.subr.bf16.mxu0 %v10120_v58  ;;  %v10169_v57 = vcombine.low %v5494_v47, %v5498_v49  ;;  %v10176_v58 = vcombine.high %v5501_v52, %v5505_v6  ;;  %v5542_v47 = vld [vmem:[#allocation22 + $0x498] sm:$0xff] }
 0x6d1   :  { %7231 = vmatprep.subr.bf16.mxu1 %v10122_v59  ;;  %v10178_v59 = vcombine.high %v5502_v31, %v5506_v55  ;;  %v5546_v49 = vld [vmem:[#allocation22 + $0x4b8] sm:$0xff] }
 0x6d3   :  { %7150 = vmatpush1.bf16.msra.mxu0 %v10119_v18  ;;  %v10175_v18 = vcombine.low %v5501_v52, %v5505_v6  ;;  %v5549_v52 = vld [vmem:[#allocation22 + $0x4d0] sm:$0xff] }
 0x6d4   :  { %7232 = vmatpush1.bf16.msra.mxu1 %v10121_v62  ;;  %7151 = vmatprep.subr.bf16.mxu0 %v10128_v63  ;;  %v10177_v62 = vcombine.low %v5502_v31, %v5506_v55  ;;  %v10184_v63 = vcombine.high %v5509_v60, %v5513_v16  ;;  %v5553_v6 = vld [vmem:[#allocation22 + $0x4f0] sm:$0xff]  ;;  %v5550_v31 = vld [vmem:[#allocation22 + $0x4d8] sm:$0xff] }
 0x6d5   :  { %7233 = vmatprep.subr.bf16.mxu1 %v10130_v0  ;;  %v10186_v0 = vcombine.high %v5510_v61, %v5514_v8  ;;  %v5554_v55 = vld [vmem:[#allocation22 + $0x4f8] sm:$0xff] }
 0x6d7   :  { %7152 = vmatpush1.bf16.msra.mxu0 %v10127_v53  ;;  %v10183_v53 = vcombine.low %v5509_v60, %v5513_v16  ;;  %v5561_v60 = vld [vmem:[#allocation22 + $0x530] sm:$0xff]  ;;  %v5558_v16 = vld [vmem:[#allocation22 + $0x518] sm:$0xff] }
 0x6d8   :  { %7234 = vmatpush1.bf16.msra.mxu1 %v10129_v20  ;;  %7153 = vmatprep.subr.bf16.mxu0 %v10136_v9  ;;  %v10185_v9 = vcombine.low %v5510_v61, %v5514_v8  ;;  %v5562_v61 = vld [vmem:[#allocation22 + $0x538] sm:$0xff]  ;;  %v10225_v8 = vcombine.low %v5550_v31, %v5554_v55 }
 0x6d9   :  { %7235 = vmatprep.subr.bf16.mxu1 %v10138_v10  ;;  %v10192_v10 = vcombine.high %v5517_v1, %v5521_v2  ;;  %v5566_v1 = vld [vmem:[#allocation22 + $0x558] sm:$0xff] }
 0x6da   :  { %v5570_v2 = vld [vmem:[#allocation22 + $0x578] sm:$0xff] }
 0x6db   :  { %7154 = vmatpush1.bf16.msra.mxu0 %v10135_v23  ;;  %v5529_v23 = vld [vmem:[#allocation22 + $0x430] sm:$0xff] }
 0x6dc   :  { %7236 = vmatpush1.bf16.msra.mxu1 %v10137_v24  ;;  %7155 = vmatprep.subr.bf16.mxu0 %v10144_v25  ;;  %v10199_v44 = vcombine.low %v5525_v22, %v5529_v23 }
 0x6dd   :  { %7237 = vmatprep.subr.bf16.mxu1 %v10146_v26  ;;  %v5526_v26 = vld [vmem:[#allocation22 + $0x418] sm:$0xff] }
 0x6df   :  { %7156 = vmatpush1.bf16.msra.mxu0 %v10143_v32 }
 0x6e0   :  { %7238 = vmatpush1.bf16.msra.mxu1 %v10145_v33  ;;  %7157 = vmatprep.subr.bf16.mxu0 %v10152_v34  ;;  %v10193_v33 = vcombine.low %v5518_v3, %v5522_v4  ;;  %v10200_v34 = vcombine.high %v5525_v22, %v5529_v23  ;;  %v10233_v4 = vcombine.low %v5558_v16, %v5562_v61  ;;  %v5574_v22 = vld [vmem:[#allocation22 + $0x598] sm:$0xff] }
 0x6e1   :  { %7239 = vmatprep.subr.bf16.mxu1 %v10154_v35  ;;  %v10202_v35 = vcombine.high %v5526_v26, %v5530_v41  ;;  %v5578_v23 = vld [vmem:[#allocation22 + $0x5b8] sm:$0xff] }
 0x6e3   :  { %7158 = vmatpush1.bf16.msra.mxu0 %v10151_v39  ;;  %v5538_v39 = vld [vmem:[#allocation22 + $0x478] sm:$0xff] }
 0x6e4   :  { %7240 = vmatpush1.bf16.msra.mxu1 %v10153_v40  ;;  %7159 = vmatprep.subr.bf16.mxu0 %v10160_v42  ;;  %v10201_v40 = vcombine.low %v5526_v26, %v5530_v41  ;;  %v10208_v42 = vcombine.high %v5533_v36, %v5537_v37  ;;  %v10210_v46 = vcombine.high %v5534_v38, %v5538_v39 }
 0x6e5   :  { %7241 = vmatprep.subr.bf16.mxu1 %v10162_v43  ;;  %v5541_v43 = vld [vmem:[#allocation22 + $0x490] sm:$0xff]  ;;  %v10241_v26 = vcombine.low %v5566_v1, %v5570_v2 }
 0x6e7   :  { %7160 = vmatpush1.bf16.msra.mxu0 %v10159_v7  ;;  %v10207_v7 = vcombine.low %v5533_v36, %v5537_v37 }
 0x6e8   :  { %7242 = vmatpush1.bf16.msra.mxu1 %v10161_v50  ;;  %7161 = vmatprep.subr.bf16.mxu0 %v10168_v11  ;;  %v10209_v50 = vcombine.low %v5534_v38, %v5538_v39  ;;  %v10216_v11 = vcombine.high %v5541_v43, %v5545_v45  ;;  %v5593_v38 = vld [vmem:[#allocation22 + $0x630] sm:$0xff]  ;;  %v5590_v39 = vld [vmem:[#allocation22 + $0x618] sm:$0xff] }
 0x6e9   :  { %7243 = vmatprep.subr.bf16.mxu1 %v10170_v51  ;;  %v10218_v51 = vcombine.high %v5542_v47, %v5546_v49 }
 0x6eb   :  { %7162 = vmatpush1.bf16.msra.mxu0 %v10167_v56  ;;  %v10215_v56 = vcombine.low %v5541_v43, %v5545_v45 }
 0x6ec   :  { %7244 = vmatpush1.bf16.msra.mxu1 %v10169_v57  ;;  %7163 = vmatprep.subr.bf16.mxu0 %v10176_v58  ;;  %v10224_v57 = vcombine.high %v5549_v52, %v5553_v6  ;;  %v10226_v58 = vcombine.high %v5550_v31, %v5554_v55  ;;  %v5605_v31 = vld [vmem:[#allocation22 + $0x690] sm:$0xff] }
 0x6ed   :  { %7245 = vmatprep.subr.bf16.mxu1 %v10178_v59  ;;  %v5557_v59 = vld [vmem:[#allocation22 + $0x510] sm:$0xff] }
 0x6ee   :  { %v10231_v3 = vcombine.low %v5557_v59, %v5561_v60  ;;  %v5609_v55 = vld [vmem:[#allocation22 + $0x6b0] sm:$0xff] }
 0x6ef   :  { %7164 = vmatpush1.bf16.msra.mxu0 %v10175_v18  ;;  %v10232_v18 = vcombine.high %v5557_v59, %v5561_v60  ;;  %v10280_v59 = vcombine.high %v5605_v31, %v5609_v55 }
 0x6f0   :  { %7246 = vmatpush1.bf16.msra.mxu1 %v10177_v62  ;;  %v12198_v20 = vpop.f32.mrb[20].mxu0  ;;  %7165 = vmatprep.subr.bf16.mxu0 %v10184_v63  ;;  %v10234_v62 = vcombine.high %v5558_v16, %v5562_v61  ;;  %v5565_v63 = vld [vmem:[#allocation22 + $0x550] sm:$0xff] }
 0x6f1   :  { %v12200_v12 = vpop.f32.mrb[20].mxu1  ;;  %v12202_v13 = vpop.f32.mrb[21].mxu0  ;;  %7247 = vmatprep.subr.bf16.mxu1 %v10186_v0  ;;  %v5569_v0 = vld [vmem:[#allocation22 + $0x570] sm:$0xff] }
 0x6f2   :  { %v12204_v24 = vpop.f32.mrb[21].mxu1  ;;  %v5236_v25 = vpop.f32.mrb[22].mxu0  ;;  %v5613_v16 = vld [vmem:[#allocation22 + $0x6d0] sm:$0xff] }
 0x6f3   :  { %v5318_v27 = vpop.f32.mrb[22].mxu1  ;;  %7166 = vmatpush1.bf16.msra.mxu0 %v10183_v53  ;;  %v5237_v29 = vpop.f32.mrb[23].mxu0  ;;  %v10240_v53 = vcombine.high %v5565_v63, %v5569_v0  ;;  %v10239_v25 = vcombine.low %v5565_v63, %v5569_v0  ;;  %v5617_v61 = vld [vmem:[#allocation22 + $0x6f0] sm:$0xff] }
 0x6f4   :  { %7248 = vmatpush1.bf16.msra.mxu1 %v10185_v9  ;;  %v5319_v32 = vpop.f32.mrb[23].mxu1  ;;  %7167 = vmatprep.subr.bf16.mxu0 %v10192_v10  ;;  %v10242_v9 = vcombine.high %v5566_v1, %v5570_v2  ;;  %v5573_v10 = vld [vmem:[#allocation22 + $0x590] sm:$0xff]  ;;  %v10250_v27 = vcombine.high %v5574_v22, %v5578_v23  ;;  %v10288_v63 = vcombine.high %v5613_v16, %v5617_v61 }
 0x6f5   :  { %7249 = vmatprep.subr.bf16.mxu1 %v10194_v28  ;;  %v5577_v28 = vld [vmem:[#allocation22 + $0x5b0] sm:$0xff]  ;;  %v5582_v32 = vld [vmem:[#allocation22 + $0x5d8] sm:$0xff] }
 0x6f6   :  { %v10248_v41 = vcombine.high %v5573_v10, %v5577_v28  ;;  %v5581_v29 = vld [vmem:[#allocation22 + $0x5d0] sm:$0xff] }
 0x6f7   :  { %7168 = vmatpush1.bf16.msra.mxu0 %v10191_v30  ;;  %v5585_v30 = vld [vmem:[#allocation22 + $0x5f0] sm:$0xff] }
 0x6f8   :  { %7250 = vmatpush1.bf16.msra.mxu1 %v10193_v33  ;;  %7178 = vmatprep.subr.bf16.mxu0 %v10200_v34  ;;  %v5586_v33 = vld [vmem:[#allocation22 + $0x5f8] sm:$0xff]  ;;  %v10247_v34 = vcombine.low %v5573_v10, %v5577_v28  ;;  %v10256_v36 = vcombine.high %v5581_v29, %v5585_v30  ;;  %v5621_v1 = vld [vmem:[#allocation22 + $0x710] sm:$0xff] }
 0x6f9   :  { %7260 = vmatprep.subr.bf16.mxu1 %v10202_v35  ;;  %v10249_v35 = vcombine.low %v5574_v22, %v5578_v23  ;;  %v10258_v37 = vcombine.high %v5582_v32, %v5586_v33  ;;  %v10257_v43 = vcombine.low %v5582_v32, %v5586_v33  ;;  %v5625_v2 = vld [vmem:[#allocation22 + $0x730] sm:$0xff] }
 0x6fa   :  { %7170 = vmatmul.mubr.bf16.vlgmr.msra.gmra.mrb[28].mxu0 %v12177_v48  ;;  %v10296_v10 = vcombine.high %v5621_v1, %v5625_v2  ;;  %v5629_v22 = vld [vmem:[#allocation22 + $0x750] sm:$0xff] }
 0x6fb   :  { %7252 = vmatmul.mubr.bf16.vlgmr.msra.gmra.mrb[28].mxu1 %v12177_v48  ;;  %7179 = vmatpush1.bf16.msra.mxu0 %v10199_v44  ;;  %v10217_v48 = vcombine.low %v5542_v47, %v5546_v49  ;;  %v5589_v44 = vld [vmem:[#allocation22 + $0x610] sm:$0xff] }
 0x6fc   :  { %7210 = vmatprep.mubr.bf16.mxu0 %v12181_v54  ;;  %7261 = vmatpush1.bf16.msra.mxu1 %v10201_v40  ;;  %v5594_v40 = vld [vmem:[#allocation22 + $0x638] sm:$0xff]  ;;  %v10264_v45 = vcombine.high %v5589_v44, %v5593_v38  ;;  %v5597_v47 = vld [vmem:[#allocation22 + $0x650] sm:$0xff] }
 0x6fd   :  { %7292 = vmatprep.mubr.bf16.mxu1 %v12181_v54  ;;  %7180 = vmatprep.subr.bf16.mxu0 %v10208_v42  ;;  %v10223_v54 = vcombine.low %v5549_v52, %v5553_v6  ;;  %v10255_v42 = vcombine.low %v5581_v29, %v5585_v30  ;;  %v5601_v49 = vld [vmem:[#allocation22 + $0x670] sm:$0xff] }
 0x6fe   :  { %7262 = vmatprep.subr.bf16.mxu1 %v10210_v46  ;;  %v10266_v46 = vcombine.high %v5590_v39, %v5594_v40  ;;  %v10272_v52 = vcombine.high %v5597_v47, %v5601_v49  ;;  %v5633_v23 = vld [vmem:[#allocation22 + $0x770] sm:$0xff] }
 0x6ff   :  { %7181 = vmatpush1.bf16.msra.mxu0 %v10207_v7  ;;  %v5598_v7 = vld [vmem:[#allocation22 + $0x658] sm:$0xff]  ;;  %v10304_v30 = vcombine.high %v5629_v22, %v5633_v23  ;;  %v5637_v33 = vld [vmem:[#allocation22 + $0x790] sm:$0xff] }
 0x700   :  { %7263 = vmatpush1.bf16.msra.mxu1 %v10209_v50  ;;  %7182 = vmatprep.subr.bf16.mxu0 %v10216_v11  ;;  %v5602_v50 = vld [vmem:[#allocation22 + $0x678] sm:$0xff]  ;;  %v10263_v11 = vcombine.low %v5589_v44, %v5593_v38  ;;  %v10303_v38 = vcombine.low %v5629_v22, %v5633_v23 }
 0x701   :  { %7264 = vmatprep.subr.bf16.mxu1 %v10218_v51  ;;  %v10265_v51 = vcombine.low %v5590_v39, %v5594_v40  ;;  %v10274_v6 = vcombine.high %v5598_v7, %v5602_v50 }
 0x703   :  { %7183 = vmatpush1.bf16.msra.mxu0 %v10215_v56  ;;  %v5606_v56 = vld [vmem:[#allocation22 + $0x698] sm:$0xff] }
 0x704   :  { %7265 = vmatpush1.bf16.msra.mxu1 %v10217_v48  ;;  %7184 = vmatprep.subr.bf16.mxu0 %v10224_v57  ;;  %v5610_v48 = vld [vmem:[#allocation22 + $0x6b8] sm:$0xff]  ;;  %v10271_v57 = vcombine.low %v5597_v47, %v5601_v49 }
 0x705   :  { %7266 = vmatprep.subr.bf16.mxu1 %v10226_v58  ;;  %v10273_v58 = vcombine.low %v5598_v7, %v5602_v50  ;;  %v10282_v60 = vcombine.high %v5606_v56, %v5610_v48  ;;  %v5650_v47 = vld [vmem:[#allocation22 + $0x7f8] sm:$0xff] }
 0x706   :  { %v12224_v7 = vld [vmem:[%s12348_s15] sm:$0xff] }
 0x707   :  { %7185 = vmatpush1.bf16.msra.mxu0 %v10223_v54  ;;  %v5614_v54 = vld [vmem:[#allocation22 + $0x6d8] sm:$0xff] }
 0x708   :  { %7267 = vmatpush1.bf16.msra.mxu1 %v10225_v8  ;;  %7186 = vmatprep.subr.bf16.mxu0 %v10232_v18  ;;  %v5618_v8 = vld [vmem:[#allocation22 + $0x6f8] sm:$0xff]  ;;  %v10279_v18 = vcombine.low %v5605_v31, %v5609_v55  ;;  %v7301_v31 = vld [vmem:[#allocation23] sm:$0xff] }
 0x709   :  { %7268 = vmatprep.subr.bf16.mxu1 %v10234_v62  ;;  %v10281_v62 = vcombine.low %v5606_v56, %v5610_v48  ;;  %v10290_v0 = vcombine.high %v5614_v54, %v5618_v8  ;;  %v7305_v55 = vld [vmem:[#allocation23 + $0x20] sm:$0xff]  ;;  %v7302_v56 = vld [vmem:[#allocation23 + $0x8] sm:$0xff] }
 0x70b   :  { %7187 = vmatpush1.bf16.msra.mxu0 %v10231_v3  ;;  %v5622_v3 = vld [vmem:[#allocation22 + $0x718] sm:$0xff] }
 0x70c   :  { %7269 = vmatpush1.bf16.msra.mxu1 %v10233_v4  ;;  %7188 = vmatprep.subr.bf16.mxu0 %v10240_v53  ;;  %v5626_v4 = vld [vmem:[#allocation22 + $0x738] sm:$0xff]  ;;  %v10287_v53 = vcombine.low %v5613_v16, %v5617_v61  ;;  %v7309_v16 = vld [vmem:[#allocation23 + $0x40] sm:$0xff] }
 0x70d   :  { %7270 = vmatprep.subr.bf16.mxu1 %v10242_v9  ;;  %v10289_v9 = vcombine.low %v5614_v54, %v5618_v8  ;;  %v10298_v28 = vcombine.high %v5622_v3, %v5626_v4  ;;  %v10297_v29 = vcombine.low %v5622_v3, %v5626_v4  ;;  %v7313_v61 = vld [vmem:[#allocation23 + $0x60] sm:$0xff]  ;;  %v10323_v8 = vcombine.low %v7301_v31, %v7305_v55 }
 0x70f   :  { %7189 = vmatpush1.bf16.msra.mxu0 %v10239_v25  ;;  %v5630_v25 = vld [vmem:[#allocation22 + $0x758] sm:$0xff] }
 0x710   :  { %7271 = vmatpush1.bf16.msra.mxu1 %v10241_v26  ;;  %7190 = vmatprep.subr.bf16.mxu0 %v10248_v41  ;;  %v5634_v26 = vld [vmem:[#allocation22 + $0x778] sm:$0xff]  ;;  %v12211_v41 = vsub.s32 5, %v12055_v14 }
 0x711   :  { %7272 = vmatprep.subr.bf16.mxu1 %v10250_v27  ;;  %v10295_v27 = vcombine.low %v5621_v1, %v5625_v2  ;;  %v10306_v32 = vcombine.high %v5630_v25, %v5634_v26  ;;  %v10305_v39 = vcombine.low %v5630_v25, %v5634_v26  ;;  %v7317_v1 = vld [vmem:[#allocation23 + $0x80] sm:$0xff] }
 0x712   :  { %v5354_v50 = vrot.slane %v12224_v7, %v12211_v41  ;;  %v7321_v2 = vld [vmem:[#allocation23 + $0xa0] sm:$0xff] }
 0x713   :  { %7191 = vmatpush1.bf16.msra.mxu0 %v10247_v34  ;;  %v5641_v34 = vld [vmem:[#allocation22 + $0x7b0] sm:$0xff]  ;;  %v10340_v22 = vcombine.high %v7317_v1, %v7321_v2  ;;  %v7325_v25 = vld [vmem:[#allocation23 + $0xc0] sm:$0xff] }
 0x714   :  { %7273 = vmatpush1.bf16.msra.mxu1 %v10249_v35  ;;  %7192 = vmatprep.subr.bf16.mxu0 %v10256_v36  ;;  %v5638_v35 = vld [vmem:[#allocation22 + $0x798] sm:$0xff]  ;;  %v10312_v40 = vcombine.high %v5637_v33, %v5641_v34  ;;  %v7329_v26 = vld [vmem:[#allocation23 + $0xe0] sm:$0xff] }
 0x715   :  { %7274 = vmatprep.subr.bf16.mxu1 %v10258_v37  ;;  %v5642_v36 = vld [vmem:[#allocation22 + $0x7b8] sm:$0xff] }
 0x716   :  { %v12216_v37 = vld [vmem:[%s12347_s14] sm:$0xff] }
 0x717   :  { %7193 = vmatpush1.bf16.msra.mxu0 %v10255_v42  ;;  %v3696_v44 = vrot.slane %v12216_v37, %v12211_v41  ;;  %v10314_v42 = vcombine.high %v5638_v35, %v5642_v36 }
 0x718   :  { %7275 = vmatpush1.bf16.msra.mxu1 %v10257_v43  ;;  %7194 = vmatprep.subr.bf16.mxu0 %v10264_v45  ;;  %v5645_v43 = vld [vmem:[#allocation22 + $0x7d0] sm:$0xff] }
 0x719   :  { %7276 = vmatprep.subr.bf16.mxu1 %v10266_v46  ;;  %v5649_v45 = vld [vmem:[#allocation22 + $0x7f0] sm:$0xff]  ;;  %v5646_v46 = vld [vmem:[#allocation22 + $0x7d8] sm:$0xff]  ;;  %v10612_v49 = vadd.f32 %v12202_v13, %v3696_v44  ;;  %v7306_v13 = vld [vmem:[#allocation23 + $0x28] sm:$0xff] }
 0x71a   :  { %v7338_v44 = vld [vmem:[#allocation23 + $0x128] sm:$0xff] }
 0x71b   :  { %7195 = vmatpush1.bf16.msra.mxu0 %v10263_v11  ;;  %v10311_v11 = vcombine.low %v5637_v33, %v5641_v34  ;;  %v5376_v48 = vmul.f32 %v10612_v49, %v5354_v50  ;;  %vm5327_vm5 = vcmp.ge.f32.partialorder %v10612_v49, 0.0  ;;  %v7333_v34 = vld [vmem:[#allocation23 + $0x100] sm:$0xff] }
 0x71c   :  { %7277 = vmatpush1.bf16.msra.mxu1 %v10265_v51  ;;  %7196 = vmatprep.subr.bf16.mxu0 %v10272_v52  ;;  %v10313_v51 = vcombine.low %v5638_v35, %v5642_v36  ;;  %v10320_v52 = vcombine.high %v5645_v43, %v5649_v45  ;;  %v7337_v35 = vld [vmem:[#allocation23 + $0x120] sm:$0xff]  ;;  %v7334_v36 = vld [vmem:[#allocation23 + $0x108] sm:$0xff] }
 0x71d   :  { %7278 = vmatprep.subr.bf16.mxu1 %v10274_v6  ;;  %v10322_v6 = vcombine.high %v5646_v46, %v5650_v47  ;;  %v5384_v54 = vsel %vm5327_vm5, %v10612_v49, %v5376_v48  ;;  %v10355_v49 = vcombine.low %v7333_v34, %v7337_v35  ;;  %v10357_v50 = vcombine.low %v7334_v36, %v7338_v44 }
 0x71e   :  { %v12228_v3 = vpack.c.bf16 %v5384_v54, %v5384_v54 }
 0x71f   :  { %7197 = vmatpush1.bf16.msra.mxu0 %v10271_v57  ;;  %v10319_v57 = vcombine.low %v5645_v43, %v5649_v45  ;;  %v7341_v43 = vld [vmem:[#allocation23 + $0x140] sm:$0xff] }
 0x720   :  { %7279 = vmatpush1.bf16.msra.mxu1 %v10273_v58  ;;  %7198 = vmatprep.subr.bf16.mxu0 %v10280_v59  ;;  %v10321_v58 = vcombine.low %v5646_v46, %v5650_v47  ;;  %v10324_v59 = vcombine.high %v7301_v31, %v7305_v55  ;;  %v7345_v45 = vld [vmem:[#allocation23 + $0x160] sm:$0xff]  ;;  %v7342_v46 = vld [vmem:[#allocation23 + $0x148] sm:$0xff] }
 0x721   :  { %7280 = vmatprep.subr.bf16.mxu1 %v10282_v60  ;;  %v10326_v60 = vcombine.high %v7302_v56, %v7306_v13  ;;  %v7346_v47 = vld [vmem:[#allocation23 + $0x168] sm:$0xff] }
 0x722   :  { %v7350_v31 = vld [vmem:[#allocation23 + $0x188] sm:$0xff] }
 0x723   :  { %7199 = vmatpush1.bf16.msra.mxu0 %v10279_v18  ;;  %v7310_v18 = vld [vmem:[#allocation23 + $0x48] sm:$0xff] }
 0x724   :  { %7281 = vmatpush1.bf16.msra.mxu1 %v10281_v62  ;;  %7200 = vmatprep.subr.bf16.mxu0 %v10288_v63  ;;  %v7314_v62 = vld [vmem:[#allocation23 + $0x68] sm:$0xff]  ;;  %v10325_v63 = vcombine.low %v7302_v56, %v7306_v13  ;;  %v10363_v56 = vcombine.low %v7341_v43, %v7345_v45  ;;  %v10365_v13 = vcombine.low %v7342_v46, %v7346_v47 }
 0x725   :  { %7282 = vmatprep.subr.bf16.mxu1 %v10290_v0  ;;  %v10332_v0 = vcombine.high %v7309_v16, %v7313_v61  ;;  %v10334_v4 = vcombine.high %v7310_v18, %v7314_v62  ;;  %v7354_v55 = vld [vmem:[#allocation23 + $0x1a8] sm:$0xff] }
 0x726   :  { %v10373_v54 = vcombine.low %v7350_v31, %v7354_v55 }
 0x727   :  { %7201 = vmatpush1.bf16.msra.mxu0 %v10287_v53  ;;  %v7318_v53 = vld [vmem:[#allocation23 + $0x88] sm:$0xff] }
 0x728   :  { %7283 = vmatpush1.bf16.msra.mxu1 %v10289_v9  ;;  %7202 = vmatprep.subr.bf16.mxu0 %v10296_v10  ;;  %v7322_v9 = vld [vmem:[#allocation23 + $0xa8] sm:$0xff]  ;;  %v10331_v10 = vcombine.low %v7309_v16, %v7313_v61 }
 0x729   :  { %7284 = vmatprep.subr.bf16.mxu1 %v10298_v28  ;;  %v10333_v28 = vcombine.low %v7310_v18, %v7314_v62  ;;  %v10342_v23 = vcombine.high %v7318_v53, %v7322_v9  ;;  %v7362_v16 = vld [vmem:[#allocation23 + $0x1e8] sm:$0xff]  ;;  %v7365_v62 = vld [vmem:[#allocation23 + $0x200] sm:$0xff] }
 0x72b   :  { %7203 = vmatpush1.bf16.msra.mxu0 %v10295_v27  ;;  %v7326_v27 = vld [vmem:[#allocation23 + $0xc8] sm:$0xff] }
 0x72c   :  { %7285 = vmatpush1.bf16.msra.mxu1 %v10297_v29  ;;  %7204 = vmatprep.subr.bf16.mxu0 %v10304_v30  ;;  %v7330_v29 = vld [vmem:[#allocation23 + $0xe8] sm:$0xff]  ;;  %v10339_v30 = vcombine.low %v7317_v1, %v7321_v2 }
 0x72d   :  { %7286 = vmatprep.subr.bf16.mxu1 %v10306_v32  ;;  %v10348_v32 = vcombine.high %v7325_v25, %v7329_v26  ;;  %v10350_v33 = vcombine.high %v7326_v27, %v7330_v29  ;;  %v7370_v1 = vld [vmem:[#allocation23 + $0x228] sm:$0xff] }
 0x72f   :  { %7205 = vmatpush1.bf16.msra.mxu0 %v10303_v38  ;;  %v10347_v38 = vcombine.low %v7325_v25, %v7329_v26 }
 0x730   :  { %7287 = vmatpush1.bf16.msra.mxu1 %v10305_v39  ;;  %7206 = vmatprep.subr.bf16.mxu0 %v10312_v40  ;;  %v10349_v39 = vcombine.low %v7326_v27, %v7330_v29  ;;  %v10356_v40 = vcombine.high %v7333_v34, %v7337_v35 }
 0x731   :  { %7288 = vmatprep.subr.bf16.mxu1 %v10314_v42  ;;  %v10358_v42 = vcombine.high %v7334_v36, %v7338_v44 }
 0x733   :  { %7207 = vmatpush1.bf16.msra.mxu0 %v10311_v11  ;;  %v10364_v11 = vcombine.high %v7341_v43, %v7345_v45 }
 0x734   :  { %7289 = vmatpush1.bf16.msra.mxu1 %v10313_v51  ;;  %7208 = vmatprep.subr.bf16.mxu0 %v10320_v52  ;;  %v10366_v51 = vcombine.high %v7342_v46, %v7346_v47  ;;  %v7349_v52 = vld [vmem:[#allocation23 + $0x180] sm:$0xff] }
 0x735   :  { %7290 = vmatprep.subr.bf16.mxu1 %v10322_v6  ;;  %v7353_v6 = vld [vmem:[#allocation23 + $0x1a0] sm:$0xff] }
 0x736   :  { %v10372_v48 = vcombine.high %v7349_v52, %v7353_v6  ;;  %v10371_v61 = vcombine.low %v7349_v52, %v7353_v6 }
 0x737   :  { %7209 = vmatpush1.bf16.msra.mxu0 %v10319_v57  ;;  %v10374_v57 = vcombine.high %v7350_v31, %v7354_v55  ;;  %v12235_v55 = vsub.s32 4, %v12055_v14 }
 0x738   :  { %7291 = vmatpush1.bf16.msra.mxu1 %v10321_v58  ;;  %8879 = vmatprep.subr.bf16.mxu0 %v10324_v59  ;;  %v7357_v58 = vld [vmem:[#allocation23 + $0x1c0] sm:$0xff] }
 0x739   :  { %8961 = vmatprep.subr.bf16.mxu1 %v10326_v60  ;;  %v7361_v59 = vld [vmem:[#allocation23 + $0x1e0] sm:$0xff]  ;;  %v7358_v60 = vld [vmem:[#allocation23 + $0x1c8] sm:$0xff] }
 0x73a   :  { %7211 = vmatmul.mubr.bf16.vlgmr.msra.gmra.mrb[28].mxu0 %v12192_v5  ;;  %v10382_v18 = vcombine.high %v7358_v60, %v7362_v16  ;;  %v10379_v2 = vcombine.low %v7357_v58, %v7361_v59 }
 0x73b   :  { %7293 = vmatmul.mubr.bf16.vlgmr.msra.gmra.mrb[28].mxu1 %v12192_v5  ;;  %8880 = vmatpush1.bf16.msra.mxu0 %v10323_v8  ;;  %v10341_v5 = vcombine.low %v7318_v53, %v7322_v9  ;;  %v10380_v8 = vcombine.high %v7357_v58, %v7361_v59  ;;  %v7410_v58 = vld [vmem:[#allocation23 + $0x368] sm:$0xff]  ;;  %v12238_v59 = vsub.s32 7, %v12055_v14 }
 0x73c   :  { %8911 = vmatprep.mubr.bf16.mxu0 %v12228_v3  ;;  %8962 = vmatpush1.bf16.msra.mxu1 %v10325_v63  ;;  %v7369_v63 = vld [vmem:[#allocation23 + $0x220] sm:$0xff] }
 0x73d   :  { %8993 = vmatprep.mubr.bf16.mxu1 %v12228_v3  ;;  %8881 = vmatprep.subr.bf16.mxu0 %v10332_v0  ;;  %v7366_v0 = vld [vmem:[#allocation23 + $0x208] sm:$0xff]  ;;  %v10388_v53 = vcombine.high %v7365_v62, %v7369_v63  ;;  %v10387_v25 = vcombine.low %v7365_v62, %v7369_v63  ;;  %v7417_v62 = vld [vmem:[#allocation23 + $0x3a0] sm:$0xff] }
 0x73e   :  { %8963 = vmatprep.subr.bf16.mxu1 %v10334_v4  ;;  %v10381_v4 = vcombine.low %v7358_v60, %v7362_v16  ;;  %v10390_v9 = vcombine.high %v7366_v0, %v7370_v1  ;;  %v10389_v26 = vcombine.low %v7366_v0, %v7370_v1  ;;  %v7414_v63 = vld [vmem:[#allocation23 + $0x388] sm:$0xff]  ;;  %v3704_v1 = vrot.slane %v12216_v37, %v12238_v59 }
 0x73f   :  { %8882 = vmatpush1.bf16.msra.mxu0 %v10331_v10  ;;  %v7373_v10 = vld [vmem:[#allocation23 + $0x240] sm:$0xff]  ;;  %v7418_v0 = vld [vmem:[#allocation23 + $0x3a8] sm:$0xff] }
 0x740   :  { %8964 = vmatpush1.bf16.msra.mxu1 %v10333_v28  ;;  %8883 = vmatprep.subr.bf16.mxu0 %v10340_v22  ;;  %v7377_v28 = vld [vmem:[#allocation23 + $0x260] sm:$0xff]  ;;  %v7374_v22 = vld [vmem:[#allocation23 + $0x248] sm:$0xff] }
 0x741   :  { %8965 = vmatprep.subr.bf16.mxu1 %v10342_v23  ;;  %v7378_v23 = vld [vmem:[#allocation23 + $0x268] sm:$0xff]  ;;  %v10396_v27 = vcombine.high %v7373_v10, %v7377_v28  ;;  %v10395_v34 = vcombine.low %v7373_v10, %v7377_v28  ;;  %v5350_v10 = vrot.slane %v12224_v7, %v12235_v55  ;;  %v10438_v28 = vcombine.high %v7414_v63, %v7418_v0 }
 0x742   :  { %v10398_v29 = vcombine.high %v7374_v22, %v7378_v23  ;;  %v10397_v35 = vcombine.low %v7374_v22, %v7378_v23  ;;  %v7421_v22 = vld [vmem:[#allocation23 + $0x3c0] sm:$0xff] }
 0x743   :  { %8884 = vmatpush1.bf16.msra.mxu0 %v10339_v30  ;;  %v7381_v30 = vld [vmem:[#allocation23 + $0x280] sm:$0xff] }
 0x744   :  { %8966 = vmatpush1.bf16.msra.mxu1 %v10341_v5  ;;  %8885 = vmatprep.subr.bf16.mxu0 %v10348_v32  ;;  %v7385_v5 = vld [vmem:[#allocation23 + $0x2a0] sm:$0xff]  ;;  %v7382_v32 = vld [vmem:[#allocation23 + $0x288] sm:$0xff] }
 0x745   :  { %8967 = vmatprep.subr.bf16.mxu1 %v10350_v33  ;;  %v7386_v33 = vld [vmem:[#allocation23 + $0x2a8] sm:$0xff]  ;;  %v10404_v36 = vcombine.high %v7381_v30, %v7385_v5  ;;  %v10403_v43 = vcombine.low %v7381_v30, %v7385_v5  ;;  %v7425_v23 = vld [vmem:[#allocation23 + $0x3e0] sm:$0xff]  ;;  %v10437_v5 = vcombine.low %v7414_v63, %v7418_v0 }
 0x746   :  { %v10406_v44 = vcombine.high %v7382_v32, %v7386_v33  ;;  %v10405_v45 = vcombine.low %v7382_v32, %v7386_v33  ;;  %v7458_v63 = vld [vmem:[#allocation23 + $0x4e8] sm:$0xff] }
 0x747   :  { %8886 = vmatpush1.bf16.msra.mxu0 %v10347_v38  ;;  %v7389_v38 = vld [vmem:[#allocation23 + $0x2c0] sm:$0xff] }
 0x748   :  { %8968 = vmatpush1.bf16.msra.mxu1 %v10349_v39  ;;  %8887 = vmatprep.subr.bf16.mxu0 %v10356_v40  ;;  %v7393_v39 = vld [vmem:[#allocation23 + $0x2e0] sm:$0xff]  ;;  %v7390_v40 = vld [vmem:[#allocation23 + $0x2c8] sm:$0xff] }
 0x749   :  { %8969 = vmatprep.subr.bf16.mxu1 %v10358_v42  ;;  %v7394_v42 = vld [vmem:[#allocation23 + $0x2e8] sm:$0xff]  ;;  %v10412_v46 = vcombine.high %v7389_v38, %v7393_v39  ;;  %v10411_v52 = vcombine.low %v7389_v38, %v7393_v39 }
 0x74a   :  { %v10414_v47 = vcombine.high %v7390_v40, %v7394_v42  ;;  %v10413_v6 = vcombine.low %v7390_v40, %v7394_v42 }
 0x74b   :  { %8888 = vmatpush1.bf16.msra.mxu0 %v10355_v49  ;;  %v7397_v49 = vld [vmem:[#allocation23 + $0x300] sm:$0xff] }
 0x74c   :  { %8970 = vmatpush1.bf16.msra.mxu1 %v10357_v50  ;;  %8889 = vmatprep.subr.bf16.mxu0 %v10364_v11  ;;  %v7401_v50 = vld [vmem:[#allocation23 + $0x320] sm:$0xff]  ;;  %v7398_v11 = vld [vmem:[#allocation23 + $0x308] sm:$0xff] }
 0x74d   :  { %8971 = vmatprep.subr.bf16.mxu1 %v10366_v51  ;;  %v7402_v51 = vld [vmem:[#allocation23 + $0x328] sm:$0xff]  ;;  %v10420_v31 = vcombine.high %v7397_v49, %v7401_v50  ;;  %v10419_v60 = vcombine.low %v7397_v49, %v7401_v50 }
 0x74e   :  { %v10421_v16 = vcombine.low %v7398_v11, %v7402_v51  ;;  %v7438_v50 = vld [vmem:[#allocation23 + $0x448] sm:$0xff] }
 0x74f   :  { %8890 = vmatpush1.bf16.msra.mxu0 %v10363_v56  ;;  %v10422_v56 = vcombine.high %v7398_v11, %v7402_v51  ;;  %v7442_v11 = vld [vmem:[#allocation23 + $0x468] sm:$0xff] }
 0x750   :  { %8972 = vmatpush1.bf16.msra.mxu1 %v10365_v13  ;;  %8891 = vmatprep.subr.bf16.mxu0 %v10372_v48  ;;  %v7405_v13 = vld [vmem:[#allocation23 + $0x340] sm:$0xff] }
 0x751   :  { %8973 = vmatprep.subr.bf16.mxu1 %v10374_v57  ;;  %v7409_v48 = vld [vmem:[#allocation23 + $0x360] sm:$0xff]  ;;  %v7406_v57 = vld [vmem:[#allocation23 + $0x348] sm:$0xff] }
 0x753   :  { %8892 = vmatpush1.bf16.msra.mxu0 %v10371_v61  ;;  %v10428_v61 = vcombine.high %v7405_v13, %v7409_v48 }
 0x754   :  { %8974 = vmatpush1.bf16.msra.mxu1 %v10373_v54  ;;  %8893 = vmatprep.subr.bf16.mxu0 %v10380_v8  ;;  %v3692_v54 = vrot.slane %v12216_v37, %v12235_v55  ;;  %v10430_v8 = vcombine.high %v7406_v57, %v7410_v58 }
 0x755   :  { %8975 = vmatprep.subr.bf16.mxu1 %v10382_v18  ;;  %v7413_v18 = vld [vmem:[#allocation23 + $0x380] sm:$0xff] }
 0x756   :  { %v10435_v30 = vcombine.low %v7413_v18, %v7417_v62 }
 0x757   :  { %8894 = vmatpush1.bf16.msra.mxu0 %v10379_v2  ;;  %v10427_v2 = vcombine.low %v7405_v13, %v7409_v48  ;;  %v10462_v48 = vcombine.high %v7438_v50, %v7442_v11 }
 0x758   :  { %8976 = vmatpush1.bf16.msra.mxu1 %v10381_v4  ;;  %8895 = vmatprep.subr.bf16.mxu0 %v10388_v53  ;;  %v10429_v4 = vcombine.low %v7406_v57, %v7410_v58  ;;  %v10436_v53 = vcombine.high %v7413_v18, %v7417_v62  ;;  %v7446_v57 = vld [vmem:[#allocation23 + $0x488] sm:$0xff]  ;;  %v7457_v18 = vld [vmem:[#allocation23 + $0x4e0] sm:$0xff] }
 0x759   :  { %8977 = vmatprep.subr.bf16.mxu1 %v10390_v9  ;;  %v10611_v9 = vadd.f32 %v12198_v20, %v3692_v54  ;;  %v10444_v20 = vcombine.high %v7421_v22, %v7425_v23  ;;  %v7450_v58 = vld [vmem:[#allocation23 + $0x4a8] sm:$0xff] }
 0x75a   :  { %v10470_v54 = vcombine.high %v7446_v57, %v7450_v58  ;;  %v7454_v62 = vld [vmem:[#allocation23 + $0x4c8] sm:$0xff] }
 0x75b   :  { %8896 = vmatpush1.bf16.msra.mxu0 %v10387_v25  ;;  %v7422_v25 = vld [vmem:[#allocation23 + $0x3c8] sm:$0xff]  ;;  %v5375_v32 = vmul.f32 %v10611_v9, %v5350_v10  ;;  %vm5326_vm6 = vcmp.ge.f32.partialorder %v10611_v9, 0.0 }
 0x75c   :  { %8978 = vmatpush1.bf16.msra.mxu1 %v10389_v26  ;;  %8897 = vmatprep.subr.bf16.mxu0 %v10396_v27  ;;  %v7426_v26 = vld [vmem:[#allocation23 + $0x3e8] sm:$0xff]  ;;  %v10614_v27 = vadd.f32 %v12204_v24, %v3704_v1  ;;  %v10443_v24 = vcombine.low %v7421_v22, %v7425_v23  ;;  %v10469_v1 = vcombine.low %v7446_v57, %v7450_v58 }
 0x75d   :  { %8979 = vmatprep.subr.bf16.mxu1 %v10398_v29  ;;  %v5362_v29 = vrot.slane %v12224_v7, %v12238_v59  ;;  %v10446_v33 = vcombine.high %v7422_v25, %v7426_v26  ;;  %v10445_v39 = vcombine.low %v7422_v25, %v7426_v26  ;;  %v5383_v42 = vsel %vm5326_vm6, %v10611_v9, %v5375_v32  ;;  %v7465_v9 = vld [vmem:[#allocation23 + $0x520] sm:$0xff]  ;;  %v7462_v10 = vld [vmem:[#allocation23 + $0x508] sm:$0xff]  ;;  %v12261_v32 = vld [vmem:[%s12373_s13] sm:$0xff] }
 0x75e   :  { %vm5329_vm7 = vcmp.ge.f32.partialorder %v10614_v27, 0.0  ;;  %v12250_v51 = vpack.c.bf16 %v5383_v42, %v5383_v42  ;;  %v10477_v23 = vcombine.low %v7454_v62, %v7458_v63  ;;  %v5660_v42 = vrot.slane %v12261_v32, %v12061_v17  ;;  %v7486_v58 = vld [vmem:[#allocation23 + $0x5c8] sm:$0xff] }
 0x75f   :  { %8898 = vmatpush1.bf16.msra.mxu0 %v10395_v34  ;;  %v7429_v34 = vld [vmem:[#allocation23 + $0x400] sm:$0xff]  ;;  %v5378_v38 = vmul.f32 %v10614_v27, %v5362_v29 }
 0x760   :  { %8980 = vmatpush1.bf16.msra.mxu1 %v10397_v35  ;;  %8899 = vmatprep.subr.bf16.mxu0 %v10404_v36  ;;  %v7433_v35 = vld [vmem:[#allocation23 + $0x420] sm:$0xff]  ;;  %v7430_v36 = vld [vmem:[#allocation23 + $0x408] sm:$0xff] }
 0x761   :  { %8981 = vmatprep.subr.bf16.mxu1 %v10406_v44  ;;  %v7434_v44 = vld [vmem:[#allocation23 + $0x428] sm:$0xff]  ;;  %v10452_v40 = vcombine.high %v7429_v34, %v7433_v35  ;;  %v10451_v49 = vcombine.low %v7429_v34, %v7433_v35  ;;  %v7473_v29 = vld [vmem:[#allocation23 + $0x560] sm:$0xff] }
 0x763   :  { %8900 = vmatpush1.bf16.msra.mxu0 %v10403_v43  ;;  %v10454_v43 = vcombine.high %v7430_v36, %v7434_v44 }
 0x764   :  { %8982 = vmatpush1.bf16.msra.mxu1 %v10405_v45  ;;  %8901 = vmatprep.subr.bf16.mxu0 %v10412_v46  ;;  %v7437_v45 = vld [vmem:[#allocation23 + $0x440] sm:$0xff] }
 0x765   :  { %8983 = vmatprep.subr.bf16.mxu1 %v10414_v47  ;;  %v7441_v46 = vld [vmem:[#allocation23 + $0x460] sm:$0xff]  ;;  %v5386_v47 = vsel %vm5329_vm7, %v10614_v27, %v5378_v38  ;;  %v5656_v38 = vrot.slane %v12261_v32, %v12058_v15 }
 0x766   :  { %v12252_v13 = vpack.c.bf16 %v5386_v47, %v5386_v47  ;;  %v7469_v27 = vld [vmem:[#allocation23 + $0x540] sm:$0xff] }
 0x767   :  { %8902 = vmatpush1.bf16.msra.mxu0 %v10411_v52  ;;  %v10453_v52 = vcombine.low %v7430_v36, %v7434_v44  ;;  %v10492_v34 = vcombine.high %v7469_v27, %v7473_v29  ;;  %v7477_v36 = vld [vmem:[#allocation23 + $0x580] sm:$0xff] }
 0x768   :  { %8984 = vmatpush1.bf16.msra.mxu1 %v10413_v6  ;;  %8903 = vmatprep.subr.bf16.mxu0 %v10420_v31  ;;  %v10460_v6 = vcombine.high %v7437_v45, %v7441_v46  ;;  %v7445_v31 = vld [vmem:[#allocation23 + $0x480] sm:$0xff] }
 0x769   :  { %8985 = vmatprep.subr.bf16.mxu1 %v10422_v56  ;;  %v7449_v56 = vld [vmem:[#allocation23 + $0x4a0] sm:$0xff] }
 0x76a   :  { %v10467_v0 = vcombine.low %v7445_v31, %v7449_v56  ;;  %v7481_v44 = vld [vmem:[#allocation23 + $0x5a0] sm:$0xff] }
 0x76b   :  { %8904 = vmatpush1.bf16.msra.mxu0 %v10419_v60  ;;  %v10459_v60 = vcombine.low %v7437_v45, %v7441_v46  ;;  %v10491_v45 = vcombine.low %v7469_v27, %v7473_v29  ;;  %v10500_v47 = vcombine.high %v7477_v36, %v7481_v44 }
 0x76c   :  { %8986 = vmatpush1.bf16.msra.mxu1 %v10421_v16  ;;  %8905 = vmatprep.subr.bf16.mxu0 %v10428_v61  ;;  %v10461_v16 = vcombine.low %v7438_v50, %v7442_v11  ;;  %v10468_v61 = vcombine.high %v7445_v31, %v7449_v56 }
 0x76d   :  { %8987 = vmatprep.subr.bf16.mxu1 %v10430_v8  ;;  %v7453_v8 = vld [vmem:[#allocation23 + $0x4c0] sm:$0xff] }
 0x76e   :  { %v10475_v22 = vcombine.low %v7453_v8, %v7457_v18 }
 0x76f   :  { %8906 = vmatpush1.bf16.msra.mxu0 %v10427_v2  ;;  %v10476_v2 = vcombine.high %v7453_v8, %v7457_v18  ;;  %v10499_v18 = vcombine.low %v7477_v36, %v7481_v44 }
 0x770   :  { %8988 = vmatpush1.bf16.msra.mxu1 %v10429_v4  ;;  %8907 = vmatprep.subr.bf16.mxu0 %v10436_v53  ;;  %v10478_v4 = vcombine.high %v7454_v62, %v7458_v63  ;;  %v7461_v53 = vld [vmem:[#allocation23 + $0x500] sm:$0xff] }
 0x771   :  { %8989 = vmatprep.subr.bf16.mxu1 %v10438_v28  ;;  %v7466_v28 = vld [vmem:[#allocation23 + $0x528] sm:$0xff]  ;;  %v10484_v25 = vcombine.high %v7461_v53, %v7465_v9 }
 0x772   :  { %v10486_v26 = vcombine.high %v7462_v10, %v7466_v28 }
 0x773   :  { %8908 = vmatpush1.bf16.msra.mxu0 %v10435_v30  ;;  %v7470_v30 = vld [vmem:[#allocation23 + $0x548] sm:$0xff] }
 0x774   :  { %8990 = vmatpush1.bf16.msra.mxu1 %v10437_v5  ;;  %8909 = vmatprep.subr.bf16.mxu0 %v10444_v20  ;;  %v7474_v5 = vld [vmem:[#allocation23 + $0x568] sm:$0xff]  ;;  %v10483_v20 = vcombine.low %v7461_v53, %v7465_v9 }
 0x775   :  { %8991 = vmatprep.subr.bf16.mxu1 %v10446_v33  ;;  %v10485_v33 = vcombine.low %v7462_v10, %v7466_v28  ;;  %v10494_v35 = vcombine.high %v7470_v30, %v7474_v5  ;;  %v10493_v46 = vcombine.low %v7470_v30, %v7474_v5  ;;  %v7493_v28 = vld [vmem:[#allocation23 + $0x600] sm:$0xff] }
 0x776   :  { %v7501_v5 = vld [vmem:[#allocation23 + $0x640] sm:$0xff] }
 0x777   :  { %8910 = vmatpush1.bf16.msra.mxu0 %v10443_v24  ;;  %v5664_v24 = vrot.slane %v12261_v32, %v12064_v19 }
 0x778   :  { %8992 = vmatpush1.bf16.msra.mxu1 %v10445_v39  ;;  %8920 = vmatprep.subr.bf16.mxu0 %v10452_v40  ;;  %v7478_v39 = vld [vmem:[#allocation23 + $0x588] sm:$0xff] }
 0x779   :  { %9002 = vmatprep.subr.bf16.mxu1 %v10454_v43  ;;  %v7482_v40 = vld [vmem:[#allocation23 + $0x5a8] sm:$0xff]  ;;  %v5668_v43 = vrot.slane %v12261_v32, %v12068_v21 }
 0x77a   :  { %8912 = vmatmul.mubr.bf16.vlgmr.msra.gmra.mrb[32].mxu0 %v12250_v51  ;;  %v10502_v11 = vcombine.high %v7478_v39, %v7482_v40 }
 0x77b   :  { %8994 = vmatmul.mubr.bf16.vlgmr.msra.gmra.mrb[32].mxu1 %v12250_v51  ;;  %8921 = vmatpush1.bf16.msra.mxu0 %v10451_v49 }
 0x77c   :  { %8952 = vmatprep.mubr.bf16.mxu0 %v12252_v13  ;;  %9003 = vmatpush1.bf16.msra.mxu1 %v10453_v52  ;;  %v7485_v52 = vld [vmem:[#allocation23 + $0x5c0] sm:$0xff] }
 0x77d   :  { %9034 = vmatprep.mubr.bf16.mxu1 %v12252_v13  ;;  %8922 = vmatprep.subr.bf16.mxu0 %v10460_v6  ;;  %v7489_v6 = vld [vmem:[#allocation23 + $0x5e0] sm:$0xff] }
 0x77e   :  { %9004 = vmatprep.subr.bf16.mxu1 %v10462_v48 }
 0x77f   :  { %8923 = vmatpush1.bf16.msra.mxu0 %v10459_v60  ;;  %v7490_v60 = vld [vmem:[#allocation23 + $0x5e8] sm:$0xff] }
 0x780   :  { %9005 = vmatpush1.bf16.msra.mxu1 %v10461_v16  ;;  %8924 = vmatprep.subr.bf16.mxu0 %v10468_v61  ;;  %v10510_v10 = vcombine.high %v7486_v58, %v7490_v60  ;;  %v10509_v27 = vcombine.low %v7486_v58, %v7490_v60 }
 0x781   :  { %9006 = vmatprep.subr.bf16.mxu1 %v10470_v54 }
 0x783   :  { %8925 = vmatpush1.bf16.msra.mxu0 %v10467_v0 }
 0x784   :  { %9007 = vmatpush1.bf16.msra.mxu1 %v10469_v1  ;;  %8926 = vmatprep.subr.bf16.mxu0 %v10476_v2  ;;  %v10501_v2 = vcombine.low %v7478_v39, %v7482_v40  ;;  %v7513_v39 = vld [vmem:[#allocation23 + $0x6a0] sm:$0xff]  ;;  %v7510_v40 = vld [vmem:[#allocation23 + $0x688] sm:$0xff] }
 0x785   :  { %9008 = vmatprep.subr.bf16.mxu1 %v10478_v4  ;;  %v10508_v4 = vcombine.high %v7485_v52, %v7489_v6 }
 0x787   :  { %8927 = vmatpush1.bf16.msra.mxu0 %v10475_v22  ;;  %v7497_v22 = vld [vmem:[#allocation23 + $0x620] sm:$0xff] }
 0x788   :  { %9009 = vmatpush1.bf16.msra.mxu1 %v10477_v23  ;;  %8928 = vmatprep.subr.bf16.mxu0 %v10484_v25  ;;  %v7494_v23 = vld [vmem:[#allocation23 + $0x608] sm:$0xff]  ;;  %v10516_v29 = vcombine.high %v7493_v28, %v7497_v22 }
 0x789   :  { %9010 = vmatprep.subr.bf16.mxu1 %v10486_v26  ;;  %v7498_v25 = vld [vmem:[#allocation23 + $0x628] sm:$0xff]  ;;  %v10507_v26 = vcombine.low %v7485_v52, %v7489_v6  ;;  %v7517_v52 = vld [vmem:[#allocation23 + $0x6c0] sm:$0xff] }
 0x78a   :  { %v10518_v30 = vcombine.high %v7494_v23, %v7498_v25  ;;  %v10517_v36 = vcombine.low %v7494_v23, %v7498_v25  ;;  %v7521_v6 = vld [vmem:[#allocation23 + $0x6e0] sm:$0xff] }
 0x78b   :  { %8929 = vmatpush1.bf16.msra.mxu0 %v10483_v20  ;;  %v7505_v20 = vld [vmem:[#allocation23 + $0x660] sm:$0xff] }
 0x78c   :  { %9011 = vmatpush1.bf16.msra.mxu1 %v10485_v33  ;;  %8930 = vmatprep.subr.bf16.mxu0 %v10492_v34  ;;  %v7502_v33 = vld [vmem:[#allocation23 + $0x648] sm:$0xff]  ;;  %v10524_v44 = vcombine.high %v7501_v5, %v7505_v20  ;;  %v7533_v23 = vld [vmem:[#allocation23 + $0x740] sm:$0xff] }
 0x78d   :  { %v7048_v49 = vpop.f32.mrb[24].mxu0  ;;  %v7130_v50 = vpop.f32.mrb[24].mxu1  ;;  %9012 = vmatprep.subr.bf16.mxu1 %v10494_v35  ;;  %v7506_v34 = vld [vmem:[#allocation23 + $0x668] sm:$0xff]  ;;  %v10515_v35 = vcombine.low %v7493_v28, %v7497_v22  ;;  %v12272_v28 = vsub.s32 6, %v12055_v14  ;;  %v7537_v25 = vld [vmem:[#allocation23 + $0x760] sm:$0xff] }
 0x78e   :  { %v10615_v31 = vadd.f32 %v7048_v49, %v5656_v38  ;;  %v10617_v56 = vadd.f32 %v7130_v50, %v5664_v24  ;;  %v7050_v48 = vpop.f32.mrb[25].mxu0  ;;  %v7132_v57 = vpop.f32.mrb[25].mxu1  ;;  %v10526_v38 = vcombine.high %v7502_v33, %v7506_v34  ;;  %v7509_v24 = vld [vmem:[#allocation23 + $0x680] sm:$0xff] }
 0x78f   :  { %v10616_v16 = vadd.f32 %v7050_v48, %v5660_v42  ;;  %v10618_v61 = vadd.f32 %v7132_v57, %v5668_v43  ;;  %v7052_v54 = vpop.f32.mrb[26].mxu0  ;;  %v7134_v8 = vpop.f32.mrb[26].mxu1  ;;  %8931 = vmatpush1.bf16.msra.mxu0 %v10491_v45  ;;  %v7514_v42 = vld [vmem:[#allocation23 + $0x6a8] sm:$0xff]  ;;  %v10523_v43 = vcombine.low %v7501_v5, %v7505_v20  ;;  %v10556_v20 = vcombine.high %v7533_v23, %v7537_v25 }
 0x790   :  { %v10579_v62 = vmul.f32 -1.442695, %v10615_v31  ;;  %v10581_v63 = vmul.f32 -1.442695, %v10617_v56  ;;  %9013 = vmatpush1.bf16.msra.mxu1 %v10493_v46  ;;  %v7053_v0 = vpop.f32.mrb[27].mxu0  ;;  %v7135_v1 = vpop.f32.mrb[27].mxu1  ;;  %8932 = vmatprep.subr.bf16.mxu0 %v10500_v47  ;;  %v10525_v46 = vcombine.low %v7502_v33, %v7506_v34  ;;  %v10532_v47 = vcombine.high %v7509_v24, %v7513_v39 }
 0x791   :  { %v10580_v53 = vmul.f32 -1.442695, %v10616_v16  ;;  %v10582_v9 = vmul.f32 -1.442695, %v10618_v61  ;;  %9014 = vmatprep.subr.bf16.mxu1 %v10502_v11  ;;  %v10534_v11 = vcombine.high %v7510_v40, %v7514_v42  ;;  %v7518_v48 = vld [vmem:[#allocation23 + $0x6c8] sm:$0xff]  ;;  %v10531_v16 = vcombine.low %v7509_v24, %v7513_v39 }
 0x792   :  { %11312 = vpow2.f32 %v10579_v62  ;;  %v7522_v57 = vld [vmem:[#allocation23 + $0x6e8] sm:$0xff]  ;;  %v10533_v54 = vcombine.low %v7510_v40, %v7514_v42  ;;  %v10540_v8 = vcombine.high %v7517_v52, %v7521_v6  ;;  %v7525_v62 = vld [vmem:[#allocation23 + $0x700] sm:$0xff]  ;;  %v3700_v34 = vrot.slane %v12216_v37, %v12272_v28 }
 0x793   :  { %11314 = vpow2.f32 %v10581_v63  ;;  %8933 = vmatpush1.bf16.msra.mxu0 %v10499_v18  ;;  %v10542_v18 = vcombine.high %v7518_v48, %v7522_v57  ;;  %v7529_v63 = vld [vmem:[#allocation23 + $0x720] sm:$0xff]  ;;  %v7526_v0 = vld [vmem:[#allocation23 + $0x708] sm:$0xff] }
 0x794   :  { %11316 = vpow2.f32 %v10580_v53  ;;  %9015 = vmatpush1.bf16.msra.mxu1 %v10501_v2  ;;  %8934 = vmatprep.subr.bf16.mxu0 %v10508_v4  ;;  %v7530_v1 = vld [vmem:[#allocation23 + $0x728] sm:$0xff]  ;;  %v11745_v2 = vmov 1983009808   ;;  %v10539_v53 = vcombine.low %v7517_v52, %v7521_v6  ;;  %v10613_v37 = vadd.f32 %v12200_v12, %v3700_v34  ;;  %v7549_v52 = vld [vmem:[#allocation23 + $0x7c0] sm:$0xff] }
 0x795   :  { %11318 = vpow2.f32 %v10582_v9  ;;  %9016 = vmatprep.subr.bf16.mxu1 %v10510_v10  ;;  %v9266_v4 = vunpack.c.l.s4 %v11745_v2  ;;  %v10541_v9 = vcombine.low %v7518_v48, %v7522_v57  ;;  %v10548_v10 = vcombine.high %v7525_v62, %v7529_v63  ;;  %v7542_v24 = vld [vmem:[#allocation23 + $0x788] sm:$0xff]  ;;  %v7553_v6 = vld [vmem:[#allocation23 + $0x7e0] sm:$0xff] }
 0x796   :  { %v10550_v22 = vcombine.high %v7526_v0, %v7530_v1  ;;  %v10549_v5 = vcombine.low %v7526_v0, %v7530_v1  ;;  %v7546_v39 = vld [vmem:[#allocation23 + $0x7a8] sm:$0xff]  ;;  %v10572_v12 = vcombine.high %v7549_v52, %v7553_v6  ;;  %vm5328_vm8 = vcmp.ge.f32.partialorder %v10613_v37, 0.0 }
 0x797   :  { %8935 = vmatpush1.bf16.msra.mxu0 %v10507_v26  ;;  %v7534_v26 = vld [vmem:[#allocation23 + $0x748] sm:$0xff] }
 0x798   :  { %9017 = vmatpush1.bf16.msra.mxu1 %v10509_v27  ;;  %8936 = vmatprep.subr.bf16.mxu0 %v10516_v29  ;;  %v7538_v27 = vld [vmem:[#allocation23 + $0x768] sm:$0xff]  ;;  %v9267_v29 = vunpack.c.0.s8 %v9266_v4 }
 0x799   :  { %9018 = vmatprep.subr.bf16.mxu1 %v10518_v30  ;;  %v10547_v30 = vcombine.low %v7525_v62, %v7529_v63  ;;  %v7308_v62 = vld [vmem:[#allocation23 + $0x38] sm:$0xff]  ;;  %v10571_v63 = vcombine.low %v7549_v52, %v7553_v6 }
 0x79a   :  { %v12277_v40 = vsub.s32 %v9267_v29, %v12055_v14  ;;  %v7319_v29 = vld [vmem:[#allocation23 + $0x90] sm:$0xff] }
 0x79b   :  { %8937 = vmatpush1.bf16.msra.mxu0 %v10515_v35  ;;  %v10558_v35 = vcombine.high %v7534_v26, %v7538_v27 }
 0x79c   :  { %v11313_v45 = vpop.eup %11312  ;;  %9019 = vmatpush1.bf16.msra.mxu1 %v10517_v36  ;;  %8938 = vmatprep.subr.bf16.mxu0 %v10524_v44  ;;  %v7541_v36 = vld [vmem:[#allocation23 + $0x780] sm:$0xff] }
 0x79d   :  { %v11315_v49 = vpop.eup %11314  ;;  %v9231_v50 = vadd.f32 1.0, %v11313_v45  ;;  %9020 = vmatprep.subr.bf16.mxu1 %v10526_v38  ;;  %v7545_v44 = vld [vmem:[#allocation23 + $0x7a0] sm:$0xff] }
 0x79e   :  { %v11317_v31 = vpop.eup %11316  ;;  %v9233_v56 = vadd.f32 1.0, %v11315_v49  ;;  %v10563_v57 = vcombine.low %v7541_v36, %v7545_v44 }
 0x79f   :  { %v11319_v58 = vpop.eup %11318  ;;  %11320 = vrcp.f32 %v9231_v50  ;;  %v9232_v60 = vadd.f32 1.0, %v11317_v31  ;;  %8939 = vmatpush1.bf16.msra.mxu0 %v10523_v43  ;;  %v10555_v43 = vcombine.low %v7533_v23, %v7537_v25  ;;  %v5358_v50 = vrot.slane %v12224_v7, %v12272_v28  ;;  %v7550_v31 = vld [vmem:[#allocation23 + $0x7c8] sm:$0xff]  ;;  %v7316_v23 = vld [vmem:[#allocation23 + $0x78] sm:$0xff] }
 0x7a0   :  { %11322 = vrcp.f32 %v9233_v56  ;;  %v9234_v61 = vadd.f32 1.0, %v11319_v58  ;;  %9021 = vmatpush1.bf16.msra.mxu1 %v10525_v46  ;;  %8940 = vmatprep.subr.bf16.mxu0 %v10532_v47  ;;  %v10557_v46 = vcombine.low %v7534_v26, %v7538_v27  ;;  %v10564_v47 = vcombine.high %v7541_v36, %v7545_v44  ;;  %v7554_v56 = vld [vmem:[#allocation23 + $0x7e8] sm:$0xff] }
 0x7a1   :  { %11324 = vrcp.f32 %v9232_v60  ;;  %9022 = vmatprep.subr.bf16.mxu1 %v10534_v11  ;;  %v10566_v11 = vcombine.high %v7542_v24, %v7546_v39  ;;  %v10565_v60 = vcombine.low %v7542_v24, %v7546_v39  ;;  %v10574_v7 = vcombine.high %v7550_v31, %v7554_v56  ;;  %v7331_v24 = vld [vmem:[#allocation23 + $0xf0] sm:$0xff]  ;;  %v7328_v39 = vld [vmem:[#allocation23 + $0xd8] sm:$0xff] }
 0x7a2   :  { %11326 = vrcp.f32 %v9234_v61  ;;  %v7303_v61 = vld [vmem:[#allocation23 + $0x10] sm:$0xff]  ;;  %v10573_v0 = vcombine.low %v7550_v31, %v7554_v56 }
 0x7a3   :  { %8941 = vmatpush1.bf16.msra.mxu0 %v10531_v16  ;;  %v5377_v16 = vmul.f32 %v10613_v37, %v5358_v50  ;;  %v7336_v50 = vld [vmem:[#allocation23 + $0x118] sm:$0xff]  ;;  %v7343_v31 = vld [vmem:[#allocation23 + $0x150] sm:$0xff] }
 0x7a4   :  { %9023 = vmatpush1.bf16.msra.mxu1 %v10533_v54  ;;  %8942 = vmatprep.subr.bf16.mxu0 %v10540_v8  ;;  %v7307_v54 = vld [vmem:[#allocation23 + $0x30] sm:$0xff] }
 0x7a5   :  { %9024 = vmatprep.subr.bf16.mxu1 %v10542_v18  ;;  %v7304_v18 = vld [vmem:[#allocation23 + $0x18] sm:$0xff]  ;;  %v10328_v1 = vcombine.high %v7303_v61, %v7307_v54  ;;  %v5385_v2 = vsel %vm5328_vm8, %v10613_v37, %v5377_v16  ;;  %v7339_v37 = vld [vmem:[#allocation23 + $0x130] sm:$0xff] }
 0x7a6   :  { %v10330_v4 = vcombine.high %v7304_v18, %v7308_v62  ;;  %v12284_v25 = vpack.c.bf16 %v5385_v2, %v5385_v2  ;;  %v10329_v26 = vcombine.low %v7304_v18, %v7308_v62  ;;  %v7347_v56 = vld [vmem:[#allocation23 + $0x170] sm:$0xff] }
 0x7a7   :  { %8943 = vmatpush1.bf16.msra.mxu0 %v10539_v53  ;;  %v7311_v53 = vld [vmem:[#allocation23 + $0x50] sm:$0xff]  ;;  %v10367_v18 = vcombine.low %v7343_v31, %v7347_v56 }
 0x7a8   :  { %9025 = vmatpush1.bf16.msra.mxu1 %v10541_v9  ;;  %8944 = vmatprep.subr.bf16.mxu0 %v10548_v10  ;;  %v7315_v9 = vld [vmem:[#allocation23 + $0x70] sm:$0xff]  ;;  %v10327_v10 = vcombine.low %v7303_v61, %v7307_v54  ;;  %v7352_v54 = vld [vmem:[#allocation23 + $0x198] sm:$0xff] }
 0x7a9   :  { %v11321_v33 = vpop.eup %11320  ;;  %9026 = vmatprep.subr.bf16.mxu1 %v10550_v22  ;;  %v7312_v22 = vld [vmem:[#allocation23 + $0x58] sm:$0xff]  ;;  %v10336_v27 = vcombine.high %v7311_v53, %v7315_v9  ;;  %v10335_v34 = vcombine.low %v7311_v53, %v7315_v9  ;;  %v7355_v61 = vld [vmem:[#allocation23 + $0x1b0] sm:$0xff] }
 0x7aa   :  { %v11323_v38 = vpop.eup %11322  ;;  %v7363_v2 = vld [vmem:[#allocation23 + $0x1f0] sm:$0xff]  ;;  %v7364_v53 = vld [vmem:[#allocation23 + $0x1f8] sm:$0xff] }
 0x7ab   :  { %v11325_v42 = vpop.eup %11324  ;;  %8945 = vmatpush1.bf16.msra.mxu0 %v10547_v30  ;;  %v7323_v30 = vld [vmem:[#allocation23 + $0xb0] sm:$0xff] }
 0x7ac   :  { %v11327_v45 = vpop.eup %11326  ;;  %9027 = vmatpush1.bf16.msra.mxu1 %v10549_v5  ;;  %8946 = vmatprep.subr.bf16.mxu0 %v10556_v20  ;;  %v9263_v49 = vcombine.low %v11321_v33, %v11325_v42  ;;  %v10338_v5 = vcombine.high %v7312_v22, %v7316_v23  ;;  %v7320_v20 = vld [vmem:[#allocation23 + $0x98] sm:$0xff]  ;;  %v10344_v36 = vcombine.high %v7319_v29, %v7323_v30 }
 0x7ad   :  { %9028 = vmatprep.subr.bf16.mxu1 %v10558_v35  ;;  %v9264_v14 = vcombine.low %v11323_v38, %v11327_v45  ;;  %v7324_v33 = vld [vmem:[#allocation23 + $0xb8] sm:$0xff]  ;;  %v10337_v35 = vcombine.low %v7312_v22, %v7316_v23  ;;  %v7327_v38 = vld [vmem:[#allocation23 + $0xd0] sm:$0xff] }
 0x7ae   :  { %v9271_v48 = vrot.slane %v9263_v49, %v12277_v40  ;;  %v10346_v44 = vcombine.high %v7320_v20, %v7324_v33  ;;  %v7332_v42 = vld [vmem:[#allocation23 + $0xf8] sm:$0xff]  ;;  %v10345_v45 = vcombine.low %v7320_v20, %v7324_v33  ;;  %v7335_v49 = vld [vmem:[#allocation23 + $0x110] sm:$0xff] }
 0x7af   :  { %8947 = vmatpush1.bf16.msra.mxu0 %v10555_v43  ;;  %v9278_v58 = vrot.slane %v9264_v14, %v12277_v40  ;;  %v10343_v43 = vcombine.low %v7319_v29, %v7323_v30  ;;  %v10353_v52 = vcombine.low %v7328_v39, %v7332_v42  ;;  %v10360_v6 = vcombine.high %v7335_v49, %v7339_v37  ;;  %v7368_v29 = vld [vmem:[#allocation23 + $0x218] sm:$0xff] }
 0x7b0   :  { %9029 = vmatpush1.bf16.msra.mxu1 %v10557_v46  ;;  %8948 = vmatprep.subr.bf16.mxu0 %v10564_v47  ;;  %v10352_v46 = vcombine.high %v7327_v38, %v7331_v24  ;;  %v10354_v47 = vcombine.high %v7328_v39, %v7332_v42  ;;  %v7372_v30 = vld [vmem:[#allocation23 + $0x238] sm:$0xff] }
 0x7b1   :  { %9030 = vmatprep.subr.bf16.mxu1 %v10566_v11  ;;  %v9279_v8 = vcombine.low %v9271_v48, %v9278_v58  ;;  %v7340_v11 = vld [vmem:[#allocation23 + $0x138] sm:$0xff]  ;;  %v10359_v58 = vcombine.low %v7335_v49, %v7339_v37  ;;  %v10393_v39 = vcombine.low %v7368_v29, %v7372_v30 }
 0x7b2   :  { %v10362_v14 = vcombine.high %v7336_v50, %v7340_v11  ;;  %v7344_v48 = vld [vmem:[#allocation23 + $0x158] sm:$0xff] }
 0x7b3   :  { %8949 = vmatpush1.bf16.msra.mxu0 %v10563_v57  ;;  %9299 = vst [vmem:[#allocation25] sm:$0xff] %v9279_v8  ;;  %v7348_v57 = vld [vmem:[#allocation23 + $0x178] sm:$0xff] }
 0x7b4   :  { %9031 = vmatpush1.bf16.msra.mxu1 %v10565_v60  ;;  %8950 = vmatprep.subr.bf16.mxu0 %v10572_v12  ;;  %v10361_v60 = vcombine.low %v7336_v50, %v7340_v11  ;;  %v10368_v12 = vcombine.high %v7343_v31, %v7347_v56  ;;  %v10370_v16 = vcombine.high %v7344_v48, %v7348_v57  ;;  %v7356_v8 = vld [vmem:[#allocation23 + $0x1b8] sm:$0xff] }
 0x7b5   :  { %9032 = vmatprep.subr.bf16.mxu1 %v10574_v7  ;;  %v7351_v7 = vld [vmem:[#allocation23 + $0x190] sm:$0xff]  ;;  %v10369_v62 = vcombine.low %v7344_v48, %v7348_v57  ;;  %v7388_v49 = vld [vmem:[#allocation23 + $0x2b8] sm:$0xff] }
 0x7b6   :  { %v10375_v9 = vcombine.low %v7351_v7, %v7355_v61  ;;  %v7396_v31 = vld [vmem:[#allocation23 + $0x2f8] sm:$0xff] }
 0x7b7   :  { %8951 = vmatpush1.bf16.msra.mxu0 %v10571_v63  ;;  %v10376_v63 = vcombine.high %v7351_v7, %v7355_v61  ;;  %v7404_v7 = vld [vmem:[#allocation23 + $0x338] sm:$0xff] }
 0x7b8   :  { %9033 = vmatpush1.bf16.msra.mxu1 %v10573_v0  ;;  %9043 = vmatprep.subr.bf16.mxu0 %v10328_v1  ;;  %v10378_v0 = vcombine.high %v7352_v54, %v7356_v8  ;;  %v7359_v1 = vld [vmem:[#allocation23 + $0x1d0] sm:$0xff] }
 0x7b9   :  { %9125 = vmatprep.subr.bf16.mxu1 %v10330_v4  ;;  %v7360_v4 = vld [vmem:[#allocation23 + $0x1d8] sm:$0xff]  ;;  %v10384_v22 = vcombine.high %v7359_v1, %v7363_v2 }
 0x7ba   :  { %8953 = vmatmul.mubr.bf16.vlgmr.msra.gmra.mrb[32].mxu0 %v12284_v25  ;;  %v10386_v23 = vcombine.high %v7360_v4, %v7364_v53  ;;  %v10385_v20 = vcombine.low %v7360_v4, %v7364_v53 }
 0x7bb   :  { %9035 = vmatmul.mubr.bf16.vlgmr.msra.gmra.mrb[32].mxu1 %v12284_v25  ;;  %9044 = vmatpush1.bf16.msra.mxu0 %v10327_v10  ;;  %v10377_v10 = vcombine.low %v7352_v54, %v7356_v8 }
 0x7bc   :  { %9075 = vmatprep.mubr.bf16.mxu0 %v12228_v3  ;;  %9126 = vmatpush1.bf16.msra.mxu1 %v10329_v26  ;;  %v7367_v26 = vld [vmem:[#allocation23 + $0x210] sm:$0xff] }
 0x7bd   :  { %9157 = vmatprep.mubr.bf16.mxu1 %v12228_v3  ;;  %9045 = vmatprep.subr.bf16.mxu0 %v10336_v27  ;;  %v10351_v3 = vcombine.low %v7327_v38, %v7331_v24  ;;  %v7371_v27 = vld [vmem:[#allocation23 + $0x230] sm:$0xff]  ;;  %v7380_v38 = vld [vmem:[#allocation23 + $0x278] sm:$0xff] }
 0x7be   :  { %9127 = vmatprep.subr.bf16.mxu1 %v10338_v5  ;;  %v10383_v5 = vcombine.low %v7359_v1, %v7363_v2  ;;  %v10392_v33 = vcombine.high %v7367_v26, %v7371_v27  ;;  %v10391_v24 = vcombine.low %v7367_v26, %v7371_v27  ;;  %v7412_v1 = vld [vmem:[#allocation23 + $0x378] sm:$0xff] }
 0x7bf   :  { %9046 = vmatpush1.bf16.msra.mxu0 %v10335_v34  ;;  %v10394_v34 = vcombine.high %v7368_v29, %v7372_v30  ;;  %v7420_v26 = vld [vmem:[#allocation23 + $0x3b8] sm:$0xff] }
 0x7c0   :  { %9128 = vmatpush1.bf16.msra.mxu1 %v10337_v35  ;;  %9047 = vmatprep.subr.bf16.mxu0 %v10344_v36  ;;  %v7375_v35 = vld [vmem:[#allocation23 + $0x250] sm:$0xff] }
 0x7c1   :  { %9129 = vmatprep.subr.bf16.mxu1 %v10346_v44  ;;  %v7379_v36 = vld [vmem:[#allocation23 + $0x270] sm:$0xff]  ;;  %v7376_v44 = vld [vmem:[#allocation23 + $0x258] sm:$0xff] }
 0x7c2   :  { %v10400_v42 = vcombine.high %v7375_v35, %v7379_v36  ;;  %v10399_v37 = vcombine.low %v7375_v35, %v7379_v36  ;;  %v10401_v50 = vcombine.low %v7376_v44, %v7380_v38  ;;  %v7428_v35 = vld [vmem:[#allocation23 + $0x3f8] sm:$0xff] }
 0x7c3   :  { %9048 = vmatpush1.bf16.msra.mxu0 %v10343_v43  ;;  %v10402_v43 = vcombine.high %v7376_v44, %v7380_v38 }
 0x7c4   :  { %9130 = vmatpush1.bf16.msra.mxu1 %v10345_v45  ;;  %9049 = vmatprep.subr.bf16.mxu0 %v10352_v46  ;;  %v7383_v45 = vld [vmem:[#allocation23 + $0x290] sm:$0xff] }
 0x7c5   :  { %9131 = vmatprep.subr.bf16.mxu1 %v10354_v47  ;;  %v7387_v46 = vld [vmem:[#allocation23 + $0x2b0] sm:$0xff]  ;;  %v7384_v47 = vld [vmem:[#allocation23 + $0x298] sm:$0xff] }
 0x7c6   :  { %v10408_v11 = vcombine.high %v7383_v45, %v7387_v46  ;;  %v10407_v56 = vcombine.low %v7383_v45, %v7387_v46  ;;  %v10409_v48 = vcombine.low %v7384_v47, %v7388_v49  ;;  %v7436_v45 = vld [vmem:[#allocation23 + $0x438] sm:$0xff] }
 0x7c7   :  { %9050 = vmatpush1.bf16.msra.mxu0 %v10351_v3  ;;  %v10410_v3 = vcombine.high %v7384_v47, %v7388_v49 }
 0x7c8   :  { %9132 = vmatpush1.bf16.msra.mxu1 %v10353_v52  ;;  %9051 = vmatprep.subr.bf16.mxu0 %v10360_v6  ;;  %v7391_v52 = vld [vmem:[#allocation23 + $0x2d0] sm:$0xff] }
 0x7c9   :  { %9133 = vmatprep.subr.bf16.mxu1 %v10362_v14  ;;  %v7395_v6 = vld [vmem:[#allocation23 + $0x2f0] sm:$0xff]  ;;  %v7392_v14 = vld [vmem:[#allocation23 + $0x2d8] sm:$0xff] }
 0x7ca   :  { %v10416_v57 = vcombine.high %v7391_v52, %v7395_v6  ;;  %v10415_v61 = vcombine.low %v7391_v52, %v7395_v6  ;;  %v10417_v54 = vcombine.low %v7392_v14, %v7396_v31  ;;  %v7440_v52 = vld [vmem:[#allocation23 + $0x458] sm:$0xff] }
 0x7cb   :  { %9052 = vmatpush1.bf16.msra.mxu0 %v10359_v58  ;;  %v10418_v58 = vcombine.high %v7392_v14, %v7396_v31  ;;  %v7444_v6 = vld [vmem:[#allocation23 + $0x478] sm:$0xff] }
 0x7cc   :  { %9134 = vmatpush1.bf16.msra.mxu1 %v10361_v60  ;;  %9053 = vmatprep.subr.bf16.mxu0 %v10368_v12  ;;  %v7399_v60 = vld [vmem:[#allocation23 + $0x310] sm:$0xff] }
 0x7cd   :  { %9135 = vmatprep.subr.bf16.mxu1 %v10370_v16  ;;  %v7403_v12 = vld [vmem:[#allocation23 + $0x330] sm:$0xff]  ;;  %v7400_v16 = vld [vmem:[#allocation23 + $0x318] sm:$0xff] }
 0x7ce   :  { %v10424_v8 = vcombine.high %v7399_v60, %v7403_v12  ;;  %v10423_v2 = vcombine.low %v7399_v60, %v7403_v12  ;;  %v10425_v4 = vcombine.low %v7400_v16, %v7404_v7  ;;  %v7452_v60 = vld [vmem:[#allocation23 + $0x4b8] sm:$0xff] }
 0x7cf   :  { %9054 = vmatpush1.bf16.msra.mxu0 %v10367_v18  ;;  %v10426_v18 = vcombine.high %v7400_v16, %v7404_v7  ;;  %v10465_v16 = vcombine.low %v7440_v52, %v7444_v6 }
 0x7d0   :  { %9136 = vmatpush1.bf16.msra.mxu1 %v10369_v62  ;;  %9055 = vmatprep.subr.bf16.mxu0 %v10376_v63  ;;  %v7407_v62 = vld [vmem:[#allocation23 + $0x350] sm:$0xff] }
 0x7d1   :  { %9137 = vmatprep.subr.bf16.mxu1 %v10378_v0  ;;  %v7411_v63 = vld [vmem:[#allocation23 + $0x370] sm:$0xff]  ;;  %v7408_v0 = vld [vmem:[#allocation23 + $0x358] sm:$0xff] }
 0x7d2   :  { %v10432_v53 = vcombine.high %v7407_v62, %v7411_v63  ;;  %v10431_v27 = vcombine.low %v7407_v62, %v7411_v63  ;;  %v10433_v29 = vcombine.low %v7408_v0, %v7412_v1  ;;  %v7460_v62 = vld [vmem:[#allocation23 + $0x4f8] sm:$0xff] }
 0x7d3   :  { %9056 = vmatpush1.bf16.msra.mxu0 %v10375_v9  ;;  %v10434_v9 = vcombine.high %v7408_v0, %v7412_v1 }
 0x7d4   :  { %9138 = vmatpush1.bf16.msra.mxu1 %v10377_v10  ;;  %9057 = vmatprep.subr.bf16.mxu0 %v10384_v22  ;;  %v7415_v10 = vld [vmem:[#allocation23 + $0x390] sm:$0xff] }
 0x7d5   :  { %9139 = vmatprep.subr.bf16.mxu1 %v10386_v23  ;;  %v7419_v22 = vld [vmem:[#allocation23 + $0x3b0] sm:$0xff]  ;;  %v7416_v23 = vld [vmem:[#allocation23 + $0x398] sm:$0xff] }
 0x7d6   :  { %v10440_v30 = vcombine.high %v7415_v10, %v7419_v22  ;;  %v10439_v36 = vcombine.low %v7415_v10, %v7419_v22  ;;  %v10441_v44 = vcombine.low %v7416_v23, %v7420_v26 }
 0x7d7   :  { %9058 = vmatpush1.bf16.msra.mxu0 %v10383_v5  ;;  %v10442_v5 = vcombine.high %v7416_v23, %v7420_v26  ;;  %v7471_v26 = vld [vmem:[#allocation23 + $0x550] sm:$0xff] }
 0x7d8   :  { %9140 = vmatpush1.bf16.msra.mxu1 %v10385_v20  ;;  %9059 = vmatprep.subr.bf16.mxu0 %v10392_v33  ;;  %v7423_v20 = vld [vmem:[#allocation23 + $0x3d0] sm:$0xff] }
 0x7d9   :  { %9141 = vmatprep.subr.bf16.mxu1 %v10394_v34  ;;  %v7427_v33 = vld [vmem:[#allocation23 + $0x3f0] sm:$0xff]  ;;  %v7424_v34 = vld [vmem:[#allocation23 + $0x3d8] sm:$0xff] }
 0x7da   :  { %v10448_v38 = vcombine.high %v7423_v20, %v7427_v33  ;;  %v10447_v46 = vcombine.low %v7423_v20, %v7427_v33  ;;  %v10449_v47 = vcombine.low %v7424_v34, %v7428_v35 }
 0x7db   :  { %9060 = vmatpush1.bf16.msra.mxu0 %v10391_v24  ;;  %v10450_v24 = vcombine.high %v7424_v34, %v7428_v35  ;;  %v7479_v35 = vld [vmem:[#allocation23 + $0x590] sm:$0xff] }
 0x7dc   :  { %9142 = vmatpush1.bf16.msra.mxu1 %v10393_v39  ;;  %9061 = vmatprep.subr.bf16.mxu0 %v10400_v42  ;;  %v7431_v39 = vld [vmem:[#allocation23 + $0x410] sm:$0xff] }
 0x7dd   :  { %9143 = vmatprep.subr.bf16.mxu1 %v10402_v43  ;;  %v7435_v42 = vld [vmem:[#allocation23 + $0x430] sm:$0xff]  ;;  %v7432_v43 = vld [vmem:[#allocation23 + $0x418] sm:$0xff] }
 0x7de   :  { %v10456_v49 = vcombine.high %v7431_v39, %v7435_v42  ;;  %v10457_v14 = vcombine.low %v7432_v43, %v7436_v45 }
 0x7df   :  { %9062 = vmatpush1.bf16.msra.mxu0 %v10399_v37  ;;  %v10458_v37 = vcombine.high %v7432_v43, %v7436_v45  ;;  %v5684_v45 = vrot.slane %v12261_v32, %v12238_v59 }
 0x7e0   :  { %9144 = vmatpush1.bf16.msra.mxu1 %v10401_v50  ;;  %9063 = vmatprep.subr.bf16.mxu0 %v10408_v11  ;;  %v7439_v50 = vld [vmem:[#allocation23 + $0x450] sm:$0xff] }
 0x7e1   :  { %9145 = vmatprep.subr.bf16.mxu1 %v10410_v3  ;;  %v7443_v11 = vld [vmem:[#allocation23 + $0x470] sm:$0xff]  ;;  %v10455_v3 = vcombine.low %v7431_v39, %v7435_v42  ;;  %v5680_v39 = vrot.slane %v12261_v32, %v12272_v28  ;;  %v5676_v42 = vrot.slane %v12261_v32, %v12211_v41 }
 0x7e2   :  { %v10464_v31 = vcombine.high %v7439_v50, %v7443_v11  ;;  %v10463_v12 = vcombine.low %v7439_v50, %v7443_v11  ;;  %v7487_v50 = vld [vmem:[#allocation23 + $0x5d0] sm:$0xff] }
 0x7e3   :  { %9064 = vmatpush1.bf16.msra.mxu0 %v10407_v56  ;;  %v7447_v56 = vld [vmem:[#allocation23 + $0x490] sm:$0xff] }
 0x7e4   :  { %9146 = vmatpush1.bf16.msra.mxu1 %v10409_v48  ;;  %9065 = vmatprep.subr.bf16.mxu0 %v10416_v57  ;;  %v7451_v48 = vld [vmem:[#allocation23 + $0x4b0] sm:$0xff]  ;;  %v10466_v57 = vcombine.high %v7440_v52, %v7444_v6 }
 0x7e5   :  { %9147 = vmatprep.subr.bf16.mxu1 %v10418_v58  ;;  %v7448_v58 = vld [vmem:[#allocation23 + $0x498] sm:$0xff]  ;;  %v10472_v7 = vcombine.high %v7447_v56, %v7451_v48  ;;  %v10471_v63 = vcombine.low %v7447_v56, %v7451_v48  ;;  %v7491_v11 = vld [vmem:[#allocation23 + $0x5f0] sm:$0xff] }
 0x7e7   :  { %9066 = vmatpush1.bf16.msra.mxu0 %v10415_v61  ;;  %v10474_v61 = vcombine.high %v7448_v58, %v7452_v60 }
 0x7e8   :  { %9148 = vmatpush1.bf16.msra.mxu1 %v10417_v54  ;;  %9067 = vmatprep.subr.bf16.mxu0 %v10424_v8  ;;  %v7455_v54 = vld [vmem:[#allocation23 + $0x4d0] sm:$0xff] }
 0x7e9   :  { %9149 = vmatprep.subr.bf16.mxu1 %v10426_v18  ;;  %v7459_v8 = vld [vmem:[#allocation23 + $0x4f0] sm:$0xff]  ;;  %v7456_v18 = vld [vmem:[#allocation23 + $0x4d8] sm:$0xff] }
 0x7ea   :  { %v10480_v0 = vcombine.high %v7455_v54, %v7459_v8  ;;  %v10482_v1 = vcombine.high %v7456_v18, %v7460_v62  ;;  %v10481_v10 = vcombine.low %v7456_v18, %v7460_v62 }
 0x7eb   :  { %9068 = vmatpush1.bf16.msra.mxu0 %v10423_v2  ;;  %v7463_v2 = vld [vmem:[#allocation23 + $0x510] sm:$0xff] }
 0x7ec   :  { %9150 = vmatpush1.bf16.msra.mxu1 %v10425_v4  ;;  %9069 = vmatprep.subr.bf16.mxu0 %v10432_v53  ;;  %v7467_v4 = vld [vmem:[#allocation23 + $0x530] sm:$0xff]  ;;  %v7464_v53 = vld [vmem:[#allocation23 + $0x518] sm:$0xff] }
 0x7ed   :  { %9151 = vmatprep.subr.bf16.mxu1 %v10434_v9  ;;  %v7468_v9 = vld [vmem:[#allocation23 + $0x538] sm:$0xff]  ;;  %v10488_v22 = vcombine.high %v7463_v2, %v7467_v4 }
 0x7ee   :  { %v10490_v23 = vcombine.high %v7464_v53, %v7468_v9  ;;  %v10489_v20 = vcombine.low %v7464_v53, %v7468_v9  ;;  %v10511_v53 = vcombine.low %v7487_v50, %v7491_v11 }
 0x7ef   :  { %9070 = vmatpush1.bf16.msra.mxu0 %v10431_v27  ;;  %v7475_v27 = vld [vmem:[#allocation23 + $0x570] sm:$0xff] }
 0x7f0   :  { %9152 = vmatpush1.bf16.msra.mxu1 %v10433_v29  ;;  %9071 = vmatprep.subr.bf16.mxu0 %v10440_v30  ;;  %v7472_v29 = vld [vmem:[#allocation23 + $0x558] sm:$0xff]  ;;  %v10496_v33 = vcombine.high %v7471_v26, %v7475_v27  ;;  %v10495_v43 = vcombine.low %v7471_v26, %v7475_v27 }
 0x7f1   :  { %9153 = vmatprep.subr.bf16.mxu1 %v10442_v5  ;;  %v7476_v30 = vld [vmem:[#allocation23 + $0x578] sm:$0xff]  ;;  %v10487_v5 = vcombine.low %v7463_v2, %v7467_v4 }
 0x7f2   :  { %v10498_v34 = vcombine.high %v7472_v29, %v7476_v30  ;;  %v7496_v2 = vld [vmem:[#allocation23 + $0x618] sm:$0xff] }
 0x7f3   :  { %9072 = vmatpush1.bf16.msra.mxu0 %v10439_v36  ;;  %v7483_v36 = vld [vmem:[#allocation23 + $0x5b0] sm:$0xff]  ;;  %v7500_v4 = vld [vmem:[#allocation23 + $0x638] sm:$0xff] }
 0x7f4   :  { %9154 = vmatpush1.bf16.msra.mxu1 %v10441_v44  ;;  %9073 = vmatprep.subr.bf16.mxu0 %v10448_v38  ;;  %v5672_v44 = vrot.slane %v12261_v32, %v12235_v55  ;;  %v7480_v38 = vld [vmem:[#allocation23 + $0x598] sm:$0xff] }
 0x7f5   :  { %9155 = vmatprep.subr.bf16.mxu1 %v10450_v24  ;;  %v7484_v24 = vld [vmem:[#allocation23 + $0x5b8] sm:$0xff] }
 0x7f6   :  { %v7504_v26 = vld [vmem:[#allocation23 + $0x658] sm:$0xff] }
 0x7f7   :  { %9074 = vmatpush1.bf16.msra.mxu0 %v10447_v46  ;;  %v10497_v46 = vcombine.low %v7472_v29, %v7476_v30  ;;  %v7508_v27 = vld [vmem:[#allocation23 + $0x678] sm:$0xff]  ;;  %v10521_v30 = vcombine.low %v7496_v2, %v7500_v4 }
 0x7f8   :  { %9156 = vmatpush1.bf16.msra.mxu1 %v10449_v47  ;;  %9084 = vmatprep.subr.bf16.mxu0 %v10456_v49  ;;  %v10504_v47 = vcombine.high %v7479_v35, %v7483_v36 }
 0x7f9   :  { %9166 = vmatprep.subr.bf16.mxu1 %v10458_v37  ;;  %v10506_v37 = vcombine.high %v7480_v38, %v7484_v24 }
 0x7fa   :  { %9076 = vmatmul.mubr.bf16.vlgmr.msra.gmra.mrb[36].mxu0 %v12250_v51 }
 0x7fb   :  { %9158 = vmatmul.mubr.bf16.vlgmr.msra.gmra.mrb[36].mxu1 %v12250_v51  ;;  %9085 = vmatpush1.bf16.msra.mxu0 %v10455_v3  ;;  %v10473_v51 = vcombine.low %v7448_v58, %v7452_v60  ;;  %v10503_v60 = vcombine.low %v7479_v35, %v7483_v36  ;;  %v7512_v35 = vld [vmem:[#allocation23 + $0x698] sm:$0xff] }
 0x7fc   :  { %9116 = vmatprep.mubr.bf16.mxu0 %v12252_v13  ;;  %9167 = vmatpush1.bf16.msra.mxu1 %v10457_v14  ;;  %v7488_v14 = vld [vmem:[#allocation23 + $0x5d8] sm:$0xff] }
 0x7fd   :  { %9198 = vmatprep.mubr.bf16.mxu1 %v12252_v13  ;;  %9086 = vmatprep.subr.bf16.mxu0 %v10464_v31  ;;  %v10479_v13 = vcombine.low %v7455_v54, %v7459_v8  ;;  %v7492_v31 = vld [vmem:[#allocation23 + $0x5f8] sm:$0xff]  ;;  %v10512_v54 = vcombine.high %v7487_v50, %v7491_v11  ;;  %v7495_v8 = vld [vmem:[#allocation23 + $0x610] sm:$0xff] }
 0x7fe   :  { %9168 = vmatprep.subr.bf16.mxu1 %v10466_v57  ;;  %v10513_v9 = vcombine.low %v7488_v14, %v7492_v31  ;;  %v7516_v36 = vld [vmem:[#allocation23 + $0x6b8] sm:$0xff] }
 0x7ff   :  { %9087 = vmatpush1.bf16.msra.mxu0 %v10463_v12  ;;  %v7520_v50 = vld [vmem:[#allocation23 + $0x6d8] sm:$0xff] }
 0x800   :  { %9169 = vmatpush1.bf16.msra.mxu1 %v10465_v16  ;;  %9088 = vmatprep.subr.bf16.mxu0 %v10472_v7  ;;  %v7524_v11 = vld [vmem:[#allocation23 + $0x6f8] sm:$0xff] }
 0x801   :  { %9170 = vmatprep.subr.bf16.mxu1 %v10474_v61  ;;  %v10505_v61 = vcombine.low %v7480_v38, %v7484_v24  ;;  %v10529_v24 = vcombine.low %v7504_v26, %v7508_v27 }
 0x803   :  { %9089 = vmatpush1.bf16.msra.mxu0 %v10471_v63 }
 0x804   :  { %9171 = vmatpush1.bf16.msra.mxu1 %v10473_v51  ;;  %9090 = vmatprep.subr.bf16.mxu0 %v10480_v0  ;;  %v10514_v51 = vcombine.high %v7488_v14, %v7492_v31  ;;  %v7499_v0 = vld [vmem:[#allocation23 + $0x630] sm:$0xff]  ;;  %v10537_v31 = vcombine.low %v7512_v35, %v7516_v36 }
 0x805   :  { %9172 = vmatprep.subr.bf16.mxu1 %v10482_v1  ;;  %v10519_v29 = vcombine.low %v7495_v8, %v7499_v0 }
 0x807   :  { %9091 = vmatpush1.bf16.msra.mxu0 %v10479_v13  ;;  %v10520_v13 = vcombine.high %v7495_v8, %v7499_v0  ;;  %v7539_v8 = vld [vmem:[#allocation23 + $0x770] sm:$0xff] }
 0x808   :  { %9173 = vmatpush1.bf16.msra.mxu1 %v10481_v10  ;;  %9092 = vmatprep.subr.bf16.mxu0 %v10488_v22  ;;  %v10522_v10 = vcombine.high %v7496_v2, %v7500_v4  ;;  %v7503_v22 = vld [vmem:[#allocation23 + $0x650] sm:$0xff] }
 0x809   :  { %9174 = vmatprep.subr.bf16.mxu1 %v10490_v23  ;;  %v7507_v23 = vld [vmem:[#allocation23 + $0x670] sm:$0xff] }
 0x80a   :  { %v7543_v4 = vld [vmem:[#allocation23 + $0x790] sm:$0xff] }
 0x80b   :  { %9093 = vmatpush1.bf16.msra.mxu0 %v10487_v5  ;;  %v10528_v5 = vcombine.high %v7503_v22, %v7507_v23 }
 0x80c   :  { %9175 = vmatpush1.bf16.msra.mxu1 %v10489_v20  ;;  %9094 = vmatprep.subr.bf16.mxu0 %v10496_v33  ;;  %v10530_v20 = vcombine.high %v7504_v26, %v7508_v27  ;;  %v7511_v33 = vld [vmem:[#allocation23 + $0x690] sm:$0xff] }
 0x80d   :  { %v7212_v49 = vpop.f32.mrb[28].mxu0  ;;  %9176 = vmatprep.subr.bf16.mxu1 %v10498_v34  ;;  %v7515_v34 = vld [vmem:[#allocation23 + $0x6b0] sm:$0xff] }
 0x80e   :  { %v10619_v3 = vadd.f32 %v7212_v49, %v5672_v44  ;;  %v7294_v52 = vpop.f32.mrb[28].mxu1  ;;  %v7214_v6 = vpop.f32.mrb[29].mxu0  ;;  %v10527_v44 = vcombine.low %v7503_v22, %v7507_v23 }
 0x80f   :  { %v10621_v56 = vadd.f32 %v7294_v52, %v5680_v39  ;;  %v10620_v48 = vadd.f32 %v7214_v6, %v5676_v42  ;;  %v7296_v57 = vpop.f32.mrb[29].mxu1  ;;  %v7216_v58 = vpop.f32.mrb[30].mxu0  ;;  %9095 = vmatpush1.bf16.msra.mxu0 %v10495_v43  ;;  %v10536_v39 = vcombine.high %v7511_v33, %v7515_v34  ;;  %v10535_v6 = vcombine.low %v7511_v33, %v7515_v34  ;;  %v7555_v33 = vld [vmem:[#allocation23 + $0x7f0] sm:$0xff] }
 0x810   :  { %v10583_v32 = vmul.f32 -1.442695, %v10619_v3  ;;  %v10622_v12 = vadd.f32 %v7296_v57, %v5684_v45  ;;  %v7298_v16 = vpop.f32.mrb[30].mxu1  ;;  %9177 = vmatpush1.bf16.msra.mxu1 %v10497_v46  ;;  %v7217_v7 = vpop.f32.mrb[31].mxu0  ;;  %9096 = vmatprep.subr.bf16.mxu0 %v10504_v47  ;;  %v10538_v45 = vcombine.high %v7512_v35, %v7516_v36  ;;  %v7519_v46 = vld [vmem:[#allocation23 + $0x6d0] sm:$0xff]  ;;  %v7552_v35 = vld [vmem:[#allocation23 + $0x7d8] sm:$0xff] }
 0x811   :  { %v10585_v18 = vmul.f32 -1.442695, %v10621_v56  ;;  %v10584_v62 = vmul.f32 -1.442695, %v10620_v48  ;;  %v7299_v63 = vpop.f32.mrb[31].mxu1  ;;  %9178 = vmatprep.subr.bf16.mxu1 %v10506_v37  ;;  %v7523_v47 = vld [vmem:[#allocation23 + $0x6f0] sm:$0xff]  ;;  %v10546_v48 = vcombine.high %v7520_v50, %v7524_v11  ;;  %v10545_v16 = vcombine.low %v7520_v50, %v7524_v11 }
 0x812   :  { %11328 = vpow2.f32 %v10583_v32  ;;  %v10586_v1 = vmul.f32 -1.442695, %v10622_v12  ;;  %v10544_v56 = vcombine.high %v7519_v46, %v7523_v47  ;;  %v7527_v57 = vld [vmem:[#allocation23 + $0x710] sm:$0xff]  ;;  %v7532_v32 = vld [vmem:[#allocation23 + $0x738] sm:$0xff]  ;;  %v10543_v12 = vcombine.low %v7519_v46, %v7523_v47 }
 0x813   :  { %11330 = vpow2.f32 %v10585_v18  ;;  %9097 = vmatpush1.bf16.msra.mxu0 %v10503_v60  ;;  %v7531_v58 = vld [vmem:[#allocation23 + $0x730] sm:$0xff]  ;;  %v7528_v60 = vld [vmem:[#allocation23 + $0x718] sm:$0xff] }
 0x814   :  { %11332 = vpow2.f32 %v10584_v62  ;;  %9179 = vmatpush1.bf16.msra.mxu1 %v10505_v61  ;;  %9098 = vmatprep.subr.bf16.mxu0 %v10512_v54  ;;  %v10552_v7 = vcombine.high %v7527_v57, %v7531_v58  ;;  %v10554_v61 = vcombine.high %v7528_v60, %v7532_v32  ;;  %v7535_v54 = vld [vmem:[#allocation23 + $0x750] sm:$0xff]  ;;  %v7536_v18 = vld [vmem:[#allocation23 + $0x758] sm:$0xff]  ;;  %v10551_v63 = vcombine.low %v7527_v57, %v7531_v58 }
 0x815   :  { %11334 = vpow2.f32 %v10586_v1  ;;  %9180 = vmatprep.subr.bf16.mxu1 %v10514_v51  ;;  %v7540_v62 = vld [vmem:[#allocation23 + $0x778] sm:$0xff]  ;;  %v10553_v51 = vcombine.low %v7528_v60, %v7532_v32  ;;  %v10560_v0 = vcombine.high %v7535_v54, %v7539_v8  ;;  %v10559_v23 = vcombine.low %v7535_v54, %v7539_v8 }
 0x816   :  { %v10562_v2 = vcombine.high %v7536_v18, %v7540_v62  ;;  %v10561_v27 = vcombine.low %v7536_v18, %v7540_v62  ;;  %v7556_v36 = vld [vmem:[#allocation23 + $0x7f8] sm:$0xff] }
 0x817   :  { %9099 = vmatpush1.bf16.msra.mxu0 %v10511_v53  ;;  %v7547_v53 = vld [vmem:[#allocation23 + $0x7b0] sm:$0xff]  ;;  %v10577_v47 = vcombine.low %v7552_v35, %v7556_v36 }
 0x818   :  { %9181 = vmatpush1.bf16.msra.mxu1 %v10513_v9  ;;  %9100 = vmatprep.subr.bf16.mxu0 %v10520_v13  ;;  %v7544_v13 = vld [vmem:[#allocation23 + $0x798] sm:$0xff] }
 0x819   :  { %9182 = vmatprep.subr.bf16.mxu1 %v10522_v10  ;;  %v7548_v10 = vld [vmem:[#allocation23 + $0x7b8] sm:$0xff] }
 0x81b   :  { %9101 = vmatpush1.bf16.msra.mxu0 %v10519_v29  ;;  %v10568_v29 = vcombine.high %v7543_v4, %v7547_v53 }
 0x81c   :  { %v11329_v38 = vpop.eup %11328  ;;  %9183 = vmatpush1.bf16.msra.mxu1 %v10521_v30  ;;  %9102 = vmatprep.subr.bf16.mxu0 %v10528_v5  ;;  %v10570_v5 = vcombine.high %v7544_v13, %v7548_v10 }
 0x81d   :  { %v11331_v42 = vpop.eup %11330  ;;  %v9235_v43 = vadd.f32 1.0, %v11329_v38  ;;  %9184 = vmatprep.subr.bf16.mxu1 %v10530_v20  ;;  %v7551_v20 = vld [vmem:[#allocation23 + $0x7d0] sm:$0xff]  ;;  %v10567_v38 = vcombine.low %v7543_v4, %v7547_v53 }
 0x81e   :  { %v11333_v49 = vpop.eup %11332  ;;  %v9237_v37 = vadd.f32 1.0, %v11331_v42  ;;  %v10576_v42 = vcombine.high %v7551_v20, %v7555_v33  ;;  %v10575_v46 = vcombine.low %v7551_v20, %v7555_v33 }
 0x81f   :  { %v11335_v3 = vpop.eup %11334  ;;  %11336 = vrcp.f32 %v9235_v43  ;;  %v9236_v52 = vadd.f32 1.0, %v11333_v49  ;;  %9103 = vmatpush1.bf16.msra.mxu0 %v10527_v44  ;;  %v10578_v43 = vcombine.high %v7552_v35, %v7556_v36  ;;  %v7557_v49 = vld [vmem:[%s12374_s23] sm:$0xff] }
 0x820   :  { %11338 = vrcp.f32 %v9237_v37  ;;  %v9238_v14 = vadd.f32 1.0, %v11335_v3  ;;  %9185 = vmatpush1.bf16.msra.mxu1 %v10529_v24  ;;  %9104 = vmatprep.subr.bf16.mxu0 %v10536_v39  ;;  %v10569_v39 = vcombine.low %v7544_v13, %v7548_v10  ;;  %v7562_v37 = vrot.slane %v7557_v49, %v12058_v15 }
 0x821   :  { %11340 = vrcp.f32 %v9236_v52  ;;  %9186 = vmatprep.subr.bf16.mxu1 %v10538_v45  ;;  %v7570_v50 = vrot.slane %v7557_v49, %v12064_v19  ;;  %v7566_v11 = vrot.slane %v7557_v49, %v12061_v17  ;;  %v7574_v3 = vrot.slane %v7557_v49, %v12068_v21 }
 0x822   :  { %11342 = vrcp.f32 %v9238_v14 }
 0x823   :  { %9105 = vmatpush1.bf16.msra.mxu0 %v10535_v6 }
 0x824   :  { %9187 = vmatpush1.bf16.msra.mxu1 %v10537_v31  ;;  %9106 = vmatprep.subr.bf16.mxu0 %v10544_v56 }
 0x825   :  { %9188 = vmatprep.subr.bf16.mxu1 %v10546_v48 }
 0x827   :  { %9107 = vmatpush1.bf16.msra.mxu0 %v10543_v12 }
 0x828   :  { %9189 = vmatpush1.bf16.msra.mxu1 %v10545_v16  ;;  %9108 = vmatprep.subr.bf16.mxu0 %v10552_v7 }
 0x829   :  { %v11337_v1 = vpop.eup %11336  ;;  %9190 = vmatprep.subr.bf16.mxu1 %v10554_v61 }
 0x82a   :  { %v11339_v9 = vpop.eup %11338 }
 0x82b   :  { %v11341_v22 = vpop.eup %11340  ;;  %9109 = vmatpush1.bf16.msra.mxu0 %v10551_v63 }
 0x82c   :  { %v11343_v26 = vpop.eup %11342  ;;  %9191 = vmatpush1.bf16.msra.mxu1 %v10553_v51  ;;  %9110 = vmatprep.subr.bf16.mxu0 %v10560_v0  ;;  %v9280_v30 = vcombine.low %v11337_v1, %v11341_v22  ;;  %v7578_v22 = vrot.slane %v7557_v49, %v12235_v55 }
 0x82d   :  { %9192 = vmatprep.subr.bf16.mxu1 %v10562_v2  ;;  %v9281_v34 = vcombine.low %v11339_v9, %v11343_v26  ;;  %v7582_v26 = vrot.slane %v7557_v49, %v12211_v41 }
 0x82e   :  { %v9288_v44 = vrot.slane %v9280_v30, %v12277_v40 }
 0x82f   :  { %9111 = vmatpush1.bf16.msra.mxu0 %v10559_v23  ;;  %v9295_v24 = vrot.slane %v9281_v34, %v12277_v40  ;;  %v7586_v23 = vrot.slane %v7557_v49, %v12272_v28 }
 0x830   :  { %9193 = vmatpush1.bf16.msra.mxu1 %v10561_v27  ;;  %9112 = vmatprep.subr.bf16.mxu0 %v10568_v29  ;;  %v7590_v27 = vrot.slane %v7557_v49, %v12238_v59 }
 0x831   :  { %9194 = vmatprep.subr.bf16.mxu1 %v10570_v5  ;;  %v9296_v45 = vcombine.low %v9288_v44, %v9295_v24 }
 0x833   :  { %9113 = vmatpush1.bf16.msra.mxu0 %v10567_v38  ;;  %9300 = vst [vmem:[#allocation25 + $0x8] sm:$0xff] %v9296_v45 }
 0x834   :  { %9195 = vmatpush1.bf16.msra.mxu1 %v10569_v39  ;;  %9114 = vmatprep.subr.bf16.mxu0 %v10576_v42 }
 0x835   :  { %9196 = vmatprep.subr.bf16.mxu1 %v10578_v43 }
 0x837   :  { %9115 = vmatpush1.bf16.msra.mxu0 %v10575_v46 }
 0x838   :  { %9197 = vmatpush1.bf16.msra.mxu1 %v10577_v47 }
 0x83a   :  { %9117 = vmatmul.mubr.bf16.vlgmr.msra.gmra.mrb[36].mxu0 %v12284_v25 }
 0x83b   :  { %9199 = vmatmul.mubr.bf16.vlgmr.msra.gmra.mrb[36].mxu1 %v12284_v25 }
 0x88d   :  { %v8954_v52 = vpop.f32.mrb[32].mxu0 }
 0x88e   :  { %v10623_v6 = vadd.f32 %v8954_v52, %v7562_v37  ;;  %v9036_v14 = vpop.f32.mrb[32].mxu1  ;;  %v8956_v31 = vpop.f32.mrb[33].mxu0 }
 0x88f   :  { %v10625_v56 = vadd.f32 %v9036_v14, %v7570_v50  ;;  %v10624_v48 = vadd.f32 %v8956_v31, %v7566_v11  ;;  %v9038_v57 = vpop.f32.mrb[33].mxu1  ;;  %v8958_v25 = vpop.f32.mrb[34].mxu0 }
 0x890   :  { %v10587_v58 = vmul.f32 -1.442695, %v10623_v6  ;;  %v10626_v60 = vadd.f32 %v9038_v57, %v7574_v3  ;;  %v9040_v32 = vpop.f32.mrb[34].mxu1  ;;  %v8959_v12 = vpop.f32.mrb[35].mxu0 }
 0x891   :  { %v10589_v16 = vmul.f32 -1.442695, %v10625_v56  ;;  %v10588_v15 = vmul.f32 -1.442695, %v10624_v48  ;;  %v9041_v7 = vpop.f32.mrb[35].mxu1 }
 0x892   :  { %11344 = vpow2.f32 %v10587_v58  ;;  %v10590_v19 = vmul.f32 -1.442695, %v10626_v60 }
 0x893   :  { %11346 = vpow2.f32 %v10589_v16 }
 0x894   :  { %11348 = vpow2.f32 %v10588_v15 }
 0x895   :  { %11350 = vpow2.f32 %v10590_v19 }
 0x89c   :  { %v11345_v17 = vpop.eup %11344 }
 0x89d   :  { %v11347_v21 = vpop.eup %11346  ;;  %v9325_v61 = vadd.f32 1.0, %v11345_v17 }
 0x89e   :  { %v11349_v54 = vpop.eup %11348  ;;  %v9327_v8 = vadd.f32 1.0, %v11347_v21 }
 0x89f   :  { %v11351_v18 = vpop.eup %11350  ;;  %11352 = vrcp.f32 %v9325_v61  ;;  %v9326_v62 = vadd.f32 1.0, %v11349_v54 }
 0x8a0   :  { %11354 = vrcp.f32 %v9327_v8  ;;  %v9328_v63 = vadd.f32 1.0, %v11351_v18 }
 0x8a1   :  { %11356 = vrcp.f32 %v9326_v62 }
 0x8a2   :  { %11358 = vrcp.f32 %v9328_v63 }
 0x8a9   :  { %v11353_v51 = vpop.eup %11352 }
 0x8aa   :  { %v11355_v0 = vpop.eup %11354 }
 0x8ab   :  { %v11357_v1 = vpop.eup %11356 }
 0x8ac   :  { %v11359_v2 = vpop.eup %11358  ;;  %v9357_v4 = vcombine.low %v11353_v51, %v11357_v1 }
 0x8ad   :  { %v9358_v53 = vcombine.low %v11355_v0, %v11359_v2 }
 0x8ae   :  { %v9365_v9 = vrot.slane %v9357_v4, %v12277_v40 }
 0x8af   :  { %v9372_v13 = vrot.slane %v9358_v53, %v12277_v40 }
 0x8b1   :  { %v9373_v10 = vcombine.low %v9365_v9, %v9372_v13 }
 0x8b3   :  { %9393 = vst [vmem:[#allocation25 + $0x10] sm:$0xff] %v9373_v10 }
 0x90d   :  { %v9118_v29 = vpop.f32.mrb[36].mxu0 }
 0x90e   :  { %v10627_v30 = vadd.f32 %v9118_v29, %v7578_v22  ;;  %v9200_v5 = vpop.f32.mrb[36].mxu1  ;;  %v9120_v20 = vpop.f32.mrb[37].mxu0 }
 0x90f   :  { %v10629_v33 = vadd.f32 %v9200_v5, %v7586_v23  ;;  %v10628_v34 = vadd.f32 %v9120_v20, %v7582_v26  ;;  %v9202_v35 = vpop.f32.mrb[37].mxu1  ;;  %v9122_v36 = vpop.f32.mrb[38].mxu0 }
 0x910   :  { %v10591_v44 = vmul.f32 -1.442695, %v10627_v30  ;;  %v10630_v38 = vadd.f32 %v9202_v35, %v7590_v27  ;;  %v9204_v24 = vpop.f32.mrb[38].mxu1  ;;  %v9123_v39 = vpop.f32.mrb[39].mxu0 }
 0x911   :  { %v10593_v42 = vmul.f32 -1.442695, %v10629_v33  ;;  %v10592_v55 = vmul.f32 -1.442695, %v10628_v34  ;;  %v9205_v43 = vpop.f32.mrb[39].mxu1 }
 0x912   :  { %11360 = vpow2.f32 %v10591_v44  ;;  %v10594_v28 = vmul.f32 -1.442695, %v10630_v38 }
 0x913   :  { %11362 = vpow2.f32 %v10593_v42 }
 0x914   :  { %11364 = vpow2.f32 %v10592_v55 }
 0x915   :  { %11366 = vpow2.f32 %v10594_v28 }
 0x91c   :  { %v11361_v41 = vpop.eup %11360 }
 0x91d   :  { %v11363_v59 = vpop.eup %11362  ;;  %v9329_v45 = vadd.f32 1.0, %v11361_v41 }
 0x91e   :  { %v11365_v46 = vpop.eup %11364  ;;  %v9331_v47 = vadd.f32 1.0, %v11363_v59 }
 0x91f   :  { %v11367_v49 = vpop.eup %11366  ;;  %11368 = vrcp.f32 %v9329_v45  ;;  %v9330_v37 = vadd.f32 1.0, %v11365_v46 }
 0x920   :  { %11370 = vrcp.f32 %v9331_v47  ;;  %v9332_v50 = vadd.f32 1.0, %v11367_v49 }
 0x921   :  { %11372 = vrcp.f32 %v9330_v37 }
 0x922   :  { %11374 = vrcp.f32 %v9332_v50 }
 0x929   :  { %v11369_v11 = vpop.eup %11368 }
 0x92a   :  { %v11371_v3 = vpop.eup %11370 }
 0x92b   :  { %v11373_v52 = vpop.eup %11372 }
 0x92c   :  { %v11375_v6 = vpop.eup %11374  ;;  %v9374_v14 = vcombine.low %v11369_v11, %v11373_v52 }
 0x92d   :  { %v9375_v31 = vcombine.low %v11371_v3, %v11375_v6 }
 0x92e   :  { %v9382_v56 = vrot.slane %v9374_v14, %v12277_v40 }
 0x92f   :  { %v9389_v48 = vrot.slane %v9375_v31, %v12277_v40 }
 0x931   :  { %v9390_v57 = vcombine.low %v9382_v56, %v9389_v48 }
 0x933   :  { %9394 = vst [vmem:[#allocation25 + $0x18] sm:$0xff] %v9390_v57 }
 0x934   :  { %11697 = shalt.err (!%p11694_p4)
}
 0x935   :  { %s12375_s3 = sld [smem:[#allocation42_spill]] }
 0x93b   :  { %s11698_s27 = scalar_lea.hbm %s12375_s3, 512 }
 0x93c   :  { %p11699_p5 = scmp.ne.s32.totalorder %s12375_s3, %s11698_s27  ;;  %p11702_p6 = scmp.lt.u32.totalorder %s11698_s27, %s12375_s3 }
 0x93e   :  { %p11704_p7 = pnand %p11702_p6, %p11699_p5 }
 0x940   :  { %11707 = shalt.err (!%p11704_p7)
}
 0x941   :  { %9404 = dma.vmem_to_hbm [thread:$0]  %s9402_s29, 512, %s12375_s3, [#allocation4]  }
 0x942   :  { %11724 = dma.done.wait [#allocation4], 512  }
 0x943   :  { %11725 = vsyncadd [#allocation4], 4294966784 }
 0x944   :  { %9408 = vsyncpa [#allocation3], 1 }
 0x945   :  { %9409 = vsyncpa [#allocation6], 1 }
 0x946   :  { %9410 = vsyncpa [#allocation9], 1 }
 0x947   :  { %9411 = vsyncpa [#allocation12], 1 }
 0x948   :  { %9412 = vsyncpa [#allocation15], 1 }
 0x949   :  { %9413 = vsyncpa [#allocation18], 1 }
 0x94a   :  { %9414 = vsyncpa [#allocation21], 1 }
 0x94b   :  { %9415 = vsyncpa [#allocation24], 1 }
 0x94c   :  { %9416 = vsyncpa [#allocation4], 1 }

</bundles_post_ra>
